<compile_context>
chip_gen: v7x
topology: tpu7x:2x2x1
jax: 0.10.0
libtpu: 0.0.40
codegen_flags: <defaults>
</compile_context>

<pallas_src>
import math

import jax
import jax.numpy as jnp
from jax.experimental import pallas as pl
from jax.experimental.pallas import tpu as pltpu

# ----------------------------- model hyper-params -----------------------------
VOCAB = 16
D_MODEL = 32
NUM_HEADS = 4
D_HEAD = D_MODEL // NUM_HEADS
D_FF = 64
N_LAYERS = 2
LN_EPS = 1e-6
NEG_INF = -1e9

NUM_ATTN = 3 * N_LAYERS          # enc-self (N), dec-self (N), dec-cross (N)
NUM_FFN = 2 * N_LAYERS           # enc (N) + dec (N)
NUM_LN = 5 * N_LAYERS + 2        # enc 2/layer + final, dec 3/layer + final

# attention-module index scheme (static Python ints, shared by packer + kernel)
#   encoder layer l  self-attn : l
#   decoder layer l  self-attn : N_LAYERS + 2*l
#   decoder layer l cross-attn : N_LAYERS + 2*l + 1
# layer-norm index scheme
#   encoder layer l: 2*l, 2*l+1 ; encoder final: 2*N_LAYERS
#   decoder layer l: 2*N_LAYERS+1 + 3*l + {0,1,2} ; decoder final: 2*N_LAYERS+1 + 3*N_LAYERS


# ------------------------------- fused Pallas kernel ---------------------------
def _encdec_kernel(src_ref, tgt_ref, encm_ref, dsm_ref, dcm_ref,
                   wq_ref, bq_ref, wkv_ref, bkv_ref, wo_ref, bo_ref,
                   fw1_ref, fb1_ref, fw2_ref, fb2_ref,
                   lng_ref, lnb_ref, out_ref):
    scale = 1.0 / math.sqrt(D_HEAD)

    def row(ref, i):
        # lane-dense (1, D) row of a stacked (N, D) parameter array
        return ref[pl.ds(i, 1)]

    def layer_norm(x, idx):
        # annotated-transformer LayerNorm: a2 * (x - mean) / (std_unbiased + eps) + b2
        mean = jnp.mean(x, axis=-1, keepdims=True)
        xc = x - mean
        var = jnp.sum(xc * xc, axis=-1, keepdims=True) * (1.0 / (D_MODEL - 1))
        inv = pl.reciprocal(jnp.sqrt(var) + LN_EPS, approx=False)   # EUP, parity-safe
        return (xc * inv) * row(lng_ref, idx) + row(lnb_ref, idx)

    def attention(xq, xkv, amask, aidx):
        # xq: (Lq, D), xkv: (Lk, D), amask: additive mask (Lq, Lk) with 0 / -1e9.
        # Fused lane-dense projections: one (Lq,32)@(32,32) and one (Lk,32)@(32,64).
        q_all = jnp.dot(xq, wq_ref[aidx],
                        preferred_element_type=jnp.float32) + row(bq_ref, aidx)    # (Lq, 32)
        kv_all = jnp.dot(xkv, wkv_ref[aidx],
                         preferred_element_type=jnp.float32) + row(bkv_ref, aidx)  # (Lk, 64)
        ctxs = []
        for h in range(NUM_HEADS):                         # static unroll
            q = q_all[:, h * D_HEAD:(h + 1) * D_HEAD]                      # (Lq, Dh)
            k = kv_all[:, h * D_HEAD:(h + 1) * D_HEAD]                     # (Lk, Dh)
            v = kv_all[:, D_MODEL + h * D_HEAD:D_MODEL + (h + 1) * D_HEAD]  # (Lk, Dh)
            s = jnp.einsum("qd,kd->qk", q, k,
                           preferred_element_type=jnp.float32) * scale + amask
            s = s - jnp.max(s, axis=-1, keepdims=True)
            e = jnp.exp(s)
            p = e * pl.reciprocal(jnp.sum(e, axis=-1, keepdims=True), approx=True)
            ctxs.append(jnp.dot(p, v, preferred_element_type=jnp.float32))  # (Lq, Dh)
        ctx = jnp.concatenate(ctxs, axis=-1)               # (Lq, 32): one 128-lane vreg
        return jnp.dot(ctx, wo_ref[aidx],
                       preferred_element_type=jnp.float32) + row(bo_ref, aidx)

    def feed_forward(x, fidx):
        h = jnp.dot(x, fw1_ref[fidx],
                    preferred_element_type=jnp.float32) + row(fb1_ref, fidx)
        h = jnp.maximum(h, 0.0)                            # ReLU
        return jnp.dot(h, fw2_ref[fidx],
                       preferred_element_type=jnp.float32) + row(fb2_ref, fidx)

    enc_amask = encm_ref[...]       # (B*LS, B*LS) block-diag additive source mask
    dself_amask = dsm_ref[...]      # (B*LT, B*LT) block-diag additive causal mask
    dcross_amask = dcm_ref[...]     # (B*LT, B*LS) block-diag additive cross mask

    # ----------------------------- encoder stack -----------------------------
    x = src_ref[...]                                      # (B*LS, D)
    for l in range(N_LAYERS):
        h = layer_norm(x, 2 * l)
        x = x + attention(h, h, enc_amask, l)
        h = layer_norm(x, 2 * l + 1)
        x = x + feed_forward(h, l)
    memory = layer_norm(x, 2 * N_LAYERS)

    # ----------------------------- decoder stack -----------------------------
    dec_ln0 = 2 * N_LAYERS + 1
    y = tgt_ref[...]                                      # (B*LT, D)
    for l in range(N_LAYERS):
        h = layer_norm(y, dec_ln0 + 3 * l)
        y = y + attention(h, h, dself_amask, N_LAYERS + 2 * l)              # masked self
        h = layer_norm(y, dec_ln0 + 3 * l + 1)
        y = y + attention(h, memory, dcross_amask, N_LAYERS + 2 * l + 1)    # cross
        h = layer_norm(y, dec_ln0 + 3 * l + 2)
        y = y + feed_forward(h, N_LAYERS + l)
    out_ref[...] = layer_norm(y, dec_ln0 + 3 * N_LAYERS)


# ------------------------------ pallas_call wrapper -----------------------------
def _full_spec(arr):
    shape = tuple(arr.shape)
    n = len(shape)
    return pl.BlockSpec(shape, lambda i, _n=n: (0,) * _n)


def positional_encoding(L, D):
    pos = jnp.arange(L, dtype=jnp.float32)[:, None]
    div = jnp.exp(jnp.arange(0, D, 2, dtype=jnp.float32) * (-math.log(10000.0) / D))
    pe = jnp.zeros((L, D), jnp.float32)
    pe = pe.at[:, 0::2].set(jnp.sin(pos * div))
    pe = pe.at[:, 1::2].set(jnp.cos(pos * div))
    return pe


def embed(tokens, emb_table):
    # emb lookup * sqrt(d_model) + sinusoidal PE (dropout = identity at eval)
    x = emb_table[tokens] * math.sqrt(D_MODEL)
    return x + positional_encoding(tokens.shape[1], D_MODEL)[None]


def encoder_decoder_forward(params, source, target, source_mask, target_mask):
    """source/target: (B, L) int tokens; source_mask: (B,1,LS) bool; target_mask: (B,LT,LT) bool."""
    B, LS = source.shape
    LT = target.shape[1]

    # batch folded into the row axis -> single grid step, 16 sublane rows per matmul
    src_x = embed(source, params["src_emb"]).reshape(B * LS, D_MODEL)
    tgt_x = embed(target, params["tgt_emb"]).reshape(B * LT, D_MODEL)

    # additive block-diagonal masks, built ONCE outside the kernel
    sb = jnp.repeat(jnp.arange(B), LS)                   # batch id per folded source row
    tb = jnp.repeat(jnp.arange(B), LT)                   # batch id per folded target row
    skey = source_mask.reshape(B * LS).astype(bool)
    enc_keep = (sb[:, None] == sb[None, :]) & skey[None, :]          # (B*LS, B*LS)
    cross_keep = (tb[:, None] == sb[None, :]) & skey[None, :]        # (B*LT, B*LS)
    dself_keep = (jnp.einsum("bc,bij->bicj", jnp.eye(B, dtype=jnp.float32),
                             target_mask.astype(jnp.float32)) > 0.5
                  ).reshape(B * LT, B * LT)                          # (B*LT, B*LT)
    enc_amask = jnp.where(enc_keep, 0.0, NEG_INF).astype(jnp.float32)
    dself_amask = jnp.where(dself_keep, 0.0, NEG_INF).astype(jnp.float32)
    cross_amask = jnp.where(cross_keep, 0.0, NEG_INF).astype(jnp.float32)

    inputs = (src_x, tgt_x, enc_amask, dself_amask, cross_amask,
              params["attn_wq"], params["attn_bq"],
              params["attn_wkv"], params["attn_bkv"],
              params["attn_wo"], params["attn_bo"],
              params["ffn_w1"], params["ffn_b1"],
              params["ffn_w2"], params["ffn_b2"],
              params["ln_g"], params["ln_b"])

    out_flat = pl.pallas_call(
        _encdec_kernel,
        out_shape=jax.ShapeDtypeStruct((B * LT, D_MODEL), jnp.float32),
        grid=(1,),
        in_specs=[_full_spec(a) for a in inputs],
        out_specs=pl.BlockSpec((B * LT, D_MODEL), lambda i: (0, 0)),
        compiler_params=pltpu.CompilerParams(dimension_semantics=("arbitrary",)),
    )(*inputs)
    return out_flat.reshape(B, LT, D_MODEL)


# --------------------------------- init params ---------------------------------
def init_params(key):
    ks = jax.random.split(key, 8)

    def w(k, shape):
        return jax.random.normal(k, shape, jnp.float32) * 0.02

    return {
        "src_emb": w(ks[0], (VOCAB, D_MODEL)),
        "tgt_emb": w(ks[1], (VOCAB, D_MODEL)),
        # lane-dense packed projections: Wq heads concatenated along lanes (D, H*Dh),
        # [Wk | Wv] heads concatenated along lanes (D, 2*H*Dh), Wo stacked over head-rows.
        "attn_wq": w(ks[2], (NUM_ATTN, D_MODEL, D_MODEL)),
        "attn_bq": jnp.zeros((NUM_ATTN, D_MODEL), jnp.float32),
        "attn_wkv": w(ks[3], (NUM_ATTN, D_MODEL, 2 * D_MODEL)),
        "attn_bkv": jnp.zeros((NUM_ATTN, 2 * D_MODEL), jnp.float32),
        "attn_wo": w(ks[4], (NUM_ATTN, D_MODEL, D_MODEL)),
        "attn_bo": jnp.zeros((NUM_ATTN, D_MODEL), jnp.float32),
        # position-wise FFNs, stacked over all FFN modules
        "ffn_w1": w(ks[5], (NUM_FFN, D_MODEL, D_FF)),
        "ffn_b1": jnp.zeros((NUM_FFN, D_FF), jnp.float32),
        "ffn_w2": w(ks[6], (NUM_FFN, D_FF, D_MODEL)),
        "ffn_b2": jnp.zeros((NUM_FFN, D_MODEL), jnp.float32),
        # all LayerNorms, stacked (2-D, lane-dense)
        "ln_g": jnp.ones((NUM_LN, D_MODEL), jnp.float32),
        "ln_b": jnp.zeros((NUM_LN, D_MODEL), jnp.float32),
    }


# ------------------------------------ main -------------------------------------
if __name__ == "__main__":
    key = jax.random.PRNGKey(0)
    pkey, skey, tkey = jax.random.split(key, 3)
    params = init_params(pkey)

    B, LS, LT = 2, 8, 8
    source = jax.random.randint(skey, (B, LS), 1, VOCAB)
    target = jax.random.randint(tkey, (B, LT), 1, VOCAB)
    source = source.at[:, -2:].set(0)                        # some padding tokens

    source_mask = (source != 0)[:, None, :]                  # (B, 1, LS)
    subsequent = jnp.tril(jnp.ones((LT, LT), dtype=bool))    # causal mask
    target_mask = (target != 0)[:, None, :] & subsequent[None]   # (B, LT, LT)

    out = jax.jit(encoder_decoder_forward)(params, source, target,
                                           source_mask, target_mask)
    out = jax.block_until_ready(out)
    assert out.shape == (B, LT, D_MODEL)
    assert bool(jnp.all(jnp.isfinite(out)))
    print("KERNEL_OK")
</pallas_src>

<mosaic_0001>
module attributes {stable_mosaic.version = 11 : i64} {
  func.func @_encdec_kernel(%arg0: i32, %arg1: memref<16x32xf32, #tpu.memory_space<vmem>>, %arg2: memref<16x32xf32, #tpu.memory_space<vmem>>, %arg3: memref<16x16xf32, #tpu.memory_space<vmem>>, %arg4: memref<16x16xf32, #tpu.memory_space<vmem>>, %arg5: memref<16x16xf32, #tpu.memory_space<vmem>>, %arg6: memref<6x32x32xf32, #tpu.memory_space<vmem>>, %arg7: memref<6x32xf32, #tpu.memory_space<vmem>>, %arg8: memref<6x32x64xf32, #tpu.memory_space<vmem>>, %arg9: memref<6x64xf32, #tpu.memory_space<vmem>>, %arg10: memref<6x32x32xf32, #tpu.memory_space<vmem>>, %arg11: memref<6x32xf32, #tpu.memory_space<vmem>>, %arg12: memref<4x32x64xf32, #tpu.memory_space<vmem>>, %arg13: memref<4x64xf32, #tpu.memory_space<vmem>>, %arg14: memref<4x64x32xf32, #tpu.memory_space<vmem>>, %arg15: memref<4x32xf32, #tpu.memory_space<vmem>>, %arg16: memref<12x32xf32, #tpu.memory_space<vmem>>, %arg17: memref<12x32xf32, #tpu.memory_space<vmem>>, %arg18: memref<16x32xf32, #tpu.memory_space<vmem>>) attributes {dimension_semantics = [#tpu.dimension_semantics<arbitrary>], iteration_bounds = array<i64: 1>, scalar_prefetch = 0 : i64, scratch_operands = 0 : i64, tpu.core_type = #tpu.core_type<tc>, window_params = [{pipeline_mode = #tpu.pipeline_mode<synchronous>, transform_indices = @transform_0, window_bounds = array<i64: 16, 32>}, {pipeline_mode = #tpu.pipeline_mode<synchronous>, transform_indices = @transform_1, window_bounds = array<i64: 16, 32>}, {pipeline_mode = #tpu.pipeline_mode<synchronous>, transform_indices = @transform_2, window_bounds = array<i64: 16, 16>}, {pipeline_mode = #tpu.pipeline_mode<synchronous>, transform_indices = @transform_3, window_bounds = array<i64: 16, 16>}, {pipeline_mode = #tpu.pipeline_mode<synchronous>, transform_indices = @transform_4, window_bounds = array<i64: 16, 16>}, {pipeline_mode = #tpu.pipeline_mode<synchronous>, transform_indices = @transform_5, window_bounds = array<i64: 6, 32, 32>}, {pipeline_mode = #tpu.pipeline_mode<synchronous>, transform_indices = @transform_6, window_bounds = array<i64: 6, 32>}, {pipeline_mode = #tpu.pipeline_mode<synchronous>, transform_indices = @transform_7, window_bounds = array<i64: 6, 32, 64>}, {pipeline_mode = #tpu.pipeline_mode<synchronous>, transform_indices = @transform_8, window_bounds = array<i64: 6, 64>}, {pipeline_mode = #tpu.pipeline_mode<synchronous>, transform_indices = @transform_9, window_bounds = array<i64: 6, 32, 32>}, {pipeline_mode = #tpu.pipeline_mode<synchronous>, transform_indices = @transform_10, window_bounds = array<i64: 6, 32>}, {pipeline_mode = #tpu.pipeline_mode<synchronous>, transform_indices = @transform_11, window_bounds = array<i64: 4, 32, 64>}, {pipeline_mode = #tpu.pipeline_mode<synchronous>, transform_indices = @transform_12, window_bounds = array<i64: 4, 64>}, {pipeline_mode = #tpu.pipeline_mode<synchronous>, transform_indices = @transform_13, window_bounds = array<i64: 4, 64, 32>}, {pipeline_mode = #tpu.pipeline_mode<synchronous>, transform_indices = @transform_14, window_bounds = array<i64: 4, 32>}, {pipeline_mode = #tpu.pipeline_mode<synchronous>, transform_indices = @transform_15, window_bounds = array<i64: 12, 32>}, {pipeline_mode = #tpu.pipeline_mode<synchronous>, transform_indices = @transform_16, window_bounds = array<i64: 12, 32>}, {pipeline_mode = #tpu.pipeline_mode<synchronous>, transform_indices = @transform_17, window_bounds = array<i64: 16, 32>}]} {
    %c0 = arith.constant 0 : index
    %c0_0 = arith.constant 0 : index
    %0 = vector.load %arg3[%c0, %c0_0] : memref<16x16xf32, #tpu.memory_space<vmem>>, vector<16x16xf32>
    %c0_1 = arith.constant 0 : index
    %c0_2 = arith.constant 0 : index
    %1 = vector.load %arg4[%c0_1, %c0_2] : memref<16x16xf32, #tpu.memory_space<vmem>>, vector<16x16xf32>
    %c0_3 = arith.constant 0 : index
    %c0_4 = arith.constant 0 : index
    %2 = vector.load %arg5[%c0_3, %c0_4] : memref<16x16xf32, #tpu.memory_space<vmem>>, vector<16x16xf32>
    %c0_5 = arith.constant 0 : index
    %c0_6 = arith.constant 0 : index
    %3 = vector.load %arg1[%c0_5, %c0_6] : memref<16x32xf32, #tpu.memory_space<vmem>>, vector<16x32xf32>
    %cst = arith.constant dense<0.000000e+00> : vector<16xf32>
    %4 = vector.multi_reduction <add>, %3, %cst [1] : vector<16x32xf32> to vector<16xf32>
    %5 = vector.shape_cast %4 : vector<16xf32> to vector<16x1xf32>
    %cst_7 = arith.constant 3.200000e+01 : f32
    %6 = vector.broadcast %cst_7 : f32 to vector<16x1xf32>
    %7 = arith.divf %5, %6 : vector<16x1xf32>
    %8 = vector.broadcast %7 : vector<16x1xf32> to vector<16x32xf32>
    %9 = arith.subf %3, %8 : vector<16x32xf32>
    %10 = arith.mulf %9, %9 : vector<16x32xf32>
    %cst_8 = arith.constant dense<0.000000e+00> : vector<16xf32>
    %11 = vector.multi_reduction <add>, %10, %cst_8 [1] : vector<16x32xf32> to vector<16xf32>
    %12 = vector.shape_cast %11 : vector<16xf32> to vector<16x1xf32>
    %cst_9 = arith.constant 0.0322580636 : f32
    %13 = vector.broadcast %cst_9 : f32 to vector<16x1xf32>
    %14 = arith.mulf %12, %13 : vector<16x1xf32>
    %15 = math.sqrt %14 : vector<16x1xf32>
    %cst_10 = arith.constant 9.99999997E-7 : f32
    %16 = vector.broadcast %cst_10 : f32 to vector<16x1xf32>
    %17 = arith.addf %15, %16 : vector<16x1xf32>
    %18 = tpu.reciprocal %17 : vector<16x1xf32> -> vector<16x1xf32>
    %19 = vector.broadcast %18 : vector<16x1xf32> to vector<16x32xf32>
    %20 = arith.mulf %9, %19 : vector<16x32xf32>
    %c0_11 = arith.constant 0 : index
    %c0_12 = arith.constant 0 : index
    %21 = vector.load %arg16[%c0_11, %c0_12] : memref<12x32xf32, #tpu.memory_space<vmem>>, vector<1x32xf32>
    %22 = vector.broadcast %21 : vector<1x32xf32> to vector<16x32xf32>
    %23 = arith.mulf %20, %22 : vector<16x32xf32>
    %c0_13 = arith.constant 0 : index
    %c0_14 = arith.constant 0 : index
    %24 = vector.load %arg17[%c0_13, %c0_14] : memref<12x32xf32, #tpu.memory_space<vmem>>, vector<1x32xf32>
    %25 = vector.broadcast %24 : vector<1x32xf32> to vector<16x32xf32>
    %26 = arith.addf %23, %25 : vector<16x32xf32>
    %c0_15 = arith.constant 0 : index
    %c0_16 = arith.constant 0 : index
    %c0_17 = arith.constant 0 : index
    %27 = vector.load %arg6[%c0_15, %c0_16, %c0_17] : memref<6x32x32xf32, #tpu.memory_space<vmem>>, vector<1x32x32xf32>
    %28 = vector.shape_cast %27 : vector<1x32x32xf32> to vector<32x32xf32>
    %cst_18 = arith.constant dense<0.000000e+00> : vector<16x32xf32>
    %29 = tpu.matmul %26, %28, %cst_18 {dimension_numbers = #tpu.dot_dimension_numbers<[1], [0], [0], [1], [0, 0, 1, 1], [], []>} : vector<16x32xf32>, vector<32x32xf32>, vector<16x32xf32> -> vector<16x32xf32>
    %c0_19 = arith.constant 0 : index
    %c0_20 = arith.constant 0 : index
    %30 = vector.load %arg7[%c0_19, %c0_20] : memref<6x32xf32, #tpu.memory_space<vmem>>, vector<1x32xf32>
    %31 = vector.broadcast %30 : vector<1x32xf32> to vector<16x32xf32>
    %32 = arith.addf %29, %31 : vector<16x32xf32>
    %c0_21 = arith.constant 0 : index
    %c0_22 = arith.constant 0 : index
    %c0_23 = arith.constant 0 : index
    %33 = vector.load %arg8[%c0_21, %c0_22, %c0_23] : memref<6x32x64xf32, #tpu.memory_space<vmem>>, vector<1x32x64xf32>
    %34 = vector.shape_cast %33 : vector<1x32x64xf32> to vector<32x64xf32>
    %cst_24 = arith.constant dense<0.000000e+00> : vector<16x64xf32>
    %35 = tpu.matmul %26, %34, %cst_24 {dimension_numbers = #tpu.dot_dimension_numbers<[1], [0], [0], [1], [0, 0, 1, 1], [], []>} : vector<16x32xf32>, vector<32x64xf32>, vector<16x64xf32> -> vector<16x64xf32>
    %c0_25 = arith.constant 0 : index
    %c0_26 = arith.constant 0 : index
    %36 = vector.load %arg9[%c0_25, %c0_26] : memref<6x64xf32, #tpu.memory_space<vmem>>, vector<1x64xf32>
    %37 = vector.broadcast %36 : vector<1x64xf32> to vector<16x64xf32>
    %38 = arith.addf %35, %37 : vector<16x64xf32>
    %39 = vector.extract_strided_slice %32 {offsets = [0, 0], sizes = [16, 8], strides = [1, 1]} : vector<16x32xf32> to vector<16x8xf32>
    %40 = vector.extract_strided_slice %38 {offsets = [0, 0], sizes = [16, 8], strides = [1, 1]} : vector<16x64xf32> to vector<16x8xf32>
    %41 = vector.extract_strided_slice %38 {offsets = [0, 32], sizes = [16, 8], strides = [1, 1]} : vector<16x64xf32> to vector<16x8xf32>
    "tpu.trace_start"() <{level = 10 : i32, message = "qd,kd->qk"}> : () -> ()
    %cst_27 = arith.constant dense<0.000000e+00> : vector<16x16xf32>
    %42 = tpu.matmul %39, %40, %cst_27 {dimension_numbers = #tpu.dot_dimension_numbers<[1], [1], [0], [0], [0, 0, 1, 0], [], []>} : vector<16x8xf32>, vector<16x8xf32>, vector<16x16xf32> -> vector<16x16xf32>
    "tpu.trace_stop"() : () -> ()
    %cst_28 = arith.constant 0.353553385 : f32
    %43 = vector.broadcast %cst_28 : f32 to vector<16x16xf32>
    %44 = arith.mulf %42, %43 : vector<16x16xf32>
    %45 = arith.addf %44, %0 : vector<16x16xf32>
    %cst_29 = arith.constant dense<0xFF800000> : vector<16xf32>
    %46 = vector.multi_reduction <maximumf>, %45, %cst_29 [1] : vector<16x16xf32> to vector<16xf32>
    %47 = vector.shape_cast %46 : vector<16xf32> to vector<16x1xf32>
    %48 = vector.broadcast %47 : vector<16x1xf32> to vector<16x16xf32>
    %49 = arith.subf %45, %48 : vector<16x16xf32>
    %50 = math.exp %49 : vector<16x16xf32>
    %cst_30 = arith.constant dense<0.000000e+00> : vector<16xf32>
    %51 = vector.multi_reduction <add>, %50, %cst_30 [1] : vector<16x16xf32> to vector<16xf32>
    %52 = vector.shape_cast %51 : vector<16xf32> to vector<16x1xf32>
    %53 = tpu.reciprocal %52 {approx = true} : vector<16x1xf32> -> vector<16x1xf32>
    %54 = vector.broadcast %53 : vector<16x1xf32> to vector<16x16xf32>
    %55 = arith.mulf %50, %54 : vector<16x16xf32>
    %cst_31 = arith.constant dense<0.000000e+00> : vector<16x8xf32>
    %56 = tpu.matmul %55, %41, %cst_31 {dimension_numbers = #tpu.dot_dimension_numbers<[1], [0], [0], [1], [0, 0, 1, 1], [], []>} : vector<16x16xf32>, vector<16x8xf32>, vector<16x8xf32> -> vector<16x8xf32>
    %57 = vector.extract_strided_slice %32 {offsets = [0, 8], sizes = [16, 8], strides = [1, 1]} : vector<16x32xf32> to vector<16x8xf32>
    %58 = vector.extract_strided_slice %38 {offsets = [0, 8], sizes = [16, 8], strides = [1, 1]} : vector<16x64xf32> to vector<16x8xf32>
    %59 = vector.extract_strided_slice %38 {offsets = [0, 40], sizes = [16, 8], strides = [1, 1]} : vector<16x64xf32> to vector<16x8xf32>
    "tpu.trace_start"() <{level = 10 : i32, message = "qd,kd->qk"}> : () -> ()
    %cst_32 = arith.constant dense<0.000000e+00> : vector<16x16xf32>
    %60 = tpu.matmul %57, %58, %cst_32 {dimension_numbers = #tpu.dot_dimension_numbers<[1], [1], [0], [0], [0, 0, 1, 0], [], []>} : vector<16x8xf32>, vector<16x8xf32>, vector<16x16xf32> -> vector<16x16xf32>
    "tpu.trace_stop"() : () -> ()
    %cst_33 = arith.constant 0.353553385 : f32
    %61 = vector.broadcast %cst_33 : f32 to vector<16x16xf32>
    %62 = arith.mulf %60, %61 : vector<16x16xf32>
    %63 = arith.addf %62, %0 : vector<16x16xf32>
    %cst_34 = arith.constant dense<0xFF800000> : vector<16xf32>
    %64 = vector.multi_reduction <maximumf>, %63, %cst_34 [1] : vector<16x16xf32> to vector<16xf32>
    %65 = vector.shape_cast %64 : vector<16xf32> to vector<16x1xf32>
    %66 = vector.broadcast %65 : vector<16x1xf32> to vector<16x16xf32>
    %67 = arith.subf %63, %66 : vector<16x16xf32>
    %68 = math.exp %67 : vector<16x16xf32>
    %cst_35 = arith.constant dense<0.000000e+00> : vector<16xf32>
    %69 = vector.multi_reduction <add>, %68, %cst_35 [1] : vector<16x16xf32> to vector<16xf32>
    %70 = vector.shape_cast %69 : vector<16xf32> to vector<16x1xf32>
    %71 = tpu.reciprocal %70 {approx = true} : vector<16x1xf32> -> vector<16x1xf32>
    %72 = vector.broadcast %71 : vector<16x1xf32> to vector<16x16xf32>
    %73 = arith.mulf %68, %72 : vector<16x16xf32>
    %cst_36 = arith.constant dense<0.000000e+00> : vector<16x8xf32>
    %74 = tpu.matmul %73, %59, %cst_36 {dimension_numbers = #tpu.dot_dimension_numbers<[1], [0], [0], [1], [0, 0, 1, 1], [], []>} : vector<16x16xf32>, vector<16x8xf32>, vector<16x8xf32> -> vector<16x8xf32>
    %75 = vector.extract_strided_slice %32 {offsets = [0, 16], sizes = [16, 8], strides = [1, 1]} : vector<16x32xf32> to vector<16x8xf32>
    %76 = vector.extract_strided_slice %38 {offsets = [0, 16], sizes = [16, 8], strides = [1, 1]} : vector<16x64xf32> to vector<16x8xf32>
    %77 = vector.extract_strided_slice %38 {offsets = [0, 48], sizes = [16, 8], strides = [1, 1]} : vector<16x64xf32> to vector<16x8xf32>
    "tpu.trace_start"() <{level = 10 : i32, message = "qd,kd->qk"}> : () -> ()
    %cst_37 = arith.constant dense<0.000000e+00> : vector<16x16xf32>
    %78 = tpu.matmul %75, %76, %cst_37 {dimension_numbers = #tpu.dot_dimension_numbers<[1], [1], [0], [0], [0, 0, 1, 0], [], []>} : vector<16x8xf32>, vector<16x8xf32>, vector<16x16xf32> -> vector<16x16xf32>
    "tpu.trace_stop"() : () -> ()
    %cst_38 = arith.constant 0.353553385 : f32
    %79 = vector.broadcast %cst_38 : f32 to vector<16x16xf32>
    %80 = arith.mulf %78, %79 : vector<16x16xf32>
    %81 = arith.addf %80, %0 : vector<16x16xf32>
    %cst_39 = arith.constant dense<0xFF800000> : vector<16xf32>
    %82 = vector.multi_reduction <maximumf>, %81, %cst_39 [1] : vector<16x16xf32> to vector<16xf32>
    %83 = vector.shape_cast %82 : vector<16xf32> to vector<16x1xf32>
    %84 = vector.broadcast %83 : vector<16x1xf32> to vector<16x16xf32>
    %85 = arith.subf %81, %84 : vector<16x16xf32>
    %86 = math.exp %85 : vector<16x16xf32>
    %cst_40 = arith.constant dense<0.000000e+00> : vector<16xf32>
    %87 = vector.multi_reduction <add>, %86, %cst_40 [1] : vector<16x16xf32> to vector<16xf32>
    %88 = vector.shape_cast %87 : vector<16xf32> to vector<16x1xf32>
    %89 = tpu.reciprocal %88 {approx = true} : vector<16x1xf32> -> vector<16x1xf32>
    %90 = vector.broadcast %89 : vector<16x1xf32> to vector<16x16xf32>
    %91 = arith.mulf %86, %90 : vector<16x16xf32>
    %cst_41 = arith.constant dense<0.000000e+00> : vector<16x8xf32>
    %92 = tpu.matmul %91, %77, %cst_41 {dimension_numbers = #tpu.dot_dimension_numbers<[1], [0], [0], [1], [0, 0, 1, 1], [], []>} : vector<16x16xf32>, vector<16x8xf32>, vector<16x8xf32> -> vector<16x8xf32>
    %93 = vector.extract_strided_slice %32 {offsets = [0, 24], sizes = [16, 8], strides = [1, 1]} : vector<16x32xf32> to vector<16x8xf32>
    %94 = vector.extract_strided_slice %38 {offsets = [0, 24], sizes = [16, 8], strides = [1, 1]} : vector<16x64xf32> to vector<16x8xf32>
    %95 = vector.extract_strided_slice %38 {offsets = [0, 56], sizes = [16, 8], strides = [1, 1]} : vector<16x64xf32> to vector<16x8xf32>
    "tpu.trace_start"() <{level = 10 : i32, message = "qd,kd->qk"}> : () -> ()
    %cst_42 = arith.constant dense<0.000000e+00> : vector<16x16xf32>
    %96 = tpu.matmul %93, %94, %cst_42 {dimension_numbers = #tpu.dot_dimension_numbers<[1], [1], [0], [0], [0, 0, 1, 0], [], []>} : vector<16x8xf32>, vector<16x8xf32>, vector<16x16xf32> -> vector<16x16xf32>
    "tpu.trace_stop"() : () -> ()
    %cst_43 = arith.constant 0.353553385 : f32
    %97 = vector.broadcast %cst_43 : f32 to vector<16x16xf32>
    %98 = arith.mulf %96, %97 : vector<16x16xf32>
    %99 = arith.addf %98, %0 : vector<16x16xf32>
    %cst_44 = arith.constant dense<0xFF800000> : vector<16xf32>
    %100 = vector.multi_reduction <maximumf>, %99, %cst_44 [1] : vector<16x16xf32> to vector<16xf32>
    %101 = vector.shape_cast %100 : vector<16xf32> to vector<16x1xf32>
    %102 = vector.broadcast %101 : vector<16x1xf32> to vector<16x16xf32>
    %103 = arith.subf %99, %102 : vector<16x16xf32>
    %104 = math.exp %103 : vector<16x16xf32>
    %cst_45 = arith.constant dense<0.000000e+00> : vector<16xf32>
    %105 = vector.multi_reduction <add>, %104, %cst_45 [1] : vector<16x16xf32> to vector<16xf32>
    %106 = vector.shape_cast %105 : vector<16xf32> to vector<16x1xf32>
    %107 = tpu.reciprocal %106 {approx = true} : vector<16x1xf32> -> vector<16x1xf32>
    %108 = vector.broadcast %107 : vector<16x1xf32> to vector<16x16xf32>
    %109 = arith.mulf %104, %108 : vector<16x16xf32>
    %cst_46 = arith.constant dense<0.000000e+00> : vector<16x8xf32>
    %110 = tpu.matmul %109, %95, %cst_46 {dimension_numbers = #tpu.dot_dimension_numbers<[1], [0], [0], [1], [0, 0, 1, 1], [], []>} : vector<16x16xf32>, vector<16x8xf32>, vector<16x8xf32> -> vector<16x8xf32>
    %111 = tpu.concatenate %56, %74, %92, %110 in 1 : vector<16x8xf32>, vector<16x8xf32>, vector<16x8xf32>, vector<16x8xf32> -> vector<16x32xf32>
    %c0_47 = arith.constant 0 : index
    %c0_48 = arith.constant 0 : index
    %c0_49 = arith.constant 0 : index
    %112 = vector.load %arg10[%c0_47, %c0_48, %c0_49] : memref<6x32x32xf32, #tpu.memory_space<vmem>>, vector<1x32x32xf32>
    %113 = vector.shape_cast %112 : vector<1x32x32xf32> to vector<32x32xf32>
    %cst_50 = arith.constant dense<0.000000e+00> : vector<16x32xf32>
    %114 = tpu.matmul %111, %113, %cst_50 {dimension_numbers = #tpu.dot_dimension_numbers<[1], [0], [0], [1], [0, 0, 1, 1], [], []>} : vector<16x32xf32>, vector<32x32xf32>, vector<16x32xf32> -> vector<16x32xf32>
    %c0_51 = arith.constant 0 : index
    %c0_52 = arith.constant 0 : index
    %115 = vector.load %arg11[%c0_51, %c0_52] : memref<6x32xf32, #tpu.memory_space<vmem>>, vector<1x32xf32>
    %116 = vector.broadcast %115 : vector<1x32xf32> to vector<16x32xf32>
    %117 = arith.addf %114, %116 : vector<16x32xf32>
    %118 = arith.addf %3, %117 : vector<16x32xf32>
    %cst_53 = arith.constant dense<0.000000e+00> : vector<16xf32>
    %119 = vector.multi_reduction <add>, %118, %cst_53 [1] : vector<16x32xf32> to vector<16xf32>
    %120 = vector.shape_cast %119 : vector<16xf32> to vector<16x1xf32>
    %cst_54 = arith.constant 3.200000e+01 : f32
    %121 = vector.broadcast %cst_54 : f32 to vector<16x1xf32>
    %122 = arith.divf %120, %121 : vector<16x1xf32>
    %123 = vector.broadcast %122 : vector<16x1xf32> to vector<16x32xf32>
    %124 = arith.subf %118, %123 : vector<16x32xf32>
    %125 = arith.mulf %124, %124 : vector<16x32xf32>
    %cst_55 = arith.constant dense<0.000000e+00> : vector<16xf32>
    %126 = vector.multi_reduction <add>, %125, %cst_55 [1] : vector<16x32xf32> to vector<16xf32>
    %127 = vector.shape_cast %126 : vector<16xf32> to vector<16x1xf32>
    %cst_56 = arith.constant 0.0322580636 : f32
    %128 = vector.broadcast %cst_56 : f32 to vector<16x1xf32>
    %129 = arith.mulf %127, %128 : vector<16x1xf32>
    %130 = math.sqrt %129 : vector<16x1xf32>
    %cst_57 = arith.constant 9.99999997E-7 : f32
    %131 = vector.broadcast %cst_57 : f32 to vector<16x1xf32>
    %132 = arith.addf %130, %131 : vector<16x1xf32>
    %133 = tpu.reciprocal %132 : vector<16x1xf32> -> vector<16x1xf32>
    %134 = vector.broadcast %133 : vector<16x1xf32> to vector<16x32xf32>
    %135 = arith.mulf %124, %134 : vector<16x32xf32>
    %c1 = arith.constant 1 : index
    %c0_58 = arith.constant 0 : index
    %136 = vector.load %arg16[%c1, %c0_58] : memref<12x32xf32, #tpu.memory_space<vmem>>, vector<1x32xf32>
    %137 = vector.broadcast %136 : vector<1x32xf32> to vector<16x32xf32>
    %138 = arith.mulf %135, %137 : vector<16x32xf32>
    %c1_59 = arith.constant 1 : index
    %c0_60 = arith.constant 0 : index
    %139 = vector.load %arg17[%c1_59, %c0_60] : memref<12x32xf32, #tpu.memory_space<vmem>>, vector<1x32xf32>
    %140 = vector.broadcast %139 : vector<1x32xf32> to vector<16x32xf32>
    %141 = arith.addf %138, %140 : vector<16x32xf32>
    %c0_61 = arith.constant 0 : index
    %c0_62 = arith.constant 0 : index
    %c0_63 = arith.constant 0 : index
    %142 = vector.load %arg12[%c0_61, %c0_62, %c0_63] : memref<4x32x64xf32, #tpu.memory_space<vmem>>, vector<1x32x64xf32>
    %143 = vector.shape_cast %142 : vector<1x32x64xf32> to vector<32x64xf32>
    %cst_64 = arith.constant dense<0.000000e+00> : vector<16x64xf32>
    %144 = tpu.matmul %141, %143, %cst_64 {dimension_numbers = #tpu.dot_dimension_numbers<[1], [0], [0], [1], [0, 0, 1, 1], [], []>} : vector<16x32xf32>, vector<32x64xf32>, vector<16x64xf32> -> vector<16x64xf32>
    %c0_65 = arith.constant 0 : index
    %c0_66 = arith.constant 0 : index
    %145 = vector.load %arg13[%c0_65, %c0_66] : memref<4x64xf32, #tpu.memory_space<vmem>>, vector<1x64xf32>
    %146 = vector.broadcast %145 : vector<1x64xf32> to vector<16x64xf32>
    %147 = arith.addf %144, %146 : vector<16x64xf32>
    %cst_67 = arith.constant 0.000000e+00 : f32
    %148 = vector.broadcast %cst_67 : f32 to vector<16x64xf32>
    %149 = arith.maximumf %147, %148 : vector<16x64xf32>
    %c0_68 = arith.constant 0 : index
    %c0_69 = arith.constant 0 : index
    %c0_70 = arith.constant 0 : index
    %150 = vector.load %arg14[%c0_68, %c0_69, %c0_70] : memref<4x64x32xf32, #tpu.memory_space<vmem>>, vector<1x64x32xf32>
    %151 = vector.shape_cast %150 : vector<1x64x32xf32> to vector<64x32xf32>
    %cst_71 = arith.constant dense<0.000000e+00> : vector<16x32xf32>
    %152 = tpu.matmul %149, %151, %cst_71 {dimension_numbers = #tpu.dot_dimension_numbers<[1], [0], [0], [1], [0, 0, 1, 1], [], []>} : vector<16x64xf32>, vector<64x32xf32>, vector<16x32xf32> -> vector<16x32xf32>
    %c0_72 = arith.constant 0 : index
    %c0_73 = arith.constant 0 : index
    %153 = vector.load %arg15[%c0_72, %c0_73] : memref<4x32xf32, #tpu.memory_space<vmem>>, vector<1x32xf32>
    %154 = vector.broadcast %153 : vector<1x32xf32> to vector<16x32xf32>
    %155 = arith.addf %152, %154 : vector<16x32xf32>
    %156 = arith.addf %118, %155 : vector<16x32xf32>
    %cst_74 = arith.constant dense<0.000000e+00> : vector<16xf32>
    %157 = vector.multi_reduction <add>, %156, %cst_74 [1] : vector<16x32xf32> to vector<16xf32>
    %158 = vector.shape_cast %157 : vector<16xf32> to vector<16x1xf32>
    %cst_75 = arith.constant 3.200000e+01 : f32
    %159 = vector.broadcast %cst_75 : f32 to vector<16x1xf32>
    %160 = arith.divf %158, %159 : vector<16x1xf32>
    %161 = vector.broadcast %160 : vector<16x1xf32> to vector<16x32xf32>
    %162 = arith.subf %156, %161 : vector<16x32xf32>
    %163 = arith.mulf %162, %162 : vector<16x32xf32>
    %cst_76 = arith.constant dense<0.000000e+00> : vector<16xf32>
    %164 = vector.multi_reduction <add>, %163, %cst_76 [1] : vector<16x32xf32> to vector<16xf32>
    %165 = vector.shape_cast %164 : vector<16xf32> to vector<16x1xf32>
    %cst_77 = arith.constant 0.0322580636 : f32
    %166 = vector.broadcast %cst_77 : f32 to vector<16x1xf32>
    %167 = arith.mulf %165, %166 : vector<16x1xf32>
    %168 = math.sqrt %167 : vector<16x1xf32>
    %cst_78 = arith.constant 9.99999997E-7 : f32
    %169 = vector.broadcast %cst_78 : f32 to vector<16x1xf32>
    %170 = arith.addf %168, %169 : vector<16x1xf32>
    %171 = tpu.reciprocal %170 : vector<16x1xf32> -> vector<16x1xf32>
    %172 = vector.broadcast %171 : vector<16x1xf32> to vector<16x32xf32>
    %173 = arith.mulf %162, %172 : vector<16x32xf32>
    %c2 = arith.constant 2 : index
    %c0_79 = arith.constant 0 : index
    %174 = vector.load %arg16[%c2, %c0_79] : memref<12x32xf32, #tpu.memory_space<vmem>>, vector<1x32xf32>
    %175 = vector.broadcast %174 : vector<1x32xf32> to vector<16x32xf32>
    %176 = arith.mulf %173, %175 : vector<16x32xf32>
    %c2_80 = arith.constant 2 : index
    %c0_81 = arith.constant 0 : index
    %177 = vector.load %arg17[%c2_80, %c0_81] : memref<12x32xf32, #tpu.memory_space<vmem>>, vector<1x32xf32>
    %178 = vector.broadcast %177 : vector<1x32xf32> to vector<16x32xf32>
    %179 = arith.addf %176, %178 : vector<16x32xf32>
    %c1_82 = arith.constant 1 : index
    %c0_83 = arith.constant 0 : index
    %c0_84 = arith.constant 0 : index
    %180 = vector.load %arg6[%c1_82, %c0_83, %c0_84] : memref<6x32x32xf32, #tpu.memory_space<vmem>>, vector<1x32x32xf32>
    %181 = vector.shape_cast %180 : vector<1x32x32xf32> to vector<32x32xf32>
    %cst_85 = arith.constant dense<0.000000e+00> : vector<16x32xf32>
    %182 = tpu.matmul %179, %181, %cst_85 {dimension_numbers = #tpu.dot_dimension_numbers<[1], [0], [0], [1], [0, 0, 1, 1], [], []>} : vector<16x32xf32>, vector<32x32xf32>, vector<16x32xf32> -> vector<16x32xf32>
    %c1_86 = arith.constant 1 : index
    %c0_87 = arith.constant 0 : index
    %183 = vector.load %arg7[%c1_86, %c0_87] : memref<6x32xf32, #tpu.memory_space<vmem>>, vector<1x32xf32>
    %184 = vector.broadcast %183 : vector<1x32xf32> to vector<16x32xf32>
    %185 = arith.addf %182, %184 : vector<16x32xf32>
    %c1_88 = arith.constant 1 : index
    %c0_89 = arith.constant 0 : index
    %c0_90 = arith.constant 0 : index
    %186 = vector.load %arg8[%c1_88, %c0_89, %c0_90] : memref<6x32x64xf32, #tpu.memory_space<vmem>>, vector<1x32x64xf32>
    %187 = vector.shape_cast %186 : vector<1x32x64xf32> to vector<32x64xf32>
    %cst_91 = arith.constant dense<0.000000e+00> : vector<16x64xf32>
    %188 = tpu.matmul %179, %187, %cst_91 {dimension_numbers = #tpu.dot_dimension_numbers<[1], [0], [0], [1], [0, 0, 1, 1], [], []>} : vector<16x32xf32>, vector<32x64xf32>, vector<16x64xf32> -> vector<16x64xf32>
    %c1_92 = arith.constant 1 : index
    %c0_93 = arith.constant 0 : index
    %189 = vector.load %arg9[%c1_92, %c0_93] : memref<6x64xf32, #tpu.memory_space<vmem>>, vector<1x64xf32>
    %190 = vector.broadcast %189 : vector<1x64xf32> to vector<16x64xf32>
    %191 = arith.addf %188, %190 : vector<16x64xf32>
    %192 = vector.extract_strided_slice %185 {offsets = [0, 0], sizes = [16, 8], strides = [1, 1]} : vector<16x32xf32> to vector<16x8xf32>
    %193 = vector.extract_strided_slice %191 {offsets = [0, 0], sizes = [16, 8], strides = [1, 1]} : vector<16x64xf32> to vector<16x8xf32>
    %194 = vector.extract_strided_slice %191 {offsets = [0, 32], sizes = [16, 8], strides = [1, 1]} : vector<16x64xf32> to vector<16x8xf32>
    "tpu.trace_start"() <{level = 10 : i32, message = "qd,kd->qk"}> : () -> ()
    %cst_94 = arith.constant dense<0.000000e+00> : vector<16x16xf32>
    %195 = tpu.matmul %192, %193, %cst_94 {dimension_numbers = #tpu.dot_dimension_numbers<[1], [1], [0], [0], [0, 0, 1, 0], [], []>} : vector<16x8xf32>, vector<16x8xf32>, vector<16x16xf32> -> vector<16x16xf32>
    "tpu.trace_stop"() : () -> ()
    %cst_95 = arith.constant 0.353553385 : f32
    %196 = vector.broadcast %cst_95 : f32 to vector<16x16xf32>
    %197 = arith.mulf %195, %196 : vector<16x16xf32>
    %198 = arith.addf %197, %0 : vector<16x16xf32>
    %cst_96 = arith.constant dense<0xFF800000> : vector<16xf32>
    %199 = vector.multi_reduction <maximumf>, %198, %cst_96 [1] : vector<16x16xf32> to vector<16xf32>
    %200 = vector.shape_cast %199 : vector<16xf32> to vector<16x1xf32>
    %201 = vector.broadcast %200 : vector<16x1xf32> to vector<16x16xf32>
    %202 = arith.subf %198, %201 : vector<16x16xf32>
    %203 = math.exp %202 : vector<16x16xf32>
    %cst_97 = arith.constant dense<0.000000e+00> : vector<16xf32>
    %204 = vector.multi_reduction <add>, %203, %cst_97 [1] : vector<16x16xf32> to vector<16xf32>
    %205 = vector.shape_cast %204 : vector<16xf32> to vector<16x1xf32>
    %206 = tpu.reciprocal %205 {approx = true} : vector<16x1xf32> -> vector<16x1xf32>
    %207 = vector.broadcast %206 : vector<16x1xf32> to vector<16x16xf32>
    %208 = arith.mulf %203, %207 : vector<16x16xf32>
    %cst_98 = arith.constant dense<0.000000e+00> : vector<16x8xf32>
    %209 = tpu.matmul %208, %194, %cst_98 {dimension_numbers = #tpu.dot_dimension_numbers<[1], [0], [0], [1], [0, 0, 1, 1], [], []>} : vector<16x16xf32>, vector<16x8xf32>, vector<16x8xf32> -> vector<16x8xf32>
    %210 = vector.extract_strided_slice %185 {offsets = [0, 8], sizes = [16, 8], strides = [1, 1]} : vector<16x32xf32> to vector<16x8xf32>
    %211 = vector.extract_strided_slice %191 {offsets = [0, 8], sizes = [16, 8], strides = [1, 1]} : vector<16x64xf32> to vector<16x8xf32>
    %212 = vector.extract_strided_slice %191 {offsets = [0, 40], sizes = [16, 8], strides = [1, 1]} : vector<16x64xf32> to vector<16x8xf32>
    "tpu.trace_start"() <{level = 10 : i32, message = "qd,kd->qk"}> : () -> ()
    %cst_99 = arith.constant dense<0.000000e+00> : vector<16x16xf32>
    %213 = tpu.matmul %210, %211, %cst_99 {dimension_numbers = #tpu.dot_dimension_numbers<[1], [1], [0], [0], [0, 0, 1, 0], [], []>} : vector<16x8xf32>, vector<16x8xf32>, vector<16x16xf32> -> vector<16x16xf32>
    "tpu.trace_stop"() : () -> ()
    %cst_100 = arith.constant 0.353553385 : f32
    %214 = vector.broadcast %cst_100 : f32 to vector<16x16xf32>
    %215 = arith.mulf %213, %214 : vector<16x16xf32>
    %216 = arith.addf %215, %0 : vector<16x16xf32>
    %cst_101 = arith.constant dense<0xFF800000> : vector<16xf32>
    %217 = vector.multi_reduction <maximumf>, %216, %cst_101 [1] : vector<16x16xf32> to vector<16xf32>
    %218 = vector.shape_cast %217 : vector<16xf32> to vector<16x1xf32>
    %219 = vector.broadcast %218 : vector<16x1xf32> to vector<16x16xf32>
    %220 = arith.subf %216, %219 : vector<16x16xf32>
    %221 = math.exp %220 : vector<16x16xf32>
    %cst_102 = arith.constant dense<0.000000e+00> : vector<16xf32>
    %222 = vector.multi_reduction <add>, %221, %cst_102 [1] : vector<16x16xf32> to vector<16xf32>
    %223 = vector.shape_cast %222 : vector<16xf32> to vector<16x1xf32>
    %224 = tpu.reciprocal %223 {approx = true} : vector<16x1xf32> -> vector<16x1xf32>
    %225 = vector.broadcast %224 : vector<16x1xf32> to vector<16x16xf32>
    %226 = arith.mulf %221, %225 : vector<16x16xf32>
    %cst_103 = arith.constant dense<0.000000e+00> : vector<16x8xf32>
    %227 = tpu.matmul %226, %212, %cst_103 {dimension_numbers = #tpu.dot_dimension_numbers<[1], [0], [0], [1], [0, 0, 1, 1], [], []>} : vector<16x16xf32>, vector<16x8xf32>, vector<16x8xf32> -> vector<16x8xf32>
    %228 = vector.extract_strided_slice %185 {offsets = [0, 16], sizes = [16, 8], strides = [1, 1]} : vector<16x32xf32> to vector<16x8xf32>
    %229 = vector.extract_strided_slice %191 {offsets = [0, 16], sizes = [16, 8], strides = [1, 1]} : vector<16x64xf32> to vector<16x8xf32>
    %230 = vector.extract_strided_slice %191 {offsets = [0, 48], sizes = [16, 8], strides = [1, 1]} : vector<16x64xf32> to vector<16x8xf32>
    "tpu.trace_start"() <{level = 10 : i32, message = "qd,kd->qk"}> : () -> ()
    %cst_104 = arith.constant dense<0.000000e+00> : vector<16x16xf32>
    %231 = tpu.matmul %228, %229, %cst_104 {dimension_numbers = #tpu.dot_dimension_numbers<[1], [1], [0], [0], [0, 0, 1, 0], [], []>} : vector<16x8xf32>, vector<16x8xf32>, vector<16x16xf32> -> vector<16x16xf32>
    "tpu.trace_stop"() : () -> ()
    %cst_105 = arith.constant 0.353553385 : f32
    %232 = vector.broadcast %cst_105 : f32 to vector<16x16xf32>
    %233 = arith.mulf %231, %232 : vector<16x16xf32>
    %234 = arith.addf %233, %0 : vector<16x16xf32>
    %cst_106 = arith.constant dense<0xFF800000> : vector<16xf32>
    %235 = vector.multi_reduction <maximumf>, %234, %cst_106 [1] : vector<16x16xf32> to vector<16xf32>
    %236 = vector.shape_cast %235 : vector<16xf32> to vector<16x1xf32>
    %237 = vector.broadcast %236 : vector<16x1xf32> to vector<16x16xf32>
    %238 = arith.subf %234, %237 : vector<16x16xf32>
    %239 = math.exp %238 : vector<16x16xf32>
    %cst_107 = arith.constant dense<0.000000e+00> : vector<16xf32>
    %240 = vector.multi_reduction <add>, %239, %cst_107 [1] : vector<16x16xf32> to vector<16xf32>
    %241 = vector.shape_cast %240 : vector<16xf32> to vector<16x1xf32>
    %242 = tpu.reciprocal %241 {approx = true} : vector<16x1xf32> -> vector<16x1xf32>
    %243 = vector.broadcast %242 : vector<16x1xf32> to vector<16x16xf32>
    %244 = arith.mulf %239, %243 : vector<16x16xf32>
    %cst_108 = arith.constant dense<0.000000e+00> : vector<16x8xf32>
    %245 = tpu.matmul %244, %230, %cst_108 {dimension_numbers = #tpu.dot_dimension_numbers<[1], [0], [0], [1], [0, 0, 1, 1], [], []>} : vector<16x16xf32>, vector<16x8xf32>, vector<16x8xf32> -> vector<16x8xf32>
    %246 = vector.extract_strided_slice %185 {offsets = [0, 24], sizes = [16, 8], strides = [1, 1]} : vector<16x32xf32> to vector<16x8xf32>
    %247 = vector.extract_strided_slice %191 {offsets = [0, 24], sizes = [16, 8], strides = [1, 1]} : vector<16x64xf32> to vector<16x8xf32>
    %248 = vector.extract_strided_slice %191 {offsets = [0, 56], sizes = [16, 8], strides = [1, 1]} : vector<16x64xf32> to vector<16x8xf32>
    "tpu.trace_start"() <{level = 10 : i32, message = "qd,kd->qk"}> : () -> ()
    %cst_109 = arith.constant dense<0.000000e+00> : vector<16x16xf32>
    %249 = tpu.matmul %246, %247, %cst_109 {dimension_numbers = #tpu.dot_dimension_numbers<[1], [1], [0], [0], [0, 0, 1, 0], [], []>} : vector<16x8xf32>, vector<16x8xf32>, vector<16x16xf32> -> vector<16x16xf32>
    "tpu.trace_stop"() : () -> ()
    %cst_110 = arith.constant 0.353553385 : f32
    %250 = vector.broadcast %cst_110 : f32 to vector<16x16xf32>
    %251 = arith.mulf %249, %250 : vector<16x16xf32>
    %252 = arith.addf %251, %0 : vector<16x16xf32>
    %cst_111 = arith.constant dense<0xFF800000> : vector<16xf32>
    %253 = vector.multi_reduction <maximumf>, %252, %cst_111 [1] : vector<16x16xf32> to vector<16xf32>
    %254 = vector.shape_cast %253 : vector<16xf32> to vector<16x1xf32>
    %255 = vector.broadcast %254 : vector<16x1xf32> to vector<16x16xf32>
    %256 = arith.subf %252, %255 : vector<16x16xf32>
    %257 = math.exp %256 : vector<16x16xf32>
    %cst_112 = arith.constant dense<0.000000e+00> : vector<16xf32>
    %258 = vector.multi_reduction <add>, %257, %cst_112 [1] : vector<16x16xf32> to vector<16xf32>
    %259 = vector.shape_cast %258 : vector<16xf32> to vector<16x1xf32>
    %260 = tpu.reciprocal %259 {approx = true} : vector<16x1xf32> -> vector<16x1xf32>
    %261 = vector.broadcast %260 : vector<16x1xf32> to vector<16x16xf32>
    %262 = arith.mulf %257, %261 : vector<16x16xf32>
    %cst_113 = arith.constant dense<0.000000e+00> : vector<16x8xf32>
    %263 = tpu.matmul %262, %248, %cst_113 {dimension_numbers = #tpu.dot_dimension_numbers<[1], [0], [0], [1], [0, 0, 1, 1], [], []>} : vector<16x16xf32>, vector<16x8xf32>, vector<16x8xf32> -> vector<16x8xf32>
    %264 = tpu.concatenate %209, %227, %245, %263 in 1 : vector<16x8xf32>, vector<16x8xf32>, vector<16x8xf32>, vector<16x8xf32> -> vector<16x32xf32>
    %c1_114 = arith.constant 1 : index
    %c0_115 = arith.constant 0 : index
    %c0_116 = arith.constant 0 : index
    %265 = vector.load %arg10[%c1_114, %c0_115, %c0_116] : memref<6x32x32xf32, #tpu.memory_space<vmem>>, vector<1x32x32xf32>
    %266 = vector.shape_cast %265 : vector<1x32x32xf32> to vector<32x32xf32>
    %cst_117 = arith.constant dense<0.000000e+00> : vector<16x32xf32>
    %267 = tpu.matmul %264, %266, %cst_117 {dimension_numbers = #tpu.dot_dimension_numbers<[1], [0], [0], [1], [0, 0, 1, 1], [], []>} : vector<16x32xf32>, vector<32x32xf32>, vector<16x32xf32> -> vector<16x32xf32>
    %c1_118 = arith.constant 1 : index
    %c0_119 = arith.constant 0 : index
    %268 = vector.load %arg11[%c1_118, %c0_119] : memref<6x32xf32, #tpu.memory_space<vmem>>, vector<1x32xf32>
    %269 = vector.broadcast %268 : vector<1x32xf32> to vector<16x32xf32>
    %270 = arith.addf %267, %269 : vector<16x32xf32>
    %271 = arith.addf %156, %270 : vector<16x32xf32>
    %cst_120 = arith.constant dense<0.000000e+00> : vector<16xf32>
    %272 = vector.multi_reduction <add>, %271, %cst_120 [1] : vector<16x32xf32> to vector<16xf32>
    %273 = vector.shape_cast %272 : vector<16xf32> to vector<16x1xf32>
    %cst_121 = arith.constant 3.200000e+01 : f32
    %274 = vector.broadcast %cst_121 : f32 to vector<16x1xf32>
    %275 = arith.divf %273, %274 : vector<16x1xf32>
    %276 = vector.broadcast %275 : vector<16x1xf32> to vector<16x32xf32>
    %277 = arith.subf %271, %276 : vector<16x32xf32>
    %278 = arith.mulf %277, %277 : vector<16x32xf32>
    %cst_122 = arith.constant dense<0.000000e+00> : vector<16xf32>
    %279 = vector.multi_reduction <add>, %278, %cst_122 [1] : vector<16x32xf32> to vector<16xf32>
    %280 = vector.shape_cast %279 : vector<16xf32> to vector<16x1xf32>
    %cst_123 = arith.constant 0.0322580636 : f32
    %281 = vector.broadcast %cst_123 : f32 to vector<16x1xf32>
    %282 = arith.mulf %280, %281 : vector<16x1xf32>
    %283 = math.sqrt %282 : vector<16x1xf32>
    %cst_124 = arith.constant 9.99999997E-7 : f32
    %284 = vector.broadcast %cst_124 : f32 to vector<16x1xf32>
    %285 = arith.addf %283, %284 : vector<16x1xf32>
    %286 = tpu.reciprocal %285 : vector<16x1xf32> -> vector<16x1xf32>
    %287 = vector.broadcast %286 : vector<16x1xf32> to vector<16x32xf32>
    %288 = arith.mulf %277, %287 : vector<16x32xf32>
    %c3 = arith.constant 3 : index
    %c0_125 = arith.constant 0 : index
    %289 = vector.load %arg16[%c3, %c0_125] : memref<12x32xf32, #tpu.memory_space<vmem>>, vector<1x32xf32>
    %290 = vector.broadcast %289 : vector<1x32xf32> to vector<16x32xf32>
    %291 = arith.mulf %288, %290 : vector<16x32xf32>
    %c3_126 = arith.constant 3 : index
    %c0_127 = arith.constant 0 : index
    %292 = vector.load %arg17[%c3_126, %c0_127] : memref<12x32xf32, #tpu.memory_space<vmem>>, vector<1x32xf32>
    %293 = vector.broadcast %292 : vector<1x32xf32> to vector<16x32xf32>
    %294 = arith.addf %291, %293 : vector<16x32xf32>
    %c1_128 = arith.constant 1 : index
    %c0_129 = arith.constant 0 : index
    %c0_130 = arith.constant 0 : index
    %295 = vector.load %arg12[%c1_128, %c0_129, %c0_130] : memref<4x32x64xf32, #tpu.memory_space<vmem>>, vector<1x32x64xf32>
    %296 = vector.shape_cast %295 : vector<1x32x64xf32> to vector<32x64xf32>
    %cst_131 = arith.constant dense<0.000000e+00> : vector<16x64xf32>
    %297 = tpu.matmul %294, %296, %cst_131 {dimension_numbers = #tpu.dot_dimension_numbers<[1], [0], [0], [1], [0, 0, 1, 1], [], []>} : vector<16x32xf32>, vector<32x64xf32>, vector<16x64xf32> -> vector<16x64xf32>
    %c1_132 = arith.constant 1 : index
    %c0_133 = arith.constant 0 : index
    %298 = vector.load %arg13[%c1_132, %c0_133] : memref<4x64xf32, #tpu.memory_space<vmem>>, vector<1x64xf32>
    %299 = vector.broadcast %298 : vector<1x64xf32> to vector<16x64xf32>
    %300 = arith.addf %297, %299 : vector<16x64xf32>
    %cst_134 = arith.constant 0.000000e+00 : f32
    %301 = vector.broadcast %cst_134 : f32 to vector<16x64xf32>
    %302 = arith.maximumf %300, %301 : vector<16x64xf32>
    %c1_135 = arith.constant 1 : index
    %c0_136 = arith.constant 0 : index
    %c0_137 = arith.constant 0 : index
    %303 = vector.load %arg14[%c1_135, %c0_136, %c0_137] : memref<4x64x32xf32, #tpu.memory_space<vmem>>, vector<1x64x32xf32>
    %304 = vector.shape_cast %303 : vector<1x64x32xf32> to vector<64x32xf32>
    %cst_138 = arith.constant dense<0.000000e+00> : vector<16x32xf32>
    %305 = tpu.matmul %302, %304, %cst_138 {dimension_numbers = #tpu.dot_dimension_numbers<[1], [0], [0], [1], [0, 0, 1, 1], [], []>} : vector<16x64xf32>, vector<64x32xf32>, vector<16x32xf32> -> vector<16x32xf32>
    %c1_139 = arith.constant 1 : index
    %c0_140 = arith.constant 0 : index
    %306 = vector.load %arg15[%c1_139, %c0_140] : memref<4x32xf32, #tpu.memory_space<vmem>>, vector<1x32xf32>
    %307 = vector.broadcast %306 : vector<1x32xf32> to vector<16x32xf32>
    %308 = arith.addf %305, %307 : vector<16x32xf32>
    %309 = arith.addf %271, %308 : vector<16x32xf32>
    %cst_141 = arith.constant dense<0.000000e+00> : vector<16xf32>
    %310 = vector.multi_reduction <add>, %309, %cst_141 [1] : vector<16x32xf32> to vector<16xf32>
    %311 = vector.shape_cast %310 : vector<16xf32> to vector<16x1xf32>
    %cst_142 = arith.constant 3.200000e+01 : f32
    %312 = vector.broadcast %cst_142 : f32 to vector<16x1xf32>
    %313 = arith.divf %311, %312 : vector<16x1xf32>
    %314 = vector.broadcast %313 : vector<16x1xf32> to vector<16x32xf32>
    %315 = arith.subf %309, %314 : vector<16x32xf32>
    %316 = arith.mulf %315, %315 : vector<16x32xf32>
    %cst_143 = arith.constant dense<0.000000e+00> : vector<16xf32>
    %317 = vector.multi_reduction <add>, %316, %cst_143 [1] : vector<16x32xf32> to vector<16xf32>
    %318 = vector.shape_cast %317 : vector<16xf32> to vector<16x1xf32>
    %cst_144 = arith.constant 0.0322580636 : f32
    %319 = vector.broadcast %cst_144 : f32 to vector<16x1xf32>
    %320 = arith.mulf %318, %319 : vector<16x1xf32>
    %321 = math.sqrt %320 : vector<16x1xf32>
    %cst_145 = arith.constant 9.99999997E-7 : f32
    %322 = vector.broadcast %cst_145 : f32 to vector<16x1xf32>
    %323 = arith.addf %321, %322 : vector<16x1xf32>
    %324 = tpu.reciprocal %323 : vector<16x1xf32> -> vector<16x1xf32>
    %325 = vector.broadcast %324 : vector<16x1xf32> to vector<16x32xf32>
    %326 = arith.mulf %315, %325 : vector<16x32xf32>
    %c4 = arith.constant 4 : index
    %c0_146 = arith.constant 0 : index
    %327 = vector.load %arg16[%c4, %c0_146] : memref<12x32xf32, #tpu.memory_space<vmem>>, vector<1x32xf32>
    %328 = vector.broadcast %327 : vector<1x32xf32> to vector<16x32xf32>
    %329 = arith.mulf %326, %328 : vector<16x32xf32>
    %c4_147 = arith.constant 4 : index
    %c0_148 = arith.constant 0 : index
    %330 = vector.load %arg17[%c4_147, %c0_148] : memref<12x32xf32, #tpu.memory_space<vmem>>, vector<1x32xf32>
    %331 = vector.broadcast %330 : vector<1x32xf32> to vector<16x32xf32>
    %332 = arith.addf %329, %331 : vector<16x32xf32>
    %c0_149 = arith.constant 0 : index
    %c0_150 = arith.constant 0 : index
    %333 = vector.load %arg2[%c0_149, %c0_150] : memref<16x32xf32, #tpu.memory_space<vmem>>, vector<16x32xf32>
    %cst_151 = arith.constant dense<0.000000e+00> : vector<16xf32>
    %334 = vector.multi_reduction <add>, %333, %cst_151 [1] : vector<16x32xf32> to vector<16xf32>
    %335 = vector.shape_cast %334 : vector<16xf32> to vector<16x1xf32>
    %cst_152 = arith.constant 3.200000e+01 : f32
    %336 = vector.broadcast %cst_152 : f32 to vector<16x1xf32>
    %337 = arith.divf %335, %336 : vector<16x1xf32>
    %338 = vector.broadcast %337 : vector<16x1xf32> to vector<16x32xf32>
    %339 = arith.subf %333, %338 : vector<16x32xf32>
    %340 = arith.mulf %339, %339 : vector<16x32xf32>
    %cst_153 = arith.constant dense<0.000000e+00> : vector<16xf32>
    %341 = vector.multi_reduction <add>, %340, %cst_153 [1] : vector<16x32xf32> to vector<16xf32>
    %342 = vector.shape_cast %341 : vector<16xf32> to vector<16x1xf32>
    %cst_154 = arith.constant 0.0322580636 : f32
    %343 = vector.broadcast %cst_154 : f32 to vector<16x1xf32>
    %344 = arith.mulf %342, %343 : vector<16x1xf32>
    %345 = math.sqrt %344 : vector<16x1xf32>
    %cst_155 = arith.constant 9.99999997E-7 : f32
    %346 = vector.broadcast %cst_155 : f32 to vector<16x1xf32>
    %347 = arith.addf %345, %346 : vector<16x1xf32>
    %348 = tpu.reciprocal %347 : vector<16x1xf32> -> vector<16x1xf32>
    %349 = vector.broadcast %348 : vector<16x1xf32> to vector<16x32xf32>
    %350 = arith.mulf %339, %349 : vector<16x32xf32>
    %c5 = arith.constant 5 : index
    %c0_156 = arith.constant 0 : index
    %351 = vector.load %arg16[%c5, %c0_156] : memref<12x32xf32, #tpu.memory_space<vmem>>, vector<1x32xf32>
    %352 = vector.broadcast %351 : vector<1x32xf32> to vector<16x32xf32>
    %353 = arith.mulf %350, %352 : vector<16x32xf32>
    %c5_157 = arith.constant 5 : index
    %c0_158 = arith.constant 0 : index
    %354 = vector.load %arg17[%c5_157, %c0_158] : memref<12x32xf32, #tpu.memory_space<vmem>>, vector<1x32xf32>
    %355 = vector.broadcast %354 : vector<1x32xf32> to vector<16x32xf32>
    %356 = arith.addf %353, %355 : vector<16x32xf32>
    %c2_159 = arith.constant 2 : index
    %c0_160 = arith.constant 0 : index
    %c0_161 = arith.constant 0 : index
    %357 = vector.load %arg6[%c2_159, %c0_160, %c0_161] : memref<6x32x32xf32, #tpu.memory_space<vmem>>, vector<1x32x32xf32>
    %358 = vector.shape_cast %357 : vector<1x32x32xf32> to vector<32x32xf32>
    %cst_162 = arith.constant dense<0.000000e+00> : vector<16x32xf32>
    %359 = tpu.matmul %356, %358, %cst_162 {dimension_numbers = #tpu.dot_dimension_numbers<[1], [0], [0], [1], [0, 0, 1, 1], [], []>} : vector<16x32xf32>, vector<32x32xf32>, vector<16x32xf32> -> vector<16x32xf32>
    %c2_163 = arith.constant 2 : index
    %c0_164 = arith.constant 0 : index
    %360 = vector.load %arg7[%c2_163, %c0_164] : memref<6x32xf32, #tpu.memory_space<vmem>>, vector<1x32xf32>
    %361 = vector.broadcast %360 : vector<1x32xf32> to vector<16x32xf32>
    %362 = arith.addf %359, %361 : vector<16x32xf32>
    %c2_165 = arith.constant 2 : index
    %c0_166 = arith.constant 0 : index
    %c0_167 = arith.constant 0 : index
    %363 = vector.load %arg8[%c2_165, %c0_166, %c0_167] : memref<6x32x64xf32, #tpu.memory_space<vmem>>, vector<1x32x64xf32>
    %364 = vector.shape_cast %363 : vector<1x32x64xf32> to vector<32x64xf32>
    %cst_168 = arith.constant dense<0.000000e+00> : vector<16x64xf32>
    %365 = tpu.matmul %356, %364, %cst_168 {dimension_numbers = #tpu.dot_dimension_numbers<[1], [0], [0], [1], [0, 0, 1, 1], [], []>} : vector<16x32xf32>, vector<32x64xf32>, vector<16x64xf32> -> vector<16x64xf32>
    %c2_169 = arith.constant 2 : index
    %c0_170 = arith.constant 0 : index
    %366 = vector.load %arg9[%c2_169, %c0_170] : memref<6x64xf32, #tpu.memory_space<vmem>>, vector<1x64xf32>
    %367 = vector.broadcast %366 : vector<1x64xf32> to vector<16x64xf32>
    %368 = arith.addf %365, %367 : vector<16x64xf32>
    %369 = vector.extract_strided_slice %362 {offsets = [0, 0], sizes = [16, 8], strides = [1, 1]} : vector<16x32xf32> to vector<16x8xf32>
    %370 = vector.extract_strided_slice %368 {offsets = [0, 0], sizes = [16, 8], strides = [1, 1]} : vector<16x64xf32> to vector<16x8xf32>
    %371 = vector.extract_strided_slice %368 {offsets = [0, 32], sizes = [16, 8], strides = [1, 1]} : vector<16x64xf32> to vector<16x8xf32>
    "tpu.trace_start"() <{level = 10 : i32, message = "qd,kd->qk"}> : () -> ()
    %cst_171 = arith.constant dense<0.000000e+00> : vector<16x16xf32>
    %372 = tpu.matmul %369, %370, %cst_171 {dimension_numbers = #tpu.dot_dimension_numbers<[1], [1], [0], [0], [0, 0, 1, 0], [], []>} : vector<16x8xf32>, vector<16x8xf32>, vector<16x16xf32> -> vector<16x16xf32>
    "tpu.trace_stop"() : () -> ()
    %cst_172 = arith.constant 0.353553385 : f32
    %373 = vector.broadcast %cst_172 : f32 to vector<16x16xf32>
    %374 = arith.mulf %372, %373 : vector<16x16xf32>
    %375 = arith.addf %374, %1 : vector<16x16xf32>
    %cst_173 = arith.constant dense<0xFF800000> : vector<16xf32>
    %376 = vector.multi_reduction <maximumf>, %375, %cst_173 [1] : vector<16x16xf32> to vector<16xf32>
    %377 = vector.shape_cast %376 : vector<16xf32> to vector<16x1xf32>
    %378 = vector.broadcast %377 : vector<16x1xf32> to vector<16x16xf32>
    %379 = arith.subf %375, %378 : vector<16x16xf32>
    %380 = math.exp %379 : vector<16x16xf32>
    %cst_174 = arith.constant dense<0.000000e+00> : vector<16xf32>
    %381 = vector.multi_reduction <add>, %380, %cst_174 [1] : vector<16x16xf32> to vector<16xf32>
    %382 = vector.shape_cast %381 : vector<16xf32> to vector<16x1xf32>
    %383 = tpu.reciprocal %382 {approx = true} : vector<16x1xf32> -> vector<16x1xf32>
    %384 = vector.broadcast %383 : vector<16x1xf32> to vector<16x16xf32>
    %385 = arith.mulf %380, %384 : vector<16x16xf32>
    %cst_175 = arith.constant dense<0.000000e+00> : vector<16x8xf32>
    %386 = tpu.matmul %385, %371, %cst_175 {dimension_numbers = #tpu.dot_dimension_numbers<[1], [0], [0], [1], [0, 0, 1, 1], [], []>} : vector<16x16xf32>, vector<16x8xf32>, vector<16x8xf32> -> vector<16x8xf32>
    %387 = vector.extract_strided_slice %362 {offsets = [0, 8], sizes = [16, 8], strides = [1, 1]} : vector<16x32xf32> to vector<16x8xf32>
    %388 = vector.extract_strided_slice %368 {offsets = [0, 8], sizes = [16, 8], strides = [1, 1]} : vector<16x64xf32> to vector<16x8xf32>
    %389 = vector.extract_strided_slice %368 {offsets = [0, 40], sizes = [16, 8], strides = [1, 1]} : vector<16x64xf32> to vector<16x8xf32>
    "tpu.trace_start"() <{level = 10 : i32, message = "qd,kd->qk"}> : () -> ()
    %cst_176 = arith.constant dense<0.000000e+00> : vector<16x16xf32>
    %390 = tpu.matmul %387, %388, %cst_176 {dimension_numbers = #tpu.dot_dimension_numbers<[1], [1], [0], [0], [0, 0, 1, 0], [], []>} : vector<16x8xf32>, vector<16x8xf32>, vector<16x16xf32> -> vector<16x16xf32>
    "tpu.trace_stop"() : () -> ()
    %cst_177 = arith.constant 0.353553385 : f32
    %391 = vector.broadcast %cst_177 : f32 to vector<16x16xf32>
    %392 = arith.mulf %390, %391 : vector<16x16xf32>
    %393 = arith.addf %392, %1 : vector<16x16xf32>
    %cst_178 = arith.constant dense<0xFF800000> : vector<16xf32>
    %394 = vector.multi_reduction <maximumf>, %393, %cst_178 [1] : vector<16x16xf32> to vector<16xf32>
    %395 = vector.shape_cast %394 : vector<16xf32> to vector<16x1xf32>
    %396 = vector.broadcast %395 : vector<16x1xf32> to vector<16x16xf32>
    %397 = arith.subf %393, %396 : vector<16x16xf32>
    %398 = math.exp %397 : vector<16x16xf32>
    %cst_179 = arith.constant dense<0.000000e+00> : vector<16xf32>
    %399 = vector.multi_reduction <add>, %398, %cst_179 [1] : vector<16x16xf32> to vector<16xf32>
    %400 = vector.shape_cast %399 : vector<16xf32> to vector<16x1xf32>
    %401 = tpu.reciprocal %400 {approx = true} : vector<16x1xf32> -> vector<16x1xf32>
    %402 = vector.broadcast %401 : vector<16x1xf32> to vector<16x16xf32>
    %403 = arith.mulf %398, %402 : vector<16x16xf32>
    %cst_180 = arith.constant dense<0.000000e+00> : vector<16x8xf32>
    %404 = tpu.matmul %403, %389, %cst_180 {dimension_numbers = #tpu.dot_dimension_numbers<[1], [0], [0], [1], [0, 0, 1, 1], [], []>} : vector<16x16xf32>, vector<16x8xf32>, vector<16x8xf32> -> vector<16x8xf32>
    %405 = vector.extract_strided_slice %362 {offsets = [0, 16], sizes = [16, 8], strides = [1, 1]} : vector<16x32xf32> to vector<16x8xf32>
    %406 = vector.extract_strided_slice %368 {offsets = [0, 16], sizes = [16, 8], strides = [1, 1]} : vector<16x64xf32> to vector<16x8xf32>
    %407 = vector.extract_strided_slice %368 {offsets = [0, 48], sizes = [16, 8], strides = [1, 1]} : vector<16x64xf32> to vector<16x8xf32>
    "tpu.trace_start"() <{level = 10 : i32, message = "qd,kd->qk"}> : () -> ()
    %cst_181 = arith.constant dense<0.000000e+00> : vector<16x16xf32>
    %408 = tpu.matmul %405, %406, %cst_181 {dimension_numbers = #tpu.dot_dimension_numbers<[1], [1], [0], [0], [0, 0, 1, 0], [], []>} : vector<16x8xf32>, vector<16x8xf32>, vector<16x16xf32> -> vector<16x16xf32>
    "tpu.trace_stop"() : () -> ()
    %cst_182 = arith.constant 0.353553385 : f32
    %409 = vector.broadcast %cst_182 : f32 to vector<16x16xf32>
    %410 = arith.mulf %408, %409 : vector<16x16xf32>
    %411 = arith.addf %410, %1 : vector<16x16xf32>
    %cst_183 = arith.constant dense<0xFF800000> : vector<16xf32>
    %412 = vector.multi_reduction <maximumf>, %411, %cst_183 [1] : vector<16x16xf32> to vector<16xf32>
    %413 = vector.shape_cast %412 : vector<16xf32> to vector<16x1xf32>
    %414 = vector.broadcast %413 : vector<16x1xf32> to vector<16x16xf32>
    %415 = arith.subf %411, %414 : vector<16x16xf32>
    %416 = math.exp %415 : vector<16x16xf32>
    %cst_184 = arith.constant dense<0.000000e+00> : vector<16xf32>
    %417 = vector.multi_reduction <add>, %416, %cst_184 [1] : vector<16x16xf32> to vector<16xf32>
    %418 = vector.shape_cast %417 : vector<16xf32> to vector<16x1xf32>
    %419 = tpu.reciprocal %418 {approx = true} : vector<16x1xf32> -> vector<16x1xf32>
    %420 = vector.broadcast %419 : vector<16x1xf32> to vector<16x16xf32>
    %421 = arith.mulf %416, %420 : vector<16x16xf32>
    %cst_185 = arith.constant dense<0.000000e+00> : vector<16x8xf32>
    %422 = tpu.matmul %421, %407, %cst_185 {dimension_numbers = #tpu.dot_dimension_numbers<[1], [0], [0], [1], [0, 0, 1, 1], [], []>} : vector<16x16xf32>, vector<16x8xf32>, vector<16x8xf32> -> vector<16x8xf32>
    %423 = vector.extract_strided_slice %362 {offsets = [0, 24], sizes = [16, 8], strides = [1, 1]} : vector<16x32xf32> to vector<16x8xf32>
    %424 = vector.extract_strided_slice %368 {offsets = [0, 24], sizes = [16, 8], strides = [1, 1]} : vector<16x64xf32> to vector<16x8xf32>
    %425 = vector.extract_strided_slice %368 {offsets = [0, 56], sizes = [16, 8], strides = [1, 1]} : vector<16x64xf32> to vector<16x8xf32>
    "tpu.trace_start"() <{level = 10 : i32, message = "qd,kd->qk"}> : () -> ()
    %cst_186 = arith.constant dense<0.000000e+00> : vector<16x16xf32>
    %426 = tpu.matmul %423, %424, %cst_186 {dimension_numbers = #tpu.dot_dimension_numbers<[1], [1], [0], [0], [0, 0, 1, 0], [], []>} : vector<16x8xf32>, vector<16x8xf32>, vector<16x16xf32> -> vector<16x16xf32>
    "tpu.trace_stop"() : () -> ()
    %cst_187 = arith.constant 0.353553385 : f32
    %427 = vector.broadcast %cst_187 : f32 to vector<16x16xf32>
    %428 = arith.mulf %426, %427 : vector<16x16xf32>
    %429 = arith.addf %428, %1 : vector<16x16xf32>
    %cst_188 = arith.constant dense<0xFF800000> : vector<16xf32>
    %430 = vector.multi_reduction <maximumf>, %429, %cst_188 [1] : vector<16x16xf32> to vector<16xf32>
    %431 = vector.shape_cast %430 : vector<16xf32> to vector<16x1xf32>
    %432 = vector.broadcast %431 : vector<16x1xf32> to vector<16x16xf32>
    %433 = arith.subf %429, %432 : vector<16x16xf32>
    %434 = math.exp %433 : vector<16x16xf32>
    %cst_189 = arith.constant dense<0.000000e+00> : vector<16xf32>
    %435 = vector.multi_reduction <add>, %434, %cst_189 [1] : vector<16x16xf32> to vector<16xf32>
    %436 = vector.shape_cast %435 : vector<16xf32> to vector<16x1xf32>
    %437 = tpu.reciprocal %436 {approx = true} : vector<16x1xf32> -> vector<16x1xf32>
    %438 = vector.broadcast %437 : vector<16x1xf32> to vector<16x16xf32>
    %439 = arith.mulf %434, %438 : vector<16x16xf32>
    %cst_190 = arith.constant dense<0.000000e+00> : vector<16x8xf32>
    %440 = tpu.matmul %439, %425, %cst_190 {dimension_numbers = #tpu.dot_dimension_numbers<[1], [0], [0], [1], [0, 0, 1, 1], [], []>} : vector<16x16xf32>, vector<16x8xf32>, vector<16x8xf32> -> vector<16x8xf32>
    %441 = tpu.concatenate %386, %404, %422, %440 in 1 : vector<16x8xf32>, vector<16x8xf32>, vector<16x8xf32>, vector<16x8xf32> -> vector<16x32xf32>
    %c2_191 = arith.constant 2 : index
    %c0_192 = arith.constant 0 : index
    %c0_193 = arith.constant 0 : index
    %442 = vector.load %arg10[%c2_191, %c0_192, %c0_193] : memref<6x32x32xf32, #tpu.memory_space<vmem>>, vector<1x32x32xf32>
    %443 = vector.shape_cast %442 : vector<1x32x32xf32> to vector<32x32xf32>
    %cst_194 = arith.constant dense<0.000000e+00> : vector<16x32xf32>
    %444 = tpu.matmul %441, %443, %cst_194 {dimension_numbers = #tpu.dot_dimension_numbers<[1], [0], [0], [1], [0, 0, 1, 1], [], []>} : vector<16x32xf32>, vector<32x32xf32>, vector<16x32xf32> -> vector<16x32xf32>
    %c2_195 = arith.constant 2 : index
    %c0_196 = arith.constant 0 : index
    %445 = vector.load %arg11[%c2_195, %c0_196] : memref<6x32xf32, #tpu.memory_space<vmem>>, vector<1x32xf32>
    %446 = vector.broadcast %445 : vector<1x32xf32> to vector<16x32xf32>
    %447 = arith.addf %444, %446 : vector<16x32xf32>
    %448 = arith.addf %333, %447 : vector<16x32xf32>
    %cst_197 = arith.constant dense<0.000000e+00> : vector<16xf32>
    %449 = vector.multi_reduction <add>, %448, %cst_197 [1] : vector<16x32xf32> to vector<16xf32>
    %450 = vector.shape_cast %449 : vector<16xf32> to vector<16x1xf32>
    %cst_198 = arith.constant 3.200000e+01 : f32
    %451 = vector.broadcast %cst_198 : f32 to vector<16x1xf32>
    %452 = arith.divf %450, %451 : vector<16x1xf32>
    %453 = vector.broadcast %452 : vector<16x1xf32> to vector<16x32xf32>
    %454 = arith.subf %448, %453 : vector<16x32xf32>
    %455 = arith.mulf %454, %454 : vector<16x32xf32>
    %cst_199 = arith.constant dense<0.000000e+00> : vector<16xf32>
    %456 = vector.multi_reduction <add>, %455, %cst_199 [1] : vector<16x32xf32> to vector<16xf32>
    %457 = vector.shape_cast %456 : vector<16xf32> to vector<16x1xf32>
    %cst_200 = arith.constant 0.0322580636 : f32
    %458 = vector.broadcast %cst_200 : f32 to vector<16x1xf32>
    %459 = arith.mulf %457, %458 : vector<16x1xf32>
    %460 = math.sqrt %459 : vector<16x1xf32>
    %cst_201 = arith.constant 9.99999997E-7 : f32
    %461 = vector.broadcast %cst_201 : f32 to vector<16x1xf32>
    %462 = arith.addf %460, %461 : vector<16x1xf32>
    %463 = tpu.reciprocal %462 : vector<16x1xf32> -> vector<16x1xf32>
    %464 = vector.broadcast %463 : vector<16x1xf32> to vector<16x32xf32>
    %465 = arith.mulf %454, %464 : vector<16x32xf32>
    %c6 = arith.constant 6 : index
    %c0_202 = arith.constant 0 : index
    %466 = vector.load %arg16[%c6, %c0_202] : memref<12x32xf32, #tpu.memory_space<vmem>>, vector<1x32xf32>
    %467 = vector.broadcast %466 : vector<1x32xf32> to vector<16x32xf32>
    %468 = arith.mulf %465, %467 : vector<16x32xf32>
    %c6_203 = arith.constant 6 : index
    %c0_204 = arith.constant 0 : index
    %469 = vector.load %arg17[%c6_203, %c0_204] : memref<12x32xf32, #tpu.memory_space<vmem>>, vector<1x32xf32>
    %470 = vector.broadcast %469 : vector<1x32xf32> to vector<16x32xf32>
    %471 = arith.addf %468, %470 : vector<16x32xf32>
    %c3_205 = arith.constant 3 : index
    %c0_206 = arith.constant 0 : index
    %c0_207 = arith.constant 0 : index
    %472 = vector.load %arg6[%c3_205, %c0_206, %c0_207] : memref<6x32x32xf32, #tpu.memory_space<vmem>>, vector<1x32x32xf32>
    %473 = vector.shape_cast %472 : vector<1x32x32xf32> to vector<32x32xf32>
    %cst_208 = arith.constant dense<0.000000e+00> : vector<16x32xf32>
    %474 = tpu.matmul %471, %473, %cst_208 {dimension_numbers = #tpu.dot_dimension_numbers<[1], [0], [0], [1], [0, 0, 1, 1], [], []>} : vector<16x32xf32>, vector<32x32xf32>, vector<16x32xf32> -> vector<16x32xf32>
    %c3_209 = arith.constant 3 : index
    %c0_210 = arith.constant 0 : index
    %475 = vector.load %arg7[%c3_209, %c0_210] : memref<6x32xf32, #tpu.memory_space<vmem>>, vector<1x32xf32>
    %476 = vector.broadcast %475 : vector<1x32xf32> to vector<16x32xf32>
    %477 = arith.addf %474, %476 : vector<16x32xf32>
    %c3_211 = arith.constant 3 : index
    %c0_212 = arith.constant 0 : index
    %c0_213 = arith.constant 0 : index
    %478 = vector.load %arg8[%c3_211, %c0_212, %c0_213] : memref<6x32x64xf32, #tpu.memory_space<vmem>>, vector<1x32x64xf32>
    %479 = vector.shape_cast %478 : vector<1x32x64xf32> to vector<32x64xf32>
    %cst_214 = arith.constant dense<0.000000e+00> : vector<16x64xf32>
    %480 = tpu.matmul %332, %479, %cst_214 {dimension_numbers = #tpu.dot_dimension_numbers<[1], [0], [0], [1], [0, 0, 1, 1], [], []>} : vector<16x32xf32>, vector<32x64xf32>, vector<16x64xf32> -> vector<16x64xf32>
    %c3_215 = arith.constant 3 : index
    %c0_216 = arith.constant 0 : index
    %481 = vector.load %arg9[%c3_215, %c0_216] : memref<6x64xf32, #tpu.memory_space<vmem>>, vector<1x64xf32>
    %482 = vector.broadcast %481 : vector<1x64xf32> to vector<16x64xf32>
    %483 = arith.addf %480, %482 : vector<16x64xf32>
    %484 = vector.extract_strided_slice %477 {offsets = [0, 0], sizes = [16, 8], strides = [1, 1]} : vector<16x32xf32> to vector<16x8xf32>
    %485 = vector.extract_strided_slice %483 {offsets = [0, 0], sizes = [16, 8], strides = [1, 1]} : vector<16x64xf32> to vector<16x8xf32>
    %486 = vector.extract_strided_slice %483 {offsets = [0, 32], sizes = [16, 8], strides = [1, 1]} : vector<16x64xf32> to vector<16x8xf32>
    "tpu.trace_start"() <{level = 10 : i32, message = "qd,kd->qk"}> : () -> ()
    %cst_217 = arith.constant dense<0.000000e+00> : vector<16x16xf32>
    %487 = tpu.matmul %484, %485, %cst_217 {dimension_numbers = #tpu.dot_dimension_numbers<[1], [1], [0], [0], [0, 0, 1, 0], [], []>} : vector<16x8xf32>, vector<16x8xf32>, vector<16x16xf32> -> vector<16x16xf32>
    "tpu.trace_stop"() : () -> ()
    %cst_218 = arith.constant 0.353553385 : f32
    %488 = vector.broadcast %cst_218 : f32 to vector<16x16xf32>
    %489 = arith.mulf %487, %488 : vector<16x16xf32>
    %490 = arith.addf %489, %2 : vector<16x16xf32>
    %cst_219 = arith.constant dense<0xFF800000> : vector<16xf32>
    %491 = vector.multi_reduction <maximumf>, %490, %cst_219 [1] : vector<16x16xf32> to vector<16xf32>
    %492 = vector.shape_cast %491 : vector<16xf32> to vector<16x1xf32>
    %493 = vector.broadcast %492 : vector<16x1xf32> to vector<16x16xf32>
    %494 = arith.subf %490, %493 : vector<16x16xf32>
    %495 = math.exp %494 : vector<16x16xf32>
    %cst_220 = arith.constant dense<0.000000e+00> : vector<16xf32>
    %496 = vector.multi_reduction <add>, %495, %cst_220 [1] : vector<16x16xf32> to vector<16xf32>
    %497 = vector.shape_cast %496 : vector<16xf32> to vector<16x1xf32>
    %498 = tpu.reciprocal %497 {approx = true} : vector<16x1xf32> -> vector<16x1xf32>
    %499 = vector.broadcast %498 : vector<16x1xf32> to vector<16x16xf32>
    %500 = arith.mulf %495, %499 : vector<16x16xf32>
    %cst_221 = arith.constant dense<0.000000e+00> : vector<16x8xf32>
    %501 = tpu.matmul %500, %486, %cst_221 {dimension_numbers = #tpu.dot_dimension_numbers<[1], [0], [0], [1], [0, 0, 1, 1], [], []>} : vector<16x16xf32>, vector<16x8xf32>, vector<16x8xf32> -> vector<16x8xf32>
    %502 = vector.extract_strided_slice %477 {offsets = [0, 8], sizes = [16, 8], strides = [1, 1]} : vector<16x32xf32> to vector<16x8xf32>
    %503 = vector.extract_strided_slice %483 {offsets = [0, 8], sizes = [16, 8], strides = [1, 1]} : vector<16x64xf32> to vector<16x8xf32>
    %504 = vector.extract_strided_slice %483 {offsets = [0, 40], sizes = [16, 8], strides = [1, 1]} : vector<16x64xf32> to vector<16x8xf32>
    "tpu.trace_start"() <{level = 10 : i32, message = "qd,kd->qk"}> : () -> ()
    %cst_222 = arith.constant dense<0.000000e+00> : vector<16x16xf32>
    %505 = tpu.matmul %502, %503, %cst_222 {dimension_numbers = #tpu.dot_dimension_numbers<[1], [1], [0], [0], [0, 0, 1, 0], [], []>} : vector<16x8xf32>, vector<16x8xf32>, vector<16x16xf32> -> vector<16x16xf32>
    "tpu.trace_stop"() : () -> ()
    %cst_223 = arith.constant 0.353553385 : f32
    %506 = vector.broadcast %cst_223 : f32 to vector<16x16xf32>
    %507 = arith.mulf %505, %506 : vector<16x16xf32>
    %508 = arith.addf %507, %2 : vector<16x16xf32>
    %cst_224 = arith.constant dense<0xFF800000> : vector<16xf32>
    %509 = vector.multi_reduction <maximumf>, %508, %cst_224 [1] : vector<16x16xf32> to vector<16xf32>
    %510 = vector.shape_cast %509 : vector<16xf32> to vector<16x1xf32>
    %511 = vector.broadcast %510 : vector<16x1xf32> to vector<16x16xf32>
    %512 = arith.subf %508, %511 : vector<16x16xf32>
    %513 = math.exp %512 : vector<16x16xf32>
    %cst_225 = arith.constant dense<0.000000e+00> : vector<16xf32>
    %514 = vector.multi_reduction <add>, %513, %cst_225 [1] : vector<16x16xf32> to vector<16xf32>
    %515 = vector.shape_cast %514 : vector<16xf32> to vector<16x1xf32>
    %516 = tpu.reciprocal %515 {approx = true} : vector<16x1xf32> -> vector<16x1xf32>
    %517 = vector.broadcast %516 : vector<16x1xf32> to vector<16x16xf32>
    %518 = arith.mulf %513, %517 : vector<16x16xf32>
    %cst_226 = arith.constant dense<0.000000e+00> : vector<16x8xf32>
    %519 = tpu.matmul %518, %504, %cst_226 {dimension_numbers = #tpu.dot_dimension_numbers<[1], [0], [0], [1], [0, 0, 1, 1], [], []>} : vector<16x16xf32>, vector<16x8xf32>, vector<16x8xf32> -> vector<16x8xf32>
    %520 = vector.extract_strided_slice %477 {offsets = [0, 16], sizes = [16, 8], strides = [1, 1]} : vector<16x32xf32> to vector<16x8xf32>
    %521 = vector.extract_strided_slice %483 {offsets = [0, 16], sizes = [16, 8], strides = [1, 1]} : vector<16x64xf32> to vector<16x8xf32>
    %522 = vector.extract_strided_slice %483 {offsets = [0, 48], sizes = [16, 8], strides = [1, 1]} : vector<16x64xf32> to vector<16x8xf32>
    "tpu.trace_start"() <{level = 10 : i32, message = "qd,kd->qk"}> : () -> ()
    %cst_227 = arith.constant dense<0.000000e+00> : vector<16x16xf32>
    %523 = tpu.matmul %520, %521, %cst_227 {dimension_numbers = #tpu.dot_dimension_numbers<[1], [1], [0], [0], [0, 0, 1, 0], [], []>} : vector<16x8xf32>, vector<16x8xf32>, vector<16x16xf32> -> vector<16x16xf32>
    "tpu.trace_stop"() : () -> ()
    %cst_228 = arith.constant 0.353553385 : f32
    %524 = vector.broadcast %cst_228 : f32 to vector<16x16xf32>
    %525 = arith.mulf %523, %524 : vector<16x16xf32>
    %526 = arith.addf %525, %2 : vector<16x16xf32>
    %cst_229 = arith.constant dense<0xFF800000> : vector<16xf32>
    %527 = vector.multi_reduction <maximumf>, %526, %cst_229 [1] : vector<16x16xf32> to vector<16xf32>
    %528 = vector.shape_cast %527 : vector<16xf32> to vector<16x1xf32>
    %529 = vector.broadcast %528 : vector<16x1xf32> to vector<16x16xf32>
    %530 = arith.subf %526, %529 : vector<16x16xf32>
    %531 = math.exp %530 : vector<16x16xf32>
    %cst_230 = arith.constant dense<0.000000e+00> : vector<16xf32>
    %532 = vector.multi_reduction <add>, %531, %cst_230 [1] : vector<16x16xf32> to vector<16xf32>
    %533 = vector.shape_cast %532 : vector<16xf32> to vector<16x1xf32>
    %534 = tpu.reciprocal %533 {approx = true} : vector<16x1xf32> -> vector<16x1xf32>
    %535 = vector.broadcast %534 : vector<16x1xf32> to vector<16x16xf32>
    %536 = arith.mulf %531, %535 : vector<16x16xf32>
    %cst_231 = arith.constant dense<0.000000e+00> : vector<16x8xf32>
    %537 = tpu.matmul %536, %522, %cst_231 {dimension_numbers = #tpu.dot_dimension_numbers<[1], [0], [0], [1], [0, 0, 1, 1], [], []>} : vector<16x16xf32>, vector<16x8xf32>, vector<16x8xf32> -> vector<16x8xf32>
    %538 = vector.extract_strided_slice %477 {offsets = [0, 24], sizes = [16, 8], strides = [1, 1]} : vector<16x32xf32> to vector<16x8xf32>
    %539 = vector.extract_strided_slice %483 {offsets = [0, 24], sizes = [16, 8], strides = [1, 1]} : vector<16x64xf32> to vector<16x8xf32>
    %540 = vector.extract_strided_slice %483 {offsets = [0, 56], sizes = [16, 8], strides = [1, 1]} : vector<16x64xf32> to vector<16x8xf32>
    "tpu.trace_start"() <{level = 10 : i32, message = "qd,kd->qk"}> : () -> ()
    %cst_232 = arith.constant dense<0.000000e+00> : vector<16x16xf32>
    %541 = tpu.matmul %538, %539, %cst_232 {dimension_numbers = #tpu.dot_dimension_numbers<[1], [1], [0], [0], [0, 0, 1, 0], [], []>} : vector<16x8xf32>, vector<16x8xf32>, vector<16x16xf32> -> vector<16x16xf32>
    "tpu.trace_stop"() : () -> ()
    %cst_233 = arith.constant 0.353553385 : f32
    %542 = vector.broadcast %cst_233 : f32 to vector<16x16xf32>
    %543 = arith.mulf %541, %542 : vector<16x16xf32>
    %544 = arith.addf %543, %2 : vector<16x16xf32>
    %cst_234 = arith.constant dense<0xFF800000> : vector<16xf32>
    %545 = vector.multi_reduction <maximumf>, %544, %cst_234 [1] : vector<16x16xf32> to vector<16xf32>
    %546 = vector.shape_cast %545 : vector<16xf32> to vector<16x1xf32>
    %547 = vector.broadcast %546 : vector<16x1xf32> to vector<16x16xf32>
    %548 = arith.subf %544, %547 : vector<16x16xf32>
    %549 = math.exp %548 : vector<16x16xf32>
    %cst_235 = arith.constant dense<0.000000e+00> : vector<16xf32>
    %550 = vector.multi_reduction <add>, %549, %cst_235 [1] : vector<16x16xf32> to vector<16xf32>
    %551 = vector.shape_cast %550 : vector<16xf32> to vector<16x1xf32>
    %552 = tpu.reciprocal %551 {approx = true} : vector<16x1xf32> -> vector<16x1xf32>
    %553 = vector.broadcast %552 : vector<16x1xf32> to vector<16x16xf32>
    %554 = arith.mulf %549, %553 : vector<16x16xf32>
    %cst_236 = arith.constant dense<0.000000e+00> : vector<16x8xf32>
    %555 = tpu.matmul %554, %540, %cst_236 {dimension_numbers = #tpu.dot_dimension_numbers<[1], [0], [0], [1], [0, 0, 1, 1], [], []>} : vector<16x16xf32>, vector<16x8xf32>, vector<16x8xf32> -> vector<16x8xf32>
    %556 = tpu.concatenate %501, %519, %537, %555 in 1 : vector<16x8xf32>, vector<16x8xf32>, vector<16x8xf32>, vector<16x8xf32> -> vector<16x32xf32>
    %c3_237 = arith.constant 3 : index
    %c0_238 = arith.constant 0 : index
    %c0_239 = arith.constant 0 : index
    %557 = vector.load %arg10[%c3_237, %c0_238, %c0_239] : memref<6x32x32xf32, #tpu.memory_space<vmem>>, vector<1x32x32xf32>
    %558 = vector.shape_cast %557 : vector<1x32x32xf32> to vector<32x32xf32>
    %cst_240 = arith.constant dense<0.000000e+00> : vector<16x32xf32>
    %559 = tpu.matmul %556, %558, %cst_240 {dimension_numbers = #tpu.dot_dimension_numbers<[1], [0], [0], [1], [0, 0, 1, 1], [], []>} : vector<16x32xf32>, vector<32x32xf32>, vector<16x32xf32> -> vector<16x32xf32>
    %c3_241 = arith.constant 3 : index
    %c0_242 = arith.constant 0 : index
    %560 = vector.load %arg11[%c3_241, %c0_242] : memref<6x32xf32, #tpu.memory_space<vmem>>, vector<1x32xf32>
    %561 = vector.broadcast %560 : vector<1x32xf32> to vector<16x32xf32>
    %562 = arith.addf %559, %561 : vector<16x32xf32>
    %563 = arith.addf %448, %562 : vector<16x32xf32>
    %cst_243 = arith.constant dense<0.000000e+00> : vector<16xf32>
    %564 = vector.multi_reduction <add>, %563, %cst_243 [1] : vector<16x32xf32> to vector<16xf32>
    %565 = vector.shape_cast %564 : vector<16xf32> to vector<16x1xf32>
    %cst_244 = arith.constant 3.200000e+01 : f32
    %566 = vector.broadcast %cst_244 : f32 to vector<16x1xf32>
    %567 = arith.divf %565, %566 : vector<16x1xf32>
    %568 = vector.broadcast %567 : vector<16x1xf32> to vector<16x32xf32>
    %569 = arith.subf %563, %568 : vector<16x32xf32>
    %570 = arith.mulf %569, %569 : vector<16x32xf32>
    %cst_245 = arith.constant dense<0.000000e+00> : vector<16xf32>
    %571 = vector.multi_reduction <add>, %570, %cst_245 [1] : vector<16x32xf32> to vector<16xf32>
    %572 = vector.shape_cast %571 : vector<16xf32> to vector<16x1xf32>
    %cst_246 = arith.constant 0.0322580636 : f32
    %573 = vector.broadcast %cst_246 : f32 to vector<16x1xf32>
    %574 = arith.mulf %572, %573 : vector<16x1xf32>
    %575 = math.sqrt %574 : vector<16x1xf32>
    %cst_247 = arith.constant 9.99999997E-7 : f32
    %576 = vector.broadcast %cst_247 : f32 to vector<16x1xf32>
    %577 = arith.addf %575, %576 : vector<16x1xf32>
    %578 = tpu.reciprocal %577 : vector<16x1xf32> -> vector<16x1xf32>
    %579 = vector.broadcast %578 : vector<16x1xf32> to vector<16x32xf32>
    %580 = arith.mulf %569, %579 : vector<16x32xf32>
    %c7 = arith.constant 7 : index
    %c0_248 = arith.constant 0 : index
    %581 = vector.load %arg16[%c7, %c0_248] : memref<12x32xf32, #tpu.memory_space<vmem>>, vector<1x32xf32>
    %582 = vector.broadcast %581 : vector<1x32xf32> to vector<16x32xf32>
    %583 = arith.mulf %580, %582 : vector<16x32xf32>
    %c7_249 = arith.constant 7 : index
    %c0_250 = arith.constant 0 : index
    %584 = vector.load %arg17[%c7_249, %c0_250] : memref<12x32xf32, #tpu.memory_space<vmem>>, vector<1x32xf32>
    %585 = vector.broadcast %584 : vector<1x32xf32> to vector<16x32xf32>
    %586 = arith.addf %583, %585 : vector<16x32xf32>
    %c2_251 = arith.constant 2 : index
    %c0_252 = arith.constant 0 : index
    %c0_253 = arith.constant 0 : index
    %587 = vector.load %arg12[%c2_251, %c0_252, %c0_253] : memref<4x32x64xf32, #tpu.memory_space<vmem>>, vector<1x32x64xf32>
    %588 = vector.shape_cast %587 : vector<1x32x64xf32> to vector<32x64xf32>
    %cst_254 = arith.constant dense<0.000000e+00> : vector<16x64xf32>
    %589 = tpu.matmul %586, %588, %cst_254 {dimension_numbers = #tpu.dot_dimension_numbers<[1], [0], [0], [1], [0, 0, 1, 1], [], []>} : vector<16x32xf32>, vector<32x64xf32>, vector<16x64xf32> -> vector<16x64xf32>
    %c2_255 = arith.constant 2 : index
    %c0_256 = arith.constant 0 : index
    %590 = vector.load %arg13[%c2_255, %c0_256] : memref<4x64xf32, #tpu.memory_space<vmem>>, vector<1x64xf32>
    %591 = vector.broadcast %590 : vector<1x64xf32> to vector<16x64xf32>
    %592 = arith.addf %589, %591 : vector<16x64xf32>
    %cst_257 = arith.constant 0.000000e+00 : f32
    %593 = vector.broadcast %cst_257 : f32 to vector<16x64xf32>
    %594 = arith.maximumf %592, %593 : vector<16x64xf32>
    %c2_258 = arith.constant 2 : index
    %c0_259 = arith.constant 0 : index
    %c0_260 = arith.constant 0 : index
    %595 = vector.load %arg14[%c2_258, %c0_259, %c0_260] : memref<4x64x32xf32, #tpu.memory_space<vmem>>, vector<1x64x32xf32>
    %596 = vector.shape_cast %595 : vector<1x64x32xf32> to vector<64x32xf32>
    %cst_261 = arith.constant dense<0.000000e+00> : vector<16x32xf32>
    %597 = tpu.matmul %594, %596, %cst_261 {dimension_numbers = #tpu.dot_dimension_numbers<[1], [0], [0], [1], [0, 0, 1, 1], [], []>} : vector<16x64xf32>, vector<64x32xf32>, vector<16x32xf32> -> vector<16x32xf32>
    %c2_262 = arith.constant 2 : index
    %c0_263 = arith.constant 0 : index
    %598 = vector.load %arg15[%c2_262, %c0_263] : memref<4x32xf32, #tpu.memory_space<vmem>>, vector<1x32xf32>
    %599 = vector.broadcast %598 : vector<1x32xf32> to vector<16x32xf32>
    %600 = arith.addf %597, %599 : vector<16x32xf32>
    %601 = arith.addf %563, %600 : vector<16x32xf32>
    %cst_264 = arith.constant dense<0.000000e+00> : vector<16xf32>
    %602 = vector.multi_reduction <add>, %601, %cst_264 [1] : vector<16x32xf32> to vector<16xf32>
    %603 = vector.shape_cast %602 : vector<16xf32> to vector<16x1xf32>
    %cst_265 = arith.constant 3.200000e+01 : f32
    %604 = vector.broadcast %cst_265 : f32 to vector<16x1xf32>
    %605 = arith.divf %603, %604 : vector<16x1xf32>
    %606 = vector.broadcast %605 : vector<16x1xf32> to vector<16x32xf32>
    %607 = arith.subf %601, %606 : vector<16x32xf32>
    %608 = arith.mulf %607, %607 : vector<16x32xf32>
    %cst_266 = arith.constant dense<0.000000e+00> : vector<16xf32>
    %609 = vector.multi_reduction <add>, %608, %cst_266 [1] : vector<16x32xf32> to vector<16xf32>
    %610 = vector.shape_cast %609 : vector<16xf32> to vector<16x1xf32>
    %cst_267 = arith.constant 0.0322580636 : f32
    %611 = vector.broadcast %cst_267 : f32 to vector<16x1xf32>
    %612 = arith.mulf %610, %611 : vector<16x1xf32>
    %613 = math.sqrt %612 : vector<16x1xf32>
    %cst_268 = arith.constant 9.99999997E-7 : f32
    %614 = vector.broadcast %cst_268 : f32 to vector<16x1xf32>
    %615 = arith.addf %613, %614 : vector<16x1xf32>
    %616 = tpu.reciprocal %615 : vector<16x1xf32> -> vector<16x1xf32>
    %617 = vector.broadcast %616 : vector<16x1xf32> to vector<16x32xf32>
    %618 = arith.mulf %607, %617 : vector<16x32xf32>
    %c8 = arith.constant 8 : index
    %c0_269 = arith.constant 0 : index
    %619 = vector.load %arg16[%c8, %c0_269] : memref<12x32xf32, #tpu.memory_space<vmem>>, vector<1x32xf32>
    %620 = vector.broadcast %619 : vector<1x32xf32> to vector<16x32xf32>
    %621 = arith.mulf %618, %620 : vector<16x32xf32>
    %c8_270 = arith.constant 8 : index
    %c0_271 = arith.constant 0 : index
    %622 = vector.load %arg17[%c8_270, %c0_271] : memref<12x32xf32, #tpu.memory_space<vmem>>, vector<1x32xf32>
    %623 = vector.broadcast %622 : vector<1x32xf32> to vector<16x32xf32>
    %624 = arith.addf %621, %623 : vector<16x32xf32>
    %c4_272 = arith.constant 4 : index
    %c0_273 = arith.constant 0 : index
    %c0_274 = arith.constant 0 : index
    %625 = vector.load %arg6[%c4_272, %c0_273, %c0_274] : memref<6x32x32xf32, #tpu.memory_space<vmem>>, vector<1x32x32xf32>
    %626 = vector.shape_cast %625 : vector<1x32x32xf32> to vector<32x32xf32>
    %cst_275 = arith.constant dense<0.000000e+00> : vector<16x32xf32>
    %627 = tpu.matmul %624, %626, %cst_275 {dimension_numbers = #tpu.dot_dimension_numbers<[1], [0], [0], [1], [0, 0, 1, 1], [], []>} : vector<16x32xf32>, vector<32x32xf32>, vector<16x32xf32> -> vector<16x32xf32>
    %c4_276 = arith.constant 4 : index
    %c0_277 = arith.constant 0 : index
    %628 = vector.load %arg7[%c4_276, %c0_277] : memref<6x32xf32, #tpu.memory_space<vmem>>, vector<1x32xf32>
    %629 = vector.broadcast %628 : vector<1x32xf32> to vector<16x32xf32>
    %630 = arith.addf %627, %629 : vector<16x32xf32>
    %c4_278 = arith.constant 4 : index
    %c0_279 = arith.constant 0 : index
    %c0_280 = arith.constant 0 : index
    %631 = vector.load %arg8[%c4_278, %c0_279, %c0_280] : memref<6x32x64xf32, #tpu.memory_space<vmem>>, vector<1x32x64xf32>
    %632 = vector.shape_cast %631 : vector<1x32x64xf32> to vector<32x64xf32>
    %cst_281 = arith.constant dense<0.000000e+00> : vector<16x64xf32>
    %633 = tpu.matmul %624, %632, %cst_281 {dimension_numbers = #tpu.dot_dimension_numbers<[1], [0], [0], [1], [0, 0, 1, 1], [], []>} : vector<16x32xf32>, vector<32x64xf32>, vector<16x64xf32> -> vector<16x64xf32>
    %c4_282 = arith.constant 4 : index
    %c0_283 = arith.constant 0 : index
    %634 = vector.load %arg9[%c4_282, %c0_283] : memref<6x64xf32, #tpu.memory_space<vmem>>, vector<1x64xf32>
    %635 = vector.broadcast %634 : vector<1x64xf32> to vector<16x64xf32>
    %636 = arith.addf %633, %635 : vector<16x64xf32>
    %637 = vector.extract_strided_slice %630 {offsets = [0, 0], sizes = [16, 8], strides = [1, 1]} : vector<16x32xf32> to vector<16x8xf32>
    %638 = vector.extract_strided_slice %636 {offsets = [0, 0], sizes = [16, 8], strides = [1, 1]} : vector<16x64xf32> to vector<16x8xf32>
    %639 = vector.extract_strided_slice %636 {offsets = [0, 32], sizes = [16, 8], strides = [1, 1]} : vector<16x64xf32> to vector<16x8xf32>
    "tpu.trace_start"() <{level = 10 : i32, message = "qd,kd->qk"}> : () -> ()
    %cst_284 = arith.constant dense<0.000000e+00> : vector<16x16xf32>
    %640 = tpu.matmul %637, %638, %cst_284 {dimension_numbers = #tpu.dot_dimension_numbers<[1], [1], [0], [0], [0, 0, 1, 0], [], []>} : vector<16x8xf32>, vector<16x8xf32>, vector<16x16xf32> -> vector<16x16xf32>
    "tpu.trace_stop"() : () -> ()
    %cst_285 = arith.constant 0.353553385 : f32
    %641 = vector.broadcast %cst_285 : f32 to vector<16x16xf32>
    %642 = arith.mulf %640, %641 : vector<16x16xf32>
    %643 = arith.addf %642, %1 : vector<16x16xf32>
    %cst_286 = arith.constant dense<0xFF800000> : vector<16xf32>
    %644 = vector.multi_reduction <maximumf>, %643, %cst_286 [1] : vector<16x16xf32> to vector<16xf32>
    %645 = vector.shape_cast %644 : vector<16xf32> to vector<16x1xf32>
    %646 = vector.broadcast %645 : vector<16x1xf32> to vector<16x16xf32>
    %647 = arith.subf %643, %646 : vector<16x16xf32>
    %648 = math.exp %647 : vector<16x16xf32>
    %cst_287 = arith.constant dense<0.000000e+00> : vector<16xf32>
    %649 = vector.multi_reduction <add>, %648, %cst_287 [1] : vector<16x16xf32> to vector<16xf32>
    %650 = vector.shape_cast %649 : vector<16xf32> to vector<16x1xf32>
    %651 = tpu.reciprocal %650 {approx = true} : vector<16x1xf32> -> vector<16x1xf32>
    %652 = vector.broadcast %651 : vector<16x1xf32> to vector<16x16xf32>
    %653 = arith.mulf %648, %652 : vector<16x16xf32>
    %cst_288 = arith.constant dense<0.000000e+00> : vector<16x8xf32>
    %654 = tpu.matmul %653, %639, %cst_288 {dimension_numbers = #tpu.dot_dimension_numbers<[1], [0], [0], [1], [0, 0, 1, 1], [], []>} : vector<16x16xf32>, vector<16x8xf32>, vector<16x8xf32> -> vector<16x8xf32>
    %655 = vector.extract_strided_slice %630 {offsets = [0, 8], sizes = [16, 8], strides = [1, 1]} : vector<16x32xf32> to vector<16x8xf32>
    %656 = vector.extract_strided_slice %636 {offsets = [0, 8], sizes = [16, 8], strides = [1, 1]} : vector<16x64xf32> to vector<16x8xf32>
    %657 = vector.extract_strided_slice %636 {offsets = [0, 40], sizes = [16, 8], strides = [1, 1]} : vector<16x64xf32> to vector<16x8xf32>
    "tpu.trace_start"() <{level = 10 : i32, message = "qd,kd->qk"}> : () -> ()
    %cst_289 = arith.constant dense<0.000000e+00> : vector<16x16xf32>
    %658 = tpu.matmul %655, %656, %cst_289 {dimension_numbers = #tpu.dot_dimension_numbers<[1], [1], [0], [0], [0, 0, 1, 0], [], []>} : vector<16x8xf32>, vector<16x8xf32>, vector<16x16xf32> -> vector<16x16xf32>
    "tpu.trace_stop"() : () -> ()
    %cst_290 = arith.constant 0.353553385 : f32
    %659 = vector.broadcast %cst_290 : f32 to vector<16x16xf32>
    %660 = arith.mulf %658, %659 : vector<16x16xf32>
    %661 = arith.addf %660, %1 : vector<16x16xf32>
    %cst_291 = arith.constant dense<0xFF800000> : vector<16xf32>
    %662 = vector.multi_reduction <maximumf>, %661, %cst_291 [1] : vector<16x16xf32> to vector<16xf32>
    %663 = vector.shape_cast %662 : vector<16xf32> to vector<16x1xf32>
    %664 = vector.broadcast %663 : vector<16x1xf32> to vector<16x16xf32>
    %665 = arith.subf %661, %664 : vector<16x16xf32>
    %666 = math.exp %665 : vector<16x16xf32>
    %cst_292 = arith.constant dense<0.000000e+00> : vector<16xf32>
    %667 = vector.multi_reduction <add>, %666, %cst_292 [1] : vector<16x16xf32> to vector<16xf32>
    %668 = vector.shape_cast %667 : vector<16xf32> to vector<16x1xf32>
    %669 = tpu.reciprocal %668 {approx = true} : vector<16x1xf32> -> vector<16x1xf32>
    %670 = vector.broadcast %669 : vector<16x1xf32> to vector<16x16xf32>
    %671 = arith.mulf %666, %670 : vector<16x16xf32>
    %cst_293 = arith.constant dense<0.000000e+00> : vector<16x8xf32>
    %672 = tpu.matmul %671, %657, %cst_293 {dimension_numbers = #tpu.dot_dimension_numbers<[1], [0], [0], [1], [0, 0, 1, 1], [], []>} : vector<16x16xf32>, vector<16x8xf32>, vector<16x8xf32> -> vector<16x8xf32>
    %673 = vector.extract_strided_slice %630 {offsets = [0, 16], sizes = [16, 8], strides = [1, 1]} : vector<16x32xf32> to vector<16x8xf32>
    %674 = vector.extract_strided_slice %636 {offsets = [0, 16], sizes = [16, 8], strides = [1, 1]} : vector<16x64xf32> to vector<16x8xf32>
    %675 = vector.extract_strided_slice %636 {offsets = [0, 48], sizes = [16, 8], strides = [1, 1]} : vector<16x64xf32> to vector<16x8xf32>
    "tpu.trace_start"() <{level = 10 : i32, message = "qd,kd->qk"}> : () -> ()
    %cst_294 = arith.constant dense<0.000000e+00> : vector<16x16xf32>
    %676 = tpu.matmul %673, %674, %cst_294 {dimension_numbers = #tpu.dot_dimension_numbers<[1], [1], [0], [0], [0, 0, 1, 0], [], []>} : vector<16x8xf32>, vector<16x8xf32>, vector<16x16xf32> -> vector<16x16xf32>
    "tpu.trace_stop"() : () -> ()
    %cst_295 = arith.constant 0.353553385 : f32
    %677 = vector.broadcast %cst_295 : f32 to vector<16x16xf32>
    %678 = arith.mulf %676, %677 : vector<16x16xf32>
    %679 = arith.addf %678, %1 : vector<16x16xf32>
    %cst_296 = arith.constant dense<0xFF800000> : vector<16xf32>
    %680 = vector.multi_reduction <maximumf>, %679, %cst_296 [1] : vector<16x16xf32> to vector<16xf32>
    %681 = vector.shape_cast %680 : vector<16xf32> to vector<16x1xf32>
    %682 = vector.broadcast %681 : vector<16x1xf32> to vector<16x16xf32>
    %683 = arith.subf %679, %682 : vector<16x16xf32>
    %684 = math.exp %683 : vector<16x16xf32>
    %cst_297 = arith.constant dense<0.000000e+00> : vector<16xf32>
    %685 = vector.multi_reduction <add>, %684, %cst_297 [1] : vector<16x16xf32> to vector<16xf32>
    %686 = vector.shape_cast %685 : vector<16xf32> to vector<16x1xf32>
    %687 = tpu.reciprocal %686 {approx = true} : vector<16x1xf32> -> vector<16x1xf32>
    %688 = vector.broadcast %687 : vector<16x1xf32> to vector<16x16xf32>
    %689 = arith.mulf %684, %688 : vector<16x16xf32>
    %cst_298 = arith.constant dense<0.000000e+00> : vector<16x8xf32>
    %690 = tpu.matmul %689, %675, %cst_298 {dimension_numbers = #tpu.dot_dimension_numbers<[1], [0], [0], [1], [0, 0, 1, 1], [], []>} : vector<16x16xf32>, vector<16x8xf32>, vector<16x8xf32> -> vector<16x8xf32>
    %691 = vector.extract_strided_slice %630 {offsets = [0, 24], sizes = [16, 8], strides = [1, 1]} : vector<16x32xf32> to vector<16x8xf32>
    %692 = vector.extract_strided_slice %636 {offsets = [0, 24], sizes = [16, 8], strides = [1, 1]} : vector<16x64xf32> to vector<16x8xf32>
    %693 = vector.extract_strided_slice %636 {offsets = [0, 56], sizes = [16, 8], strides = [1, 1]} : vector<16x64xf32> to vector<16x8xf32>
    "tpu.trace_start"() <{level = 10 : i32, message = "qd,kd->qk"}> : () -> ()
    %cst_299 = arith.constant dense<0.000000e+00> : vector<16x16xf32>
    %694 = tpu.matmul %691, %692, %cst_299 {dimension_numbers = #tpu.dot_dimension_numbers<[1], [1], [0], [0], [0, 0, 1, 0], [], []>} : vector<16x8xf32>, vector<16x8xf32>, vector<16x16xf32> -> vector<16x16xf32>
    "tpu.trace_stop"() : () -> ()
    %cst_300 = arith.constant 0.353553385 : f32
    %695 = vector.broadcast %cst_300 : f32 to vector<16x16xf32>
    %696 = arith.mulf %694, %695 : vector<16x16xf32>
    %697 = arith.addf %696, %1 : vector<16x16xf32>
    %cst_301 = arith.constant dense<0xFF800000> : vector<16xf32>
    %698 = vector.multi_reduction <maximumf>, %697, %cst_301 [1] : vector<16x16xf32> to vector<16xf32>
    %699 = vector.shape_cast %698 : vector<16xf32> to vector<16x1xf32>
    %700 = vector.broadcast %699 : vector<16x1xf32> to vector<16x16xf32>
    %701 = arith.subf %697, %700 : vector<16x16xf32>
    %702 = math.exp %701 : vector<16x16xf32>
    %cst_302 = arith.constant dense<0.000000e+00> : vector<16xf32>
    %703 = vector.multi_reduction <add>, %702, %cst_302 [1] : vector<16x16xf32> to vector<16xf32>
    %704 = vector.shape_cast %703 : vector<16xf32> to vector<16x1xf32>
    %705 = tpu.reciprocal %704 {approx = true} : vector<16x1xf32> -> vector<16x1xf32>
    %706 = vector.broadcast %705 : vector<16x1xf32> to vector<16x16xf32>
    %707 = arith.mulf %702, %706 : vector<16x16xf32>
    %cst_303 = arith.constant dense<0.000000e+00> : vector<16x8xf32>
    %708 = tpu.matmul %707, %693, %cst_303 {dimension_numbers = #tpu.dot_dimension_numbers<[1], [0], [0], [1], [0, 0, 1, 1], [], []>} : vector<16x16xf32>, vector<16x8xf32>, vector<16x8xf32> -> vector<16x8xf32>
    %709 = tpu.concatenate %654, %672, %690, %708 in 1 : vector<16x8xf32>, vector<16x8xf32>, vector<16x8xf32>, vector<16x8xf32> -> vector<16x32xf32>
    %c4_304 = arith.constant 4 : index
    %c0_305 = arith.constant 0 : index
    %c0_306 = arith.constant 0 : index
    %710 = vector.load %arg10[%c4_304, %c0_305, %c0_306] : memref<6x32x32xf32, #tpu.memory_space<vmem>>, vector<1x32x32xf32>
    %711 = vector.shape_cast %710 : vector<1x32x32xf32> to vector<32x32xf32>
    %cst_307 = arith.constant dense<0.000000e+00> : vector<16x32xf32>
    %712 = tpu.matmul %709, %711, %cst_307 {dimension_numbers = #tpu.dot_dimension_numbers<[1], [0], [0], [1], [0, 0, 1, 1], [], []>} : vector<16x32xf32>, vector<32x32xf32>, vector<16x32xf32> -> vector<16x32xf32>
    %c4_308 = arith.constant 4 : index
    %c0_309 = arith.constant 0 : index
    %713 = vector.load %arg11[%c4_308, %c0_309] : memref<6x32xf32, #tpu.memory_space<vmem>>, vector<1x32xf32>
    %714 = vector.broadcast %713 : vector<1x32xf32> to vector<16x32xf32>
    %715 = arith.addf %712, %714 : vector<16x32xf32>
    %716 = arith.addf %601, %715 : vector<16x32xf32>
    %cst_310 = arith.constant dense<0.000000e+00> : vector<16xf32>
    %717 = vector.multi_reduction <add>, %716, %cst_310 [1] : vector<16x32xf32> to vector<16xf32>
    %718 = vector.shape_cast %717 : vector<16xf32> to vector<16x1xf32>
    %cst_311 = arith.constant 3.200000e+01 : f32
    %719 = vector.broadcast %cst_311 : f32 to vector<16x1xf32>
    %720 = arith.divf %718, %719 : vector<16x1xf32>
    %721 = vector.broadcast %720 : vector<16x1xf32> to vector<16x32xf32>
    %722 = arith.subf %716, %721 : vector<16x32xf32>
    %723 = arith.mulf %722, %722 : vector<16x32xf32>
    %cst_312 = arith.constant dense<0.000000e+00> : vector<16xf32>
    %724 = vector.multi_reduction <add>, %723, %cst_312 [1] : vector<16x32xf32> to vector<16xf32>
    %725 = vector.shape_cast %724 : vector<16xf32> to vector<16x1xf32>
    %cst_313 = arith.constant 0.0322580636 : f32
    %726 = vector.broadcast %cst_313 : f32 to vector<16x1xf32>
    %727 = arith.mulf %725, %726 : vector<16x1xf32>
    %728 = math.sqrt %727 : vector<16x1xf32>
    %cst_314 = arith.constant 9.99999997E-7 : f32
    %729 = vector.broadcast %cst_314 : f32 to vector<16x1xf32>
    %730 = arith.addf %728, %729 : vector<16x1xf32>
    %731 = tpu.reciprocal %730 : vector<16x1xf32> -> vector<16x1xf32>
    %732 = vector.broadcast %731 : vector<16x1xf32> to vector<16x32xf32>
    %733 = arith.mulf %722, %732 : vector<16x32xf32>
    %c9 = arith.constant 9 : index
    %c0_315 = arith.constant 0 : index
    %734 = vector.load %arg16[%c9, %c0_315] : memref<12x32xf32, #tpu.memory_space<vmem>>, vector<1x32xf32>
    %735 = vector.broadcast %734 : vector<1x32xf32> to vector<16x32xf32>
    %736 = arith.mulf %733, %735 : vector<16x32xf32>
    %c9_316 = arith.constant 9 : index
    %c0_317 = arith.constant 0 : index
    %737 = vector.load %arg17[%c9_316, %c0_317] : memref<12x32xf32, #tpu.memory_space<vmem>>, vector<1x32xf32>
    %738 = vector.broadcast %737 : vector<1x32xf32> to vector<16x32xf32>
    %739 = arith.addf %736, %738 : vector<16x32xf32>
    %c5_318 = arith.constant 5 : index
    %c0_319 = arith.constant 0 : index
    %c0_320 = arith.constant 0 : index
    %740 = vector.load %arg6[%c5_318, %c0_319, %c0_320] : memref<6x32x32xf32, #tpu.memory_space<vmem>>, vector<1x32x32xf32>
    %741 = vector.shape_cast %740 : vector<1x32x32xf32> to vector<32x32xf32>
    %cst_321 = arith.constant dense<0.000000e+00> : vector<16x32xf32>
    %742 = tpu.matmul %739, %741, %cst_321 {dimension_numbers = #tpu.dot_dimension_numbers<[1], [0], [0], [1], [0, 0, 1, 1], [], []>} : vector<16x32xf32>, vector<32x32xf32>, vector<16x32xf32> -> vector<16x32xf32>
    %c5_322 = arith.constant 5 : index
    %c0_323 = arith.constant 0 : index
    %743 = vector.load %arg7[%c5_322, %c0_323] : memref<6x32xf32, #tpu.memory_space<vmem>>, vector<1x32xf32>
    %744 = vector.broadcast %743 : vector<1x32xf32> to vector<16x32xf32>
    %745 = arith.addf %742, %744 : vector<16x32xf32>
    %c5_324 = arith.constant 5 : index
    %c0_325 = arith.constant 0 : index
    %c0_326 = arith.constant 0 : index
    %746 = vector.load %arg8[%c5_324, %c0_325, %c0_326] : memref<6x32x64xf32, #tpu.memory_space<vmem>>, vector<1x32x64xf32>
    %747 = vector.shape_cast %746 : vector<1x32x64xf32> to vector<32x64xf32>
    %cst_327 = arith.constant dense<0.000000e+00> : vector<16x64xf32>
    %748 = tpu.matmul %332, %747, %cst_327 {dimension_numbers = #tpu.dot_dimension_numbers<[1], [0], [0], [1], [0, 0, 1, 1], [], []>} : vector<16x32xf32>, vector<32x64xf32>, vector<16x64xf32> -> vector<16x64xf32>
    %c5_328 = arith.constant 5 : index
    %c0_329 = arith.constant 0 : index
    %749 = vector.load %arg9[%c5_328, %c0_329] : memref<6x64xf32, #tpu.memory_space<vmem>>, vector<1x64xf32>
    %750 = vector.broadcast %749 : vector<1x64xf32> to vector<16x64xf32>
    %751 = arith.addf %748, %750 : vector<16x64xf32>
    %752 = vector.extract_strided_slice %745 {offsets = [0, 0], sizes = [16, 8], strides = [1, 1]} : vector<16x32xf32> to vector<16x8xf32>
    %753 = vector.extract_strided_slice %751 {offsets = [0, 0], sizes = [16, 8], strides = [1, 1]} : vector<16x64xf32> to vector<16x8xf32>
    %754 = vector.extract_strided_slice %751 {offsets = [0, 32], sizes = [16, 8], strides = [1, 1]} : vector<16x64xf32> to vector<16x8xf32>
    "tpu.trace_start"() <{level = 10 : i32, message = "qd,kd->qk"}> : () -> ()
    %cst_330 = arith.constant dense<0.000000e+00> : vector<16x16xf32>
    %755 = tpu.matmul %752, %753, %cst_330 {dimension_numbers = #tpu.dot_dimension_numbers<[1], [1], [0], [0], [0, 0, 1, 0], [], []>} : vector<16x8xf32>, vector<16x8xf32>, vector<16x16xf32> -> vector<16x16xf32>
    "tpu.trace_stop"() : () -> ()
    %cst_331 = arith.constant 0.353553385 : f32
    %756 = vector.broadcast %cst_331 : f32 to vector<16x16xf32>
    %757 = arith.mulf %755, %756 : vector<16x16xf32>
    %758 = arith.addf %757, %2 : vector<16x16xf32>
    %cst_332 = arith.constant dense<0xFF800000> : vector<16xf32>
    %759 = vector.multi_reduction <maximumf>, %758, %cst_332 [1] : vector<16x16xf32> to vector<16xf32>
    %760 = vector.shape_cast %759 : vector<16xf32> to vector<16x1xf32>
    %761 = vector.broadcast %760 : vector<16x1xf32> to vector<16x16xf32>
    %762 = arith.subf %758, %761 : vector<16x16xf32>
    %763 = math.exp %762 : vector<16x16xf32>
    %cst_333 = arith.constant dense<0.000000e+00> : vector<16xf32>
    %764 = vector.multi_reduction <add>, %763, %cst_333 [1] : vector<16x16xf32> to vector<16xf32>
    %765 = vector.shape_cast %764 : vector<16xf32> to vector<16x1xf32>
    %766 = tpu.reciprocal %765 {approx = true} : vector<16x1xf32> -> vector<16x1xf32>
    %767 = vector.broadcast %766 : vector<16x1xf32> to vector<16x16xf32>
    %768 = arith.mulf %763, %767 : vector<16x16xf32>
    %cst_334 = arith.constant dense<0.000000e+00> : vector<16x8xf32>
    %769 = tpu.matmul %768, %754, %cst_334 {dimension_numbers = #tpu.dot_dimension_numbers<[1], [0], [0], [1], [0, 0, 1, 1], [], []>} : vector<16x16xf32>, vector<16x8xf32>, vector<16x8xf32> -> vector<16x8xf32>
    %770 = vector.extract_strided_slice %745 {offsets = [0, 8], sizes = [16, 8], strides = [1, 1]} : vector<16x32xf32> to vector<16x8xf32>
    %771 = vector.extract_strided_slice %751 {offsets = [0, 8], sizes = [16, 8], strides = [1, 1]} : vector<16x64xf32> to vector<16x8xf32>
    %772 = vector.extract_strided_slice %751 {offsets = [0, 40], sizes = [16, 8], strides = [1, 1]} : vector<16x64xf32> to vector<16x8xf32>
    "tpu.trace_start"() <{level = 10 : i32, message = "qd,kd->qk"}> : () -> ()
    %cst_335 = arith.constant dense<0.000000e+00> : vector<16x16xf32>
    %773 = tpu.matmul %770, %771, %cst_335 {dimension_numbers = #tpu.dot_dimension_numbers<[1], [1], [0], [0], [0, 0, 1, 0], [], []>} : vector<16x8xf32>, vector<16x8xf32>, vector<16x16xf32> -> vector<16x16xf32>
    "tpu.trace_stop"() : () -> ()
    %cst_336 = arith.constant 0.353553385 : f32
    %774 = vector.broadcast %cst_336 : f32 to vector<16x16xf32>
    %775 = arith.mulf %773, %774 : vector<16x16xf32>
    %776 = arith.addf %775, %2 : vector<16x16xf32>
    %cst_337 = arith.constant dense<0xFF800000> : vector<16xf32>
    %777 = vector.multi_reduction <maximumf>, %776, %cst_337 [1] : vector<16x16xf32> to vector<16xf32>
    %778 = vector.shape_cast %777 : vector<16xf32> to vector<16x1xf32>
    %779 = vector.broadcast %778 : vector<16x1xf32> to vector<16x16xf32>
    %780 = arith.subf %776, %779 : vector<16x16xf32>
    %781 = math.exp %780 : vector<16x16xf32>
    %cst_338 = arith.constant dense<0.000000e+00> : vector<16xf32>
    %782 = vector.multi_reduction <add>, %781, %cst_338 [1] : vector<16x16xf32> to vector<16xf32>
    %783 = vector.shape_cast %782 : vector<16xf32> to vector<16x1xf32>
    %784 = tpu.reciprocal %783 {approx = true} : vector<16x1xf32> -> vector<16x1xf32>
    %785 = vector.broadcast %784 : vector<16x1xf32> to vector<16x16xf32>
    %786 = arith.mulf %781, %785 : vector<16x16xf32>
    %cst_339 = arith.constant dense<0.000000e+00> : vector<16x8xf32>
    %787 = tpu.matmul %786, %772, %cst_339 {dimension_numbers = #tpu.dot_dimension_numbers<[1], [0], [0], [1], [0, 0, 1, 1], [], []>} : vector<16x16xf32>, vector<16x8xf32>, vector<16x8xf32> -> vector<16x8xf32>
    %788 = vector.extract_strided_slice %745 {offsets = [0, 16], sizes = [16, 8], strides = [1, 1]} : vector<16x32xf32> to vector<16x8xf32>
    %789 = vector.extract_strided_slice %751 {offsets = [0, 16], sizes = [16, 8], strides = [1, 1]} : vector<16x64xf32> to vector<16x8xf32>
    %790 = vector.extract_strided_slice %751 {offsets = [0, 48], sizes = [16, 8], strides = [1, 1]} : vector<16x64xf32> to vector<16x8xf32>
    "tpu.trace_start"() <{level = 10 : i32, message = "qd,kd->qk"}> : () -> ()
    %cst_340 = arith.constant dense<0.000000e+00> : vector<16x16xf32>
    %791 = tpu.matmul %788, %789, %cst_340 {dimension_numbers = #tpu.dot_dimension_numbers<[1], [1], [0], [0], [0, 0, 1, 0], [], []>} : vector<16x8xf32>, vector<16x8xf32>, vector<16x16xf32> -> vector<16x16xf32>
    "tpu.trace_stop"() : () -> ()
    %cst_341 = arith.constant 0.353553385 : f32
    %792 = vector.broadcast %cst_341 : f32 to vector<16x16xf32>
    %793 = arith.mulf %791, %792 : vector<16x16xf32>
    %794 = arith.addf %793, %2 : vector<16x16xf32>
    %cst_342 = arith.constant dense<0xFF800000> : vector<16xf32>
    %795 = vector.multi_reduction <maximumf>, %794, %cst_342 [1] : vector<16x16xf32> to vector<16xf32>
    %796 = vector.shape_cast %795 : vector<16xf32> to vector<16x1xf32>
    %797 = vector.broadcast %796 : vector<16x1xf32> to vector<16x16xf32>
    %798 = arith.subf %794, %797 : vector<16x16xf32>
    %799 = math.exp %798 : vector<16x16xf32>
    %cst_343 = arith.constant dense<0.000000e+00> : vector<16xf32>
    %800 = vector.multi_reduction <add>, %799, %cst_343 [1] : vector<16x16xf32> to vector<16xf32>
    %801 = vector.shape_cast %800 : vector<16xf32> to vector<16x1xf32>
    %802 = tpu.reciprocal %801 {approx = true} : vector<16x1xf32> -> vector<16x1xf32>
    %803 = vector.broadcast %802 : vector<16x1xf32> to vector<16x16xf32>
    %804 = arith.mulf %799, %803 : vector<16x16xf32>
    %cst_344 = arith.constant dense<0.000000e+00> : vector<16x8xf32>
    %805 = tpu.matmul %804, %790, %cst_344 {dimension_numbers = #tpu.dot_dimension_numbers<[1], [0], [0], [1], [0, 0, 1, 1], [], []>} : vector<16x16xf32>, vector<16x8xf32>, vector<16x8xf32> -> vector<16x8xf32>
    %806 = vector.extract_strided_slice %745 {offsets = [0, 24], sizes = [16, 8], strides = [1, 1]} : vector<16x32xf32> to vector<16x8xf32>
    %807 = vector.extract_strided_slice %751 {offsets = [0, 24], sizes = [16, 8], strides = [1, 1]} : vector<16x64xf32> to vector<16x8xf32>
    %808 = vector.extract_strided_slice %751 {offsets = [0, 56], sizes = [16, 8], strides = [1, 1]} : vector<16x64xf32> to vector<16x8xf32>
    "tpu.trace_start"() <{level = 10 : i32, message = "qd,kd->qk"}> : () -> ()
    %cst_345 = arith.constant dense<0.000000e+00> : vector<16x16xf32>
    %809 = tpu.matmul %806, %807, %cst_345 {dimension_numbers = #tpu.dot_dimension_numbers<[1], [1], [0], [0], [0, 0, 1, 0], [], []>} : vector<16x8xf32>, vector<16x8xf32>, vector<16x16xf32> -> vector<16x16xf32>
    "tpu.trace_stop"() : () -> ()
    %cst_346 = arith.constant 0.353553385 : f32
    %810 = vector.broadcast %cst_346 : f32 to vector<16x16xf32>
    %811 = arith.mulf %809, %810 : vector<16x16xf32>
    %812 = arith.addf %811, %2 : vector<16x16xf32>
    %cst_347 = arith.constant dense<0xFF800000> : vector<16xf32>
    %813 = vector.multi_reduction <maximumf>, %812, %cst_347 [1] : vector<16x16xf32> to vector<16xf32>
    %814 = vector.shape_cast %813 : vector<16xf32> to vector<16x1xf32>
    %815 = vector.broadcast %814 : vector<16x1xf32> to vector<16x16xf32>
    %816 = arith.subf %812, %815 : vector<16x16xf32>
    %817 = math.exp %816 : vector<16x16xf32>
    %cst_348 = arith.constant dense<0.000000e+00> : vector<16xf32>
    %818 = vector.multi_reduction <add>, %817, %cst_348 [1] : vector<16x16xf32> to vector<16xf32>
    %819 = vector.shape_cast %818 : vector<16xf32> to vector<16x1xf32>
    %820 = tpu.reciprocal %819 {approx = true} : vector<16x1xf32> -> vector<16x1xf32>
    %821 = vector.broadcast %820 : vector<16x1xf32> to vector<16x16xf32>
    %822 = arith.mulf %817, %821 : vector<16x16xf32>
    %cst_349 = arith.constant dense<0.000000e+00> : vector<16x8xf32>
    %823 = tpu.matmul %822, %808, %cst_349 {dimension_numbers = #tpu.dot_dimension_numbers<[1], [0], [0], [1], [0, 0, 1, 1], [], []>} : vector<16x16xf32>, vector<16x8xf32>, vector<16x8xf32> -> vector<16x8xf32>
    %824 = tpu.concatenate %769, %787, %805, %823 in 1 : vector<16x8xf32>, vector<16x8xf32>, vector<16x8xf32>, vector<16x8xf32> -> vector<16x32xf32>
    %c5_350 = arith.constant 5 : index
    %c0_351 = arith.constant 0 : index
    %c0_352 = arith.constant 0 : index
    %825 = vector.load %arg10[%c5_350, %c0_351, %c0_352] : memref<6x32x32xf32, #tpu.memory_space<vmem>>, vector<1x32x32xf32>
    %826 = vector.shape_cast %825 : vector<1x32x32xf32> to vector<32x32xf32>
    %cst_353 = arith.constant dense<0.000000e+00> : vector<16x32xf32>
    %827 = tpu.matmul %824, %826, %cst_353 {dimension_numbers = #tpu.dot_dimension_numbers<[1], [0], [0], [1], [0, 0, 1, 1], [], []>} : vector<16x32xf32>, vector<32x32xf32>, vector<16x32xf32> -> vector<16x32xf32>
    %c5_354 = arith.constant 5 : index
    %c0_355 = arith.constant 0 : index
    %828 = vector.load %arg11[%c5_354, %c0_355] : memref<6x32xf32, #tpu.memory_space<vmem>>, vector<1x32xf32>
    %829 = vector.broadcast %828 : vector<1x32xf32> to vector<16x32xf32>
    %830 = arith.addf %827, %829 : vector<16x32xf32>
    %831 = arith.addf %716, %830 : vector<16x32xf32>
    %cst_356 = arith.constant dense<0.000000e+00> : vector<16xf32>
    %832 = vector.multi_reduction <add>, %831, %cst_356 [1] : vector<16x32xf32> to vector<16xf32>
    %833 = vector.shape_cast %832 : vector<16xf32> to vector<16x1xf32>
    %cst_357 = arith.constant 3.200000e+01 : f32
    %834 = vector.broadcast %cst_357 : f32 to vector<16x1xf32>
    %835 = arith.divf %833, %834 : vector<16x1xf32>
    %836 = vector.broadcast %835 : vector<16x1xf32> to vector<16x32xf32>
    %837 = arith.subf %831, %836 : vector<16x32xf32>
    %838 = arith.mulf %837, %837 : vector<16x32xf32>
    %cst_358 = arith.constant dense<0.000000e+00> : vector<16xf32>
    %839 = vector.multi_reduction <add>, %838, %cst_358 [1] : vector<16x32xf32> to vector<16xf32>
    %840 = vector.shape_cast %839 : vector<16xf32> to vector<16x1xf32>
    %cst_359 = arith.constant 0.0322580636 : f32
    %841 = vector.broadcast %cst_359 : f32 to vector<16x1xf32>
    %842 = arith.mulf %840, %841 : vector<16x1xf32>
    %843 = math.sqrt %842 : vector<16x1xf32>
    %cst_360 = arith.constant 9.99999997E-7 : f32
    %844 = vector.broadcast %cst_360 : f32 to vector<16x1xf32>
    %845 = arith.addf %843, %844 : vector<16x1xf32>
    %846 = tpu.reciprocal %845 : vector<16x1xf32> -> vector<16x1xf32>
    %847 = vector.broadcast %846 : vector<16x1xf32> to vector<16x32xf32>
    %848 = arith.mulf %837, %847 : vector<16x32xf32>
    %c10 = arith.constant 10 : index
    %c0_361 = arith.constant 0 : index
    %849 = vector.load %arg16[%c10, %c0_361] : memref<12x32xf32, #tpu.memory_space<vmem>>, vector<1x32xf32>
    %850 = vector.broadcast %849 : vector<1x32xf32> to vector<16x32xf32>
    %851 = arith.mulf %848, %850 : vector<16x32xf32>
    %c10_362 = arith.constant 10 : index
    %c0_363 = arith.constant 0 : index
    %852 = vector.load %arg17[%c10_362, %c0_363] : memref<12x32xf32, #tpu.memory_space<vmem>>, vector<1x32xf32>
    %853 = vector.broadcast %852 : vector<1x32xf32> to vector<16x32xf32>
    %854 = arith.addf %851, %853 : vector<16x32xf32>
    %c3_364 = arith.constant 3 : index
    %c0_365 = arith.constant 0 : index
    %c0_366 = arith.constant 0 : index
    %855 = vector.load %arg12[%c3_364, %c0_365, %c0_366] : memref<4x32x64xf32, #tpu.memory_space<vmem>>, vector<1x32x64xf32>
    %856 = vector.shape_cast %855 : vector<1x32x64xf32> to vector<32x64xf32>
    %cst_367 = arith.constant dense<0.000000e+00> : vector<16x64xf32>
    %857 = tpu.matmul %854, %856, %cst_367 {dimension_numbers = #tpu.dot_dimension_numbers<[1], [0], [0], [1], [0, 0, 1, 1], [], []>} : vector<16x32xf32>, vector<32x64xf32>, vector<16x64xf32> -> vector<16x64xf32>
    %c3_368 = arith.constant 3 : index
    %c0_369 = arith.constant 0 : index
    %858 = vector.load %arg13[%c3_368, %c0_369] : memref<4x64xf32, #tpu.memory_space<vmem>>, vector<1x64xf32>
    %859 = vector.broadcast %858 : vector<1x64xf32> to vector<16x64xf32>
    %860 = arith.addf %857, %859 : vector<16x64xf32>
    %cst_370 = arith.constant 0.000000e+00 : f32
    %861 = vector.broadcast %cst_370 : f32 to vector<16x64xf32>
    %862 = arith.maximumf %860, %861 : vector<16x64xf32>
    %c3_371 = arith.constant 3 : index
    %c0_372 = arith.constant 0 : index
    %c0_373 = arith.constant 0 : index
    %863 = vector.load %arg14[%c3_371, %c0_372, %c0_373] : memref<4x64x32xf32, #tpu.memory_space<vmem>>, vector<1x64x32xf32>
    %864 = vector.shape_cast %863 : vector<1x64x32xf32> to vector<64x32xf32>
    %cst_374 = arith.constant dense<0.000000e+00> : vector<16x32xf32>
    %865 = tpu.matmul %862, %864, %cst_374 {dimension_numbers = #tpu.dot_dimension_numbers<[1], [0], [0], [1], [0, 0, 1, 1], [], []>} : vector<16x64xf32>, vector<64x32xf32>, vector<16x32xf32> -> vector<16x32xf32>
    %c3_375 = arith.constant 3 : index
    %c0_376 = arith.constant 0 : index
    %866 = vector.load %arg15[%c3_375, %c0_376] : memref<4x32xf32, #tpu.memory_space<vmem>>, vector<1x32xf32>
    %867 = vector.broadcast %866 : vector<1x32xf32> to vector<16x32xf32>
    %868 = arith.addf %865, %867 : vector<16x32xf32>
    %869 = arith.addf %831, %868 : vector<16x32xf32>
    %cst_377 = arith.constant dense<0.000000e+00> : vector<16xf32>
    %870 = vector.multi_reduction <add>, %869, %cst_377 [1] : vector<16x32xf32> to vector<16xf32>
    %871 = vector.shape_cast %870 : vector<16xf32> to vector<16x1xf32>
    %cst_378 = arith.constant 3.200000e+01 : f32
    %872 = vector.broadcast %cst_378 : f32 to vector<16x1xf32>
    %873 = arith.divf %871, %872 : vector<16x1xf32>
    %874 = vector.broadcast %873 : vector<16x1xf32> to vector<16x32xf32>
    %875 = arith.subf %869, %874 : vector<16x32xf32>
    %876 = arith.mulf %875, %875 : vector<16x32xf32>
    %cst_379 = arith.constant dense<0.000000e+00> : vector<16xf32>
    %877 = vector.multi_reduction <add>, %876, %cst_379 [1] : vector<16x32xf32> to vector<16xf32>
    %878 = vector.shape_cast %877 : vector<16xf32> to vector<16x1xf32>
    %cst_380 = arith.constant 0.0322580636 : f32
    %879 = vector.broadcast %cst_380 : f32 to vector<16x1xf32>
    %880 = arith.mulf %878, %879 : vector<16x1xf32>
    %881 = math.sqrt %880 : vector<16x1xf32>
    %cst_381 = arith.constant 9.99999997E-7 : f32
    %882 = vector.broadcast %cst_381 : f32 to vector<16x1xf32>
    %883 = arith.addf %881, %882 : vector<16x1xf32>
    %884 = tpu.reciprocal %883 : vector<16x1xf32> -> vector<16x1xf32>
    %885 = vector.broadcast %884 : vector<16x1xf32> to vector<16x32xf32>
    %886 = arith.mulf %875, %885 : vector<16x32xf32>
    %c11 = arith.constant 11 : index
    %c0_382 = arith.constant 0 : index
    %887 = vector.load %arg16[%c11, %c0_382] : memref<12x32xf32, #tpu.memory_space<vmem>>, vector<1x32xf32>
    %888 = vector.broadcast %887 : vector<1x32xf32> to vector<16x32xf32>
    %889 = arith.mulf %886, %888 : vector<16x32xf32>
    %c11_383 = arith.constant 11 : index
    %c0_384 = arith.constant 0 : index
    %890 = vector.load %arg17[%c11_383, %c0_384] : memref<12x32xf32, #tpu.memory_space<vmem>>, vector<1x32xf32>
    %891 = vector.broadcast %890 : vector<1x32xf32> to vector<16x32xf32>
    %892 = arith.addf %889, %891 : vector<16x32xf32>
    %c0_385 = arith.constant 0 : index
    %c0_386 = arith.constant 0 : index
    %893 = vector.load %arg18[%c0_385, %c0_386] : memref<16x32xf32, #tpu.memory_space<vmem>>, vector<16x32xf32>
    tpu.vector_store %arg18[%c0_385, %c0_386], %892 {strides = array<i32>} : memref<16x32xf32, #tpu.memory_space<vmem>>, vector<16x32xf32>,
    return
  }
  func.func @transform_0(%arg0: i32) -> (i32, i32) {
    %c0_i32 = arith.constant 0 : i32
    %c0_i32_0 = arith.constant 0 : i32
    %c0_i32_1 = arith.constant 0 : i32
    return %c0_i32, %c0_i32_0 : i32, i32
  }
  func.func @transform_1(%arg0: i32) -> (i32, i32) {
    %c0_i32 = arith.constant 0 : i32
    %c0_i32_0 = arith.constant 0 : i32
    %c0_i32_1 = arith.constant 0 : i32
    return %c0_i32, %c0_i32_0 : i32, i32
  }
  func.func @transform_2(%arg0: i32) -> (i32, i32) {
    %c0_i32 = arith.constant 0 : i32
    %c0_i32_0 = arith.constant 0 : i32
    %c0_i32_1 = arith.constant 0 : i32
    return %c0_i32, %c0_i32_0 : i32, i32
  }
  func.func @transform_3(%arg0: i32) -> (i32, i32) {
    %c0_i32 = arith.constant 0 : i32
    %c0_i32_0 = arith.constant 0 : i32
    %c0_i32_1 = arith.constant 0 : i32
    return %c0_i32, %c0_i32_0 : i32, i32
  }
  func.func @transform_4(%arg0: i32) -> (i32, i32) {
    %c0_i32 = arith.constant 0 : i32
    %c0_i32_0 = arith.constant 0 : i32
    %c0_i32_1 = arith.constant 0 : i32
    return %c0_i32, %c0_i32_0 : i32, i32
  }
  func.func @transform_5(%arg0: i32) -> (i32, i32, i32) {
    %c0_i32 = arith.constant 0 : i32
    %c0_i32_0 = arith.constant 0 : i32
    %c0_i32_1 = arith.constant 0 : i32
    %c0_i32_2 = arith.constant 0 : i32
    return %c0_i32, %c0_i32_0, %c0_i32_1 : i32, i32, i32
  }
  func.func @transform_6(%arg0: i32) -> (i32, i32) {
    %c0_i32 = arith.constant 0 : i32
    %c0_i32_0 = arith.constant 0 : i32
    %c0_i32_1 = arith.constant 0 : i32
    return %c0_i32, %c0_i32_0 : i32, i32
  }
  func.func @transform_7(%arg0: i32) -> (i32, i32, i32) {
    %c0_i32 = arith.constant 0 : i32
    %c0_i32_0 = arith.constant 0 : i32
    %c0_i32_1 = arith.constant 0 : i32
    %c0_i32_2 = arith.constant 0 : i32
    return %c0_i32, %c0_i32_0, %c0_i32_1 : i32, i32, i32
  }
  func.func @transform_8(%arg0: i32) -> (i32, i32) {
    %c0_i32 = arith.constant 0 : i32
    %c0_i32_0 = arith.constant 0 : i32
    %c0_i32_1 = arith.constant 0 : i32
    return %c0_i32, %c0_i32_0 : i32, i32
  }
  func.func @transform_9(%arg0: i32) -> (i32, i32, i32) {
    %c0_i32 = arith.constant 0 : i32
    %c0_i32_0 = arith.constant 0 : i32
    %c0_i32_1 = arith.constant 0 : i32
    %c0_i32_2 = arith.constant 0 : i32
    return %c0_i32, %c0_i32_0, %c0_i32_1 : i32, i32, i32
  }
  func.func @transform_10(%arg0: i32) -> (i32, i32) {
    %c0_i32 = arith.constant 0 : i32
    %c0_i32_0 = arith.constant 0 : i32
    %c0_i32_1 = arith.constant 0 : i32
    return %c0_i32, %c0_i32_0 : i32, i32
  }
  func.func @transform_11(%arg0: i32) -> (i32, i32, i32) {
    %c0_i32 = arith.constant 0 : i32
    %c0_i32_0 = arith.constant 0 : i32
    %c0_i32_1 = arith.constant 0 : i32
    %c0_i32_2 = arith.constant 0 : i32
    return %c0_i32, %c0_i32_0, %c0_i32_1 : i32, i32, i32
  }
  func.func @transform_12(%arg0: i32) -> (i32, i32) {
    %c0_i32 = arith.constant 0 : i32
    %c0_i32_0 = arith.constant 0 : i32
    %c0_i32_1 = arith.constant 0 : i32
    return %c0_i32, %c0_i32_0 : i32, i32
  }
  func.func @transform_13(%arg0: i32) -> (i32, i32, i32) {
    %c0_i32 = arith.constant 0 : i32
    %c0_i32_0 = arith.constant 0 : i32
    %c0_i32_1 = arith.constant 0 : i32
    %c0_i32_2 = arith.constant 0 : i32
    return %c0_i32, %c0_i32_0, %c0_i32_1 : i32, i32, i32
  }
  func.func @transform_14(%arg0: i32) -> (i32, i32) {
    %c0_i32 = arith.constant 0 : i32
    %c0_i32_0 = arith.constant 0 : i32
    %c0_i32_1 = arith.constant 0 : i32
    return %c0_i32, %c0_i32_0 : i32, i32
  }
  func.func @transform_15(%arg0: i32) -> (i32, i32) {
    %c0_i32 = arith.constant 0 : i32
    %c0_i32_0 = arith.constant 0 : i32
    %c0_i32_1 = arith.constant 0 : i32
    return %c0_i32, %c0_i32_0 : i32, i32
  }
  func.func @transform_16(%arg0: i32) -> (i32, i32) {
    %c0_i32 = arith.constant 0 : i32
    %c0_i32_0 = arith.constant 0 : i32
    %c0_i32_1 = arith.constant 0 : i32
    return %c0_i32, %c0_i32_0 : i32, i32
  }
  func.func @transform_17(%arg0: i32) -> (i32, i32) {
    %c0_i32 = arith.constant 0 : i32
    %c0_i32_0 = arith.constant 0 : i32
    %c0_i32_1 = arith.constant 0 : i32
    return %c0_i32, %c0_i32_0 : i32, i32
  }
}

</mosaic_0001>

<bundles_post_ra>
// kernel: encoder_decoder_forward.1
= control target key start
LH: loop header
LB: loop body
LE: loop exit
PB: predicated region body
PF: predicated region fallthrough
CT: control target
= control target key end

     0   :  { %s12198_s0 = inlined_call_operand.vmem [shape: f32[16,32], index: 0, kind: input, shape index: {}]   ;;  %s12199_s1 = inlined_call_operand.vmem [shape: f32[16,32], index: 1, kind: input, shape index: {}]   ;;  %s12200_s2 = inlined_call_operand.vmem [shape: f32[16,16], index: 2, kind: input, shape index: {}, may-alias: {2,4}]   ;;  %s12201_s3 = inlined_call_operand.vmem [shape: f32[16,16], index: 3, kind: input, shape index: {}]   ;;  %s12202_s4 = inlined_call_operand.vmem [shape: f32[16,16], index: 4, kind: input, shape index: {}, may-alias: {2,4}]   ;;  %s12203_s5 = inlined_call_operand.vmem [shape: f32[6,32,32], index: 5, kind: input, shape index: {}]   ;;  %s12204_s6 = inlined_call_operand.vmem [shape: f32[6,32], index: 6, kind: input, shape index: {}]   ;;  %s12205_s7 = inlined_call_operand.vmem [shape: f32[6,32,64], index: 7, kind: input, shape index: {}]   ;;  %s12206_s8 = inlined_call_operand.vmem [shape: f32[6,64], index: 8, kind: input, shape index: {}]   ;;  %s12207_s9 = inlined_call_operand.vmem [shape: f32[6,32,32], index: 9, kind: input, shape index: {}]   ;;  %s12208_s10 = inlined_call_operand.vmem [shape: f32[6,32], index: 10, kind: input, shape index: {}]   ;;  %s12209_s11 = inlined_call_operand.vmem [shape: f32[4,32,64], index: 11, kind: input, shape index: {}]   ;;  %s12210_s12 = inlined_call_operand.vmem [shape: f32[4,64], index: 12, kind: input, shape index: {}]   ;;  %s12211_s13 = inlined_call_operand.vmem [shape: f32[4,64,32], index: 13, kind: input, shape index: {}]   ;;  %s12212_s14 = inlined_call_operand.vmem [shape: f32[4,32], index: 14, kind: input, shape index: {}]   ;;  %s12213_s15 = inlined_call_operand.vmem [shape: f32[12,32], index: 15, kind: input, shape index: {}]   ;;  %s12214_s16 = inlined_call_operand.vmem [shape: f32[12,32], index: 16, kind: input, shape index: {}]   ;;  %s12215_s17 = inlined_call_operand.hbm [shape: f32[16,32], index: 17, kind: output, shape index: {}]  }
   0x1   :  { %12245 = sst [smem:[#allocation5_spill]] %s12198_s0 }
   0x2   :  { %12246 = sst [smem:[#allocation6_spill]] %s12199_s1 }
   0x3   :  { %12247 = sst [smem:[#allocation7_spill]] %s12202_s4 }
   0x4   :  { %12248 = sst [smem:[#allocation8_spill]] %s12208_s10 }
   0x5   :  { %12249 = sst [smem:[#allocation9_spill]] %s12209_s11 }
   0x6   :  { %12250 = sst [smem:[#allocation10_spill]] %s12215_s17 }
   0x7   :  { %s12251_s26 = sld [smem:[#allocation5_spill]]  ;;  %vm65_vm0 = vcmask 261120  }
   0xd   :  { %v10651_v0 = vld [vmem:[%s12251_s26] sm:$0xff]  ;;  %v10656_v1 = vld [vmem:[%s12251_s26 + $0x8] sm:$0xff] }
   0xe   :  { %22 = vsyncpa [#allocation3], 0  ;;  %v66_v2 = vsel %vm65_vm0, %v10651_v0, 0.0  ;;  %v69_v3 = vsel %vm65_vm0, %v10656_v1, 0.0  ;;  %v121_v14 = vld [vmem:[%s12203_s5] sm:$0xff]  ;;  %v122_v15 = vld [vmem:[%s12203_s5 + $0x8] sm:$0xff] }
   0xf   :  { %67 = vadd.xlane.f32.xlu0 %v66_v2  ;;  %v123_v16 = vld [vmem:[%s12203_s5 + $0x10] sm:$0xff]  ;;  %v9526_v17 = vpack.c.bf16 %v122_v15, %v121_v14  ;;  %v124_v18 = vld [vmem:[%s12203_s5 + $0x18] sm:$0xff]  ;;  %v211_v20 = vld [vmem:[%s12205_s7] sm:$0xff]  ;;  %vm295_vm5 = vcmask 64512   ;;  %vm387_vm7 = vcmask 130048   ;;  %s12236_s27 = smov 120  }
  0x10   :  { %v9530_v19 = vpack.c.bf16 %v124_v18, %v123_v16  ;;  %v212_v21 = vld [vmem:[%s12205_s7 + $0x8] sm:$0xff]  ;;  %v8166_v40 = vld [vmem:[%s12213_s15] ss:$0 sm:$0xff]  ;;  %v213_v47 = vld [vmem:[%s12205_s7 + $0x10] sm:$0xff]  ;;  %s12234_s28 = smov 96   ;;  %s12232_s29 = smov 112  }
  0x11   :  { %9527 = vmatprep.subr.bf16.mxu1 %v9526_v17  ;;  %v9534_v22 = vpack.c.bf16 %v212_v21, %v211_v20  ;;  %v8167_v42 = vld [vmem:[%s12214_s16] ss:$0 sm:$0xff]  ;;  %v214_v48 = vld [vmem:[%s12205_s7 + $0x18] sm:$0xff]  ;;  %vm10712_vm6 = vmpackc.low %vm295_vm5, %vm295_vm5  ;;  %s12230_s0 = smov 88   ;;  %s12226_s30 = smov 104   ;;  %vm1137_vm8 = vcmask 195584  }
  0x12   :  { %9529 = vmatpush3.bf16.msra.mxu1 %v9526_v17  ;;  %v9538_v51 = vpack.c.bf16 %v214_v48, %v213_v47  ;;  %v8168_v52 = vld [vmem:[%s12204_s6] ss:$0 sm:$0xff]  ;;  %s12228_s18 = smov 80   ;;  %s12220_s19 = smov 8   ;;  %vm1391_vm13 = vcmask 523264  }
  0x13   :  { %70 = vadd.xlane.f32.xlu0 %v69_v3  ;;  %9531 = vmatprep.subr.bf16.mxu1 %v9530_v19  ;;  %v8171_v56 = vld [vmem:[%s12206_s8] ss:$0 sm:$0xff]  ;;  %s12218_s1 = smov 16   ;;  %s12224_s20 = smov 72  }
  0x14   :  { %s12222_s21 = smov 24   ;;  %s12257_s24 = smov 16  }
  0x15   :  { %s12258_s25 = smov 24   ;;  %s12261_s26 = smov 112  }
  0x16   :  { %9533 = vmatpush3.bf16.msra.mxu1 %v9530_v19  ;;  %s12264_s22 = smov 120   ;;  %s12266_s23 = sld [smem:[#allocation7_spill]] }
  0x17   :  { %9535 = vmatprep.subr.bf16.mxu1 %v9534_v22 }
  0x9c   :  { %v68_v4 = vpop.xlane.xlu0 %67 }
  0x9d   :  { %v73_v5 = vmul.f32 0.03125, %v68_v4  ;;  %v10729_v4 = vld [vmem:[%s12200_s2 + $0x8] sm:$0xff] }
  0x9f   :  { %v75_v6 = vsub.f32 %v10651_v0, %v73_v5 }
  0xa0   :  { %v71_v7 = vpop.xlane.xlu0 %70 }
  0xa1   :  { %v74_v8 = vmul.f32 0.03125, %v71_v7  ;;  %v77_v9 = vmul.f32 %v75_v6, %v75_v6  ;;  %v10734_v7 = vld [vmem:[%s12200_s2] sm:$0xff] }
  0xa3   :  { %v76_v10 = vsub.f32 %v10656_v1, %v74_v8  ;;  %v79_v11 = vsel %vm65_vm0, %v77_v9, 0.0 }
  0xa4   :  { %80 = vadd.xlane.f32.xlu1 %v79_v11 }
  0xa5   :  { %v78_v12 = vmul.f32 %v76_v10, %v76_v10 }
  0xa7   :  { %v82_v13 = vsel %vm65_vm0, %v78_v12, 0.0 }
  0xa8   :  { %83 = vadd.xlane.f32.xlu1 %v82_v13 }
 0x131   :  { %v81_v23 = vpop.xlane.xlu1 %80 }
 0x132   :  { %v85_v24 = vmul.f32 0.032258064, %v81_v23 }
 0x134   :  { %10228 = vrsqrt.f32 %v85_v24  ;;  %vm89_vm1 = vcmp.eq.f32.partialorder %v85_v24, inf  ;;  %v92_v29 = vand.u32 2147483648, %v85_v24  ;;  %vm91_vm2 = vcmp.eq.f32.partialorder %v85_v24, 0.0 }
 0x135   :  { %v84_v25 = vpop.xlane.xlu1 %83 }
 0x136   :  { %v86_v26 = vmul.f32 0.032258064, %v84_v25 }
 0x138   :  { %10230 = vrsqrt.f32 %v86_v26  ;;  %vm96_vm3 = vcmp.eq.f32.partialorder %v86_v26, inf  ;;  %v99_v35 = vand.u32 2147483648, %v86_v26  ;;  %vm98_vm4 = vcmp.eq.f32.partialorder %v86_v26, 0.0 }
 0x13e   :  { %v10229_v27 = vpop.eup %10228 }
 0x13f   :  { %v88_v28 = vmul.f32 %v10229_v27, %v85_v24 }
 0x141   :  { %v90_v30 = vsel %vm89_vm1, %v85_v24, %v88_v28 }
 0x142   :  { %v10231_v31 = vpop.eup %10230  ;;  %v93_v32 = vsel %vm91_vm2, %v92_v29, %v90_v30 }
 0x143   :  { %v95_v33 = vmul.f32 %v10231_v31, %v86_v26  ;;  %v101_v34 = vadd.f32 1e-06, %v93_v32 }
 0x145   :  { %v97_v36 = vsel %vm96_vm3, %v86_v26, %v95_v33  ;;  %10232 = vrcp.f32 %v101_v34 }
 0x146   :  { %v100_v37 = vsel %vm98_vm4, %v99_v35, %v97_v36 }
 0x147   :  { %v102_v38 = vadd.f32 1e-06, %v100_v37 }
 0x149   :  { %10234 = vrcp.f32 %v102_v38 }
 0x14f   :  { %v10233_v39 = vpop.eup %10232 }
 0x150   :  { %v105_v41 = vmul.f32 %v10233_v39, %v75_v6 }
 0x152   :  { %v112_v43 = vmul.f32 %v8166_v40, %v105_v41 }
 0x153   :  { %v10235_v44 = vpop.eup %10234 }
 0x154   :  { %v106_v45 = vmul.f32 %v10235_v44, %v76_v10  ;;  %v119_v46 = vadd.f32 %v8167_v42, %v112_v43 }
 0x156   :  { %v113_v49 = vmul.f32 %v8166_v40, %v106_v45  ;;  %8880 = vmatprep.mubr.msk.f32.mxu1 %vm65_vm0, %v119_v46 }
 0x158   :  { %v120_v50 = vadd.f32 %v8167_v42, %v113_v49 }
 0x15a   :  { %8881 = vmatmul.mubr.msk.f32.vlgmr.msra.gmra.mrb[0].mxu1 %vm65_vm0, %v120_v50 }
 0x15b   :  { %9537 = vmatpush3.bf16.msra.mxu1 %v9534_v22  ;;  %8891 = vmatprep.mubr.msk.f32.mxu1 %vm65_vm0, %v119_v46 }
 0x15c   :  { %9539 = vmatprep.subr.bf16.mxu1 %v9538_v51 }
 0x15f   :  { %9541 = vmatpush3.bf16.msra.mxu1 %v9538_v51 }
 0x162   :  { %8892 = vmatmul.mubr.msk.f32.vlgmr.msra.gmra.mrb[2].mxu1 %vm65_vm0, %v120_v50 }
 0x22d   :  { %v8882_v53 = vpop.f32.mrb[0].mxu1 }
 0x22e   :  { %v202_v54 = vpop.f32.mrb[1].mxu1  ;;  %v10722_v2 = vadd.f32 %v8882_v53, %v8168_v52 }
 0x22f   :  { %v10703_v55 = vadd.f32 %v8168_v52, %v202_v54 }
 0x231   :  { %8898 = vmatprep.mubr.msk.f32.mxu0 %vm295_vm5, %v10703_v55 }
 0x235   :  { %v8893_v57 = vpop.f32.mrb[2].mxu1 }
 0x236   :  { %v292_v58 = vadd.f32 %v8893_v57, %v8171_v56  ;;  %v286_v59 = vpop.f32.mrb[3].mxu1 }
 0x237   :  { %v287_v60 = vadd.f32 %v8171_v56, %v286_v59 }
 0x239   :  { %v9542_v62 = vpack.c.bf16 %v292_v58, %v287_v60  ;;  %v10716_v63 = vpack.i.bf16 %v292_v58, %v287_v60 }
 0x23b   :  { %9544 = vmatprep.subr.msk.bf16.mxu0 %vm10712_vm6, %v9542_v62 }
 0x23c   :  { %9547 = vmatpush3.bf16.xpose.msk.msra.mxu0 %vm10712_vm6, %v9542_v62 }
 0x243   :  { %8899 = vmatmul.mubr.msk.f32.vlgmr.msra.gmra.mrb[0].mxu0 %vm295_vm5, %v10722_v2 }
 0x316   :  { %v8900_v3 = vpop.f32.mrb[0].mxu0 }
 0x317   :  { %v384_v5 = vmul.f32 0.35355338, %v8900_v3  ;;  %v374_v6 = vpop.f32.mrb[1].mxu0 }
 0x318   :  { %v383_v8 = vmul.f32 0.35355338, %v374_v6 }
 0x319   :  { %v386_v9 = vadd.f32 %v384_v5, %v10729_v4 }
 0x31a   :  { %v385_v10 = vadd.f32 %v383_v8, %v10734_v7 }
 0x31b   :  { %v391_v11 = vsel %vm387_vm7, %v386_v9, -inf }
 0x31c   :  { %392 = vmax.xlane.f32.xlu1 %v391_v11  ;;  %v388_v12 = vsel %vm387_vm7, %v385_v10, -inf }
 0x31d   :  { %389 = vmax.xlane.f32.xlu0 %v388_v12 }
 0x3a9   :  { %v393_v13 = vpop.xlane.xlu1 %392 }
 0x3aa   :  { %v395_v14 = vsub.f32 %v386_v9, %v393_v13  ;;  %v390_v15 = vpop.xlane.xlu0 %389 }
 0x3ab   :  { %v394_v16 = vsub.f32 %v385_v10, %v390_v15 }
 0x3ac   :  { %v398_v17 = vmul.f32 1.442695, %v395_v14 }
 0x3ad   :  { %v396_v18 = vmul.f32 1.442695, %v394_v16 }
 0x3ae   :  { %10236 = vpow2.f32 %v398_v17 }
 0x3af   :  { %10238 = vpow2.f32 %v396_v18 }
 0x3b8   :  { %v10237_v19 = vpop.eup %10236 }
 0x3b9   :  { %v10239_v20 = vpop.eup %10238  ;;  %v403_v21 = vsel %vm387_vm7, %v10237_v19, 0.0 }
 0x3ba   :  { %404 = vadd.xlane.f32.xlu1 %v403_v21  ;;  %v400_v22 = vsel %vm387_vm7, %v10239_v20, 0.0 }
 0x3bb   :  { %401 = vadd.xlane.f32.xlu0 %v400_v22 }
 0x3cb   :  { %10024 = vrot.lane.b32.xlu1 %v10716_v63, %s12236_s27 }
 0x3cf   :  { %497 = vrot.lane.b32.xlu1 %v10703_v55, %s12236_s27 }
 0x3d1   :  { %10019 = vrot.lane.b32.xlu0 %v10716_v63, %s12234_s28 }
 0x3d3   :  { %499 = vrot.lane.b32.xlu1 %v10722_v2, %s12236_s27 }
 0x447   :  { %v405_v23 = vpop.xlane.xlu1 %404 }
 0x448   :  { %10240 = vrcp.f32 %v405_v23  ;;  %v402_v24 = vpop.xlane.xlu0 %401 }
 0x449   :  { %10242 = vrcp.f32 %v402_v24 }
 0x44b   :  { %v10025_v25 = vpop.permute.xlu1 %10024 }
 0x44c   :  { %v10020_v26 = vpop.permute.xlu0 %10019  ;;  %v10027_v27 = vunpack.i.h.bf16 %v10025_v25  ;;  %v10026_v28 = vunpack.i.l.bf16 %v10025_v25 }
 0x44d   :  { %v10022_v29 = vunpack.i.h.bf16 %v10020_v26  ;;  %v10021_v30 = vunpack.i.l.bf16 %v10020_v26 }
 0x44e   :  { %v9552_v32 = vpack.c.bf16 %v10027_v27, %v10026_v28 }
 0x44f   :  { %v9548_v31 = vpack.c.bf16 %v10022_v29, %v10021_v30  ;;  %v498_v37 = vpop.permute.xlu1 %497 }
 0x451   :  { %9549 = vmatprep.subr.bf16.mxu1 %v9548_v31 }
 0x452   :  { %v10241_v33 = vpop.eup %10240  ;;  %9551 = vmatpush3.bf16.msra.mxu1 %v9548_v31 }
 0x453   :  { %v10243_v34 = vpop.eup %10242  ;;  %9554 = vmatprep.subr.msk.bf16.mxu1 %vm10712_vm6, %v9552_v32  ;;  %v409_v36 = vmul.f32 %v10241_v33, %v10237_v19  ;;  %v500_v38 = vpop.permute.xlu1 %499 }
 0x454   :  { %v408_v35 = vmul.f32 %v10243_v34, %v10239_v20 }
 0x456   :  { %8905 = vmatprep.mubr.msk.f32.mxu1 %vm387_vm7, %v408_v35 }
 0x457   :  { %8906 = vmatmul.mubr.msk.f32.vlgmr.msra.gmra.mrb[4].mxu1 %vm387_vm7, %v409_v36 }
 0x458   :  { %8912 = vmatprep.mubr.msk.f32.mxu1 %vm295_vm5, %v498_v37 }
 0x45b   :  { %9557 = vmatpush3.bf16.xpose.msk.msra.mxu1 %vm10712_vm6, %v9552_v32 }
 0x462   :  { %8913 = vmatmul.mubr.msk.f32.vlgmr.msra.gmra.mrb[6].mxu1 %vm295_vm5, %v500_v38 }
 0x52a   :  { %v10758_v39 = vpop.f32.mrb[4].mxu1 }
 0x52b   :  { %v10760_v40 = vpop.f32.mrb[5].mxu1 }
 0x535   :  { %v8914_v41 = vpop.f32.mrb[6].mxu1 }
 0x536   :  { %v589_v42 = vmul.f32 0.35355338, %v8914_v41  ;;  %v579_v43 = vpop.f32.mrb[7].mxu1 }
 0x537   :  { %v588_v44 = vmul.f32 0.35355338, %v579_v43 }
 0x538   :  { %v591_v45 = vadd.f32 %v589_v42, %v10729_v4 }
 0x539   :  { %v590_v46 = vadd.f32 %v588_v44, %v10734_v7 }
 0x53a   :  { %v595_v47 = vsel %vm387_vm7, %v591_v45, -inf }
 0x53b   :  { %596 = vmax.xlane.f32.xlu1 %v595_v47  ;;  %v592_v48 = vsel %vm387_vm7, %v590_v46, -inf }
 0x53c   :  { %593 = vmax.xlane.f32.xlu0 %v592_v48 }
 0x54c   :  { %10034 = vrot.lane.b32.xlu1 %v10716_v63, %s12232_s29 }
 0x550   :  { %701 = vrot.lane.b32.xlu1 %v10703_v55, %s12232_s29 }
 0x554   :  { %703 = vrot.lane.b32.xlu1 %v10722_v2, %s12232_s29 }
 0x5c8   :  { %v597_v49 = vpop.xlane.xlu1 %596 }
 0x5c9   :  { %v599_v50 = vsub.f32 %v591_v45, %v597_v49  ;;  %v594_v51 = vpop.xlane.xlu0 %593 }
 0x5ca   :  { %v598_v52 = vsub.f32 %v590_v46, %v594_v51 }
 0x5cb   :  { %v602_v53 = vmul.f32 1.442695, %v599_v50 }
 0x5cc   :  { %v600_v54 = vmul.f32 1.442695, %v598_v52  ;;  %v10035_v3 = vpop.permute.xlu1 %10034 }
 0x5cd   :  { %10244 = vpow2.f32 %v602_v53  ;;  %v10037_v6 = vunpack.i.h.bf16 %v10035_v3  ;;  %v10036_v8 = vunpack.i.l.bf16 %v10035_v3 }
 0x5ce   :  { %10246 = vpow2.f32 %v600_v54 }
 0x5cf   :  { %v9562_v12 = vpack.c.bf16 %v10037_v6, %v10036_v8 }
 0x5d0   :  { %v702_v17 = vpop.permute.xlu1 %701 }
 0x5d4   :  { %v704_v18 = vpop.permute.xlu1 %703 }
 0x5d7   :  { %v10245_v56 = vpop.eup %10244 }
 0x5d8   :  { %v607_v57 = vsel %vm387_vm7, %v10245_v56, 0.0  ;;  %v10247_v58 = vpop.eup %10246 }
 0x5d9   :  { %608 = vadd.xlane.f32.xlu0 %v607_v57  ;;  %v604_v59 = vsel %vm387_vm7, %v10247_v58, 0.0 }
 0x5dd   :  { %605 = vadd.xlane.f32.xlu0 %v604_v59 }
 0x5f3   :  { %10029 = vrot.lane.b32.xlu0 %v10716_v63, %s12230_s0 }
 0x666   :  { %v609_v60 = vpop.xlane.xlu0 %608 }
 0x667   :  { %10248 = vrcp.f32 %v609_v60 }
 0x66a   :  { %v606_v62 = vpop.xlane.xlu0 %605 }
 0x66b   :  { %10250 = vrcp.f32 %v606_v62 }
 0x66e   :  { %v10030_v5 = vpop.permute.xlu0 %10029 }
 0x66f   :  { %v10032_v9 = vunpack.i.h.bf16 %v10030_v5  ;;  %v10031_v10 = vunpack.i.l.bf16 %v10030_v5 }
 0x671   :  { %v9558_v11 = vpack.c.bf16 %v10032_v9, %v10031_v10  ;;  %v10249_v13 = vpop.eup %10248 }
 0x672   :  { %v613_v16 = vmul.f32 %v10249_v13, %v10245_v56 }
 0x673   :  { %9559 = vmatprep.subr.bf16.mxu0 %v9558_v11 }
 0x674   :  { %9561 = vmatpush3.bf16.msra.mxu0 %v9558_v11 }
 0x675   :  { %v10251_v14 = vpop.eup %10250  ;;  %9564 = vmatprep.subr.msk.bf16.mxu0 %vm10712_vm6, %v9562_v12 }
 0x676   :  { %v612_v15 = vmul.f32 %v10251_v14, %v10247_v58 }
 0x678   :  { %8919 = vmatprep.mubr.msk.f32.mxu0 %vm387_vm7, %v612_v15 }
 0x679   :  { %8920 = vmatmul.mubr.msk.f32.vlgmr.msra.gmra.mrb[2].mxu0 %vm387_vm7, %v613_v16 }
 0x67a   :  { %8926 = vmatprep.mubr.msk.f32.mxu0 %vm295_vm5, %v702_v17 }
 0x67d   :  { %9567 = vmatpush3.bf16.xpose.msk.msra.mxu0 %vm10712_vm6, %v9562_v12 }
 0x684   :  { %8927 = vmatmul.mubr.msk.f32.vlgmr.msra.gmra.mrb[4].mxu0 %vm295_vm5, %v704_v18 }
 0x74c   :  { %v10784_v19 = vpop.f32.mrb[2].mxu0 }
 0x74d   :  { %v10786_v20 = vpop.f32.mrb[3].mxu0 }
 0x757   :  { %v8928_v21 = vpop.f32.mrb[4].mxu0 }
 0x758   :  { %v793_v22 = vmul.f32 0.35355338, %v8928_v21  ;;  %v783_v23 = vpop.f32.mrb[5].mxu0 }
 0x759   :  { %v792_v24 = vmul.f32 0.35355338, %v783_v23 }
 0x75a   :  { %v795_v25 = vadd.f32 %v793_v22, %v10729_v4 }
 0x75b   :  { %v794_v26 = vadd.f32 %v792_v24, %v10734_v7 }
 0x75c   :  { %v799_v27 = vsel %vm387_vm7, %v795_v25, -inf }
 0x75d   :  { %800 = vmax.xlane.f32.xlu1 %v799_v27  ;;  %v796_v28 = vsel %vm387_vm7, %v794_v26, -inf }
 0x75e   :  { %797 = vmax.xlane.f32.xlu0 %v796_v28 }
 0x76e   :  { %10044 = vrot.lane.b32.xlu1 %v10716_v63, %s12226_s30 }
 0x772   :  { %905 = vrot.lane.b32.xlu1 %v10703_v55, %s12226_s30 }
 0x776   :  { %907 = vrot.lane.b32.xlu1 %v10722_v2, %s12226_s30  ;;  %s12255_s30 = smov 72  }
 0x7ea   :  { %v801_v29 = vpop.xlane.xlu1 %800 }
 0x7eb   :  { %v803_v30 = vsub.f32 %v795_v25, %v801_v29  ;;  %v798_v31 = vpop.xlane.xlu0 %797  ;;  %v1141_v29 = vld [vmem:[%s12207_s9 + $0x8] sm:$0xff] }
 0x7ec   :  { %v802_v32 = vsub.f32 %v794_v26, %v798_v31 }
 0x7ed   :  { %v806_v33 = vmul.f32 1.442695, %v803_v30  ;;  %v1142_v30 = vld [vmem:[%s12207_s9 + $0x10] sm:$0xff] }
 0x7ee   :  { %v804_v34 = vmul.f32 1.442695, %v802_v32  ;;  %v10045_v41 = vpop.permute.xlu1 %10044  ;;  %v1143_v32 = vld [vmem:[%s12207_s9 + $0x18] sm:$0xff] }
 0x7ef   :  { %10252 = vpow2.f32 %v806_v33  ;;  %v10047_v43 = vunpack.i.h.bf16 %v10045_v41  ;;  %v10046_v44 = vunpack.i.l.bf16 %v10045_v41  ;;  %v9586_v33 = vpack.c.bf16 %v1143_v32, %v1142_v30 }
 0x7f0   :  { %10254 = vpow2.f32 %v804_v34 }
 0x7f1   :  { %v9572_v48 = vpack.c.bf16 %v10047_v43, %v10046_v44 }
 0x7f2   :  { %v906_v53 = vpop.permute.xlu1 %905 }
 0x7f6   :  { %v908_v54 = vpop.permute.xlu1 %907 }
 0x7f9   :  { %v10253_v35 = vpop.eup %10252 }
 0x7fa   :  { %v811_v36 = vsel %vm387_vm7, %v10253_v35, 0.0  ;;  %v10255_v37 = vpop.eup %10254 }
 0x7fb   :  { %812 = vadd.xlane.f32.xlu0 %v811_v36  ;;  %v808_v38 = vsel %vm387_vm7, %v10255_v37, 0.0 }
 0x7ff   :  { %809 = vadd.xlane.f32.xlu0 %v808_v38 }
 0x815   :  { %10039 = vrot.lane.b32.xlu0 %v10716_v63, %s12228_s18 }
 0x888   :  { %v813_v55 = vpop.xlane.xlu0 %812 }
 0x889   :  { %10256 = vrcp.f32 %v813_v55 }
 0x88c   :  { %v810_v2 = vpop.xlane.xlu0 %809 }
 0x88d   :  { %10258 = vrcp.f32 %v810_v2 }
 0x890   :  { %v10040_v42 = vpop.permute.xlu0 %10039 }
 0x891   :  { %v10042_v45 = vunpack.i.h.bf16 %v10040_v42  ;;  %v10041_v46 = vunpack.i.l.bf16 %v10040_v42 }
 0x893   :  { %v9568_v47 = vpack.c.bf16 %v10042_v45, %v10041_v46  ;;  %v10257_v49 = vpop.eup %10256 }
 0x894   :  { %v817_v52 = vmul.f32 %v10257_v49, %v10253_v35 }
 0x895   :  { %9569 = vmatprep.subr.bf16.mxu1 %v9568_v47 }
 0x896   :  { %9571 = vmatpush3.bf16.msra.mxu1 %v9568_v47 }
 0x897   :  { %v10259_v50 = vpop.eup %10258  ;;  %9574 = vmatprep.subr.msk.bf16.mxu1 %vm10712_vm6, %v9572_v48 }
 0x898   :  { %v816_v51 = vmul.f32 %v10259_v50, %v10255_v37 }
 0x89a   :  { %8933 = vmatprep.mubr.msk.f32.mxu1 %vm387_vm7, %v816_v51 }
 0x89b   :  { %8934 = vmatmul.mubr.msk.f32.vlgmr.msra.gmra.mrb[8].mxu1 %vm387_vm7, %v817_v52 }
 0x89c   :  { %8940 = vmatprep.mubr.msk.f32.mxu1 %vm295_vm5, %v906_v53 }
 0x89f   :  { %9577 = vmatpush3.bf16.xpose.msk.msra.mxu1 %vm10712_vm6, %v9572_v48 }
 0x8a6   :  { %8941 = vmatmul.mubr.msk.f32.vlgmr.msra.gmra.mrb[10].mxu1 %vm295_vm5, %v908_v54 }
 0x96e   :  { %v8935_v56 = vpop.f32.mrb[8].mxu1 }
 0x96f   :  { %v896_v57 = vpop.f32.mrb[9].mxu1 }
 0x979   :  { %v8942_v58 = vpop.f32.mrb[10].mxu1 }
 0x97a   :  { %v997_v59 = vmul.f32 0.35355338, %v8942_v58  ;;  %v987_v60 = vpop.f32.mrb[11].mxu1 }
 0x97b   :  { %v996_v62 = vmul.f32 0.35355338, %v987_v60 }
 0x97c   :  { %v999_v3 = vadd.f32 %v997_v59, %v10729_v4 }
 0x97d   :  { %v998_v5 = vadd.f32 %v996_v62, %v10734_v7 }
 0x97e   :  { %v1003_v6 = vsel %vm387_vm7, %v999_v3, -inf }
 0x97f   :  { %1004 = vmax.xlane.f32.xlu1 %v1003_v6  ;;  %v1000_v8 = vsel %vm387_vm7, %v998_v5, -inf  ;;  %v1286_v6 = vld [vmem:[%s12209_s11] sm:$0xff] }
 0x980   :  { %1001 = vmax.xlane.f32.xlu0 %v1000_v8  ;;  %v1287_v8 = vld [vmem:[%s12209_s11 + $0x8] sm:$0xff] }
 0x990   :  { %1111 = vrot.lane.b32.xlu1 %v10786_v20, %s12220_s19 }
 0x994   :  { %1113 = vrot.lane.b32.xlu1 %v10784_v19, %s12220_s19  ;;  %s12262_s19 = smov 88  }
 0x998   :  { %1119 = vrot.lane.b32.xlu1 %v896_v57, %s12218_s1 }
 0xa0c   :  { %v1005_v9 = vpop.xlane.xlu1 %1004 }
 0xa0d   :  { %v1007_v10 = vsub.f32 %v999_v3, %v1005_v9  ;;  %v1002_v11 = vpop.xlane.xlu0 %1001  ;;  %v1288_v9 = vld [vmem:[%s12209_s11 + $0x10] sm:$0xff] }
 0xa0e   :  { %v1006_v12 = vsub.f32 %v998_v5, %v1002_v11  ;;  %v1289_v11 = vld [vmem:[%s12209_s11 + $0x18] sm:$0xff] }
 0xa0f   :  { %v1010_v13 = vmul.f32 1.442695, %v1007_v10  ;;  %v9590_v10 = vpack.c.bf16 %v1287_v8, %v1286_v6 }
 0xa10   :  { %v1008_v14 = vmul.f32 1.442695, %v1006_v12  ;;  %v1112_v36 = vpop.permute.xlu1 %1111  ;;  %v9594_v12 = vpack.c.bf16 %v1289_v11, %v1288_v9 }
 0xa11   :  { %10260 = vpow2.f32 %v1010_v13  ;;  %v1133_v2 = vsel %vm295_vm5, %v10760_v40, %v1112_v36  ;;  %v8198_v40 = vld [vmem:[%s12208_s10] ss:$0 sm:$0xff]  ;;  %9591 = vmatprep.subr.bf16.mxu1 %v9590_v10 }
 0xa12   :  { %10262 = vpow2.f32 %v1008_v14  ;;  %9593 = vmatpush3.bf16.msra.mxu1 %v9590_v10  ;;  %v1378_v13 = vld [vmem:[%s12211_s13] sm:$0xff]  ;;  %v1379_v14 = vld [vmem:[%s12211_s13 + $0x8] sm:$0xff] }
 0xa13   :  { %9595 = vmatprep.subr.bf16.mxu1 %v9594_v12 }
 0xa14   :  { %v1114_v37 = vpop.permute.xlu1 %1113 }
 0xa15   :  { %v1134_v42 = vsel %vm295_vm5, %v10758_v39, %v1114_v37 }
 0xa16   :  { %9597 = vmatpush3.bf16.msra.mxu1 %v9594_v12 }
 0xa18   :  { %v1120_v55 = vpop.permute.xlu1 %1119 }
 0xa19   :  { %v1135_v43 = vsel %vm387_vm7, %v1133_v2, %v1120_v55  ;;  %v8202_v2 = vld [vmem:[%s12214_s16 + $0x1] ss:$0 sm:$0xff] }
 0xa1b   :  { %v10261_v15 = vpop.eup %10260 }
 0xa1c   :  { %v1015_v16 = vsel %vm387_vm7, %v10261_v15, 0.0  ;;  %v10263_v17 = vpop.eup %10262 }
 0xa1d   :  { %1016 = vadd.xlane.f32.xlu0 %v1015_v16  ;;  %v1012_v18 = vsel %vm387_vm7, %v10263_v17, 0.0  ;;  %v9598_v16 = vpack.c.bf16 %v1379_v14, %v1378_v13 }
 0xa21   :  { %1013 = vadd.xlane.f32.xlu0 %v1012_v18 }
 0xa37   :  { %10049 = vrot.lane.b32.xlu0 %v10716_v63, %s12224_s20  ;;  %v1140_v63 = vld [vmem:[%s12207_s9] sm:$0xff]  ;;  %s12256_s20 = smov 8  }
 0xa38   :  { %v9582_v31 = vpack.c.bf16 %v1141_v29, %v1140_v63 }
 0xa3b   :  { %1121 = vrot.lane.b32.xlu0 %v8935_v56, %s12218_s1  ;;  %s12259_s1 = sld [smem:[#allocation6_spill]] }
 0xaaa   :  { %v1017_v19 = vpop.xlane.xlu0 %1016 }
 0xaab   :  { %10264 = vrcp.f32 %v1017_v19  ;;  %v1382_v19 = vld [vmem:[%s12211_s13 + $0x20] sm:$0xff] }
 0xaae   :  { %v1014_v20 = vpop.xlane.xlu0 %1013 }
 0xaaf   :  { %10266 = vrcp.f32 %v1014_v20  ;;  %v1383_v20 = vld [vmem:[%s12211_s13 + $0x28] sm:$0xff] }
 0xab2   :  { %v10050_v21 = vpop.permute.xlu0 %10049 }
 0xab3   :  { %v10052_v22 = vunpack.i.h.bf16 %v10050_v21  ;;  %v10051_v23 = vunpack.i.l.bf16 %v10050_v21  ;;  %v9606_v21 = vpack.c.bf16 %v1383_v20, %v1382_v19  ;;  %v8214_v20 = vld [vmem:[%s12203_s5 + $0x38] sm:$0xff] }
 0xab5   :  { %v9578_v24 = vpack.c.bf16 %v10052_v22, %v10051_v23  ;;  %v10265_v25 = vpop.eup %10264 }
 0xab6   :  { %v1021_v28 = vmul.f32 %v10265_v25, %v10261_v15  ;;  %v1122_v38 = vpop.permute.xlu0 %1121  ;;  %v1380_v15 = vld [vmem:[%s12211_s13 + $0x10] sm:$0xff] }
 0xab7   :  { %9579 = vmatprep.subr.bf16.mxu0 %v9578_v24  ;;  %v1136_v45 = vsel %vm387_vm7, %v1134_v42, %v1122_v38  ;;  %v8201_v38 = vld [vmem:[%s12213_s15 + $0x1] ss:$0 sm:$0xff] }
 0xab8   :  { %9581 = vmatpush3.bf16.msra.mxu0 %v9578_v24 }
 0xab9   :  { %v10267_v26 = vpop.eup %10266  ;;  %9583 = vmatprep.subr.bf16.mxu0 %v9582_v31 }
 0xaba   :  { %v1020_v27 = vmul.f32 %v10267_v26, %v10263_v17  ;;  %v1381_v17 = vld [vmem:[%s12211_s13 + $0x18] sm:$0xff] }
 0xabb   :  { %v9602_v18 = vpack.c.bf16 %v1381_v17, %v1380_v15  ;;  %v8212_v17 = vld [vmem:[%s12203_s5 + $0x28] sm:$0xff] }
 0xabc   :  { %8947 = vmatprep.mubr.msk.f32.mxu0 %vm387_vm7, %v1020_v27 }
 0xabd   :  { %8948 = vmatmul.mubr.msk.f32.vlgmr.msra.gmra.mrb[6].mxu0 %vm387_vm7, %v1021_v28 }
 0xabe   :  { %9585 = vmatpush3.bf16.msra.mxu0 %v9582_v31 }
 0xabf   :  { %9587 = vmatprep.subr.bf16.mxu0 %v9586_v33 }
 0xac2   :  { %9589 = vmatpush3.bf16.msra.mxu0 %v9586_v33 }
 0xac3   :  { %9599 = vmatprep.subr.bf16.mxu0 %v9598_v16 }
 0xb90   :  { %v8949_v34 = vpop.f32.mrb[6].mxu0 }
 0xb91   :  { %1129 = vrot.lane.b32.xlu0 %v8949_v34, %s12222_s21  ;;  %v1100_v35 = vpop.f32.mrb[7].mxu0 }
 0xb92   :  { %1127 = vrot.lane.b32.xlu1 %v1100_v35, %s12222_s21  ;;  %s12263_s21 = smov 80  }
 0xc03   :  { %v1130_v41 = vpop.permute.xlu0 %1129 }
 0xc04   :  { %v1128_v44 = vpop.permute.xlu1 %1127  ;;  %v1139_v47 = vsel %vm1137_vm8, %v1136_v45, %v1130_v41 }
 0xc05   :  { %v1138_v46 = vsel %vm1137_vm8, %v1135_v43, %v1128_v44 }
 0xc06   :  { %8958 = vmatprep.mubr.msk.f32.mxu0 %vm65_vm0, %v1138_v46 }
 0xc07   :  { %8959 = vmatmul.mubr.msk.f32.vlgmr.msra.gmra.mrb[8].mxu0 %vm65_vm0, %v1139_v47  ;;  %v1384_v47 = vld [vmem:[%s12211_s13 + $0x30] sm:$0xff] }
 0xc08   :  { %9601 = vmatpush3.bf16.msra.mxu0 %v9598_v16  ;;  %v8211_v16 = vld [vmem:[%s12203_s5 + $0x20] sm:$0xff] }
 0xc09   :  { %9603 = vmatprep.subr.bf16.mxu0 %v9602_v18  ;;  %v9614_v19 = vpack.c.bf16 %v8212_v17, %v8211_v16 }
 0xc0b   :  { %9615 = vmatprep.subr.bf16.mxu1 %v9614_v19 }
 0xc0c   :  { %9605 = vmatpush3.bf16.msra.mxu0 %v9602_v18  ;;  %v8213_v18 = vld [vmem:[%s12203_s5 + $0x30] sm:$0xff] }
 0xc0d   :  { %9607 = vmatprep.subr.bf16.mxu0 %v9606_v21 }
 0xc10   :  { %9609 = vmatpush3.bf16.msra.mxu0 %v9606_v21  ;;  %v9618_v21 = vpack.c.bf16 %v8214_v20, %v8213_v18 }
 0xcda   :  { %v8960_v48 = vpop.f32.mrb[8].mxu0 }
 0xcdb   :  { %v1227_v49 = vadd.f32 %v8960_v48, %v8198_v40  ;;  %v1221_v39 = vpop.f32.mrb[9].mxu0 }
 0xcdc   :  { %v1222_v50 = vadd.f32 %v8198_v40, %v1221_v39  ;;  %v1385_v40 = vld [vmem:[%s12211_s13 + $0x38] sm:$0xff] }
 0xcdd   :  { %v10854_v51 = vadd.f32 %v1227_v49, %v10656_v1  ;;  %v9610_v48 = vpack.c.bf16 %v1385_v40, %v1384_v47  ;;  %v8203_v49 = vld [vmem:[%s12210_s12] ss:$0 sm:$0xff]  ;;  %v8220_v40 = vld [vmem:[%s12205_s7 + $0x30] sm:$0xff] }
 0xcde   :  { %v10857_v52 = vadd.f32 %v1222_v50, %v10651_v0 }
 0xcdf   :  { %v1235_v53 = vsel %vm65_vm0, %v10854_v51, 0.0  ;;  %9611 = vmatprep.subr.bf16.mxu0 %v9610_v48 }
 0xce0   :  { %1236 = vadd.xlane.f32.xlu0 %v1235_v53  ;;  %v1232_v54 = vsel %vm65_vm0, %v10857_v52, 0.0  ;;  %9613 = vmatpush3.bf16.msra.mxu0 %v9610_v48  ;;  %v8221_v48 = vld [vmem:[%s12205_s7 + $0x38] sm:$0xff] }
 0xce1   :  { %1233 = vadd.xlane.f32.xlu1 %v1232_v54 }
 0xd6d   :  { %v1237_v56 = vpop.xlane.xlu0 %1236 }
 0xd6e   :  { %v1239_v57 = vmul.f32 0.03125, %v1237_v56  ;;  %v1234_v58 = vpop.xlane.xlu1 %1233 }
 0xd6f   :  { %v1238_v59 = vmul.f32 0.03125, %v1234_v58  ;;  %v8206_v58 = vld [vmem:[%s12212_s14] ss:$0 sm:$0xff] }
 0xd70   :  { %v10864_v60 = vsub.f32 %v10854_v51, %v1239_v57 }
 0xd71   :  { %v1240_v1 = vsub.f32 %v10857_v52, %v1238_v59 }
 0xd72   :  { %v1243_v3 = vmul.f32 %v10864_v60, %v10864_v60 }
 0xd73   :  { %v1242_v62 = vmul.f32 %v1240_v1, %v1240_v1 }
 0xd74   :  { %v1247_v5 = vsel %vm65_vm0, %v1243_v3, 0.0 }
 0xd75   :  { %v1244_v0 = vsel %vm65_vm0, %v1242_v62, 0.0 }
 0xd76   :  { %1245 = vadd.xlane.f32.xlu0 %v1244_v0 }
 0xd7a   :  { %1248 = vadd.xlane.f32.xlu0 %v1247_v5 }
 0xe03   :  { %v1246_v22 = vpop.xlane.xlu0 %1245 }
 0xe04   :  { %v1250_v23 = vmul.f32 0.032258064, %v1246_v22  ;;  %v8218_v22 = vld [vmem:[%s12205_s7 + $0x20] sm:$0xff] }
 0xe06   :  { %10268 = vrsqrt.f32 %v1250_v23  ;;  %vm1254_vm9 = vcmp.eq.f32.partialorder %v1250_v23, inf  ;;  %v1257_v28 = vand.u32 2147483648, %v1250_v23  ;;  %vm1256_vm10 = vcmp.eq.f32.partialorder %v1250_v23, 0.0 }
 0xe07   :  { %v1249_v24 = vpop.xlane.xlu0 %1248 }
 0xe08   :  { %v1251_v25 = vmul.f32 0.032258064, %v1249_v24 }
 0xe0a   :  { %10270 = vrsqrt.f32 %v1251_v25  ;;  %vm1261_vm11 = vcmp.eq.f32.partialorder %v1251_v25, inf  ;;  %v1264_v33 = vand.u32 2147483648, %v1251_v25  ;;  %vm1263_vm12 = vcmp.eq.f32.partialorder %v1251_v25, 0.0 }
 0xe10   :  { %v10269_v26 = vpop.eup %10268 }
 0xe11   :  { %v1253_v27 = vmul.f32 %v10269_v26, %v1250_v23 }
 0xe13   :  { %v1255_v63 = vsel %vm1254_vm9, %v1250_v23, %v1253_v27  ;;  %v8219_v23 = vld [vmem:[%s12205_s7 + $0x28] sm:$0xff] }
 0xe14   :  { %v10271_v29 = vpop.eup %10270  ;;  %v1258_v30 = vsel %vm1256_vm10, %v1257_v28, %v1255_v63  ;;  %v9622_v24 = vpack.c.bf16 %v8219_v23, %v8218_v22 }
 0xe15   :  { %v1266_v31 = vadd.f32 1e-06, %v1258_v30  ;;  %v1260_v32 = vmul.f32 %v10271_v29, %v1251_v25 }
 0xe17   :  { %v1262_v34 = vsel %vm1261_vm11, %v1251_v25, %v1260_v32  ;;  %10272 = vrcp.f32 %v1266_v31 }
 0xe18   :  { %v1265_v35 = vsel %vm1263_vm12, %v1264_v33, %v1262_v34 }
 0xe19   :  { %v1267_v36 = vadd.f32 1e-06, %v1265_v35 }
 0xe1b   :  { %10274 = vrcp.f32 %v1267_v36 }
 0xe21   :  { %v10273_v37 = vpop.eup %10272 }
 0xe22   :  { %v1270_v55 = vmul.f32 %v10273_v37, %v1240_v1 }
 0xe24   :  { %v1277_v41 = vmul.f32 %v8201_v38, %v1270_v55 }
 0xe25   :  { %v10275_v42 = vpop.eup %10274 }
 0xe26   :  { %v1271_v43 = vmul.f32 %v10275_v42, %v10864_v60  ;;  %v1284_v44 = vadd.f32 %v8202_v2, %v1277_v41  ;;  %v8209_v41 = vld [vmem:[%s12213_s15 + $0x2] ss:$0 sm:$0xff] }
 0xe28   :  { %v1278_v45 = vmul.f32 %v8201_v38, %v1271_v43  ;;  %8969 = vmatprep.mubr.msk.f32.mxu1 %vm65_vm0, %v1284_v44 }
 0xe2a   :  { %v1285_v46 = vadd.f32 %v8202_v2, %v1278_v45 }
 0xe2c   :  { %8970 = vmatmul.mubr.msk.f32.vlgmr.msra.gmra.mrb[12].mxu1 %vm65_vm0, %v1285_v46  ;;  %v8210_v46 = vld [vmem:[%s12214_s16 + $0x2] ss:$0 sm:$0xff] }
 0xe2d   :  { %9617 = vmatpush3.bf16.msra.mxu1 %v9614_v19 }
 0xe2e   :  { %9619 = vmatprep.subr.bf16.mxu1 %v9618_v21 }
 0xe31   :  { %9621 = vmatpush3.bf16.msra.mxu1 %v9618_v21 }
 0xe32   :  { %9623 = vmatprep.subr.bf16.mxu1 %v9622_v24 }
 0xeff   :  { %v8971_v39 = vpop.f32.mrb[12].mxu1 }
 0xf00   :  { %v1373_v50 = vadd.f32 %v8971_v39, %v8203_v49  ;;  %v1367_v53 = vpop.f32.mrb[13].mxu1 }
 0xf01   :  { %v1368_v54 = vadd.f32 %v8203_v49, %v1367_v53  ;;  %v8215_v53 = vld [vmem:[%s12204_s6 + $0x1] ss:$0 sm:$0xff] }
 0xf02   :  { %v1377_v57 = vmax.f32 %v1373_v50, 0.0  ;;  %v9626_v50 = vpack.c.bf16 %v8221_v48, %v8220_v40 }
 0xf03   :  { %v1376_v56 = vmax.f32 %v1368_v54, 0.0 }
 0xf05   :  { %8988 = vmatprep.mubr.msk.f32.mxu0 %vm1391_vm13, %v1376_v56 }
 0xf06   :  { %8989 = vmatmul.mubr.msk.f32.vlgmr.msra.gmra.mrb[10].mxu0 %vm1391_vm13, %v1377_v57 }
 0xfd9   :  { %v8990_v59 = vpop.f32.mrb[10].mxu0 }
 0xfda   :  { %v1470_v60 = vadd.f32 %v8990_v59, %v8206_v58  ;;  %v1464_v1 = vpop.f32.mrb[11].mxu0 }
 0xfdb   :  { %v1465_v62 = vadd.f32 %v8206_v58, %v1464_v1  ;;  %v8222_v58 = vld [vmem:[%s12206_s8 + $0x1] ss:$0 sm:$0xff] }
 0xfdc   :  { %v10925_v0 = vadd.f32 %v1470_v60, %v10854_v51 }
 0xfdd   :  { %v10928_v3 = vadd.f32 %v1465_v62, %v10857_v52 }
 0xfde   :  { %v1478_v5 = vsel %vm65_vm0, %v10925_v0, 0.0 }
 0xfdf   :  { %1479 = vadd.xlane.f32.xlu0 %v1478_v5  ;;  %v1475_v6 = vsel %vm65_vm0, %v10928_v3, 0.0 }
 0xfe0   :  { %1476 = vadd.xlane.f32.xlu1 %v1475_v6 }
0x106c   :  { %v1480_v8 = vpop.xlane.xlu0 %1479 }
0x106d   :  { %v1482_v9 = vmul.f32 0.03125, %v1480_v8  ;;  %v1477_v10 = vpop.xlane.xlu1 %1476 }
0x106e   :  { %v1481_v11 = vmul.f32 0.03125, %v1477_v10 }
0x106f   :  { %v1484_v12 = vsub.f32 %v10925_v0, %v1482_v9 }
0x1070   :  { %v1483_v51 = vsub.f32 %v10928_v3, %v1481_v11 }
0x1071   :  { %v1486_v13 = vmul.f32 %v1484_v12, %v1484_v12 }
0x1072   :  { %v1485_v14 = vmul.f32 %v1483_v51, %v1483_v51 }
0x1073   :  { %v1490_v52 = vsel %vm65_vm0, %v1486_v13, 0.0 }
0x1074   :  { %1491 = vadd.xlane.f32.xlu0 %v1490_v52  ;;  %v1487_v15 = vsel %vm65_vm0, %v1485_v14, 0.0 }
0x1075   :  { %1488 = vadd.xlane.f32.xlu1 %v1487_v15 }
0x1101   :  { %v1492_v25 = vpop.xlane.xlu0 %1491 }
0x1102   :  { %v1494_v26 = vmul.f32 0.032258064, %v1492_v25  ;;  %v1489_v27 = vpop.xlane.xlu1 %1488 }
0x1103   :  { %v1493_v28 = vmul.f32 0.032258064, %v1489_v27 }
0x1104   :  { %10276 = vrsqrt.f32 %v1494_v26  ;;  %vm1504_vm14 = vcmp.eq.f32.partialorder %v1494_v26, inf  ;;  %v1507_v31 = vand.u32 2147483648, %v1494_v26  ;;  %vm1506_vm15 = vcmp.eq.f32.partialorder %v1494_v26, 0.0 }
0x1105   :  { %10278 = vrsqrt.f32 %v1493_v28  ;;  %vm1497_vm1 = vcmp.eq.f32.partialorder %v1493_v28, inf  ;;  %v1500_v34 = vand.u32 2147483648, %v1493_v28  ;;  %vm1499_vm2 = vcmp.eq.f32.partialorder %v1493_v28, 0.0 }
0x110e   :  { %v10277_v63 = vpop.eup %10276 }
0x110f   :  { %v10279_v29 = vpop.eup %10278  ;;  %v1503_v30 = vmul.f32 %v10277_v63, %v1494_v26 }
0x1110   :  { %v1496_v32 = vmul.f32 %v10279_v29, %v1493_v28 }
0x1111   :  { %v1505_v33 = vsel %vm1504_vm14, %v1494_v26, %v1503_v30 }
0x1112   :  { %v1508_v35 = vsel %vm1506_vm15, %v1507_v31, %v1505_v33  ;;  %v1498_v36 = vsel %vm1497_vm1, %v1493_v28, %v1496_v32 }
0x1113   :  { %v1510_v37 = vadd.f32 1e-06, %v1508_v35  ;;  %v1501_v38 = vsel %vm1499_vm2, %v1500_v34, %v1498_v36 }
0x1114   :  { %v1509_v55 = vadd.f32 1e-06, %v1501_v38 }
0x1115   :  { %10280 = vrcp.f32 %v1510_v37 }
0x1116   :  { %10282 = vrcp.f32 %v1509_v55 }
0x111f   :  { %v10281_v2 = vpop.eup %10280 }
0x1120   :  { %v10283_v42 = vpop.eup %10282  ;;  %v1514_v43 = vmul.f32 %v10281_v2, %v1484_v12 }
0x1121   :  { %v1513_v44 = vmul.f32 %v10283_v42, %v1483_v51 }
0x1122   :  { %v1521_v45 = vmul.f32 %v8209_v41, %v1514_v43 }
0x1123   :  { %v1520_v47 = vmul.f32 %v8209_v41, %v1513_v44  ;;  %v11021_v44 = vld [vmem:[%s12200_s2 + $0x8] sm:$0xff] }
0x1124   :  { %v1528_v39 = vadd.f32 %v8210_v46, %v1521_v45 }
0x1125   :  { %v1527_v49 = vadd.f32 %v8210_v46, %v1520_v47  ;;  %v11027_v46 = vld [vmem:[%s12200_s2] sm:$0xff]  ;;  %s12254_s2 = smov 104  }
0x1127   :  { %8999 = vmatprep.mubr.msk.f32.mxu1 %vm65_vm0, %v1527_v49 }
0x1128   :  { %9000 = vmatmul.mubr.msk.f32.vlgmr.msra.gmra.mrb[14].mxu1 %vm65_vm0, %v1528_v39 }
0x1129   :  { %9625 = vmatpush3.bf16.msra.mxu1 %v9622_v24  ;;  %9010 = vmatprep.mubr.msk.f32.mxu1 %vm65_vm0, %v1527_v49 }
0x112a   :  { %9627 = vmatprep.subr.bf16.mxu1 %v9626_v50 }
0x112d   :  { %9629 = vmatpush3.bf16.msra.mxu1 %v9626_v50 }
0x1130   :  { %9011 = vmatmul.mubr.msk.f32.vlgmr.msra.gmra.mrb[16].mxu1 %vm65_vm0, %v1528_v39 }
0x11fb   :  { %v9001_v54 = vpop.f32.mrb[14].mxu1 }
0x11fc   :  { %v1611_v56 = vpop.f32.mrb[15].mxu1  ;;  %v10988_v8 = vadd.f32 %v9001_v54, %v8215_v53 }
0x11fd   :  { %v10975_v57 = vadd.f32 %v8215_v53, %v1611_v56 }
0x11ff   :  { %9017 = vmatprep.mubr.msk.f32.mxu0 %vm295_vm5, %v10975_v57 }
0x1203   :  { %v9012_v59 = vpop.f32.mrb[16].mxu1 }
0x1204   :  { %v1702_v60 = vadd.f32 %v9012_v59, %v8222_v58  ;;  %v1696_v1 = vpop.f32.mrb[17].mxu1 }
0x1205   :  { %v1697_v62 = vadd.f32 %v8222_v58, %v1696_v1 }
0x1207   :  { %v9630_v5 = vpack.c.bf16 %v1702_v60, %v1697_v62  ;;  %v10982_v6 = vpack.i.bf16 %v1702_v60, %v1697_v62 }
0x1209   :  { %9632 = vmatprep.subr.msk.bf16.mxu0 %vm10712_vm6, %v9630_v5 }
0x120a   :  { %9635 = vmatpush3.bf16.xpose.msk.msra.mxu0 %vm10712_vm6, %v9630_v5 }
0x1211   :  { %9018 = vmatmul.mubr.msk.f32.vlgmr.msra.gmra.mrb[12].mxu0 %vm295_vm5, %v10988_v8 }
0x12e4   :  { %v9019_v9 = vpop.f32.mrb[12].mxu0 }
0x12e5   :  { %v1793_v10 = vmul.f32 0.35355338, %v9019_v9  ;;  %v1783_v11 = vpop.f32.mrb[13].mxu0 }
0x12e6   :  { %v1792_v12 = vmul.f32 0.35355338, %v1783_v11 }
0x12e7   :  { %v1795_v51 = vadd.f32 %v1793_v10, %v10729_v4 }
0x12e8   :  { %v1794_v13 = vadd.f32 %v1792_v12, %v10734_v7 }
0x12e9   :  { %v1799_v14 = vsel %vm387_vm7, %v1795_v51, -inf }
0x12ea   :  { %1800 = vmax.xlane.f32.xlu0 %v1799_v14  ;;  %v1796_v52 = vsel %vm387_vm7, %v1794_v13, -inf }
0x12eb   :  { %1797 = vmax.xlane.f32.xlu1 %v1796_v52 }
0x12fc   :  { %10054 = vrot.lane.b32.xlu1 %v10982_v6, %s12234_s28 }
0x1300   :  { %1905 = vrot.lane.b32.xlu1 %v10975_v57, %s12236_s27 }
0x1377   :  { %v1801_v15 = vpop.xlane.xlu0 %1800 }
0x1378   :  { %v1803_v16 = vsub.f32 %v1795_v51, %v1801_v15  ;;  %v1798_v17 = vpop.xlane.xlu1 %1797 }
0x1379   :  { %v1802_v18 = vsub.f32 %v1794_v13, %v1798_v17 }
0x137a   :  { %v1806_v19 = vmul.f32 1.442695, %v1803_v16 }
0x137b   :  { %v1804_v4 = vmul.f32 1.442695, %v1802_v18 }
0x137c   :  { %10284 = vpow2.f32 %v1806_v19  ;;  %v10055_v7 = vpop.permute.xlu1 %10054 }
0x137d   :  { %10286 = vpow2.f32 %v1804_v4  ;;  %v10057_v20 = vunpack.i.h.bf16 %v10055_v7  ;;  %v10056_v21 = vunpack.i.l.bf16 %v10055_v7 }
0x137f   :  { %v9636_v22 = vpack.c.bf16 %v10057_v20, %v10056_v21 }
0x1380   :  { %v1906_v27 = vpop.permute.xlu1 %1905 }
0x1381   :  { %9637 = vmatprep.subr.bf16.mxu1 %v9636_v22 }
0x1382   :  { %9639 = vmatpush3.bf16.msra.mxu1 %v9636_v22 }
0x1386   :  { %v10285_v23 = vpop.eup %10284 }
0x1387   :  { %v10287_v24 = vpop.eup %10286  ;;  %v1811_v25 = vsel %vm387_vm7, %v10285_v23, 0.0 }
0x1388   :  { %1812 = vadd.xlane.f32.xlu0 %v1811_v25  ;;  %v1808_v26 = vsel %vm387_vm7, %v10287_v24, 0.0 }
0x1389   :  { %1809 = vadd.xlane.f32.xlu1 %v1808_v26 }
0x139a   :  { %1907 = vrot.lane.b32.xlu1 %v10988_v8, %s12236_s27 }
0x139e   :  { %10059 = vrot.lane.b32.xlu0 %v10982_v6, %s12236_s27 }
0x1415   :  { %v1813_v28 = vpop.xlane.xlu0 %1812 }
0x1416   :  { %10288 = vrcp.f32 %v1813_v28  ;;  %v1810_v63 = vpop.xlane.xlu1 %1809 }
0x1417   :  { %10290 = vrcp.f32 %v1810_v63 }
0x1419   :  { %v10060_v29 = vpop.permute.xlu0 %10059 }
0x141a   :  { %v10062_v30 = vunpack.i.h.bf16 %v10060_v29  ;;  %v10061_v31 = vunpack.i.l.bf16 %v10060_v29  ;;  %v1908_v37 = vpop.permute.xlu1 %1907 }
0x141c   :  { %v9640_v32 = vpack.c.bf16 %v10062_v30, %v10061_v31 }
0x141e   :  { %9642 = vmatprep.subr.msk.bf16.mxu1 %vm10712_vm6, %v9640_v32 }
0x1420   :  { %v10289_v33 = vpop.eup %10288 }
0x1421   :  { %v10291_v34 = vpop.eup %10290  ;;  %v1817_v36 = vmul.f32 %v10289_v33, %v10285_v23 }
0x1422   :  { %v1816_v35 = vmul.f32 %v10291_v34, %v10287_v24 }
0x1424   :  { %9024 = vmatprep.mubr.msk.f32.mxu1 %vm387_vm7, %v1816_v35 }
0x1425   :  { %9025 = vmatmul.mubr.msk.f32.vlgmr.msra.gmra.mrb[18].mxu1 %vm387_vm7, %v1817_v36 }
0x1426   :  { %9645 = vmatpush3.bf16.xpose.msk.msra.mxu1 %vm10712_vm6, %v9640_v32  ;;  %9031 = vmatprep.mubr.msk.f32.mxu1 %vm295_vm5, %v1906_v27 }
0x142d   :  { %9032 = vmatmul.mubr.msk.f32.vlgmr.msra.gmra.mrb[20].mxu1 %vm295_vm5, %v1908_v37 }
0x14f8   :  { %v11014_v38 = vpop.f32.mrb[18].mxu1 }
0x14f9   :  { %v11016_v55 = vpop.f32.mrb[19].mxu1 }
0x1500   :  { %v9033_v2 = vpop.f32.mrb[20].mxu1 }
0x1501   :  { %v1997_v41 = vmul.f32 0.35355338, %v9033_v2  ;;  %v1987_v42 = vpop.f32.mrb[21].mxu1 }
0x1502   :  { %v1996_v43 = vmul.f32 0.35355338, %v1987_v42 }
0x1503   :  { %v1999_v45 = vadd.f32 %v11021_v44, %v1997_v41 }
0x1504   :  { %v1998_v47 = vadd.f32 %v11027_v46, %v1996_v43 }
0x1505   :  { %v2003_v40 = vsel %vm387_vm7, %v1999_v45, -inf }
0x1506   :  { %2004 = vmax.xlane.f32.xlu0 %v2003_v40  ;;  %v2000_v48 = vsel %vm387_vm7, %v1998_v47, -inf }
0x1507   :  { %2001 = vmax.xlane.f32.xlu1 %v2000_v48 }
0x1518   :  { %10064 = vrot.lane.b32.xlu1 %v10982_v6, %s12230_s0  ;;  %s12265_s0 = sld [smem:[#allocation8_spill]] }
0x151c   :  { %2109 = vrot.lane.b32.xlu1 %v10975_v57, %s12232_s29 }
0x1520   :  { %2111 = vrot.lane.b32.xlu1 %v10988_v8, %s12232_s29 }
0x1593   :  { %v2005_v49 = vpop.xlane.xlu0 %2004 }
0x1594   :  { %v2007_v39 = vsub.f32 %v1999_v45, %v2005_v49  ;;  %v2002_v50 = vpop.xlane.xlu1 %2001 }
0x1595   :  { %v2006_v53 = vsub.f32 %v1998_v47, %v2002_v50 }
0x1596   :  { %v2010_v54 = vmul.f32 1.442695, %v2007_v39 }
0x1597   :  { %v2008_v56 = vmul.f32 1.442695, %v2006_v53 }
0x1598   :  { %10292 = vpow2.f32 %v2010_v54  ;;  %v10065_v58 = vpop.permute.xlu1 %10064 }
0x1599   :  { %v10067_v59 = vunpack.i.h.bf16 %v10065_v58  ;;  %v10066_v60 = vunpack.i.l.bf16 %v10065_v58  ;;  %10294 = vpow2.f32 %v2008_v56 }
0x159b   :  { %v9646_v1 = vpack.c.bf16 %v10067_v59, %v10066_v60 }
0x159c   :  { %v2110_v19 = vpop.permute.xlu1 %2109 }
0x159d   :  { %9647 = vmatprep.subr.bf16.mxu0 %v9646_v1 }
0x159e   :  { %9649 = vmatpush3.bf16.msra.mxu0 %v9646_v1 }
0x15a0   :  { %v2112_v4 = vpop.permute.xlu1 %2111 }
0x15a2   :  { %v10293_v62 = vpop.eup %10292 }
0x15a3   :  { %v2015_v5 = vsel %vm387_vm7, %v10293_v62, 0.0  ;;  %v10295_v9 = vpop.eup %10294 }
0x15a4   :  { %2016 = vadd.xlane.f32.xlu0 %v2015_v5  ;;  %v2012_v10 = vsel %vm387_vm7, %v10295_v9, 0.0 }
0x15a8   :  { %2013 = vadd.xlane.f32.xlu0 %v2012_v10 }
0x15be   :  { %10069 = vrot.lane.b32.xlu0 %v10982_v6, %s12232_s29  ;;  %s10556_s29 = smov [#allocation2]  }
0x1631   :  { %v2017_v11 = vpop.xlane.xlu0 %2016 }
0x1632   :  { %10296 = vrcp.f32 %v2017_v11 }
0x1635   :  { %v2014_v12 = vpop.xlane.xlu0 %2013 }
0x1636   :  { %10298 = vrcp.f32 %v2014_v12 }
0x1639   :  { %v10070_v51 = vpop.permute.xlu0 %10069 }
0x163a   :  { %v10072_v13 = vunpack.i.h.bf16 %v10070_v51  ;;  %v10071_v14 = vunpack.i.l.bf16 %v10070_v51 }
0x163c   :  { %v9650_v52 = vpack.c.bf16 %v10072_v13, %v10071_v14  ;;  %v10297_v15 = vpop.eup %10296 }
0x163d   :  { %v2021_v18 = vmul.f32 %v10297_v15, %v10293_v62 }
0x163e   :  { %9652 = vmatprep.subr.msk.bf16.mxu0 %vm10712_vm6, %v9650_v52 }
0x1640   :  { %v10299_v16 = vpop.eup %10298 }
0x1641   :  { %v2020_v17 = vmul.f32 %v10299_v16, %v10295_v9 }
0x1643   :  { %9038 = vmatprep.mubr.msk.f32.mxu0 %vm387_vm7, %v2020_v17 }
0x1644   :  { %9039 = vmatmul.mubr.msk.f32.vlgmr.msra.gmra.mrb[14].mxu0 %vm387_vm7, %v2021_v18 }
0x1645   :  { %9655 = vmatpush3.bf16.xpose.msk.msra.mxu0 %vm10712_vm6, %v9650_v52  ;;  %9045 = vmatprep.mubr.msk.f32.mxu0 %vm295_vm5, %v2110_v19 }
0x164c   :  { %9046 = vmatmul.mubr.msk.f32.vlgmr.msra.gmra.mrb[16].mxu0 %vm295_vm5, %v2112_v4 }
0x1717   :  { %v11050_v7 = vpop.f32.mrb[14].mxu0 }
0x1718   :  { %v11052_v20 = vpop.f32.mrb[15].mxu0 }
0x171f   :  { %v9047_v21 = vpop.f32.mrb[16].mxu0 }
0x1720   :  { %v2201_v22 = vmul.f32 0.35355338, %v9047_v21  ;;  %v2191_v23 = vpop.f32.mrb[17].mxu0 }
0x1721   :  { %v2200_v24 = vmul.f32 0.35355338, %v2191_v23 }
0x1722   :  { %v2203_v25 = vadd.f32 %v11021_v44, %v2201_v22 }
0x1723   :  { %v2202_v26 = vadd.f32 %v11027_v46, %v2200_v24 }
0x1724   :  { %v2207_v27 = vsel %vm387_vm7, %v2203_v25, -inf }
0x1725   :  { %2208 = vmax.xlane.f32.xlu0 %v2207_v27  ;;  %v2204_v28 = vsel %vm387_vm7, %v2202_v26, -inf  ;;  %v8249_v27 = vld [vmem:[%s12207_s9 + $0x20] sm:$0xff] }
0x1726   :  { %2205 = vmax.xlane.f32.xlu1 %v2204_v28  ;;  %v8251_v28 = vld [vmem:[%s12207_s9 + $0x30] sm:$0xff] }
0x1737   :  { %10074 = vrot.lane.b32.xlu1 %v10982_v6, %s12228_s18  ;;  %s12260_s18 = smov 96  }
0x173b   :  { %2313 = vrot.lane.b32.xlu1 %v10975_v57, %s12254_s2 }
0x173f   :  { %2315 = vrot.lane.b32.xlu1 %v10988_v8, %s12254_s2 }
0x17b2   :  { %v2209_v63 = vpop.xlane.xlu0 %2208 }
0x17b3   :  { %v2211_v29 = vsub.f32 %v2203_v25, %v2209_v63  ;;  %v2206_v30 = vpop.xlane.xlu1 %2205 }
0x17b4   :  { %v2210_v31 = vsub.f32 %v2202_v26, %v2206_v30 }
0x17b5   :  { %v2214_v32 = vmul.f32 1.442695, %v2211_v29  ;;  %v8252_v29 = vld [vmem:[%s12207_s9 + $0x38] sm:$0xff] }
0x17b6   :  { %v2212_v33 = vmul.f32 1.442695, %v2210_v31  ;;  %v9674_v30 = vpack.c.bf16 %v8252_v29, %v8251_v28 }
0x17b7   :  { %10300 = vpow2.f32 %v2214_v32  ;;  %v10075_v34 = vpop.permute.xlu1 %10074 }
0x17b8   :  { %v10077_v35 = vunpack.i.h.bf16 %v10075_v34  ;;  %v10076_v36 = vunpack.i.l.bf16 %v10075_v34  ;;  %10302 = vpow2.f32 %v2212_v33 }
0x17ba   :  { %v9656_v37 = vpack.c.bf16 %v10077_v35, %v10076_v36 }
0x17bb   :  { %v2314_v54 = vpop.permute.xlu1 %2313 }
0x17bc   :  { %9657 = vmatprep.subr.bf16.mxu1 %v9656_v37 }
0x17bd   :  { %9659 = vmatpush3.bf16.msra.mxu1 %v9656_v37 }
0x17bf   :  { %v2316_v56 = vpop.permute.xlu1 %2315 }
0x17c1   :  { %v10301_v2 = vpop.eup %10300 }
0x17c2   :  { %v2219_v57 = vsel %vm387_vm7, %v10301_v2, 0.0  ;;  %v10303_v41 = vpop.eup %10302 }
0x17c3   :  { %2220 = vadd.xlane.f32.xlu0 %v2219_v57  ;;  %v2216_v8 = vsel %vm387_vm7, %v10303_v41, 0.0 }
0x17c7   :  { %2217 = vadd.xlane.f32.xlu0 %v2216_v8 }
0x17dd   :  { %10079 = vrot.lane.b32.xlu0 %v10982_v6, %s12254_s2 }
0x1850   :  { %v2221_v42 = vpop.xlane.xlu0 %2220 }
0x1851   :  { %10304 = vrcp.f32 %v2221_v42 }
0x1854   :  { %v2218_v43 = vpop.xlane.xlu0 %2217 }
0x1855   :  { %10306 = vrcp.f32 %v2218_v43 }
0x1858   :  { %v10080_v45 = vpop.permute.xlu0 %10079 }
0x1859   :  { %v10082_v47 = vunpack.i.h.bf16 %v10080_v45  ;;  %v10081_v40 = vunpack.i.l.bf16 %v10080_v45 }
0x185b   :  { %v9660_v48 = vpack.c.bf16 %v10082_v47, %v10081_v40  ;;  %v10305_v49 = vpop.eup %10304 }
0x185c   :  { %v2225_v53 = vmul.f32 %v10305_v49, %v10301_v2 }
0x185d   :  { %9662 = vmatprep.subr.msk.bf16.mxu1 %vm10712_vm6, %v9660_v48 }
0x185f   :  { %v10307_v39 = vpop.eup %10306 }
0x1860   :  { %v2224_v50 = vmul.f32 %v10307_v39, %v10303_v41 }
0x1862   :  { %9052 = vmatprep.mubr.msk.f32.mxu1 %vm387_vm7, %v2224_v50 }
0x1863   :  { %9053 = vmatmul.mubr.msk.f32.vlgmr.msra.gmra.mrb[22].mxu1 %vm387_vm7, %v2225_v53  ;;  %v11130_v53 = vld [vmem:[%s12259_s1] sm:$0xff] }
0x1864   :  { %9665 = vmatpush3.bf16.xpose.msk.msra.mxu1 %vm10712_vm6, %v9660_v48  ;;  %9059 = vmatprep.mubr.msk.f32.mxu1 %vm295_vm5, %v2314_v54 }
0x186b   :  { %9060 = vmatmul.mubr.msk.f32.vlgmr.msra.gmra.mrb[24].mxu1 %vm295_vm5, %v2316_v56 }
0x1936   :  { %v9054_v58 = vpop.f32.mrb[22].mxu1 }
0x1937   :  { %v2304_v59 = vpop.f32.mrb[23].mxu1 }
0x193e   :  { %v9061_v60 = vpop.f32.mrb[24].mxu1 }
0x193f   :  { %v2405_v1 = vmul.f32 0.35355338, %v9061_v60  ;;  %v2395_v62 = vpop.f32.mrb[25].mxu1 }
0x1940   :  { %v2404_v5 = vmul.f32 0.35355338, %v2395_v62 }
0x1941   :  { %v2407_v9 = vadd.f32 %v11021_v44, %v2405_v1 }
0x1942   :  { %v2406_v10 = vadd.f32 %v11027_v46, %v2404_v5 }
0x1943   :  { %v2411_v11 = vsel %vm387_vm7, %v2407_v9, -inf }
0x1944   :  { %2412 = vmax.xlane.f32.xlu0 %v2411_v11  ;;  %v2408_v12 = vsel %vm387_vm7, %v2406_v10, -inf }
0x1945   :  { %2409 = vmax.xlane.f32.xlu1 %v2408_v12 }
0x1956   :  { %10084 = vrot.lane.b32.xlu1 %v10982_v6, %s12255_s30 }
0x195a   :  { %2521 = vrot.lane.b32.xlu1 %v11050_v7, %s12256_s20 }
0x195e   :  { %2527 = vrot.lane.b32.xlu1 %v2304_v59, %s12257_s24 }
0x1962   :  { %2529 = vrot.lane.b32.xlu1 %v9054_v58, %s12257_s24 }
0x19d1   :  { %v2413_v51 = vpop.xlane.xlu0 %2412 }
0x19d2   :  { %v2415_v44 = vsub.f32 %v2407_v9, %v2413_v51  ;;  %v2410_v13 = vpop.xlane.xlu1 %2409 }
0x19d3   :  { %v2414_v46 = vsub.f32 %v2406_v10, %v2410_v13 }
0x19d4   :  { %v2418_v14 = vmul.f32 1.442695, %v2415_v44 }
0x19d5   :  { %v2416_v52 = vmul.f32 1.442695, %v2414_v46 }
0x19d6   :  { %v10085_v15 = vpop.permute.xlu1 %10084 }
0x19d7   :  { %10308 = vpow2.f32 %v2416_v52  ;;  %v10087_v16 = vunpack.i.h.bf16 %v10085_v15  ;;  %v10086_v17 = vunpack.i.l.bf16 %v10085_v15 }
0x19d8   :  { %10310 = vpow2.f32 %v2418_v14 }
0x19d9   :  { %v9666_v18 = vpack.c.bf16 %v10087_v16, %v10086_v17 }
0x19da   :  { %v2522_v33 = vpop.permute.xlu1 %2521 }
0x19db   :  { %9667 = vmatprep.subr.bf16.mxu0 %v9666_v18  ;;  %v2542_v57 = vsel %vm295_vm5, %v11014_v38, %v2522_v33 }
0x19dc   :  { %9669 = vmatpush3.bf16.msra.mxu0 %v9666_v18 }
0x19de   :  { %v2528_v34 = vpop.permute.xlu1 %2527 }
0x19e1   :  { %v10309_v6 = vpop.eup %10308 }
0x19e2   :  { %v2420_v19 = vsel %vm387_vm7, %v10309_v6, 0.0  ;;  %v10311_v4 = vpop.eup %10310  ;;  %v2530_v36 = vpop.permute.xlu1 %2529 }
0x19e3   :  { %2421 = vadd.xlane.f32.xlu0 %v2420_v19  ;;  %v2423_v7 = vsel %vm387_vm7, %v10311_v4, 0.0  ;;  %v2544_v42 = vsel %vm387_vm7, %v2542_v57, %v2530_v36  ;;  %v8259_v19 = vld [vmem:[%s12209_s11 + $0x28] sm:$0xff] }
0x19e7   :  { %2424 = vadd.xlane.f32.xlu0 %v2423_v7  ;;  %v8260_v7 = vld [vmem:[%s12209_s11 + $0x30] sm:$0xff] }
0x19fd   :  { %2519 = vrot.lane.b32.xlu0 %v11052_v20, %s12256_s20  ;;  %v8250_v20 = vld [vmem:[%s12207_s9 + $0x28] sm:$0xff] }
0x19fe   :  { %v9670_v63 = vpack.c.bf16 %v8250_v20, %v8249_v27  ;;  %v8266_v27 = vld [vmem:[%s12211_s13 + $0x48] sm:$0xff]  ;;  %v8267_v20 = vld [vmem:[%s12211_s13 + $0x50] sm:$0xff] }
0x1a00   :  { %9671 = vmatprep.subr.bf16.mxu0 %v9670_v63 }
0x1a70   :  { %v2422_v21 = vpop.xlane.xlu0 %2421 }
0x1a71   :  { %10312 = vrcp.f32 %v2422_v21  ;;  %v8261_v21 = vld [vmem:[%s12209_s11 + $0x38] sm:$0xff] }
0x1a74   :  { %v2425_v22 = vpop.xlane.xlu0 %2424 }
0x1a75   :  { %10314 = vrcp.f32 %v2425_v22  ;;  %v9682_v22 = vpack.c.bf16 %v8261_v21, %v8260_v7  ;;  %v8282_v7 = vld [vmem:[%s12203_s5 + $0x50] sm:$0xff]  ;;  %v8283_v21 = vld [vmem:[%s12203_s5 + $0x58] sm:$0xff] }
0x1a78   :  { %v2520_v35 = vpop.permute.xlu0 %2519 }
0x1a79   :  { %v2541_v37 = vsel %vm295_vm5, %v11016_v55, %v2520_v35  ;;  %v8253_v55 = vld [vmem:[%s12208_s10 + $0x1] ss:$0 sm:$0xff] }
0x1a7a   :  { %v2543_v41 = vsel %vm387_vm7, %v2541_v37, %v2528_v34 }
0x1a7b   :  { %v10313_v23 = vpop.eup %10312 }
0x1a7c   :  { %v2428_v24 = vmul.f32 %v10313_v23, %v10309_v6  ;;  %v8258_v6 = vld [vmem:[%s12209_s11 + $0x20] sm:$0xff] }
0x1a7d   :  { %v8280_v23 = vld [vmem:[%s12203_s5 + $0x40] sm:$0xff] }
0x1a7e   :  { %9066 = vmatprep.mubr.msk.f32.mxu0 %vm387_vm7, %v2428_v24  ;;  %v8281_v24 = vld [vmem:[%s12203_s5 + $0x48] sm:$0xff] }
0x1a7f   :  { %v10315_v25 = vpop.eup %10314 }
0x1a80   :  { %v2429_v26 = vmul.f32 %v10315_v25, %v10311_v4  ;;  %v9678_v4 = vpack.c.bf16 %v8259_v19, %v8258_v6  ;;  %v11185_v25 = vpack.c.bf16 %v8281_v24, %v8280_v23  ;;  %v8257_v19 = vld [vmem:[%s12214_s16 + $0x3] ss:$0 sm:$0xff] }
0x1a82   :  { %9067 = vmatmul.mubr.msk.f32.vlgmr.msra.gmra.mrb[18].mxu0 %vm387_vm7, %v2429_v26  ;;  %9679 = vmatprep.subr.bf16.mxu1 %v9678_v4  ;;  %v8265_v26 = vld [vmem:[%s12211_s13 + $0x40] sm:$0xff] }
0x1a83   :  { %9673 = vmatpush3.bf16.msra.mxu0 %v9670_v63  ;;  %9681 = vmatpush3.bf16.msra.mxu1 %v9678_v4  ;;  %v9686_v28 = vpack.c.bf16 %v8266_v27, %v8265_v26  ;;  %v8268_v63 = vld [vmem:[%s12211_s13 + $0x58] sm:$0xff]  ;;  %v9706_v26 = vpack.c.bf16 %v8283_v21, %v8282_v7  ;;  %v8279_v27 = vld [vmem:[%s12214_s16 + $0x5] ss:$0 sm:$0xff] }
0x1a84   :  { %9675 = vmatprep.subr.bf16.mxu0 %v9674_v30  ;;  %9683 = vmatprep.subr.bf16.mxu1 %v9682_v22  ;;  %v9690_v29 = vpack.c.bf16 %v8268_v63, %v8267_v20  ;;  %v8288_v63 = vld [vmem:[%s12205_s7 + $0x48] sm:$0xff] }
0x1a87   :  { %9677 = vmatpush3.bf16.msra.mxu0 %v9674_v30  ;;  %9685 = vmatpush3.bf16.msra.mxu1 %v9682_v22  ;;  %v8269_v30 = vld [vmem:[%s12211_s13 + $0x60] sm:$0xff] }
0x1a88   :  { %9703 = vmatprep.subr.bf16.mxu1 %v11185_v25  ;;  %9687 = vmatprep.subr.bf16.mxu0 %v9686_v28 }
0x1b55   :  { %v9068_v31 = vpop.f32.mrb[18].mxu0 }
0x1b56   :  { %2537 = vrot.lane.b32.xlu1 %v9068_v31, %s12258_s25  ;;  %v2508_v32 = vpop.f32.mrb[19].mxu0  ;;  %v8270_v31 = vld [vmem:[%s12211_s13 + $0x68] sm:$0xff] }
0x1b57   :  { %2535 = vrot.lane.b32.xlu0 %v2508_v32, %s12258_s25  ;;  %v9694_v32 = vpack.c.bf16 %v8270_v31, %v8269_v30 }
0x1bc8   :  { %v2538_v2 = vpop.permute.xlu1 %2537 }
0x1bc9   :  { %v2536_v8 = vpop.permute.xlu0 %2535  ;;  %v2546_v45 = vsel %vm1137_vm8, %v2544_v42, %v2538_v2 }
0x1bca   :  { %v2545_v43 = vsel %vm1137_vm8, %v2543_v41, %v2536_v8 }
0x1bcb   :  { %9077 = vmatprep.mubr.msk.f32.mxu0 %vm65_vm0, %v2545_v43 }
0x1bcc   :  { %9078 = vmatmul.mubr.msk.f32.vlgmr.msra.gmra.mrb[20].mxu0 %vm65_vm0, %v2546_v45 }
0x1bcd   :  { %9689 = vmatpush3.bf16.msra.mxu0 %v9686_v28  ;;  %v8287_v28 = vld [vmem:[%s12205_s7 + $0x40] sm:$0xff] }
0x1bce   :  { %9691 = vmatprep.subr.bf16.mxu0 %v9690_v29  ;;  %v9710_v31 = vpack.c.bf16 %v8288_v63, %v8287_v28 }
0x1bd1   :  { %9693 = vmatpush3.bf16.msra.mxu0 %v9690_v29 }
0x1bd2   :  { %9695 = vmatprep.subr.bf16.mxu0 %v9694_v32 }
0x1bd5   :  { %9697 = vmatpush3.bf16.msra.mxu0 %v9694_v32 }
0x1c9f   :  { %v9079_v47 = vpop.f32.mrb[20].mxu0 }
0x1ca0   :  { %v2635_v40 = vadd.f32 %v9079_v47, %v8253_v55  ;;  %v2629_v38 = vpop.f32.mrb[21].mxu0 }
0x1ca1   :  { %v2630_v48 = vadd.f32 %v8253_v55, %v2629_v38 }
0x1ca2   :  { %v11120_v49 = vadd.f32 %v2635_v40, %v10925_v0  ;;  %v2940_v0 = vsel %vm65_vm0, %v11130_v53, 0.0 }
0x1ca3   :  { %v11123_v39 = vadd.f32 %v2630_v48, %v10928_v3  ;;  %v11139_v3 = vld [vmem:[%s12259_s1 + $0x8] sm:$0xff] }
0x1ca4   :  { %v2643_v50 = vsel %vm65_vm0, %v11120_v49, 0.0  ;;  %v2943_v56 = vsel %vm65_vm0, %v11139_v3, 0.0 }
0x1ca5   :  { %2644 = vadd.xlane.f32.xlu1 %v2643_v50  ;;  %v2640_v54 = vsel %vm65_vm0, %v11123_v39, 0.0 }
0x1ca6   :  { %2641 = vadd.xlane.f32.xlu0 %v2640_v54 }
0x1caa   :  { %2941 = vadd.xlane.f32.xlu0 %v2940_v0 }
0x1cae   :  { %2944 = vadd.xlane.f32.xlu0 %v2943_v56 }
0x1d32   :  { %v2645_v58 = vpop.xlane.xlu1 %2644 }
0x1d33   :  { %v2647_v59 = vmul.f32 0.03125, %v2645_v58  ;;  %v2642_v60 = vpop.xlane.xlu0 %2641 }
0x1d34   :  { %v2646_v1 = vmul.f32 0.03125, %v2642_v60 }
0x1d35   :  { %v11144_v62 = vsub.f32 %v11120_v49, %v2647_v59 }
0x1d36   :  { %v11147_v5 = vsub.f32 %v11123_v39, %v2646_v1 }
0x1d37   :  { %v2942_v9 = vpop.xlane.xlu0 %2941  ;;  %v2651_v10 = vmul.f32 %v11144_v62, %v11144_v62 }
0x1d38   :  { %v2946_v11 = vmul.f32 0.03125, %v2942_v9  ;;  %v2650_v12 = vmul.f32 %v11147_v5, %v11147_v5 }
0x1d39   :  { %v2655_v51 = vsel %vm65_vm0, %v2651_v10, 0.0 }
0x1d3a   :  { %v11155_v44 = vsub.f32 %v11130_v53, %v2946_v11  ;;  %2656 = vadd.xlane.f32.xlu1 %v2655_v51  ;;  %v2652_v13 = vsel %vm65_vm0, %v2650_v12, 0.0 }
0x1d3b   :  { %2653 = vadd.xlane.f32.xlu0 %v2652_v13  ;;  %v2945_v46 = vpop.xlane.xlu0 %2944 }
0x1d3c   :  { %v2947_v14 = vmul.f32 0.03125, %v2945_v46  ;;  %v2950_v52 = vmul.f32 %v11155_v44, %v11155_v44 }
0x1d3e   :  { %v11161_v15 = vsub.f32 %v11139_v3, %v2947_v14  ;;  %v2952_v16 = vsel %vm65_vm0, %v2950_v52, 0.0  ;;  %v8256_v52 = vld [vmem:[%s12213_s15 + $0x3] ss:$0 sm:$0xff] }
0x1d3f   :  { %2953 = vadd.xlane.f32.xlu0 %v2952_v16 }
0x1d40   :  { %v2951_v17 = vmul.f32 %v11161_v15, %v11161_v15 }
0x1d42   :  { %v2955_v18 = vsel %vm65_vm0, %v2951_v17, 0.0 }
0x1d43   :  { %2956 = vadd.xlane.f32.xlu1 %v2955_v18 }
0x1dc7   :  { %v2657_v33 = vpop.xlane.xlu1 %2656 }
0x1dc8   :  { %v2659_v34 = vmul.f32 0.032258064, %v2657_v33  ;;  %v2654_v35 = vpop.xlane.xlu0 %2653  ;;  %v8289_v33 = vld [vmem:[%s12205_s7 + $0x50] sm:$0xff] }
0x1dc9   :  { %v2658_v36 = vmul.f32 0.032258064, %v2654_v35 }
0x1dca   :  { %10316 = vrsqrt.f32 %v2659_v34  ;;  %vm2669_vm3 = vcmp.eq.f32.partialorder %v2659_v34, inf  ;;  %v2672_v45 = vand.u32 2147483648, %v2659_v34  ;;  %vm2671_vm4 = vcmp.eq.f32.partialorder %v2659_v34, 0.0 }
0x1dcb   :  { %10318 = vrsqrt.f32 %v2658_v36  ;;  %vm2662_vm9 = vcmp.eq.f32.partialorder %v2658_v36, inf  ;;  %v2665_v40 = vand.u32 2147483648, %v2658_v36  ;;  %vm2664_vm10 = vcmp.eq.f32.partialorder %v2658_v36, 0.0 }
0x1dcc   :  { %v2954_v37 = vpop.xlane.xlu0 %2953 }
0x1dcd   :  { %v2958_v2 = vmul.f32 0.032258064, %v2954_v37 }
0x1dcf   :  { %10320 = vrsqrt.f32 %v2958_v2  ;;  %vm2962_vm11 = vcmp.eq.f32.partialorder %v2958_v2, inf  ;;  %v2965_v59 = vand.u32 2147483648, %v2958_v2  ;;  %vm2964_vm12 = vcmp.eq.f32.partialorder %v2958_v2, 0.0 }
0x1dd0   :  { %v2957_v57 = vpop.xlane.xlu1 %2956 }
0x1dd1   :  { %v2959_v41 = vmul.f32 0.032258064, %v2957_v57 }
0x1dd3   :  { %10322 = vrsqrt.f32 %v2959_v41  ;;  %vm2969_vm14 = vcmp.eq.f32.partialorder %v2959_v41, inf  ;;  %v2972_v12 = vand.u32 2147483648, %v2959_v41  ;;  %vm2971_vm15 = vcmp.eq.f32.partialorder %v2959_v41, 0.0 }
0x1dd4   :  { %v10317_v8 = vpop.eup %10316 }
0x1dd5   :  { %v10319_v42 = vpop.eup %10318  ;;  %v2668_v43 = vmul.f32 %v10317_v8, %v2659_v34 }
0x1dd6   :  { %v2661_v55 = vmul.f32 %v10319_v42, %v2658_v36 }
0x1dd7   :  { %v2670_v47 = vsel %vm2669_vm3, %v2659_v34, %v2668_v43  ;;  %v8290_v34 = vld [vmem:[%s12205_s7 + $0x58] sm:$0xff] }
0x1dd8   :  { %v2673_v38 = vsel %vm2671_vm4, %v2672_v45, %v2670_v47  ;;  %v2663_v48 = vsel %vm2662_vm9, %v2658_v36, %v2661_v55  ;;  %v8272_v36 = vld [vmem:[%s12211_s13 + $0x78] sm:$0xff]  ;;  %v8284_v55 = vld [vmem:[%s12204_s6 + $0x2] ss:$0 sm:$0xff] }
0x1dd9   :  { %v10321_v50 = vpop.eup %10320  ;;  %v2675_v54 = vadd.f32 1e-06, %v2673_v38  ;;  %v2666_v0 = vsel %vm2664_vm10, %v2665_v40, %v2663_v48  ;;  %v8291_v48 = vld [vmem:[%s12206_s8 + $0x2] ss:$0 sm:$0xff] }
0x1dda   :  { %v2674_v56 = vadd.f32 1e-06, %v2666_v0  ;;  %v2961_v58 = vmul.f32 %v10321_v50, %v2958_v2 }
0x1ddb   :  { %10324 = vrcp.f32 %v2675_v54 }
0x1ddc   :  { %v2963_v60 = vsel %vm2962_vm11, %v2958_v2, %v2961_v58  ;;  %10326 = vrcp.f32 %v2674_v56  ;;  %v8262_v2 = vld [vmem:[%s12210_s12 + $0x1] ss:$0 sm:$0xff] }
0x1ddd   :  { %v10323_v1 = vpop.eup %10322  ;;  %v2966_v9 = vsel %vm2964_vm12, %v2965_v59, %v2963_v60 }
0x1dde   :  { %v2974_v10 = vadd.f32 1e-06, %v2966_v9  ;;  %v2968_v11 = vmul.f32 %v10323_v1, %v2959_v41 }
0x1de0   :  { %v2970_v51 = vsel %vm2969_vm14, %v2959_v41, %v2968_v11  ;;  %10328 = vrcp.f32 %v2974_v10  ;;  %v11285_v11 = vld [vmem:[%s12201_s3 + $0x8] sm:$0xff] }
0x1de1   :  { %v2973_v13 = vsel %vm2971_vm15, %v2972_v12, %v2970_v51 }
0x1de2   :  { %v2975_v46 = vadd.f32 1e-06, %v2973_v13  ;;  %v11290_v13 = vld [vmem:[%s12201_s3] sm:$0xff] }
0x1de4   :  { %10330 = vrcp.f32 %v2975_v46 }
0x1de5   :  { %v10325_v14 = vpop.eup %10324 }
0x1de6   :  { %v10327_v16 = vpop.eup %10326  ;;  %v2679_v17 = vmul.f32 %v10325_v14, %v11144_v62  ;;  %v8278_v62 = vld [vmem:[%s12213_s15 + $0x5] ss:$0 sm:$0xff] }
0x1de7   :  { %v2678_v18 = vmul.f32 %v10327_v16, %v11147_v5 }
0x1de8   :  { %v2686_v6 = vmul.f32 %v8256_v52, %v2679_v17 }
0x1de9   :  { %v2685_v4 = vmul.f32 %v8256_v52, %v2678_v18 }
0x1dea   :  { %v10329_v22 = vpop.eup %10328  ;;  %v2693_v24 = vadd.f32 %v8257_v19, %v2686_v6 }
0x1deb   :  { %v2692_v5 = vadd.f32 %v8257_v19, %v2685_v4  ;;  %v2978_v23 = vmul.f32 %v10329_v22, %v11155_v44 }
0x1ded   :  { %9088 = vmatprep.mubr.msk.f32.mxu1 %vm65_vm0, %v2692_v5  ;;  %v2985_v20 = vmul.f32 %v8278_v62, %v2978_v23 }
0x1dee   :  { %v10331_v29 = vpop.eup %10330  ;;  %9089 = vmatmul.mubr.msk.f32.vlgmr.msra.gmra.mrb[26].mxu1 %vm65_vm0, %v2693_v24 }
0x1def   :  { %9705 = vmatpush3.bf16.msra.mxu1 %v11185_v25  ;;  %v2979_v44 = vmul.f32 %v10331_v29, %v11161_v15  ;;  %v2992_v30 = vadd.f32 %v8279_v27, %v2985_v20  ;;  %v9714_v25 = vpack.c.bf16 %v8290_v34, %v8289_v33  ;;  %v8271_v15 = vld [vmem:[%s12211_s13 + $0x70] sm:$0xff] }
0x1df0   :  { %9707 = vmatprep.subr.bf16.mxu1 %v9706_v26  ;;  %v9698_v37 = vpack.c.bf16 %v8272_v36, %v8271_v15 }
0x1df1   :  { %v2986_v32 = vmul.f32 %v8278_v62, %v2979_v44  ;;  %9118 = vmatprep.mubr.msk.f32.mxu1 %vm65_vm0, %v2992_v30 }
0x1df2   :  { %9699 = vmatprep.subr.bf16.mxu0 %v9698_v37 }
0x1df3   :  { %v2993_v35 = vadd.f32 %v8279_v27, %v2986_v32  ;;  %9709 = vmatpush3.bf16.msra.mxu1 %v9706_v26  ;;  %9701 = vmatpush3.bf16.msra.mxu0 %v9698_v37 }
0x1df4   :  { %9711 = vmatprep.subr.bf16.mxu1 %v9710_v31 }
0x1df6   :  { %9119 = vmatmul.mubr.msk.f32.vlgmr.msra.gmra.mrb[28].mxu1 %vm65_vm0, %v2993_v35 }
0x1df7   :  { %9713 = vmatpush3.bf16.msra.mxu1 %v9710_v31  ;;  %9129 = vmatprep.mubr.msk.f32.mxu1 %vm65_vm0, %v2992_v30 }
0x1df8   :  { %9715 = vmatprep.subr.bf16.mxu1 %v9714_v25 }
0x1dfb   :  { %9717 = vmatpush3.bf16.msra.mxu1 %v9714_v25 }
0x1dfe   :  { %9130 = vmatmul.mubr.msk.f32.vlgmr.msra.gmra.mrb[30].mxu1 %vm65_vm0, %v2993_v35 }
0x1ec1   :  { %v9090_v57 = vpop.f32.mrb[26].mxu1 }
0x1ec2   :  { %v2782_v41 = vadd.f32 %v9090_v57, %v8262_v2  ;;  %v2776_v8 = vpop.f32.mrb[27].mxu1 }
0x1ec3   :  { %v2777_v42 = vadd.f32 %v8262_v2, %v2776_v8 }
0x1ec4   :  { %v2786_v45 = vmax.f32 %v2782_v41, 0.0 }
0x1ec5   :  { %v2785_v43 = vmax.f32 %v2777_v42, 0.0 }
0x1ec7   :  { %9107 = vmatprep.mubr.msk.f32.mxu0 %vm1391_vm13, %v2785_v43 }
0x1ec8   :  { %9108 = vmatmul.mubr.msk.f32.vlgmr.msra.gmra.mrb[22].mxu0 %vm1391_vm13, %v2786_v45 }
0x1ec9   :  { %v9120_v47 = vpop.f32.mrb[28].mxu1 }
0x1eca   :  { %v3076_v40 = vpop.f32.mrb[29].mxu1  ;;  %v11274_v60 = vadd.f32 %v9120_v47, %v8284_v55 }
0x1ecb   :  { %v11261_v38 = vadd.f32 %v8284_v55, %v3076_v40 }
0x1ecd   :  { %9136 = vmatprep.mubr.msk.f32.mxu0 %vm295_vm5, %v11261_v38 }
0x1ed1   :  { %v9131_v50 = vpop.f32.mrb[30].mxu1 }
0x1ed2   :  { %v3167_v54 = vadd.f32 %v9131_v50, %v8291_v48  ;;  %v3161_v0 = vpop.f32.mrb[31].mxu1 }
0x1ed3   :  { %v3162_v56 = vadd.f32 %v8291_v48, %v3161_v0 }
0x1ed5   :  { %v9718_v58 = vpack.c.bf16 %v3167_v54, %v3162_v56  ;;  %v11268_v59 = vpack.i.bf16 %v3167_v54, %v3162_v56 }
0x1ed7   :  { %9720 = vmatprep.subr.msk.bf16.mxu0 %vm10712_vm6, %v9718_v58 }
0x1ed8   :  { %9723 = vmatpush3.bf16.xpose.msk.msra.mxu0 %vm10712_vm6, %v9718_v58 }
0x1edf   :  { %9137 = vmatmul.mubr.msk.f32.vlgmr.msra.gmra.mrb[24].mxu0 %vm295_vm5, %v11274_v60 }
0x1f9b   :  { %v11278_v1 = vpop.f32.mrb[22].mxu0 }
0x1f9c   :  { %v11280_v9 = vpop.f32.mrb[23].mxu0 }
0x1fb2   :  { %v9138_v10 = vpop.f32.mrb[24].mxu0 }
0x1fb3   :  { %v3258_v12 = vmul.f32 0.35355338, %v9138_v10  ;;  %v3248_v51 = vpop.f32.mrb[25].mxu0 }
0x1fb4   :  { %v3257_v46 = vmul.f32 0.35355338, %v3248_v51 }
0x1fb5   :  { %v3260_v14 = vadd.f32 %v3258_v12, %v11285_v11 }
0x1fb6   :  { %v3259_v52 = vadd.f32 %v3257_v46, %v11290_v13 }
0x1fb7   :  { %v3264_v16 = vsel %vm387_vm7, %v3260_v14, -inf }
0x1fb8   :  { %3265 = vmax.xlane.f32.xlu1 %v3264_v16  ;;  %v3261_v17 = vsel %vm387_vm7, %v3259_v52, -inf }
0x1fb9   :  { %3262 = vmax.xlane.f32.xlu0 %v3261_v17 }
0x2045   :  { %v3266_v18 = vpop.xlane.xlu1 %3265 }
0x2046   :  { %v3268_v6 = vsub.f32 %v3260_v14, %v3266_v18  ;;  %v3263_v19 = vpop.xlane.xlu0 %3262 }
0x2047   :  { %v3267_v4 = vsub.f32 %v3259_v52, %v3263_v19 }
0x2048   :  { %v3271_v7 = vmul.f32 1.442695, %v3268_v6 }
0x2049   :  { %v3269_v21 = vmul.f32 1.442695, %v3267_v4 }
0x204a   :  { %10332 = vpow2.f32 %v3271_v7 }
0x204b   :  { %10334 = vpow2.f32 %v3269_v21 }
0x2054   :  { %v10333_v22 = vpop.eup %10332 }
0x2055   :  { %v10335_v62 = vpop.eup %10334  ;;  %v3276_v5 = vsel %vm387_vm7, %v10333_v22, 0.0 }
0x2056   :  { %3277 = vadd.xlane.f32.xlu1 %v3276_v5  ;;  %v3273_v23 = vsel %vm387_vm7, %v10335_v62, 0.0 }
0x2057   :  { %3274 = vadd.xlane.f32.xlu0 %v3273_v23 }
0x2067   :  { %10094 = vrot.lane.b32.xlu1 %v11268_v59, %s12236_s27 }
0x206b   :  { %3370 = vrot.lane.b32.xlu1 %v11261_v38, %s12236_s27 }
0x206d   :  { %10089 = vrot.lane.b32.xlu0 %v11268_v59, %s12260_s18 }
0x206f   :  { %3372 = vrot.lane.b32.xlu1 %v11274_v60, %s12236_s27 }
0x20e3   :  { %v3278_v24 = vpop.xlane.xlu1 %3277 }
0x20e4   :  { %10336 = vrcp.f32 %v3278_v24  ;;  %v3275_v26 = vpop.xlane.xlu0 %3274 }
0x20e5   :  { %10338 = vrcp.f32 %v3275_v26 }
0x20e7   :  { %v10095_v27 = vpop.permute.xlu1 %10094 }
0x20e8   :  { %v10090_v20 = vpop.permute.xlu0 %10089  ;;  %v10097_v28 = vunpack.i.h.bf16 %v10095_v27  ;;  %v10096_v63 = vunpack.i.l.bf16 %v10095_v27 }
0x20e9   :  { %v10092_v29 = vunpack.i.h.bf16 %v10090_v20  ;;  %v10091_v44 = vunpack.i.l.bf16 %v10090_v20 }
0x20ea   :  { %v9728_v31 = vpack.c.bf16 %v10097_v28, %v10096_v63 }
0x20eb   :  { %v9724_v30 = vpack.c.bf16 %v10092_v29, %v10091_v44  ;;  %v3371_v25 = vpop.permute.xlu1 %3370 }
0x20ed   :  { %9725 = vmatprep.subr.bf16.mxu1 %v9724_v30 }
0x20ee   :  { %v10337_v32 = vpop.eup %10336  ;;  %9727 = vmatpush3.bf16.msra.mxu1 %v9724_v30 }
0x20ef   :  { %v10339_v33 = vpop.eup %10338  ;;  %9730 = vmatprep.subr.msk.bf16.mxu1 %vm10712_vm6, %v9728_v31  ;;  %v3282_v35 = vmul.f32 %v10337_v32, %v10333_v22  ;;  %v3373_v15 = vpop.permute.xlu1 %3372 }
0x20f0   :  { %v3281_v34 = vmul.f32 %v10339_v33, %v10335_v62 }
0x20f2   :  { %9143 = vmatprep.mubr.msk.f32.mxu1 %vm387_vm7, %v3281_v34 }
0x20f3   :  { %9144 = vmatmul.mubr.msk.f32.vlgmr.msra.gmra.mrb[32].mxu1 %vm387_vm7, %v3282_v35 }
0x20f4   :  { %9150 = vmatprep.mubr.msk.f32.mxu1 %vm295_vm5, %v3371_v25 }
0x20f7   :  { %9733 = vmatpush3.bf16.xpose.msk.msra.mxu1 %vm10712_vm6, %v9728_v31 }
0x20fe   :  { %9151 = vmatmul.mubr.msk.f32.vlgmr.msra.gmra.mrb[34].mxu1 %vm295_vm5, %v3373_v15 }
0x21c6   :  { %v11314_v36 = vpop.f32.mrb[32].mxu1 }
0x21c7   :  { %v11316_v37 = vpop.f32.mrb[33].mxu1 }
0x21d1   :  { %v9152_v2 = vpop.f32.mrb[34].mxu1 }
0x21d2   :  { %v3462_v57 = vmul.f32 0.35355338, %v9152_v2  ;;  %v3452_v41 = vpop.f32.mrb[35].mxu1 }
0x21d3   :  { %v3461_v8 = vmul.f32 0.35355338, %v3452_v41 }
0x21d4   :  { %v3464_v42 = vadd.f32 %v3462_v57, %v11285_v11 }
0x21d5   :  { %v3463_v43 = vadd.f32 %v3461_v8, %v11290_v13 }
0x21d6   :  { %v3468_v45 = vsel %vm387_vm7, %v3464_v42, -inf }
0x21d7   :  { %3469 = vmax.xlane.f32.xlu1 %v3468_v45  ;;  %v3465_v55 = vsel %vm387_vm7, %v3463_v43, -inf }
0x21d8   :  { %3466 = vmax.xlane.f32.xlu0 %v3465_v55 }
0x21e8   :  { %10104 = vrot.lane.b32.xlu1 %v11268_v59, %s12261_s26 }
0x21ec   :  { %3574 = vrot.lane.b32.xlu1 %v11261_v38, %s12261_s26 }
0x21f0   :  { %3576 = vrot.lane.b32.xlu1 %v11274_v60, %s12261_s26 }
0x2264   :  { %v3470_v47 = vpop.xlane.xlu1 %3469 }
0x2265   :  { %v3472_v40 = vsub.f32 %v3464_v42, %v3470_v47  ;;  %v3467_v48 = vpop.xlane.xlu0 %3466 }
0x2266   :  { %v3471_v50 = vsub.f32 %v3463_v43, %v3467_v48 }
0x2267   :  { %v3475_v54 = vmul.f32 1.442695, %v3472_v40 }
0x2268   :  { %v3473_v0 = vmul.f32 1.442695, %v3471_v50  ;;  %v10105_v14 = vpop.permute.xlu1 %10104 }
0x2269   :  { %10340 = vpow2.f32 %v3475_v54  ;;  %v10107_v16 = vunpack.i.h.bf16 %v10105_v14  ;;  %v10106_v17 = vunpack.i.l.bf16 %v10105_v14 }
0x226a   :  { %10342 = vpow2.f32 %v3473_v0 }
0x226b   :  { %v9738_v4 = vpack.c.bf16 %v10107_v16, %v10106_v17 }
0x226c   :  { %v3575_v5 = vpop.permute.xlu1 %3574 }
0x2270   :  { %v3577_v23 = vpop.permute.xlu1 %3576 }
0x2273   :  { %v10341_v56 = vpop.eup %10340 }
0x2274   :  { %v3480_v58 = vsel %vm387_vm7, %v10341_v56, 0.0  ;;  %v10343_v10 = vpop.eup %10342 }
0x2275   :  { %3481 = vadd.xlane.f32.xlu0 %v3480_v58  ;;  %v3477_v12 = vsel %vm387_vm7, %v10343_v10, 0.0 }
0x2279   :  { %3478 = vadd.xlane.f32.xlu0 %v3477_v12 }
0x228f   :  { %10099 = vrot.lane.b32.xlu0 %v11268_v59, %s12262_s19 }
0x2302   :  { %v3482_v51 = vpop.xlane.xlu0 %3481 }
0x2303   :  { %10344 = vrcp.f32 %v3482_v51 }
0x2306   :  { %v3479_v46 = vpop.xlane.xlu0 %3478 }
0x2307   :  { %10346 = vrcp.f32 %v3479_v46 }
0x230a   :  { %v10100_v52 = vpop.permute.xlu0 %10099 }
0x230b   :  { %v10102_v18 = vunpack.i.h.bf16 %v10100_v52  ;;  %v10101_v6 = vunpack.i.l.bf16 %v10100_v52 }
0x230d   :  { %v9734_v19 = vpack.c.bf16 %v10102_v18, %v10101_v6  ;;  %v10345_v7 = vpop.eup %10344 }
0x230e   :  { %v3486_v62 = vmul.f32 %v10345_v7, %v10341_v56 }
0x230f   :  { %9735 = vmatprep.subr.bf16.mxu0 %v9734_v19 }
0x2310   :  { %9737 = vmatpush3.bf16.msra.mxu0 %v9734_v19 }
0x2311   :  { %v10347_v21 = vpop.eup %10346  ;;  %9740 = vmatprep.subr.msk.bf16.mxu0 %vm10712_vm6, %v9738_v4 }
0x2312   :  { %v3485_v22 = vmul.f32 %v10347_v21, %v10343_v10 }
0x2314   :  { %9157 = vmatprep.mubr.msk.f32.mxu0 %vm387_vm7, %v3485_v22 }
0x2315   :  { %9158 = vmatmul.mubr.msk.f32.vlgmr.msra.gmra.mrb[26].mxu0 %vm387_vm7, %v3486_v62 }
0x2316   :  { %9164 = vmatprep.mubr.msk.f32.mxu0 %vm295_vm5, %v3575_v5 }
0x2319   :  { %9743 = vmatpush3.bf16.xpose.msk.msra.mxu0 %vm10712_vm6, %v9738_v4 }
0x2320   :  { %9165 = vmatmul.mubr.msk.f32.vlgmr.msra.gmra.mrb[28].mxu0 %vm295_vm5, %v3577_v23 }
0x23e8   :  { %v11340_v24 = vpop.f32.mrb[26].mxu0 }
0x23e9   :  { %v11342_v26 = vpop.f32.mrb[27].mxu0 }
0x23f3   :  { %v9166_v27 = vpop.f32.mrb[28].mxu0 }
0x23f4   :  { %v3666_v20 = vmul.f32 0.35355338, %v9166_v27  ;;  %v3656_v28 = vpop.f32.mrb[29].mxu0 }
0x23f5   :  { %v3665_v63 = vmul.f32 0.35355338, %v3656_v28 }
0x23f6   :  { %v3668_v29 = vadd.f32 %v3666_v20, %v11285_v11 }
0x23f7   :  { %v3667_v44 = vadd.f32 %v3665_v63, %v11290_v13 }
0x23f8   :  { %v3672_v30 = vsel %vm387_vm7, %v3668_v29, -inf }
0x23f9   :  { %3673 = vmax.xlane.f32.xlu1 %v3672_v30  ;;  %v3669_v31 = vsel %vm387_vm7, %v3667_v44, -inf }
0x23fa   :  { %3670 = vmax.xlane.f32.xlu0 %v3669_v31 }
0x240a   :  { %10114 = vrot.lane.b32.xlu1 %v11268_v59, %s12254_s2 }
0x240e   :  { %3778 = vrot.lane.b32.xlu1 %v11261_v38, %s12254_s2 }
0x2412   :  { %3780 = vrot.lane.b32.xlu1 %v11274_v60, %s12254_s2 }
0x2486   :  { %v3674_v32 = vpop.xlane.xlu1 %3673 }
0x2487   :  { %v3676_v33 = vsub.f32 %v3668_v29, %v3674_v32  ;;  %v3671_v34 = vpop.xlane.xlu0 %3670 }
0x2488   :  { %v3675_v35 = vsub.f32 %v3667_v44, %v3671_v34  ;;  %v8319_v34 = vld [vmem:[%s12207_s9 + $0x48] sm:$0xff] }
0x2489   :  { %v3679_v25 = vmul.f32 1.442695, %v3676_v33 }
0x248a   :  { %v3677_v15 = vmul.f32 1.442695, %v3675_v35  ;;  %v10115_v42 = vpop.permute.xlu1 %10114  ;;  %v8320_v35 = vld [vmem:[%s12207_s9 + $0x50] sm:$0xff] }
0x248b   :  { %10348 = vpow2.f32 %v3679_v25  ;;  %v10117_v45 = vunpack.i.h.bf16 %v10115_v42  ;;  %v10116_v55 = vunpack.i.l.bf16 %v10115_v42 }
0x248c   :  { %10350 = vpow2.f32 %v3677_v15  ;;  %v8321_v15 = vld [vmem:[%s12207_s9 + $0x58] sm:$0xff] }
0x248d   :  { %v9748_v50 = vpack.c.bf16 %v10117_v45, %v10116_v55 }
0x248e   :  { %v3779_v10 = vpop.permute.xlu1 %3778 }
0x2492   :  { %v3781_v12 = vpop.permute.xlu1 %3780 }
0x2495   :  { %v10349_v2 = vpop.eup %10348 }
0x2496   :  { %v3684_v57 = vsel %vm387_vm7, %v10349_v2, 0.0  ;;  %v10351_v41 = vpop.eup %10350 }
0x2497   :  { %3685 = vadd.xlane.f32.xlu0 %v3684_v57  ;;  %v3681_v8 = vsel %vm387_vm7, %v10351_v41, 0.0 }
0x249b   :  { %3682 = vadd.xlane.f32.xlu0 %v3681_v8  ;;  %v8273_v8 = vld [vmem:[%s12212_s14 + $0x1] ss:$0 sm:$0xff] }
0x249c   :  { %v2874_v42 = vadd.f32 %v8273_v8, %v11280_v9 }
0x249e   :  { %v2882_v45 = vadd.f32 %v2874_v42, %v11123_v39 }
0x24a0   :  { %v2884_v55 = vsel %vm65_vm0, %v2882_v45, 0.0 }
0x24b1   :  { %10109 = vrot.lane.b32.xlu0 %v11268_v59, %s12263_s21 }
0x2524   :  { %v3686_v38 = vpop.xlane.xlu0 %3685 }
0x2525   :  { %10352 = vrcp.f32 %v3686_v38  ;;  %v2879_v38 = vadd.f32 %v11278_v1, %v8273_v8 }
0x2528   :  { %v3683_v60 = vpop.xlane.xlu0 %3682 }
0x2529   :  { %10354 = vrcp.f32 %v3683_v60  ;;  %v2883_v60 = vadd.f32 %v2879_v38, %v11120_v49 }
0x252c   :  { %v10110_v43 = vpop.permute.xlu0 %10109 }
0x252d   :  { %v10112_v47 = vunpack.i.h.bf16 %v10110_v43  ;;  %v10111_v40 = vunpack.i.l.bf16 %v10110_v43  ;;  %v2887_v43 = vsel %vm65_vm0, %v2883_v60, 0.0 }
0x252f   :  { %v9744_v48 = vpack.c.bf16 %v10112_v47, %v10111_v40  ;;  %v10353_v54 = vpop.eup %10352 }
0x2530   :  { %v3690_v58 = vmul.f32 %v10353_v54, %v10349_v2  ;;  %v9762_v2 = vpack.c.bf16 %v8321_v15, %v8320_v35 }
0x2531   :  { %9745 = vmatprep.subr.bf16.mxu1 %v9744_v48 }
0x2532   :  { %9747 = vmatpush3.bf16.msra.mxu1 %v9744_v48 }
0x2533   :  { %v10355_v0 = vpop.eup %10354  ;;  %9750 = vmatprep.subr.msk.bf16.mxu1 %vm10712_vm6, %v9748_v50 }
0x2534   :  { %v3689_v56 = vmul.f32 %v10355_v0, %v10351_v41 }
0x2536   :  { %9171 = vmatprep.mubr.msk.f32.mxu1 %vm387_vm7, %v3689_v56 }
0x2537   :  { %9172 = vmatmul.mubr.msk.f32.vlgmr.msra.gmra.mrb[36].mxu1 %vm387_vm7, %v3690_v58 }
0x2538   :  { %9178 = vmatprep.mubr.msk.f32.mxu1 %vm295_vm5, %v3779_v10 }
0x253b   :  { %9753 = vmatpush3.bf16.xpose.msk.msra.mxu1 %vm10712_vm6, %v9748_v50 }
0x2542   :  { %9179 = vmatmul.mubr.msk.f32.vlgmr.msra.gmra.mrb[38].mxu1 %vm295_vm5, %v3781_v12 }
0x260a   :  { %v9173_v51 = vpop.f32.mrb[36].mxu1 }
0x260b   :  { %v3769_v46 = vpop.f32.mrb[37].mxu1 }
0x2615   :  { %v9180_v14 = vpop.f32.mrb[38].mxu1 }
0x2616   :  { %v3870_v52 = vmul.f32 0.35355338, %v9180_v14  ;;  %v3860_v16 = vpop.f32.mrb[39].mxu1 }
0x2617   :  { %v3869_v17 = vmul.f32 0.35355338, %v3860_v16  ;;  %v8322_v16 = vld [vmem:[%s12208_s10 + $0x2] ss:$0 sm:$0xff] }
0x2618   :  { %v3872_v18 = vadd.f32 %v3870_v52, %v11285_v11 }
0x2619   :  { %v3871_v6 = vadd.f32 %v3869_v17, %v11290_v13 }
0x261a   :  { %v3876_v19 = vsel %vm387_vm7, %v3872_v18, -inf }
0x261b   :  { %3877 = vmax.xlane.f32.xlu1 %v3876_v19  ;;  %v3873_v4 = vsel %vm387_vm7, %v3871_v6, -inf }
0x261c   :  { %3874 = vmax.xlane.f32.xlu0 %v3873_v4 }
0x262c   :  { %3984 = vrot.lane.b32.xlu1 %v11342_v26, %s12256_s20 }
0x2630   :  { %3986 = vrot.lane.b32.xlu1 %v11340_v24, %s12256_s20 }
0x2634   :  { %3992 = vrot.lane.b32.xlu1 %v3769_v46, %s12257_s24 }
0x26a8   :  { %v3878_v7 = vpop.xlane.xlu1 %3877 }
0x26a9   :  { %v3880_v21 = vsub.f32 %v3872_v18, %v3878_v7  ;;  %v3875_v22 = vpop.xlane.xlu0 %3874 }
0x26aa   :  { %v3879_v11 = vsub.f32 %v3871_v6, %v3875_v22 }
0x26ab   :  { %v3883_v62 = vmul.f32 1.442695, %v3880_v21 }
0x26ac   :  { %v3881_v13 = vmul.f32 1.442695, %v3879_v11  ;;  %v3985_v47 = vpop.permute.xlu1 %3984 }
0x26ad   :  { %10356 = vpow2.f32 %v3883_v62  ;;  %v4006_v54 = vsel %vm295_vm5, %v11316_v37, %v3985_v47 }
0x26ae   :  { %10358 = vpow2.f32 %v3881_v13 }
0x26b0   :  { %v3987_v40 = vpop.permute.xlu1 %3986 }
0x26b1   :  { %v4007_v49 = vsel %vm295_vm5, %v11314_v36, %v3987_v40 }
0x26b4   :  { %v3993_v50 = vpop.permute.xlu1 %3992 }
0x26b5   :  { %v4008_v9 = vsel %vm387_vm7, %v4006_v54, %v3993_v50 }
0x26b7   :  { %v10357_v5 = vpop.eup %10356 }
0x26b8   :  { %v3888_v23 = vsel %vm387_vm7, %v10357_v5, 0.0  ;;  %v10359_v27 = vpop.eup %10358 }
0x26b9   :  { %3889 = vadd.xlane.f32.xlu0 %v3888_v23  ;;  %v3885_v26 = vsel %vm387_vm7, %v10359_v27, 0.0 }
0x26bd   :  { %3886 = vadd.xlane.f32.xlu0 %v3885_v26 }
0x26d3   :  { %10119 = vrot.lane.b32.xlu0 %v11268_v59, %s12255_s30  ;;  %v8318_v59 = vld [vmem:[%s12207_s9 + $0x40] sm:$0xff] }
0x26d4   :  { %v9758_v25 = vpack.c.bf16 %v8319_v34, %v8318_v59  ;;  %v8337_v34 = vld [vmem:[%s12205_s7 + $0x78] sm:$0xff] }
0x26d7   :  { %3994 = vrot.lane.b32.xlu0 %v9173_v51, %s12257_s24 }
0x2746   :  { %v3890_v24 = vpop.xlane.xlu0 %3889 }
0x2747   :  { %10360 = vrcp.f32 %v3890_v24 }
0x274a   :  { %v3887_v20 = vpop.xlane.xlu0 %3886 }
0x274b   :  { %10362 = vrcp.f32 %v3887_v20 }
0x274e   :  { %v10120_v28 = vpop.permute.xlu0 %10119 }
0x274f   :  { %v10122_v63 = vunpack.i.h.bf16 %v10120_v28  ;;  %v10121_v29 = vunpack.i.l.bf16 %v10120_v28  ;;  %v8276_v28 = vld [vmem:[%s12213_s15 + $0x4] ss:$0 sm:$0xff] }
0x2751   :  { %v9754_v44 = vpack.c.bf16 %v10122_v63, %v10121_v29  ;;  %v10361_v30 = vpop.eup %10360  ;;  %v8277_v29 = vld [vmem:[%s12214_s16 + $0x4] ss:$0 sm:$0xff] }
0x2752   :  { %v3894_v33 = vmul.f32 %v10361_v30, %v10357_v5  ;;  %v3995_v48 = vpop.permute.xlu0 %3994 }
0x2753   :  { %9755 = vmatprep.subr.bf16.mxu0 %v9754_v44  ;;  %v4009_v56 = vsel %vm387_vm7, %v4007_v49, %v3995_v48 }
0x2754   :  { %9757 = vmatpush3.bf16.msra.mxu0 %v9754_v44 }
0x2755   :  { %v10363_v31 = vpop.eup %10362  ;;  %9759 = vmatprep.subr.bf16.mxu0 %v9758_v25 }
0x2756   :  { %v3893_v32 = vmul.f32 %v10363_v31, %v10359_v27  ;;  %v8334_v31 = vld [vmem:[%s12205_s7 + $0x60] sm:$0xff] }
0x2758   :  { %9185 = vmatprep.mubr.msk.f32.mxu0 %vm387_vm7, %v3893_v32  ;;  %v8335_v32 = vld [vmem:[%s12205_s7 + $0x68] sm:$0xff] }
0x2759   :  { %9186 = vmatmul.mubr.msk.f32.vlgmr.msra.gmra.mrb[30].mxu0 %vm387_vm7, %v3894_v33  ;;  %v8336_v33 = vld [vmem:[%s12205_s7 + $0x70] sm:$0xff]  ;;  %v9774_v59 = vpack.c.bf16 %v8335_v32, %v8334_v31  ;;  %v8338_v31 = vld [vmem:[%s12206_s8 + $0x3] ss:$0 sm:$0xff] }
0x275a   :  { %9761 = vmatpush3.bf16.msra.mxu0 %v9758_v25  ;;  %v9778_v35 = vpack.c.bf16 %v8337_v34, %v8336_v33 }
0x275b   :  { %9763 = vmatprep.subr.bf16.mxu0 %v9762_v2 }
0x275e   :  { %9765 = vmatpush3.bf16.msra.mxu0 %v9762_v2 }
0x275f   :  { %9775 = vmatprep.subr.bf16.mxu0 %v9774_v59 }
0x282c   :  { %v9187_v57 = vpop.f32.mrb[30].mxu0 }
0x282d   :  { %4002 = vrot.lane.b32.xlu0 %v9187_v57, %s12258_s25  ;;  %v3973_v41 = vpop.f32.mrb[31].mxu0 }
0x282e   :  { %4000 = vrot.lane.b32.xlu1 %v3973_v41, %s12258_s25 }
0x284c   :  { %2888 = vadd.xlane.f32.xlu0 %v2887_v43 }
0x2852   :  { %2885 = vadd.xlane.f32.xlu1 %v2884_v55 }
0x289f   :  { %v4003_v1 = vpop.permute.xlu0 %4002 }
0x28a0   :  { %v4001_v0 = vpop.permute.xlu1 %4000  ;;  %v4011_v58 = vsel %vm1137_vm8, %v4009_v56, %v4003_v1 }
0x28a1   :  { %v4010_v39 = vsel %vm1137_vm8, %v4008_v9, %v4001_v0 }
0x28a2   :  { %9196 = vmatprep.mubr.msk.f32.mxu0 %vm65_vm0, %v4010_v39  ;;  %v8327_v39 = vld [vmem:[%s12203_s5 + $0x60] sm:$0xff] }
0x28a3   :  { %9197 = vmatmul.mubr.msk.f32.vlgmr.msra.gmra.mrb[32].mxu0 %vm65_vm0, %v4011_v58  ;;  %v8328_v58 = vld [vmem:[%s12203_s5 + $0x68] sm:$0xff] }
0x28a4   :  { %9777 = vmatpush3.bf16.msra.mxu0 %v9774_v59 }
0x28a5   :  { %9779 = vmatprep.subr.bf16.mxu0 %v9778_v35 }
0x28a8   :  { %9781 = vmatpush3.bf16.msra.mxu0 %v9778_v35 }
0x28d9   :  { %v2889_v14 = vpop.xlane.xlu0 %2888 }
0x28da   :  { %v2891_v6 = vmul.f32 0.03125, %v2889_v14 }
0x28dc   :  { %v2893_v21 = vsub.f32 %v2883_v60, %v2891_v6 }
0x28de   :  { %v2895_v13 = vmul.f32 %v2893_v21, %v2893_v21 }
0x28df   :  { %v2886_v10 = vpop.xlane.xlu1 %2885 }
0x28e0   :  { %v2890_v12 = vmul.f32 0.03125, %v2886_v10  ;;  %v8329_v10 = vld [vmem:[%s12203_s5 + $0x70] sm:$0xff] }
0x28e2   :  { %v2892_v37 = vsub.f32 %v2882_v45, %v2890_v12  ;;  %v9766_v12 = vpack.c.bf16 %v8328_v58, %v8327_v39 }
0x28e4   :  { %v2894_v51 = vmul.f32 %v2892_v37, %v2892_v37  ;;  %9767 = vmatprep.subr.bf16.mxu1 %v9766_v12 }
0x28e5   :  { %9769 = vmatpush3.bf16.msra.mxu1 %v9766_v12 }
0x28e6   :  { %v2896_v46 = vsel %vm65_vm0, %v2894_v51, 0.0 }
0x28e7   :  { %2897 = vadd.xlane.f32.xlu1 %v2896_v46 }
0x2974   :  { %v2898_v36 = vpop.xlane.xlu1 %2897 }
0x2975   :  { %v2902_v52 = vmul.f32 0.032258064, %v2898_v36 }
0x2976   :  { %v9198_v17 = vpop.f32.mrb[32].mxu0 }
0x2977   :  { %10364 = vrsqrt.f32 %v2902_v52  ;;  %v4094_v18 = vpop.f32.mrb[33].mxu0  ;;  %v4100_v19 = vadd.f32 %v9198_v17, %v8322_v16  ;;  %vm2906_vm1 = vcmp.eq.f32.partialorder %v2902_v52, inf  ;;  %v2909_v27 = vand.u32 2147483648, %v2902_v52 }
0x2978   :  { %v4095_v4 = vadd.f32 %v8322_v16, %v4094_v18  ;;  %vm2908_vm2 = vcmp.eq.f32.partialorder %v2902_v52, 0.0 }
0x2979   :  { %v11423_v22 = vadd.f32 %v4100_v19, %v11139_v3 }
0x297a   :  { %v11420_v7 = vadd.f32 %v4095_v4, %v11130_v53  ;;  %v2899_v53 = vsel %vm65_vm0, %v2895_v13, 0.0 }
0x297b   :  { %v4108_v62 = vsel %vm65_vm0, %v11423_v22, 0.0 }
0x297c   :  { %v4105_v11 = vsel %vm65_vm0, %v11420_v7, 0.0 }
0x297d   :  { %4106 = vadd.xlane.f32.xlu0 %v4105_v11 }
0x2981   :  { %v10365_v5 = vpop.eup %10364  ;;  %4109 = vadd.xlane.f32.xlu0 %v4108_v62 }
0x2982   :  { %v2905_v23 = vmul.f32 %v10365_v5, %v2902_v52 }
0x2984   :  { %v2907_v26 = vsel %vm2906_vm1, %v2902_v52, %v2905_v23 }
0x2985   :  { %v2910_v24 = vsel %vm2908_vm2, %v2909_v27, %v2907_v26  ;;  %2900 = vadd.xlane.f32.xlu0 %v2899_v53  ;;  %v8325_v26 = vld [vmem:[%s12213_s15 + $0x6] ss:$0 sm:$0xff] }
0x2986   :  { %v2918_v3 = vadd.f32 1e-06, %v2910_v24  ;;  %v8326_v24 = vld [vmem:[%s12214_s16 + $0x6] ss:$0 sm:$0xff] }
0x2988   :  { %10366 = vrcp.f32 %v2918_v3 }
0x2992   :  { %v10367_v20 = vpop.eup %10366 }
0x2993   :  { %v2922_v63 = vmul.f32 %v10367_v20, %v2892_v37  ;;  %v8330_v37 = vld [vmem:[%s12203_s5 + $0x78] sm:$0xff] }
0x2994   :  { %v9770_v51 = vpack.c.bf16 %v8330_v37, %v8329_v10 }
0x2995   :  { %v2929_v44 = vmul.f32 %v8276_v28, %v2922_v63 }
0x2996   :  { %9771 = vmatprep.subr.bf16.mxu1 %v9770_v51 }
0x2997   :  { %v11436_v30 = vadd.f32 %v8277_v29, %v2929_v44  ;;  %9773 = vmatpush3.bf16.msra.mxu1 %v9770_v51 }
0x2999   :  { %9218 = vmatprep.mubr.msk.f32.mxu0 %vm65_vm0, %v11436_v30 }
0x2a0a   :  { %v4107_v25 = vpop.xlane.xlu0 %4106 }
0x2a0b   :  { %v4111_v15 = vmul.f32 0.03125, %v4107_v25 }
0x2a0d   :  { %v11453_v2 = vsub.f32 %v11420_v7, %v4111_v15 }
0x2a0e   :  { %v4110_v57 = vpop.xlane.xlu0 %4109 }
0x2a0f   :  { %v4112_v41 = vmul.f32 0.03125, %v4110_v57  ;;  %v4115_v8 = vmul.f32 %v11453_v2, %v11453_v2 }
0x2a11   :  { %v11458_v38 = vsub.f32 %v11423_v22, %v4112_v41  ;;  %v4117_v60 = vsel %vm65_vm0, %v4115_v8, 0.0  ;;  %v8331_v8 = vld [vmem:[%s12204_s6 + $0x3] ss:$0 sm:$0xff] }
0x2a12   :  { %v2901_v42 = vpop.xlane.xlu0 %2900  ;;  %4118 = vadd.xlane.f32.xlu1 %v4117_v60 }
0x2a13   :  { %v2903_v43 = vmul.f32 0.032258064, %v2901_v42  ;;  %v4116_v45 = vmul.f32 %v11458_v38, %v11458_v38 }
0x2a15   :  { %10368 = vrsqrt.f32 %v2903_v43  ;;  %v4120_v55 = vsel %vm65_vm0, %v4116_v45, 0.0  ;;  %vm2913_vm3 = vcmp.eq.f32.partialorder %v2903_v43, inf  ;;  %v2916_v48 = vand.u32 2147483648, %v2903_v43 }
0x2a16   :  { %4121 = vadd.xlane.f32.xlu0 %v4120_v55  ;;  %vm2915_vm4 = vcmp.eq.f32.partialorder %v2903_v43, 0.0 }
0x2a1f   :  { %v10369_v47 = vpop.eup %10368 }
0x2a20   :  { %v2912_v40 = vmul.f32 %v10369_v47, %v2903_v43  ;;  %v11525_v47 = vld [vmem:[%s12202_s4 + $0x8] sm:$0xff] }
0x2a22   :  { %v2914_v50 = vsel %vm2913_vm3, %v2903_v43, %v2912_v40 }
0x2a23   :  { %v2917_v54 = vsel %vm2915_vm4, %v2916_v48, %v2914_v50  ;;  %v11530_v50 = vld [vmem:[%s12202_s4] sm:$0xff] }
0x2a24   :  { %v2919_v1 = vadd.f32 1e-06, %v2917_v54 }
0x2a26   :  { %10370 = vrcp.f32 %v2919_v1 }
0x2a30   :  { %v10371_v49 = vpop.eup %10370 }
0x2a31   :  { %v2923_v9 = vmul.f32 %v10371_v49, %v2893_v21 }
0x2a33   :  { %v2930_v0 = vmul.f32 %v8276_v28, %v2923_v9 }
0x2a35   :  { %v11464_v56 = vadd.f32 %v8277_v29, %v2930_v0 }
0x2a37   :  { %9219 = vmatmul.mubr.msk.f32.vlgmr.msra.gmra.mrb[34].mxu0 %vm65_vm0, %v11464_v56 }
0x2a9f   :  { %v4119_v46 = vpop.xlane.xlu1 %4118 }
0x2aa0   :  { %v4123_v36 = vmul.f32 0.032258064, %v4119_v46 }
0x2aa2   :  { %10372 = vrsqrt.f32 %v4123_v36  ;;  %vm4127_vm9 = vcmp.eq.f32.partialorder %v4123_v36, inf  ;;  %v4130_v18 = vand.u32 2147483648, %v4123_v36  ;;  %vm4129_vm10 = vcmp.eq.f32.partialorder %v4123_v36, 0.0 }
0x2aa3   :  { %v4122_v14 = vpop.xlane.xlu0 %4121 }
0x2aa4   :  { %v4124_v52 = vmul.f32 0.032258064, %v4122_v14 }
0x2aa6   :  { %10374 = vrsqrt.f32 %v4124_v52  ;;  %vm4134_vm11 = vcmp.eq.f32.partialorder %v4124_v52, inf  ;;  %v4137_v62 = vand.u32 2147483648, %v4124_v52  ;;  %vm4136_vm12 = vcmp.eq.f32.partialorder %v4124_v52, 0.0 }
0x2aac   :  { %v10373_v16 = vpop.eup %10372 }
0x2aad   :  { %v4126_v17 = vmul.f32 %v10373_v16, %v4123_v36 }
0x2aaf   :  { %v4128_v6 = vsel %vm4127_vm9, %v4123_v36, %v4126_v17 }
0x2ab0   :  { %v4131_v19 = vsel %vm4129_vm10, %v4130_v18, %v4128_v6  ;;  %v10375_v4 = vpop.eup %10374 }
0x2ab1   :  { %v4139_v21 = vadd.f32 1e-06, %v4131_v19  ;;  %v4133_v11 = vmul.f32 %v10375_v4, %v4124_v52 }
0x2ab3   :  { %10376 = vrcp.f32 %v4139_v21  ;;  %v4135_v13 = vsel %vm4134_vm11, %v4124_v52, %v4133_v11 }
0x2ab4   :  { %v4138_v5 = vsel %vm4136_vm12, %v4137_v62, %v4135_v13 }
0x2ab5   :  { %v4140_v23 = vadd.f32 1e-06, %v4138_v5 }
0x2ab7   :  { %10378 = vrcp.f32 %v4140_v23 }
0x2abd   :  { %v10377_v27 = vpop.eup %10376 }
0x2abe   :  { %v4143_v53 = vmul.f32 %v10377_v27, %v11453_v2 }
0x2ac0   :  { %v4150_v3 = vmul.f32 %v8325_v26, %v4143_v53 }
0x2ac1   :  { %v10379_v20 = vpop.eup %10378 }
0x2ac2   :  { %v4157_v28 = vadd.f32 %v8326_v24, %v4150_v3  ;;  %v4144_v63 = vmul.f32 %v10379_v20, %v11458_v38 }
0x2ac4   :  { %9207 = vmatprep.mubr.msk.f32.mxu1 %vm65_vm0, %v4157_v28  ;;  %v4151_v29 = vmul.f32 %v8325_v26, %v4144_v63 }
0x2ac6   :  { %v4158_v44 = vadd.f32 %v8326_v24, %v4151_v29 }
0x2ac8   :  { %9208 = vmatmul.mubr.msk.f32.vlgmr.msra.gmra.mrb[40].mxu1 %vm65_vm0, %v4158_v44 }
0x2b0a   :  { %v9220_v32 = vpop.f32.mrb[34].mxu0 }
0x2b0b   :  { %v4338_v33 = vadd.f32 %v9220_v32, %v8338_v31  ;;  %v4332_v59 = vpop.f32.mrb[35].mxu0 }
0x2b0c   :  { %v4333_v34 = vadd.f32 %v8338_v31, %v4332_v59 }
0x2b0e   :  { %v11493_v35 = vpack.i.bf16 %v4338_v33, %v4333_v34  ;;  %v9782_v25 = vpack.c.bf16 %v4338_v33, %v4333_v34 }
0x2b10   :  { %10124 = vrot.lane.b32.xlu1 %v11493_v35, %s12264_s22  ;;  %9784 = vmatprep.subr.msk.bf16.mxu1 %vm10712_vm6, %v9782_v25 }
0x2b11   :  { %9787 = vmatpush3.bf16.xpose.msk.msra.mxu1 %vm10712_vm6, %v9782_v25 }
0x2b82   :  { %v10125_v15 = vpop.permute.xlu1 %10124 }
0x2b83   :  { %v10127_v2 = vunpack.i.h.bf16 %v10125_v15  ;;  %v10126_v57 = vunpack.i.l.bf16 %v10125_v15 }
0x2b85   :  { %v9792_v41 = vpack.c.bf16 %v10127_v2, %v10126_v57 }
0x2b87   :  { %9794 = vmatprep.subr.msk.bf16.mxu1 %vm10712_vm6, %v9792_v41 }
0x2b9b   :  { %v9209_v38 = vpop.f32.mrb[40].mxu1 }
0x2b9c   :  { %v11506_v60 = vadd.f32 %v9209_v38, %v8331_v8  ;;  %v4241_v42 = vpop.f32.mrb[41].mxu1 }
0x2b9d   :  { %v11508_v43 = vadd.f32 %v8331_v8, %v4241_v42 }
0x2b9e   :  { %4543 = vrot.lane.b32.xlu1 %v11506_v60, %s12264_s22 }
0x2b9f   :  { %4541 = vrot.lane.b32.xlu0 %v11508_v43, %s12264_s22  ;;  %9225 = vmatprep.mubr.msk.f32.mxu1 %vm295_vm5, %v11508_v43 }
0x2ba0   :  { %9226 = vmatmul.mubr.msk.f32.vlgmr.msra.gmra.mrb[42].mxu1 %vm295_vm5, %v11506_v60 }
0x2ba1   :  { %9797 = vmatpush3.bf16.xpose.msk.msra.mxu1 %vm10712_vm6, %v9792_v41 }
0x2c10   :  { %v4544_v55 = vpop.permute.xlu1 %4543 }
0x2c11   :  { %v4542_v45 = vpop.permute.xlu0 %4541 }
0x2c12   :  { %9239 = vmatprep.mubr.msk.f32.mxu1 %vm295_vm5, %v4542_v45 }
0x2c13   :  { %9240 = vmatmul.mubr.msk.f32.vlgmr.msra.gmra.mrb[44].mxu1 %vm295_vm5, %v4544_v55 }
0x2c73   :  { %v9227_v40 = vpop.f32.mrb[42].mxu1 }
0x2c74   :  { %v4429_v48 = vmul.f32 0.35355338, %v9227_v40  ;;  %v4419_v54 = vpop.f32.mrb[43].mxu1 }
0x2c75   :  { %v4428_v1 = vmul.f32 0.35355338, %v4419_v54 }
0x2c76   :  { %v4431_v49 = vadd.f32 %v4429_v48, %v11525_v47 }
0x2c77   :  { %v4430_v9 = vadd.f32 %v4428_v1, %v11530_v50 }
0x2c78   :  { %v4435_v0 = vsel %vm387_vm7, %v4431_v49, -inf }
0x2c79   :  { %4436 = vmax.xlane.f32.xlu0 %v4435_v0  ;;  %v4432_v39 = vsel %vm387_vm7, %v4430_v9, -inf }
0x2c7a   :  { %4433 = vmax.xlane.f32.xlu1 %v4432_v39 }
0x2ce6   :  { %v9241_v58 = vpop.f32.mrb[44].mxu1 }
0x2ce7   :  { %v4633_v10 = vmul.f32 0.35355338, %v9241_v58  ;;  %v4623_v12 = vpop.f32.mrb[45].mxu1 }
0x2ce8   :  { %v4632_v37 = vmul.f32 0.35355338, %v4623_v12 }
0x2ce9   :  { %v4635_v51 = vadd.f32 %v4633_v10, %v11525_v47 }
0x2cea   :  { %v4634_v46 = vadd.f32 %v4632_v37, %v11530_v50 }
0x2ceb   :  { %v4639_v36 = vsel %vm387_vm7, %v4635_v51, -inf }
0x2cec   :  { %4640 = vmax.xlane.f32.xlu1 %v4639_v36  ;;  %v4636_v14 = vsel %vm387_vm7, %v4634_v46, -inf }
0x2ced   :  { %4637 = vmax.xlane.f32.xlu0 %v4636_v14 }
0x2d06   :  { %v4437_v52 = vpop.xlane.xlu0 %4436 }
0x2d07   :  { %v4439_v16 = vsub.f32 %v4431_v49, %v4437_v52  ;;  %v4434_v17 = vpop.xlane.xlu1 %4433 }
0x2d08   :  { %v4438_v18 = vsub.f32 %v4430_v9, %v4434_v17 }
0x2d09   :  { %v4442_v6 = vmul.f32 1.442695, %v4439_v16 }
0x2d0a   :  { %v4440_v19 = vmul.f32 1.442695, %v4438_v18 }
0x2d0b   :  { %10380 = vpow2.f32 %v4442_v6 }
0x2d0c   :  { %10382 = vpow2.f32 %v4440_v19 }
0x2d15   :  { %v10381_v4 = vpop.eup %10380 }
0x2d16   :  { %v10383_v21 = vpop.eup %10382  ;;  %v4447_v11 = vsel %vm387_vm7, %v10381_v4, 0.0 }
0x2d17   :  { %4448 = vadd.xlane.f32.xlu1 %v4447_v11  ;;  %v4444_v62 = vsel %vm387_vm7, %v10383_v21, 0.0 }
0x2d18   :  { %4445 = vadd.xlane.f32.xlu0 %v4444_v62 }
0x2d79   :  { %v4641_v13 = vpop.xlane.xlu1 %4640 }
0x2d7a   :  { %v4643_v5 = vsub.f32 %v4635_v51, %v4641_v13  ;;  %v4638_v23 = vpop.xlane.xlu0 %4637 }
0x2d7b   :  { %v4642_v27 = vsub.f32 %v4634_v46, %v4638_v23 }
0x2d7c   :  { %v4646_v26 = vmul.f32 1.442695, %v4643_v5 }
0x2d7d   :  { %v4644_v53 = vmul.f32 1.442695, %v4642_v27 }
0x2d7e   :  { %10384 = vpow2.f32 %v4646_v26 }
0x2d7f   :  { %10386 = vpow2.f32 %v4644_v53 }
0x2d88   :  { %v10385_v24 = vpop.eup %10384 }
0x2d89   :  { %v10387_v3 = vpop.eup %10386  ;;  %v4651_v20 = vsel %vm387_vm7, %v10385_v24, 0.0 }
0x2d8a   :  { %4652 = vadd.xlane.f32.xlu1 %v4651_v20  ;;  %v4648_v28 = vsel %vm387_vm7, %v10387_v3, 0.0 }
0x2d8b   :  { %4649 = vadd.xlane.f32.xlu0 %v4648_v28 }
0x2d9b   :  { %10134 = vrot.lane.b32.xlu1 %v11493_v35, %s12262_s19 }
0x2d9f   :  { %10139 = vrot.lane.b32.xlu1 %v11493_v35, %s12261_s26 }
0x2da1   :  { %10129 = vrot.lane.b32.xlu0 %v11493_v35, %s12260_s18 }
0x2da3   :  { %4745 = vrot.lane.b32.xlu1 %v11508_v43, %s12261_s26 }
0x2da4   :  { %v4449_v31 = vpop.xlane.xlu1 %4448 }
0x2da5   :  { %4747 = vrot.lane.b32.xlu0 %v11506_v60, %s12261_s26  ;;  %v4446_v63 = vpop.xlane.xlu0 %4445 }
0x2da6   :  { %10388 = vrcp.f32 %v4446_v63 }
0x2da7   :  { %10390 = vrcp.f32 %v4449_v31 }
0x2db0   :  { %v10389_v29 = vpop.eup %10388 }
0x2db1   :  { %v4452_v44 = vmul.f32 %v10389_v29, %v10383_v21  ;;  %v10391_v38 = vpop.eup %10390 }
0x2db2   :  { %v4453_v48 = vmul.f32 %v10391_v38, %v10381_v4 }
0x2db3   :  { %9232 = vmatprep.mubr.msk.f32.mxu0 %vm387_vm7, %v4452_v44 }
0x2e17   :  { %v4653_v32 = vpop.xlane.xlu1 %4652 }
0x2e18   :  { %v4650_v33 = vpop.xlane.xlu0 %4649 }
0x2e19   :  { %10392 = vrcp.f32 %v4650_v33 }
0x2e1a   :  { %10394 = vrcp.f32 %v4653_v32 }
0x2e1b   :  { %v10135_v59 = vpop.permute.xlu1 %10134 }
0x2e1c   :  { %v10130_v34 = vpop.permute.xlu0 %10129  ;;  %v10137_v25 = vunpack.i.h.bf16 %v10135_v59  ;;  %v10136_v15 = vunpack.i.l.bf16 %v10135_v59 }
0x2e1d   :  { %v10132_v2 = vunpack.i.h.bf16 %v10130_v34  ;;  %v10131_v57 = vunpack.i.l.bf16 %v10130_v34 }
0x2e1e   :  { %v9798_v55 = vpack.c.bf16 %v10137_v25, %v10136_v15 }
0x2e1f   :  { %v10140_v41 = vpop.permute.xlu1 %10139  ;;  %v9788_v8 = vpack.c.bf16 %v10132_v2, %v10131_v57 }
0x2e20   :  { %v10142_v42 = vunpack.i.h.bf16 %v10140_v41  ;;  %v10141_v45 = vunpack.i.l.bf16 %v10140_v41  ;;  %v4748_v39 = vpop.permute.xlu0 %4747 }
0x2e21   :  { %9789 = vmatprep.subr.bf16.mxu0 %v9788_v8 }
0x2e22   :  { %9791 = vmatpush3.bf16.msra.mxu0 %v9788_v8  ;;  %v9802_v49 = vpack.c.bf16 %v10142_v42, %v10141_v45 }
0x2e23   :  { %v10393_v40 = vpop.eup %10392  ;;  %9799 = vmatprep.subr.bf16.mxu0 %v9798_v55  ;;  %v4746_v0 = vpop.permute.xlu1 %4745 }
0x2e24   :  { %v10395_v54 = vpop.eup %10394  ;;  %v4656_v1 = vmul.f32 %v10393_v40, %v10387_v3 }
0x2e25   :  { %9233 = vmatmul.mubr.msk.f32.vlgmr.msra.gmra.mrb[36].mxu0 %vm387_vm7, %v4453_v48  ;;  %v4657_v9 = vmul.f32 %v10395_v54, %v10385_v24 }
0x2e26   :  { %9801 = vmatpush3.bf16.msra.mxu0 %v9798_v55  ;;  %9246 = vmatprep.mubr.msk.f32.mxu0 %vm387_vm7, %v4656_v1 }
0x2e27   :  { %9804 = vmatprep.subr.msk.bf16.mxu0 %vm10712_vm6, %v9802_v49 }
0x2e29   :  { %9247 = vmatmul.mubr.msk.f32.vlgmr.msra.gmra.mrb[38].mxu0 %vm387_vm7, %v4657_v9 }
0x2e2a   :  { %9253 = vmatprep.mubr.msk.f32.mxu0 %vm295_vm5, %v4746_v0 }
0x2e2f   :  { %9807 = vmatpush3.bf16.xpose.msk.msra.mxu0 %vm10712_vm6, %v9802_v49 }
0x2e36   :  { %9254 = vmatmul.mubr.msk.f32.vlgmr.msra.gmra.mrb[40].mxu0 %vm295_vm5, %v4748_v39 }
0x2ef8   :  { %v11564_v58 = vpop.f32.mrb[36].mxu0 }
0x2ef9   :  { %v11566_v10 = vpop.f32.mrb[37].mxu0 }
0x2efc   :  { %v11568_v12 = vpop.f32.mrb[38].mxu0 }
0x2efd   :  { %v11570_v37 = vpop.f32.mrb[39].mxu0 }
0x2f09   :  { %v9255_v51 = vpop.f32.mrb[40].mxu0 }
0x2f0a   :  { %v4837_v46 = vmul.f32 0.35355338, %v9255_v51  ;;  %v4827_v36 = vpop.f32.mrb[41].mxu0 }
0x2f0b   :  { %v4836_v14 = vmul.f32 0.35355338, %v4827_v36 }
0x2f0c   :  { %v4839_v52 = vadd.f32 %v4837_v46, %v11525_v47 }
0x2f0d   :  { %v4838_v16 = vadd.f32 %v4836_v14, %v11530_v50 }
0x2f0e   :  { %v4843_v17 = vsel %vm387_vm7, %v4839_v52, -inf }
0x2f0f   :  { %4844 = vmax.xlane.f32.xlu0 %v4843_v17  ;;  %v4840_v18 = vsel %vm387_vm7, %v4838_v16, -inf }
0x2f10   :  { %4841 = vmax.xlane.f32.xlu1 %v4840_v18 }
0x2f21   :  { %10144 = vrot.lane.b32.xlu1 %v11493_v35, %s12263_s21 }
0x2f25   :  { %4949 = vrot.lane.b32.xlu1 %v11508_v43, %s12254_s2 }
0x2f29   :  { %4951 = vrot.lane.b32.xlu1 %v11506_v60, %s12254_s2 }
0x2f9c   :  { %v4845_v6 = vpop.xlane.xlu0 %4844 }
0x2f9d   :  { %v4847_v19 = vsub.f32 %v4839_v52, %v4845_v6  ;;  %v4842_v4 = vpop.xlane.xlu1 %4841  ;;  %v8365_v6 = vld [vmem:[%s12207_s9 + $0x60] sm:$0xff] }
0x2f9e   :  { %v4846_v21 = vsub.f32 %v4838_v16, %v4842_v4 }
0x2f9f   :  { %v4850_v11 = vmul.f32 1.442695, %v4847_v19  ;;  %v8367_v19 = vld [vmem:[%s12207_s9 + $0x70] sm:$0xff] }
0x2fa0   :  { %v4848_v62 = vmul.f32 1.442695, %v4846_v21  ;;  %v8368_v21 = vld [vmem:[%s12207_s9 + $0x78] sm:$0xff] }
0x2fa1   :  { %10396 = vpow2.f32 %v4850_v11  ;;  %v10145_v13 = vpop.permute.xlu1 %10144  ;;  %v9826_v11 = vpack.c.bf16 %v8368_v21, %v8367_v19 }
0x2fa2   :  { %v10147_v5 = vunpack.i.h.bf16 %v10145_v13  ;;  %v10146_v23 = vunpack.i.l.bf16 %v10145_v13  ;;  %10398 = vpow2.f32 %v4848_v62 }
0x2fa4   :  { %v9808_v27 = vpack.c.bf16 %v10147_v5, %v10146_v23 }
0x2fa5   :  { %v4950_v59 = vpop.permute.xlu1 %4949 }
0x2fa6   :  { %9809 = vmatprep.subr.bf16.mxu1 %v9808_v27 }
0x2fa7   :  { %9811 = vmatpush3.bf16.msra.mxu1 %v9808_v27 }
0x2fa9   :  { %v4952_v34 = vpop.permute.xlu1 %4951 }
0x2fab   :  { %v10397_v26 = vpop.eup %10396 }
0x2fac   :  { %v4855_v43 = vsel %vm387_vm7, %v10397_v26, 0.0  ;;  %v10399_v53 = vpop.eup %10398 }
0x2fad   :  { %4856 = vadd.xlane.f32.xlu0 %v4855_v43  ;;  %v4852_v60 = vsel %vm387_vm7, %v10399_v53, 0.0 }
0x2fb1   :  { %4853 = vadd.xlane.f32.xlu0 %v4852_v60 }
0x2fc7   :  { %10149 = vrot.lane.b32.xlu0 %v11493_v35, %s12254_s2 }
0x303a   :  { %v4857_v24 = vpop.xlane.xlu0 %4856 }
0x303b   :  { %10400 = vrcp.f32 %v4857_v24 }
0x303e   :  { %v4854_v3 = vpop.xlane.xlu0 %4853 }
0x303f   :  { %10402 = vrcp.f32 %v4854_v3 }
0x3042   :  { %v10150_v20 = vpop.permute.xlu0 %10149 }
0x3043   :  { %v10152_v28 = vunpack.i.h.bf16 %v10150_v20  ;;  %v10151_v63 = vunpack.i.l.bf16 %v10150_v20 }
0x3045   :  { %v9812_v29 = vpack.c.bf16 %v10152_v28, %v10151_v63  ;;  %v10401_v44 = vpop.eup %10400 }
0x3046   :  { %v4861_v33 = vmul.f32 %v10401_v44, %v10397_v26 }
0x3047   :  { %9814 = vmatprep.subr.msk.bf16.mxu1 %vm10712_vm6, %v9812_v29 }
0x3049   :  { %v10403_v31 = vpop.eup %10402 }
0x304a   :  { %v4860_v32 = vmul.f32 %v10403_v31, %v10399_v53 }
0x304c   :  { %9260 = vmatprep.mubr.msk.f32.mxu1 %vm387_vm7, %v4860_v32 }
0x304d   :  { %9261 = vmatmul.mubr.msk.f32.vlgmr.msra.gmra.mrb[46].mxu1 %vm387_vm7, %v4861_v33 }
0x304e   :  { %9817 = vmatpush3.bf16.xpose.msk.msra.mxu1 %vm10712_vm6, %v9812_v29  ;;  %9267 = vmatprep.mubr.msk.f32.mxu1 %vm295_vm5, %v4950_v59 }
0x3055   :  { %9268 = vmatmul.mubr.msk.f32.vlgmr.msra.gmra.mrb[48].mxu1 %vm295_vm5, %v4952_v34 }
0x3120   :  { %v9262_v25 = vpop.f32.mrb[46].mxu1 }
0x3121   :  { %v4940_v15 = vpop.f32.mrb[47].mxu1 }
0x3128   :  { %v9269_v2 = vpop.f32.mrb[48].mxu1 }
0x3129   :  { %v5041_v57 = vmul.f32 0.35355338, %v9269_v2  ;;  %v5031_v41 = vpop.f32.mrb[49].mxu1 }
0x312a   :  { %v5040_v8 = vmul.f32 0.35355338, %v5031_v41 }
0x312b   :  { %v5043_v38 = vadd.f32 %v5041_v57, %v11525_v47 }
0x312c   :  { %v5042_v42 = vadd.f32 %v5040_v8, %v11530_v50 }
0x312d   :  { %v5047_v45 = vsel %vm387_vm7, %v5043_v38, -inf }
0x312e   :  { %5048 = vmax.xlane.f32.xlu0 %v5047_v45  ;;  %v5044_v55 = vsel %vm387_vm7, %v5042_v42, -inf  ;;  %v8374_v45 = vld [vmem:[%s12209_s11 + $0x40] sm:$0xff] }
0x312f   :  { %5045 = vmax.xlane.f32.xlu1 %v5044_v55  ;;  %v8375_v55 = vld [vmem:[%s12209_s11 + $0x48] sm:$0xff] }
0x3140   :  { %10154 = vrot.lane.b32.xlu1 %v11493_v35, %s12255_s30 }
0x3144   :  { %5157 = vrot.lane.b32.xlu1 %v11568_v12, %s12256_s20 }
0x3148   :  { %5163 = vrot.lane.b32.xlu1 %v4940_v15, %s12257_s24 }
0x314c   :  { %5165 = vrot.lane.b32.xlu1 %v9262_v25, %s12257_s24 }
0x31bb   :  { %v5049_v40 = vpop.xlane.xlu0 %5048 }
0x31bc   :  { %v5051_v47 = vsub.f32 %v5043_v38, %v5049_v40  ;;  %v5046_v48 = vpop.xlane.xlu1 %5045  ;;  %v8376_v40 = vld [vmem:[%s12209_s11 + $0x50] sm:$0xff] }
0x31bd   :  { %v5050_v50 = vsub.f32 %v5042_v42, %v5046_v48  ;;  %v8377_v48 = vld [vmem:[%s12209_s11 + $0x58] sm:$0xff] }
0x31be   :  { %v5054_v54 = vmul.f32 1.442695, %v5051_v47  ;;  %v9830_v47 = vpack.c.bf16 %v8375_v55, %v8374_v45 }
0x31bf   :  { %v5052_v1 = vmul.f32 1.442695, %v5050_v50  ;;  %v9834_v50 = vpack.c.bf16 %v8377_v48, %v8376_v40 }
0x31c0   :  { %v10155_v49 = vpop.permute.xlu1 %10154  ;;  %9831 = vmatprep.subr.bf16.mxu1 %v9830_v47 }
0x31c1   :  { %10404 = vpow2.f32 %v5052_v1  ;;  %v10157_v9 = vunpack.i.h.bf16 %v10155_v49  ;;  %v10156_v0 = vunpack.i.l.bf16 %v10155_v49  ;;  %9833 = vmatpush3.bf16.msra.mxu1 %v9830_v47  ;;  %v8382_v1 = vld [vmem:[%s12211_s13 + $0x88] sm:$0xff]  ;;  %v8383_v49 = vld [vmem:[%s12211_s13 + $0x90] sm:$0xff] }
0x31c2   :  { %10406 = vpow2.f32 %v5054_v54  ;;  %9835 = vmatprep.subr.bf16.mxu1 %v9834_v50  ;;  %v8381_v54 = vld [vmem:[%s12211_s13 + $0x80] sm:$0xff] }
0x31c3   :  { %v9818_v39 = vpack.c.bf16 %v10157_v9, %v10156_v0  ;;  %v9838_v9 = vpack.c.bf16 %v8382_v1, %v8381_v54  ;;  %v8384_v0 = vld [vmem:[%s12211_s13 + $0x98] sm:$0xff] }
0x31c4   :  { %v5158_v5 = vpop.permute.xlu1 %5157 }
0x31c5   :  { %9819 = vmatprep.subr.bf16.mxu0 %v9818_v39  ;;  %v5178_v60 = vsel %vm295_vm5, %v11564_v58, %v5158_v5  ;;  %9837 = vmatpush3.bf16.msra.mxu1 %v9834_v50 }
0x31c6   :  { %9821 = vmatpush3.bf16.msra.mxu0 %v9818_v39  ;;  %v9842_v39 = vpack.c.bf16 %v8384_v0, %v8383_v49  ;;  %v8395_v0 = vld [vmem:[%s12203_s5 + $0x88] sm:$0xff] }
0x31c8   :  { %v5164_v23 = vpop.permute.xlu1 %5163 }
0x31cb   :  { %v10405_v35 = vpop.eup %10404 }
0x31cc   :  { %v5056_v12 = vsel %vm387_vm7, %v10405_v35, 0.0  ;;  %v10407_v51 = vpop.eup %10406  ;;  %v5166_v26 = vpop.permute.xlu1 %5165 }
0x31cd   :  { %5057 = vadd.xlane.f32.xlu0 %v5056_v12  ;;  %v5059_v46 = vsel %vm387_vm7, %v10407_v51, 0.0  ;;  %v5180_v20 = vsel %vm387_vm7, %v5178_v60, %v5166_v26  ;;  %v8386_v12 = vld [vmem:[%s12211_s13 + $0xa8] sm:$0xff] }
0x31d1   :  { %5060 = vadd.xlane.f32.xlu0 %v5059_v46 }
0x31e7   :  { %5155 = vrot.lane.b32.xlu0 %v11570_v37, %s12256_s20  ;;  %v8366_v37 = vld [vmem:[%s12207_s9 + $0x68] sm:$0xff] }
0x31e8   :  { %v9822_v4 = vpack.c.bf16 %v8366_v37, %v8365_v6 }
0x31ea   :  { %9823 = vmatprep.subr.bf16.mxu0 %v9822_v4 }
0x325a   :  { %v5058_v36 = vpop.xlane.xlu0 %5057 }
0x325b   :  { %10408 = vrcp.f32 %v5058_v36 }
0x325e   :  { %v5061_v14 = vpop.xlane.xlu0 %5060 }
0x325f   :  { %10410 = vrcp.f32 %v5061_v14 }
0x3262   :  { %v5156_v27 = vpop.permute.xlu0 %5155 }
0x3263   :  { %v5177_v43 = vsel %vm295_vm5, %v11566_v10, %v5156_v27  ;;  %v8369_v10 = vld [vmem:[%s12208_s10 + $0x3] ss:$0 sm:$0xff]  ;;  %v8372_v27 = vld [vmem:[%s12213_s15 + $0x7] ss:$0 sm:$0xff] }
0x3264   :  { %v5179_v24 = vsel %vm387_vm7, %v5177_v43, %v5164_v23  ;;  %v8373_v43 = vld [vmem:[%s12214_s16 + $0x7] ss:$0 sm:$0xff] }
0x3265   :  { %v10409_v52 = vpop.eup %10408 }
0x3266   :  { %v5064_v16 = vmul.f32 %v10409_v52, %v10405_v35  ;;  %v8385_v35 = vld [vmem:[%s12211_s13 + $0xa0] sm:$0xff] }
0x3268   :  { %9274 = vmatprep.mubr.msk.f32.mxu0 %vm387_vm7, %v5064_v16 }
0x3269   :  { %v10411_v17 = vpop.eup %10410 }
0x326a   :  { %v5065_v18 = vmul.f32 %v10411_v17, %v10407_v51  ;;  %v9846_v51 = vpack.c.bf16 %v8386_v12, %v8385_v35  ;;  %v8397_v12 = vld [vmem:[%s12203_s5 + $0x98] sm:$0xff] }
0x326c   :  { %9275 = vmatmul.mubr.msk.f32.vlgmr.msra.gmra.mrb[42].mxu0 %vm387_vm7, %v5065_v18 }
0x326d   :  { %9825 = vmatpush3.bf16.msra.mxu0 %v9822_v4 }
0x326e   :  { %9827 = vmatprep.subr.bf16.mxu0 %v9826_v11 }
0x3271   :  { %9829 = vmatpush3.bf16.msra.mxu0 %v9826_v11 }
0x3272   :  { %9839 = vmatprep.subr.bf16.mxu0 %v9838_v9 }
0x333f   :  { %v9276_v62 = vpop.f32.mrb[42].mxu0 }
0x3340   :  { %5173 = vrot.lane.b32.xlu1 %v9276_v62, %s12258_s25  ;;  %v5144_v13 = vpop.f32.mrb[43].mxu0 }
0x3341   :  { %5171 = vrot.lane.b32.xlu0 %v5144_v13, %s12258_s25 }
0x33b2   :  { %v5174_v53 = vpop.permute.xlu1 %5173 }
0x33b3   :  { %v5172_v3 = vpop.permute.xlu0 %5171  ;;  %v5182_v63 = vsel %vm1137_vm8, %v5180_v20, %v5174_v53 }
0x33b4   :  { %v5181_v28 = vsel %vm1137_vm8, %v5179_v24, %v5172_v3 }
0x33b5   :  { %9285 = vmatprep.mubr.msk.f32.mxu0 %vm65_vm0, %v5181_v28 }
0x33b6   :  { %9286 = vmatmul.mubr.msk.f32.vlgmr.msra.gmra.mrb[44].mxu0 %vm65_vm0, %v5182_v63  ;;  %v8387_v63 = vld [vmem:[%s12211_s13 + $0xb0] sm:$0xff] }
0x33b7   :  { %9841 = vmatpush3.bf16.msra.mxu0 %v9838_v9  ;;  %v8394_v9 = vld [vmem:[%s12203_s5 + $0x80] sm:$0xff] }
0x33b8   :  { %9843 = vmatprep.subr.bf16.mxu0 %v9842_v39  ;;  %v9854_v35 = vpack.c.bf16 %v8395_v0, %v8394_v9 }
0x33ba   :  { %9855 = vmatprep.subr.bf16.mxu1 %v9854_v35 }
0x33bb   :  { %9845 = vmatpush3.bf16.msra.mxu0 %v9842_v39  ;;  %v8396_v39 = vld [vmem:[%s12203_s5 + $0x90] sm:$0xff] }
0x33bc   :  { %9847 = vmatprep.subr.bf16.mxu0 %v9846_v51 }
0x33bf   :  { %9849 = vmatpush3.bf16.msra.mxu0 %v9846_v51  ;;  %v9858_v51 = vpack.c.bf16 %v8397_v12, %v8396_v39 }
0x3489   :  { %v9287_v29 = vpop.f32.mrb[44].mxu0 }
0x348a   :  { %v5271_v44 = vadd.f32 %v9287_v29, %v8369_v10  ;;  %v5265_v58 = vpop.f32.mrb[45].mxu0 }
0x348b   :  { %v5266_v31 = vadd.f32 %v8369_v10, %v5265_v58  ;;  %v8388_v10 = vld [vmem:[%s12211_s13 + $0xb8] sm:$0xff] }
0x348c   :  { %v11638_v32 = vadd.f32 %v5271_v44, %v11423_v22  ;;  %v9850_v29 = vpack.c.bf16 %v8388_v10, %v8387_v63  ;;  %v8378_v44 = vld [vmem:[%s12210_s12 + $0x2] ss:$0 sm:$0xff]  ;;  %v8403_v10 = vld [vmem:[%s12205_s7 + $0x90] sm:$0xff] }
0x348d   :  { %v11641_v33 = vadd.f32 %v5266_v31, %v11420_v7 }
0x348e   :  { %v5279_v59 = vsel %vm65_vm0, %v11638_v32, 0.0  ;;  %9851 = vmatprep.subr.bf16.mxu0 %v9850_v29 }
0x348f   :  { %5280 = vadd.xlane.f32.xlu1 %v5279_v59  ;;  %v5276_v34 = vsel %vm65_vm0, %v11641_v33, 0.0  ;;  %9853 = vmatpush3.bf16.msra.mxu0 %v9850_v29  ;;  %v8404_v29 = vld [vmem:[%s12205_s7 + $0x98] sm:$0xff] }
0x3490   :  { %5277 = vadd.xlane.f32.xlu0 %v5276_v34 }
0x351c   :  { %v5281_v25 = vpop.xlane.xlu1 %5280 }
0x351d   :  { %v5283_v15 = vmul.f32 0.03125, %v5281_v25  ;;  %v5278_v2 = vpop.xlane.xlu0 %5277 }
0x351e   :  { %v5282_v57 = vmul.f32 0.03125, %v5278_v2  ;;  %v8389_v2 = vld [vmem:[%s12212_s14 + $0x2] ss:$0 sm:$0xff] }
0x351f   :  { %v11648_v41 = vsub.f32 %v11638_v32, %v5283_v15 }
0x3520   :  { %v5284_v22 = vsub.f32 %v11641_v33, %v5282_v57 }
0x3521   :  { %v5287_v38 = vmul.f32 %v11648_v41, %v11648_v41 }
0x3522   :  { %v5286_v8 = vmul.f32 %v5284_v22, %v5284_v22 }
0x3523   :  { %v5291_v42 = vsel %vm65_vm0, %v5287_v38, 0.0 }
0x3524   :  { %v5288_v7 = vsel %vm65_vm0, %v5286_v8, 0.0 }
0x3525   :  { %5289 = vadd.xlane.f32.xlu0 %v5288_v7 }
0x3529   :  { %5292 = vadd.xlane.f32.xlu0 %v5291_v42 }
0x35b2   :  { %v5290_v46 = vpop.xlane.xlu0 %5289 }
0x35b3   :  { %v5294_v36 = vmul.f32 0.032258064, %v5290_v46  ;;  %v8401_v46 = vld [vmem:[%s12205_s7 + $0x80] sm:$0xff] }
0x35b5   :  { %10412 = vrsqrt.f32 %v5294_v36  ;;  %vm5298_vm14 = vcmp.eq.f32.partialorder %v5294_v36, inf  ;;  %v5301_v18 = vand.u32 2147483648, %v5294_v36  ;;  %vm5300_vm15 = vcmp.eq.f32.partialorder %v5294_v36, 0.0 }
0x35b6   :  { %v5293_v14 = vpop.xlane.xlu0 %5292 }
0x35b7   :  { %v5295_v52 = vmul.f32 0.032258064, %v5293_v14 }
0x35b9   :  { %10414 = vrsqrt.f32 %v5295_v52  ;;  %vm5305_vm1 = vcmp.eq.f32.partialorder %v5295_v52, inf  ;;  %v5308_v11 = vand.u32 2147483648, %v5295_v52  ;;  %vm5307_vm2 = vcmp.eq.f32.partialorder %v5295_v52, 0.0 }
0x35bf   :  { %v10413_v16 = vpop.eup %10412 }
0x35c0   :  { %v5297_v17 = vmul.f32 %v10413_v16, %v5294_v36 }
0x35c2   :  { %v5299_v6 = vsel %vm5298_vm14, %v5294_v36, %v5297_v17  ;;  %v8402_v36 = vld [vmem:[%s12205_s7 + $0x88] sm:$0xff] }
0x35c3   :  { %v10415_v37 = vpop.eup %10414  ;;  %v5302_v19 = vsel %vm5300_vm15, %v5301_v18, %v5299_v6  ;;  %v9862_v14 = vpack.c.bf16 %v8402_v36, %v8401_v46 }
0x35c4   :  { %v5310_v4 = vadd.f32 1e-06, %v5302_v19  ;;  %v5304_v21 = vmul.f32 %v10415_v37, %v5295_v52 }
0x35c6   :  { %10416 = vrcp.f32 %v5310_v4  ;;  %v5306_v62 = vsel %vm5305_vm1, %v5295_v52, %v5304_v21 }
0x35c7   :  { %v5309_v13 = vsel %vm5307_vm2, %v5308_v11, %v5306_v62 }
0x35c8   :  { %v5311_v5 = vadd.f32 1e-06, %v5309_v13 }
0x35ca   :  { %10418 = vrcp.f32 %v5311_v5 }
0x35d0   :  { %v10417_v23 = vpop.eup %10416 }
0x35d1   :  { %v5314_v26 = vmul.f32 %v10417_v23, %v5284_v22 }
0x35d3   :  { %v5321_v53 = vmul.f32 %v8372_v27, %v5314_v26 }
0x35d4   :  { %v10419_v60 = vpop.eup %10418 }
0x35d5   :  { %v5315_v24 = vmul.f32 %v10419_v60, %v11648_v41  ;;  %v5328_v3 = vadd.f32 %v8373_v43, %v5321_v53  ;;  %v8392_v53 = vld [vmem:[%s12213_s15 + $0x8] ss:$0 sm:$0xff] }
0x35d7   :  { %v5322_v20 = vmul.f32 %v8372_v27, %v5315_v24  ;;  %9296 = vmatprep.mubr.msk.f32.mxu1 %vm65_vm0, %v5328_v3 }
0x35d9   :  { %v5329_v28 = vadd.f32 %v8373_v43, %v5322_v20 }
0x35db   :  { %9297 = vmatmul.mubr.msk.f32.vlgmr.msra.gmra.mrb[50].mxu1 %vm65_vm0, %v5329_v28  ;;  %v8393_v28 = vld [vmem:[%s12214_s16 + $0x8] ss:$0 sm:$0xff] }
0x35dc   :  { %9857 = vmatpush3.bf16.msra.mxu1 %v9854_v35 }
0x35dd   :  { %9859 = vmatprep.subr.bf16.mxu1 %v9858_v51 }
0x35e0   :  { %9861 = vmatpush3.bf16.msra.mxu1 %v9858_v51 }
0x35e1   :  { %9863 = vmatprep.subr.bf16.mxu1 %v9862_v14 }
0x36ae   :  { %v9298_v58 = vpop.f32.mrb[50].mxu1 }
0x36af   :  { %v5418_v31 = vadd.f32 %v9298_v58, %v8378_v44  ;;  %v5412_v59 = vpop.f32.mrb[51].mxu1 }
0x36b0   :  { %v5413_v34 = vadd.f32 %v8378_v44, %v5412_v59  ;;  %v8398_v59 = vld [vmem:[%s12204_s6 + $0x4] ss:$0 sm:$0xff] }
0x36b1   :  { %v5422_v15 = vmax.f32 %v5418_v31, 0.0  ;;  %v9866_v31 = vpack.c.bf16 %v8404_v29, %v8403_v10 }
0x36b2   :  { %v5421_v25 = vmax.f32 %v5413_v34, 0.0 }
0x36b4   :  { %9315 = vmatprep.mubr.msk.f32.mxu0 %vm1391_vm13, %v5421_v25 }
0x36b5   :  { %9316 = vmatmul.mubr.msk.f32.vlgmr.msra.gmra.mrb[46].mxu0 %vm1391_vm13, %v5422_v15 }
0x3788   :  { %v9317_v57 = vpop.f32.mrb[46].mxu0 }
0x3789   :  { %v5515_v41 = vadd.f32 %v9317_v57, %v8389_v2  ;;  %v5509_v22 = vpop.f32.mrb[47].mxu0 }
0x378a   :  { %v5510_v8 = vadd.f32 %v8389_v2, %v5509_v22  ;;  %v8405_v2 = vld [vmem:[%s12206_s8 + $0x4] ss:$0 sm:$0xff] }
0x378b   :  { %v11709_v7 = vadd.f32 %v5515_v41, %v11638_v32 }
0x378c   :  { %v11712_v38 = vadd.f32 %v5510_v8, %v11641_v33 }
0x378d   :  { %v5523_v42 = vsel %vm65_vm0, %v11709_v7, 0.0 }
0x378e   :  { %5524 = vadd.xlane.f32.xlu1 %v5523_v42  ;;  %v5520_v45 = vsel %vm65_vm0, %v11712_v38, 0.0 }
0x378f   :  { %5521 = vadd.xlane.f32.xlu0 %v5520_v45 }
0x381b   :  { %v5525_v55 = vpop.xlane.xlu1 %5524 }
0x381c   :  { %v5527_v40 = vmul.f32 0.03125, %v5525_v55  ;;  %v5522_v47 = vpop.xlane.xlu0 %5521 }
0x381d   :  { %v5526_v48 = vmul.f32 0.03125, %v5522_v47 }
0x381e   :  { %v5529_v50 = vsub.f32 %v11709_v7, %v5527_v40 }
0x381f   :  { %v5528_v32 = vsub.f32 %v11712_v38, %v5526_v48 }
0x3820   :  { %v5531_v54 = vmul.f32 %v5529_v50, %v5529_v50 }
0x3821   :  { %v5530_v1 = vmul.f32 %v5528_v32, %v5528_v32 }
0x3822   :  { %v5535_v33 = vsel %vm65_vm0, %v5531_v54, 0.0 }
0x3823   :  { %5536 = vadd.xlane.f32.xlu1 %v5535_v33  ;;  %v5532_v49 = vsel %vm65_vm0, %v5530_v1, 0.0  ;;  %v11785_v1 = vld [vmem:[%s12201_s3] sm:$0xff] }
0x3824   :  { %5533 = vadd.xlane.f32.xlu0 %v5532_v49 }
0x38b0   :  { %v5537_v52 = vpop.xlane.xlu1 %5536 }
0x38b1   :  { %v5539_v16 = vmul.f32 0.032258064, %v5537_v52  ;;  %v5534_v17 = vpop.xlane.xlu0 %5533 }
0x38b2   :  { %v5538_v18 = vmul.f32 0.032258064, %v5534_v17 }
0x38b3   :  { %10420 = vrsqrt.f32 %v5539_v16  ;;  %vm5549_vm3 = vcmp.eq.f32.partialorder %v5539_v16, inf  ;;  %v5552_v4 = vand.u32 2147483648, %v5539_v16  ;;  %vm5551_vm4 = vcmp.eq.f32.partialorder %v5539_v16, 0.0 }
0x38b4   :  { %10422 = vrsqrt.f32 %v5538_v18  ;;  %vm5542_vm9 = vcmp.eq.f32.partialorder %v5538_v18, inf  ;;  %v5545_v62 = vand.u32 2147483648, %v5538_v18  ;;  %vm5544_vm10 = vcmp.eq.f32.partialorder %v5538_v18, 0.0 }
0x38bd   :  { %v10421_v6 = vpop.eup %10420 }
0x38be   :  { %v10423_v37 = vpop.eup %10422  ;;  %v5548_v19 = vmul.f32 %v10421_v6, %v5539_v16 }
0x38bf   :  { %v5541_v21 = vmul.f32 %v10423_v37, %v5538_v18 }
0x38c0   :  { %v5550_v11 = vsel %vm5549_vm3, %v5539_v16, %v5548_v19 }
0x38c1   :  { %v5553_v13 = vsel %vm5551_vm4, %v5552_v4, %v5550_v11  ;;  %v5543_v5 = vsel %vm5542_vm9, %v5538_v18, %v5541_v21 }
0x38c2   :  { %v5555_v23 = vadd.f32 1e-06, %v5553_v13  ;;  %v5546_v27 = vsel %vm5544_vm10, %v5545_v62, %v5543_v5 }
0x38c3   :  { %v5554_v26 = vadd.f32 1e-06, %v5546_v27 }
0x38c4   :  { %10424 = vrcp.f32 %v5555_v23 }
0x38c5   :  { %10426 = vrcp.f32 %v5554_v26 }
0x38ce   :  { %v10425_v43 = vpop.eup %10424 }
0x38cf   :  { %v10427_v60 = vpop.eup %10426  ;;  %v5559_v24 = vmul.f32 %v10425_v43, %v5529_v50 }
0x38d0   :  { %v5558_v3 = vmul.f32 %v10427_v60, %v5528_v32  ;;  %v11779_v32 = vld [vmem:[%s12201_s3 + $0x8] sm:$0xff] }
0x38d1   :  { %v5566_v20 = vmul.f32 %v8392_v53, %v5559_v24 }
0x38d2   :  { %v5565_v63 = vmul.f32 %v8392_v53, %v5558_v3 }
0x38d3   :  { %v5573_v58 = vadd.f32 %v8393_v28, %v5566_v20 }
0x38d4   :  { %v5572_v44 = vadd.f32 %v8393_v28, %v5565_v63 }
0x38d6   :  { %9326 = vmatprep.mubr.msk.f32.mxu1 %vm65_vm0, %v5572_v44 }
0x38d7   :  { %9327 = vmatmul.mubr.msk.f32.vlgmr.msra.gmra.mrb[52].mxu1 %vm65_vm0, %v5573_v58 }
0x38d8   :  { %9865 = vmatpush3.bf16.msra.mxu1 %v9862_v14  ;;  %9337 = vmatprep.mubr.msk.f32.mxu1 %vm65_vm0, %v5572_v44 }
0x38d9   :  { %9867 = vmatprep.subr.bf16.mxu1 %v9866_v31 }
0x38dc   :  { %9869 = vmatpush3.bf16.msra.mxu1 %v9866_v31 }
0x38df   :  { %9338 = vmatmul.mubr.msk.f32.vlgmr.msra.gmra.mrb[54].mxu1 %vm65_vm0, %v5573_v58 }
0x39aa   :  { %v9328_v34 = vpop.f32.mrb[52].mxu1 }
0x39ab   :  { %v5656_v25 = vpop.f32.mrb[53].mxu1  ;;  %v11772_v55 = vadd.f32 %v9328_v34, %v8398_v59 }
0x39ac   :  { %v11759_v15 = vadd.f32 %v8398_v59, %v5656_v25 }
0x39ae   :  { %9344 = vmatprep.mubr.msk.f32.mxu0 %vm295_vm5, %v11759_v15 }
0x39b2   :  { %v9339_v57 = vpop.f32.mrb[54].mxu1 }
0x39b3   :  { %v5747_v41 = vadd.f32 %v9339_v57, %v8405_v2  ;;  %v5741_v22 = vpop.f32.mrb[55].mxu1 }
0x39b4   :  { %v5742_v8 = vadd.f32 %v8405_v2, %v5741_v22 }
0x39b6   :  { %v9870_v42 = vpack.c.bf16 %v5747_v41, %v5742_v8  ;;  %v11766_v45 = vpack.i.bf16 %v5747_v41, %v5742_v8 }
0x39b8   :  { %9872 = vmatprep.subr.msk.bf16.mxu0 %vm10712_vm6, %v9870_v42 }
0x39b9   :  { %9875 = vmatpush3.bf16.xpose.msk.msra.mxu0 %vm10712_vm6, %v9870_v42 }
0x39c0   :  { %9345 = vmatmul.mubr.msk.f32.vlgmr.msra.gmra.mrb[48].mxu0 %vm295_vm5, %v11772_v55 }
0x3a93   :  { %v9346_v40 = vpop.f32.mrb[48].mxu0 }
0x3a94   :  { %v5838_v47 = vmul.f32 0.35355338, %v9346_v40  ;;  %v5828_v48 = vpop.f32.mrb[49].mxu0 }
0x3a95   :  { %v5837_v50 = vmul.f32 0.35355338, %v5828_v48 }
0x3a96   :  { %v5840_v54 = vadd.f32 %v11779_v32, %v5838_v47 }
0x3a97   :  { %v5839_v33 = vadd.f32 %v11785_v1, %v5837_v50 }
0x3a98   :  { %v5844_v49 = vsel %vm387_vm7, %v5840_v54, -inf }
0x3a99   :  { %5845 = vmax.xlane.f32.xlu1 %v5844_v49  ;;  %v5841_v9 = vsel %vm387_vm7, %v5839_v33, -inf }
0x3a9a   :  { %5842 = vmax.xlane.f32.xlu0 %v5841_v9 }
0x3b26   :  { %v5846_v0 = vpop.xlane.xlu1 %5845 }
0x3b27   :  { %v5848_v39 = vsub.f32 %v5840_v54, %v5846_v0  ;;  %v5843_v35 = vpop.xlane.xlu0 %5842 }
0x3b28   :  { %v5847_v12 = vsub.f32 %v5839_v33, %v5843_v35 }
0x3b29   :  { %v5851_v51 = vmul.f32 1.442695, %v5848_v39 }
0x3b2a   :  { %v5849_v46 = vmul.f32 1.442695, %v5847_v12 }
0x3b2b   :  { %10428 = vpow2.f32 %v5851_v51 }
0x3b2c   :  { %10430 = vpow2.f32 %v5849_v46 }
0x3b35   :  { %v10429_v36 = vpop.eup %10428 }
0x3b36   :  { %v10431_v14 = vpop.eup %10430  ;;  %v5856_v52 = vsel %vm387_vm7, %v10429_v36, 0.0 }
0x3b37   :  { %5857 = vadd.xlane.f32.xlu1 %v5856_v52  ;;  %v5853_v16 = vsel %vm387_vm7, %v10431_v14, 0.0 }
0x3b38   :  { %5854 = vadd.xlane.f32.xlu0 %v5853_v16 }
0x3b48   :  { %10164 = vrot.lane.b32.xlu1 %v11766_v45, %s12264_s22 }
0x3b4c   :  { %5950 = vrot.lane.b32.xlu1 %v11759_v15, %s12264_s22 }
0x3b4e   :  { %10159 = vrot.lane.b32.xlu0 %v11766_v45, %s12260_s18 }
0x3b50   :  { %5952 = vrot.lane.b32.xlu1 %v11772_v55, %s12264_s22 }
0x3bc4   :  { %v5858_v17 = vpop.xlane.xlu1 %5857 }
0x3bc5   :  { %10432 = vrcp.f32 %v5858_v17  ;;  %v5855_v18 = vpop.xlane.xlu0 %5854 }
0x3bc6   :  { %10434 = vrcp.f32 %v5855_v18 }
0x3bc8   :  { %v10165_v6 = vpop.permute.xlu1 %10164 }
0x3bc9   :  { %v10160_v37 = vpop.permute.xlu0 %10159  ;;  %v10167_v19 = vunpack.i.h.bf16 %v10165_v6  ;;  %v10166_v4 = vunpack.i.l.bf16 %v10165_v6 }
0x3bca   :  { %v10162_v21 = vunpack.i.h.bf16 %v10160_v37  ;;  %v10161_v11 = vunpack.i.l.bf16 %v10160_v37 }
0x3bcb   :  { %v9880_v13 = vpack.c.bf16 %v10167_v19, %v10166_v4 }
0x3bcc   :  { %v9876_v62 = vpack.c.bf16 %v10162_v21, %v10161_v11  ;;  %v5951_v43 = vpop.permute.xlu1 %5950 }
0x3bce   :  { %9877 = vmatprep.subr.bf16.mxu1 %v9876_v62 }
0x3bcf   :  { %v10433_v5 = vpop.eup %10432  ;;  %9879 = vmatpush3.bf16.msra.mxu1 %v9876_v62 }
0x3bd0   :  { %v10435_v23 = vpop.eup %10434  ;;  %9882 = vmatprep.subr.msk.bf16.mxu1 %vm10712_vm6, %v9880_v13  ;;  %v5862_v26 = vmul.f32 %v10433_v5, %v10429_v36  ;;  %v5953_v53 = vpop.permute.xlu1 %5952 }
0x3bd1   :  { %v5861_v27 = vmul.f32 %v10435_v23, %v10431_v14 }
0x3bd3   :  { %9351 = vmatprep.mubr.msk.f32.mxu1 %vm387_vm7, %v5861_v27 }
0x3bd4   :  { %9352 = vmatmul.mubr.msk.f32.vlgmr.msra.gmra.mrb[56].mxu1 %vm387_vm7, %v5862_v26 }
0x3bd5   :  { %9358 = vmatprep.mubr.msk.f32.mxu1 %vm295_vm5, %v5951_v43 }
0x3bd8   :  { %9885 = vmatpush3.bf16.xpose.msk.msra.mxu1 %vm10712_vm6, %v9880_v13 }
0x3bdf   :  { %9359 = vmatmul.mubr.msk.f32.vlgmr.msra.gmra.mrb[58].mxu1 %vm295_vm5, %v5953_v53 }
0x3ca7   :  { %v11808_v60 = vpop.f32.mrb[56].mxu1 }
0x3ca8   :  { %v11810_v24 = vpop.f32.mrb[57].mxu1 }
0x3cb2   :  { %v9360_v3 = vpop.f32.mrb[58].mxu1 }
0x3cb3   :  { %v6042_v20 = vmul.f32 0.35355338, %v9360_v3  ;;  %v6032_v28 = vpop.f32.mrb[59].mxu1 }
0x3cb4   :  { %v6041_v63 = vmul.f32 0.35355338, %v6032_v28 }
0x3cb5   :  { %v6044_v10 = vadd.f32 %v11779_v32, %v6042_v20 }
0x3cb6   :  { %v6043_v29 = vadd.f32 %v11785_v1, %v6041_v63 }
0x3cb7   :  { %v6048_v44 = vsel %vm387_vm7, %v6044_v10, -inf }
0x3cb8   :  { %6049 = vmax.xlane.f32.xlu1 %v6048_v44  ;;  %v6045_v58 = vsel %vm387_vm7, %v6043_v29, -inf }
0x3cb9   :  { %6046 = vmax.xlane.f32.xlu0 %v6045_v58 }
0x3cc9   :  { %10174 = vrot.lane.b32.xlu1 %v11766_v45, %s12261_s26 }
0x3ccd   :  { %6154 = vrot.lane.b32.xlu1 %v11759_v15, %s12261_s26 }
0x3cd1   :  { %6156 = vrot.lane.b32.xlu1 %v11772_v55, %s12261_s26 }
0x3d45   :  { %v6050_v31 = vpop.xlane.xlu1 %6049 }
0x3d46   :  { %v6052_v59 = vsub.f32 %v6044_v10, %v6050_v31  ;;  %v6047_v34 = vpop.xlane.xlu0 %6046 }
0x3d47   :  { %v6051_v25 = vsub.f32 %v6043_v29, %v6047_v34 }
0x3d48   :  { %v6055_v2 = vmul.f32 1.442695, %v6052_v59 }
0x3d49   :  { %v6053_v57 = vmul.f32 1.442695, %v6051_v25  ;;  %v10175_v48 = vpop.permute.xlu1 %10174 }
0x3d4a   :  { %10436 = vpow2.f32 %v6055_v2  ;;  %v10177_v54 = vunpack.i.h.bf16 %v10175_v48  ;;  %v10176_v33 = vunpack.i.l.bf16 %v10175_v48 }
0x3d4b   :  { %10438 = vpow2.f32 %v6053_v57 }
0x3d4c   :  { %v9890_v39 = vpack.c.bf16 %v10177_v54, %v10176_v33 }
0x3d4d   :  { %v6155_v36 = vpop.permute.xlu1 %6154 }
0x3d51   :  { %v6157_v14 = vpop.permute.xlu1 %6156 }
0x3d54   :  { %v10437_v41 = vpop.eup %10436 }
0x3d55   :  { %v6060_v22 = vsel %vm387_vm7, %v10437_v41, 0.0  ;;  %v10439_v8 = vpop.eup %10438 }
0x3d56   :  { %6061 = vadd.xlane.f32.xlu0 %v6060_v22  ;;  %v6057_v42 = vsel %vm387_vm7, %v10439_v8, 0.0 }
0x3d5a   :  { %6058 = vadd.xlane.f32.xlu0 %v6057_v42 }
0x3d70   :  { %10169 = vrot.lane.b32.xlu0 %v11766_v45, %s12262_s19 }
0x3de3   :  { %v6062_v40 = vpop.xlane.xlu0 %6061 }
0x3de4   :  { %10440 = vrcp.f32 %v6062_v40 }
0x3de7   :  { %v6059_v47 = vpop.xlane.xlu0 %6058 }
0x3de8   :  { %10442 = vrcp.f32 %v6059_v47 }
0x3deb   :  { %v10170_v50 = vpop.permute.xlu0 %10169 }
0x3dec   :  { %v10172_v49 = vunpack.i.h.bf16 %v10170_v50  ;;  %v10171_v9 = vunpack.i.l.bf16 %v10170_v50 }
0x3dee   :  { %v9886_v0 = vpack.c.bf16 %v10172_v49, %v10171_v9  ;;  %v10441_v35 = vpop.eup %10440 }
0x3def   :  { %v6066_v46 = vmul.f32 %v10441_v35, %v10437_v41 }
0x3df0   :  { %9887 = vmatprep.subr.bf16.mxu0 %v9886_v0 }
0x3df1   :  { %9889 = vmatpush3.bf16.msra.mxu0 %v9886_v0 }
0x3df2   :  { %v10443_v12 = vpop.eup %10442  ;;  %9892 = vmatprep.subr.msk.bf16.mxu0 %vm10712_vm6, %v9890_v39 }
0x3df3   :  { %v6065_v51 = vmul.f32 %v10443_v12, %v10439_v8 }
0x3df5   :  { %9365 = vmatprep.mubr.msk.f32.mxu0 %vm387_vm7, %v6065_v51 }
0x3df6   :  { %9366 = vmatmul.mubr.msk.f32.vlgmr.msra.gmra.mrb[50].mxu0 %vm387_vm7, %v6066_v46 }
0x3df7   :  { %9372 = vmatprep.mubr.msk.f32.mxu0 %vm295_vm5, %v6155_v36 }
0x3dfa   :  { %9895 = vmatpush3.bf16.xpose.msk.msra.mxu0 %vm10712_vm6, %v9890_v39 }
0x3e01   :  { %9373 = vmatmul.mubr.msk.f32.vlgmr.msra.gmra.mrb[52].mxu0 %vm295_vm5, %v6157_v14 }
0x3ec9   :  { %v11834_v52 = vpop.f32.mrb[50].mxu0 }
0x3eca   :  { %v11836_v16 = vpop.f32.mrb[51].mxu0 }
0x3ed4   :  { %v9374_v17 = vpop.f32.mrb[52].mxu0 }
0x3ed5   :  { %v6246_v18 = vmul.f32 0.35355338, %v9374_v17  ;;  %v6236_v6 = vpop.f32.mrb[53].mxu0 }
0x3ed6   :  { %v6245_v37 = vmul.f32 0.35355338, %v6236_v6 }
0x3ed7   :  { %v6248_v19 = vadd.f32 %v11779_v32, %v6246_v18 }
0x3ed8   :  { %v6247_v4 = vadd.f32 %v11785_v1, %v6245_v37 }
0x3ed9   :  { %v6252_v21 = vsel %vm387_vm7, %v6248_v19, -inf }
0x3eda   :  { %6253 = vmax.xlane.f32.xlu1 %v6252_v21  ;;  %v6249_v11 = vsel %vm387_vm7, %v6247_v4, -inf }
0x3edb   :  { %6250 = vmax.xlane.f32.xlu0 %v6249_v11 }
0x3eeb   :  { %10184 = vrot.lane.b32.xlu1 %v11766_v45, %s12254_s2 }
0x3eef   :  { %6358 = vrot.lane.b32.xlu1 %v11759_v15, %s12254_s2 }
0x3ef3   :  { %6360 = vrot.lane.b32.xlu1 %v11772_v55, %s12254_s2 }
0x3f67   :  { %v6254_v62 = vpop.xlane.xlu1 %6253 }
0x3f68   :  { %v6256_v13 = vsub.f32 %v6248_v19, %v6254_v62  ;;  %v6251_v5 = vpop.xlane.xlu0 %6250  ;;  %v8433_v62 = vld [vmem:[%s12207_s9 + $0x88] sm:$0xff] }
0x3f69   :  { %v6255_v23 = vsub.f32 %v6247_v4, %v6251_v5 }
0x3f6a   :  { %v6259_v27 = vmul.f32 1.442695, %v6256_v13  ;;  %v8434_v13 = vld [vmem:[%s12207_s9 + $0x90] sm:$0xff] }
0x3f6b   :  { %v6257_v26 = vmul.f32 1.442695, %v6255_v23  ;;  %v10185_v28 = vpop.permute.xlu1 %10184  ;;  %v8435_v23 = vld [vmem:[%s12207_s9 + $0x98] sm:$0xff] }
0x3f6c   :  { %10444 = vpow2.f32 %v6259_v27  ;;  %v10187_v10 = vunpack.i.h.bf16 %v10185_v28  ;;  %v10186_v29 = vunpack.i.l.bf16 %v10185_v28  ;;  %v9914_v27 = vpack.c.bf16 %v8435_v23, %v8434_v13 }
0x3f6d   :  { %10446 = vpow2.f32 %v6257_v26  ;;  %v8448_v26 = vld [vmem:[%s12205_s7 + $0xa0] sm:$0xff] }
0x3f6e   :  { %v9900_v59 = vpack.c.bf16 %v10187_v10, %v10186_v29  ;;  %v8450_v10 = vld [vmem:[%s12205_s7 + $0xb0] sm:$0xff]  ;;  %v8451_v29 = vld [vmem:[%s12205_s7 + $0xb8] sm:$0xff] }
0x3f6f   :  { %v6359_v41 = vpop.permute.xlu1 %6358 }
0x3f73   :  { %v6361_v22 = vpop.permute.xlu1 %6360 }
0x3f76   :  { %v10445_v43 = vpop.eup %10444 }
0x3f77   :  { %v6264_v53 = vsel %vm387_vm7, %v10445_v43, 0.0  ;;  %v10447_v3 = vpop.eup %10446 }
0x3f78   :  { %6265 = vadd.xlane.f32.xlu0 %v6264_v53  ;;  %v6261_v20 = vsel %vm387_vm7, %v10447_v3, 0.0 }
0x3f7c   :  { %6262 = vadd.xlane.f32.xlu0 %v6261_v20 }
0x3f92   :  { %10179 = vrot.lane.b32.xlu0 %v11766_v45, %s12263_s21 }
0x4005   :  { %v6266_v15 = vpop.xlane.xlu0 %6265 }
0x4006   :  { %10448 = vrcp.f32 %v6266_v15 }
0x4009   :  { %v6263_v55 = vpop.xlane.xlu0 %6262 }
0x400a   :  { %10450 = vrcp.f32 %v6263_v55 }
0x400d   :  { %v10180_v63 = vpop.permute.xlu0 %10179 }
0x400e   :  { %v10182_v44 = vunpack.i.h.bf16 %v10180_v63  ;;  %v10181_v58 = vunpack.i.l.bf16 %v10180_v63 }
0x4010   :  { %v9896_v31 = vpack.c.bf16 %v10182_v44, %v10181_v58  ;;  %v10449_v34 = vpop.eup %10448 }
0x4011   :  { %v6270_v57 = vmul.f32 %v10449_v34, %v10445_v43  ;;  %v8449_v43 = vld [vmem:[%s12205_s7 + $0xa8] sm:$0xff] }
0x4012   :  { %9897 = vmatprep.subr.bf16.mxu1 %v9896_v31  ;;  %v9926_v53 = vpack.c.bf16 %v8449_v43, %v8448_v26 }
0x4013   :  { %9899 = vmatpush3.bf16.msra.mxu1 %v9896_v31 }
0x4014   :  { %v10451_v25 = vpop.eup %10450  ;;  %9902 = vmatprep.subr.msk.bf16.mxu1 %vm10712_vm6, %v9900_v59 }
0x4015   :  { %v6269_v2 = vmul.f32 %v10451_v25, %v10447_v3 }
0x4017   :  { %9379 = vmatprep.mubr.msk.f32.mxu1 %vm387_vm7, %v6269_v2 }
0x4018   :  { %9380 = vmatmul.mubr.msk.f32.vlgmr.msra.gmra.mrb[60].mxu1 %vm387_vm7, %v6270_v57  ;;  %v9930_v57 = vpack.c.bf16 %v8451_v29, %v8450_v10 }
0x4019   :  { %9386 = vmatprep.mubr.msk.f32.mxu1 %vm295_vm5, %v6359_v41 }
0x401c   :  { %9905 = vmatpush3.bf16.xpose.msk.msra.mxu1 %vm10712_vm6, %v9900_v59 }
0x4023   :  { %9387 = vmatmul.mubr.msk.f32.vlgmr.msra.gmra.mrb[62].mxu1 %vm295_vm5, %v6361_v22 }
0x40eb   :  { %v9381_v8 = vpop.f32.mrb[60].mxu1 }
0x40ec   :  { %v6349_v42 = vpop.f32.mrb[61].mxu1 }
0x40f6   :  { %v9388_v40 = vpop.f32.mrb[62].mxu1 }
0x40f7   :  { %v6450_v47 = vmul.f32 0.35355338, %v9388_v40  ;;  %v6440_v48 = vpop.f32.mrb[63].mxu1 }
0x40f8   :  { %v6449_v50 = vmul.f32 0.35355338, %v6440_v48 }
0x40f9   :  { %v6452_v54 = vadd.f32 %v11779_v32, %v6450_v47 }
0x40fa   :  { %v6451_v33 = vadd.f32 %v11785_v1, %v6449_v50 }
0x40fb   :  { %v6456_v49 = vsel %vm387_vm7, %v6452_v54, -inf }
0x40fc   :  { %6457 = vmax.xlane.f32.xlu1 %v6456_v49  ;;  %v6453_v9 = vsel %vm387_vm7, %v6451_v33, -inf }
0x40fd   :  { %6454 = vmax.xlane.f32.xlu0 %v6453_v9  ;;  %v8452_v9 = vld [vmem:[%s12206_s8 + $0x5] ss:$0 sm:$0xff] }
0x410d   :  { %6564 = vrot.lane.b32.xlu1 %v11836_v16, %s12256_s20 }
0x4111   :  { %6566 = vrot.lane.b32.xlu1 %v11834_v52, %s12256_s20 }
0x4115   :  { %6572 = vrot.lane.b32.xlu1 %v6349_v42, %s12257_s24  ;;  %v8436_v42 = vld [vmem:[%s12265_s0 + $0x4] ss:$0 sm:$0xff] }
0x4189   :  { %v6458_v0 = vpop.xlane.xlu1 %6457 }
0x418a   :  { %v6460_v39 = vsub.f32 %v6452_v54, %v6458_v0  ;;  %v6455_v35 = vpop.xlane.xlu0 %6454 }
0x418b   :  { %v6459_v32 = vsub.f32 %v6451_v33, %v6455_v35 }
0x418c   :  { %v6463_v12 = vmul.f32 1.442695, %v6460_v39 }
0x418d   :  { %v6461_v1 = vmul.f32 1.442695, %v6459_v32  ;;  %v6565_v15 = vpop.permute.xlu1 %6564 }
0x418e   :  { %10452 = vpow2.f32 %v6463_v12  ;;  %v6586_v44 = vsel %vm295_vm5, %v11810_v24, %v6565_v15  ;;  %v8442_v24 = vld [vmem:[%s12203_s5 + $0xa8] sm:$0xff] }
0x418f   :  { %10454 = vpow2.f32 %v6461_v1 }
0x4191   :  { %v6567_v55 = vpop.permute.xlu1 %6566 }
0x4192   :  { %v6587_v31 = vsel %vm295_vm5, %v11808_v60, %v6567_v55  ;;  %v8441_v60 = vld [vmem:[%s12203_s5 + $0xa0] sm:$0xff]  ;;  %v8439_v55 = vld [vmem:[%s12213_s15 + $0x9] ss:$0 sm:$0xff] }
0x4193   :  { %v9918_v22 = vpack.c.bf16 %v8442_v24, %v8441_v60 }
0x4195   :  { %v6573_v63 = vpop.permute.xlu1 %6572  ;;  %9919 = vmatprep.subr.bf16.mxu1 %v9918_v22 }
0x4196   :  { %v6588_v59 = vsel %vm387_vm7, %v6586_v44, %v6573_v63  ;;  %9921 = vmatpush3.bf16.msra.mxu1 %v9918_v22  ;;  %v8440_v63 = vld [vmem:[%s12214_s16 + $0x9] ss:$0 sm:$0xff] }
0x4198   :  { %v10453_v51 = vpop.eup %10452 }
0x4199   :  { %v6468_v46 = vsel %vm387_vm7, %v10453_v51, 0.0  ;;  %v10455_v36 = vpop.eup %10454 }
0x419a   :  { %6469 = vadd.xlane.f32.xlu0 %v6468_v46  ;;  %v6465_v14 = vsel %vm387_vm7, %v10455_v36, 0.0 }
0x419e   :  { %6466 = vadd.xlane.f32.xlu0 %v6465_v14 }
0x41b4   :  { %10189 = vrot.lane.b32.xlu0 %v11766_v45, %s12255_s30  ;;  %v8432_v45 = vld [vmem:[%s12207_s9 + $0x80] sm:$0xff] }
0x41b5   :  { %v9910_v5 = vpack.c.bf16 %v8433_v62, %v8432_v45 }
0x41b8   :  { %6574 = vrot.lane.b32.xlu0 %v9381_v8, %s12257_s24  ;;  %v8444_v8 = vld [vmem:[%s12203_s5 + $0xb8] sm:$0xff] }
0x4227   :  { %v6470_v52 = vpop.xlane.xlu0 %6469 }
0x4228   :  { %10456 = vrcp.f32 %v6470_v52 }
0x422b   :  { %v6467_v16 = vpop.xlane.xlu0 %6466 }
0x422c   :  { %10458 = vrcp.f32 %v6467_v16 }
0x422f   :  { %v10190_v17 = vpop.permute.xlu0 %10189 }
0x4230   :  { %v10192_v18 = vunpack.i.h.bf16 %v10190_v17  ;;  %v10191_v6 = vunpack.i.l.bf16 %v10190_v17 }
0x4232   :  { %v9906_v37 = vpack.c.bf16 %v10192_v18, %v10191_v6  ;;  %v10457_v19 = vpop.eup %10456 }
0x4233   :  { %v6474_v11 = vmul.f32 %v10457_v19, %v10453_v51  ;;  %v6575_v28 = vpop.permute.xlu0 %6574 }
0x4234   :  { %9907 = vmatprep.subr.bf16.mxu0 %v9906_v37  ;;  %v6589_v25 = vsel %vm387_vm7, %v6587_v31, %v6575_v28 }
0x4235   :  { %9909 = vmatpush3.bf16.msra.mxu0 %v9906_v37 }
0x4236   :  { %v10459_v4 = vpop.eup %10458  ;;  %9911 = vmatprep.subr.bf16.mxu0 %v9910_v5 }
0x4237   :  { %v6473_v21 = vmul.f32 %v10459_v4, %v10455_v36 }
0x4239   :  { %9393 = vmatprep.mubr.msk.f32.mxu0 %vm387_vm7, %v6473_v21 }
0x423a   :  { %9394 = vmatmul.mubr.msk.f32.vlgmr.msra.gmra.mrb[54].mxu0 %vm387_vm7, %v6474_v11 }
0x423b   :  { %9913 = vmatpush3.bf16.msra.mxu0 %v9910_v5 }
0x423c   :  { %9915 = vmatprep.subr.bf16.mxu0 %v9914_v27 }
0x423f   :  { %9917 = vmatpush3.bf16.msra.mxu0 %v9914_v27 }
0x4240   :  { %9927 = vmatprep.subr.bf16.mxu0 %v9926_v53 }
0x430d   :  { %v9395_v3 = vpop.f32.mrb[54].mxu0 }
0x430e   :  { %6582 = vrot.lane.b32.xlu0 %v9395_v3, %s12258_s25  ;;  %v6553_v20 = vpop.f32.mrb[55].mxu0 }
0x430f   :  { %6580 = vrot.lane.b32.xlu1 %v6553_v20, %s12258_s25 }
0x4380   :  { %v6583_v58 = vpop.permute.xlu0 %6582 }
0x4381   :  { %v6581_v34 = vpop.permute.xlu1 %6580  ;;  %v6591_v41 = vsel %vm1137_vm8, %v6589_v25, %v6583_v58 }
0x4382   :  { %v6590_v2 = vsel %vm1137_vm8, %v6588_v59, %v6581_v34 }
0x4383   :  { %9404 = vmatprep.mubr.msk.f32.mxu0 %vm65_vm0, %v6590_v2 }
0x4384   :  { %9405 = vmatmul.mubr.msk.f32.vlgmr.msra.gmra.mrb[56].mxu0 %vm65_vm0, %v6591_v41  ;;  %v8445_v41 = vld [vmem:[%s12204_s6 + $0x5] ss:$0 sm:$0xff]  ;;  %s8155_s6 = sshll.u32 %s10556_s29, 4  ;;  %s8156_s6 = int_to_ptr.vmem [resolvable:$true] %s8155_s6 }
0x4385   :  { %9929 = vmatpush3.bf16.msra.mxu0 %v9926_v53  ;;  %9426 = vmatprep.mubr.msk.f32.mxu0 %vm65_vm0, %v11436_v30  ;;  %v8443_v30 = vld [vmem:[%s12203_s5 + $0xb0] sm:$0xff]  ;;  %s12267_s5 = sld [smem:[#allocation9_spill]]  ;;  %p10527_p1 = scmp.lt.s32.totalorder %s8156_s6, %s8156_s6 }
0x4386   :  { %9931 = vmatprep.subr.bf16.mxu0 %v9930_v57 }
0x4389   :  { %9933 = vmatpush3.bf16.msra.mxu0 %v9930_v57 }
0x438c   :  { %9427 = vmatmul.mubr.msk.f32.vlgmr.msra.gmra.mrb[58].mxu0 %vm65_vm0, %v11464_v56  ;;  %v9922_v56 = vpack.c.bf16 %v8444_v8, %v8443_v30 }
0x438e   :  { %9923 = vmatprep.subr.bf16.mxu1 %v9922_v56 }
0x438f   :  { %9925 = vmatpush3.bf16.msra.mxu1 %v9922_v56 }
0x4457   :  { %v9406_v40 = vpop.f32.mrb[56].mxu0 }
0x4458   :  { %v6680_v47 = vadd.f32 %v9406_v40, %v8436_v42  ;;  %v6674_v48 = vpop.f32.mrb[57].mxu0 }
0x4459   :  { %v6675_v50 = vadd.f32 %v8436_v42, %v6674_v48 }
0x445a   :  { %v11932_v54 = vadd.f32 %v6680_v47, %v11709_v7 }
0x445b   :  { %v11935_v33 = vadd.f32 %v6675_v50, %v11712_v38  ;;  %v11988_v50 = vld [vmem:[%s12266_s23 + $0x8] sm:$0xff] }
0x445c   :  { %v6688_v49 = vsel %vm65_vm0, %v11932_v54, 0.0 }
0x445d   :  { %6689 = vadd.xlane.f32.xlu0 %v6688_v49  ;;  %v6685_v0 = vsel %vm65_vm0, %v11935_v33, 0.0 }
0x445e   :  { %6686 = vadd.xlane.f32.xlu1 %v6685_v0 }
0x445f   :  { %v9428_v39 = vpop.f32.mrb[58].mxu0 }
0x4460   :  { %v6912_v35 = vadd.f32 %v9428_v39, %v8452_v9  ;;  %v6906_v32 = vpop.f32.mrb[59].mxu0 }
0x4461   :  { %v6907_v7 = vadd.f32 %v8452_v9, %v6906_v32  ;;  %v11994_v9 = vld [vmem:[%s12266_s23] sm:$0xff] }
0x4463   :  { %v9934_v12 = vpack.c.bf16 %v6912_v35, %v6907_v7  ;;  %v11944_v1 = vpack.i.bf16 %v6912_v35, %v6907_v7 }
0x4465   :  { %9936 = vmatprep.subr.msk.bf16.mxu1 %vm10712_vm6, %v9934_v12 }
0x446f   :  { %10194 = vrot.lane.b32.xlu1 %v11944_v1, %s12264_s22 }
0x44ea   :  { %v6690_v38 = vpop.xlane.xlu0 %6689 }
0x44eb   :  { %v6692_v51 = vmul.f32 0.03125, %v6690_v38  ;;  %v6687_v46 = vpop.xlane.xlu1 %6686 }
0x44ec   :  { %v6691_v36 = vmul.f32 0.03125, %v6687_v46 }
0x44ed   :  { %v6694_v14 = vsub.f32 %v11932_v54, %v6692_v51 }
0x44ee   :  { %v6693_v52 = vsub.f32 %v11935_v33, %v6691_v36 }
0x44ef   :  { %v6696_v18 = vmul.f32 %v6694_v14, %v6694_v14  ;;  %v10195_v44 = vpop.permute.xlu1 %10194 }
0x44f0   :  { %v6695_v16 = vmul.f32 %v6693_v52, %v6693_v52  ;;  %v10197_v59 = vunpack.i.h.bf16 %v10195_v44  ;;  %v10196_v34 = vunpack.i.l.bf16 %v10195_v44 }
0x44f1   :  { %v6700_v6 = vsel %vm65_vm0, %v6696_v18, 0.0 }
0x44f2   :  { %v6697_v17 = vsel %vm65_vm0, %v6695_v16, 0.0  ;;  %v9944_v57 = vpack.c.bf16 %v10197_v59, %v10196_v34 }
0x44f3   :  { %6698 = vadd.xlane.f32.xlu0 %v6697_v17 }
0x44f7   :  { %6701 = vadd.xlane.f32.xlu0 %v6700_v6 }
0x4580   :  { %v6699_v37 = vpop.xlane.xlu0 %6698 }
0x4581   :  { %v6703_v19 = vmul.f32 0.032258064, %v6699_v37 }
0x4583   :  { %10460 = vrsqrt.f32 %v6703_v19  ;;  %vm6707_vm11 = vcmp.eq.f32.partialorder %v6703_v19, inf  ;;  %v6710_v62 = vand.u32 2147483648, %v6703_v19  ;;  %vm6709_vm12 = vcmp.eq.f32.partialorder %v6703_v19, 0.0 }
0x4584   :  { %v6702_v4 = vpop.xlane.xlu0 %6701 }
0x4585   :  { %v6704_v21 = vmul.f32 0.032258064, %v6702_v4 }
0x4587   :  { %10462 = vrsqrt.f32 %v6704_v21  ;;  %vm6714_vm14 = vcmp.eq.f32.partialorder %v6704_v21, inf  ;;  %v6717_v43 = vand.u32 2147483648, %v6704_v21  ;;  %vm6716_vm15 = vcmp.eq.f32.partialorder %v6704_v21, 0.0 }
0x458d   :  { %v10461_v11 = vpop.eup %10460 }
0x458e   :  { %v6706_v45 = vmul.f32 %v10461_v11, %v6703_v19 }
0x4590   :  { %v6708_v13 = vsel %vm6707_vm11, %v6703_v19, %v6706_v45 }
0x4591   :  { %v10463_v5 = vpop.eup %10462  ;;  %v6711_v23 = vsel %vm6709_vm12, %v6710_v62, %v6708_v13 }
0x4592   :  { %v6719_v27 = vadd.f32 1e-06, %v6711_v23  ;;  %v6713_v26 = vmul.f32 %v10463_v5, %v6704_v21 }
0x4594   :  { %10464 = vrcp.f32 %v6719_v27  ;;  %v6715_v53 = vsel %vm6714_vm14, %v6704_v21, %v6713_v26 }
0x4595   :  { %v6718_v3 = vsel %vm6716_vm15, %v6717_v43, %v6715_v53 }
0x4596   :  { %v6720_v20 = vadd.f32 1e-06, %v6718_v3 }
0x4598   :  { %10466 = vrcp.f32 %v6720_v20 }
0x459e   :  { %v10465_v15 = vpop.eup %10464 }
0x459f   :  { %v6723_v28 = vmul.f32 %v10465_v15, %v6693_v52 }
0x45a1   :  { %v6730_v10 = vmul.f32 %v8439_v55, %v6723_v28 }
0x45a2   :  { %v10467_v29 = vpop.eup %10466 }
0x45a3   :  { %v6724_v58 = vmul.f32 %v10467_v29, %v6694_v14  ;;  %v6737_v31 = vadd.f32 %v8440_v63, %v6730_v10 }
0x45a5   :  { %v6731_v25 = vmul.f32 %v8439_v55, %v6724_v58  ;;  %9415 = vmatprep.mubr.msk.f32.mxu1 %vm65_vm0, %v6737_v31 }
0x45a7   :  { %v6738_v2 = vadd.f32 %v8440_v63, %v6731_v25 }
0x45a9   :  { %9416 = vmatmul.mubr.msk.f32.vlgmr.msra.gmra.mrb[64].mxu1 %vm65_vm0, %v6738_v2 }
0x45aa   :  { %9939 = vmatpush3.bf16.xpose.msk.msra.mxu1 %vm10712_vm6, %v9934_v12 }
0x45ab   :  { %9946 = vmatprep.subr.msk.bf16.mxu1 %vm10712_vm6, %v9944_v57 }
0x467c   :  { %v9417_v60 = vpop.f32.mrb[64].mxu1 }
0x467d   :  { %v11969_v24 = vadd.f32 %v9417_v60, %v8445_v41  ;;  %v6821_v22 = vpop.f32.mrb[65].mxu1 }
0x467e   :  { %v11971_v30 = vadd.f32 %v8445_v41, %v6821_v22 }
0x467f   :  { %7117 = vrot.lane.b32.xlu1 %v11969_v24, %s12264_s22 }
0x4680   :  { %7115 = vrot.lane.b32.xlu0 %v11971_v30, %s12264_s22  ;;  %9433 = vmatprep.mubr.msk.f32.mxu1 %vm295_vm5, %v11971_v30  ;;  %s10522_s22 = scalar_lea.vmem %s8156_s6, 256 }
0x4681   :  { %9434 = vmatmul.mubr.msk.f32.vlgmr.msra.gmra.mrb[66].mxu1 %vm295_vm5, %v11969_v24  ;;  %p10523_p0 = scmp.ne.s32.totalorder %s8156_s6, %s10522_s22  ;;  %p10528_p2 = scmp.lt.s32.totalorder %s10522_s22, %s10522_s22 }
0x4682   :  { %9949 = vmatpush3.bf16.xpose.msk.msra.mxu1 %vm10712_vm6, %v9944_v57 }
0x4683   :  { %p10529_p3 = por %p10528_p2, %p10527_p1 }
0x4685   :  { %p10530_p4 = pnand %p10529_p3, %p10523_p0 }
0x46f1   :  { %v7118_v56 = vpop.permute.xlu1 %7117 }
0x46f2   :  { %v7116_v8 = vpop.permute.xlu0 %7115 }
0x46f3   :  { %9447 = vmatprep.mubr.msk.f32.mxu1 %vm295_vm5, %v7116_v8 }
0x46f4   :  { %9448 = vmatmul.mubr.msk.f32.vlgmr.msra.gmra.mrb[68].mxu1 %vm295_vm5, %v7118_v56 }
0x4754   :  { %v9435_v42 = vpop.f32.mrb[66].mxu1 }
0x4755   :  { %v7003_v40 = vmul.f32 0.35355338, %v9435_v42  ;;  %v6993_v47 = vpop.f32.mrb[67].mxu1 }
0x4756   :  { %v7002_v48 = vmul.f32 0.35355338, %v6993_v47 }
0x4757   :  { %v7005_v49 = vadd.f32 %v11988_v50, %v7003_v40 }
0x4758   :  { %v7004_v0 = vadd.f32 %v11994_v9, %v7002_v48 }
0x4759   :  { %v7009_v39 = vsel %vm387_vm7, %v7005_v49, -inf }
0x475a   :  { %7010 = vmax.xlane.f32.xlu0 %v7009_v39  ;;  %v7006_v35 = vsel %vm387_vm7, %v7004_v0, -inf }
0x475b   :  { %7007 = vmax.xlane.f32.xlu1 %v7006_v35 }
0x47c7   :  { %v9449_v32 = vpop.f32.mrb[68].mxu1 }
0x47c8   :  { %v7207_v7 = vmul.f32 0.35355338, %v9449_v32  ;;  %v7197_v12 = vpop.f32.mrb[69].mxu1 }
0x47c9   :  { %v7206_v38 = vmul.f32 0.35355338, %v7197_v12 }
0x47ca   :  { %v7209_v51 = vadd.f32 %v11988_v50, %v7207_v7 }
0x47cb   :  { %v7208_v46 = vadd.f32 %v11994_v9, %v7206_v38 }
0x47cc   :  { %v7213_v36 = vsel %vm387_vm7, %v7209_v51, -inf }
0x47cd   :  { %7214 = vmax.xlane.f32.xlu1 %v7213_v36  ;;  %v7210_v14 = vsel %vm387_vm7, %v7208_v46, -inf }
0x47ce   :  { %7211 = vmax.xlane.f32.xlu0 %v7210_v14 }
0x47e7   :  { %v7011_v52 = vpop.xlane.xlu0 %7010 }
0x47e8   :  { %v7013_v16 = vsub.f32 %v7005_v49, %v7011_v52  ;;  %v7008_v17 = vpop.xlane.xlu1 %7007 }
0x47e9   :  { %v7012_v18 = vsub.f32 %v7004_v0, %v7008_v17 }
0x47ea   :  { %v7016_v6 = vmul.f32 1.442695, %v7013_v16 }
0x47eb   :  { %v7014_v37 = vmul.f32 1.442695, %v7012_v18 }
0x47ec   :  { %10468 = vpow2.f32 %v7016_v6 }
0x47ed   :  { %10470 = vpow2.f32 %v7014_v37 }
0x47f6   :  { %v10469_v19 = vpop.eup %10468 }
0x47f7   :  { %v10471_v4 = vpop.eup %10470  ;;  %v7021_v21 = vsel %vm387_vm7, %v10469_v19, 0.0 }
0x47f8   :  { %7022 = vadd.xlane.f32.xlu1 %v7021_v21  ;;  %v7018_v11 = vsel %vm387_vm7, %v10471_v4, 0.0 }
0x47f9   :  { %7019 = vadd.xlane.f32.xlu0 %v7018_v11 }
0x485a   :  { %v7215_v45 = vpop.xlane.xlu1 %7214 }
0x485b   :  { %v7217_v62 = vsub.f32 %v7209_v51, %v7215_v45  ;;  %v7212_v13 = vpop.xlane.xlu0 %7211 }
0x485c   :  { %v7216_v5 = vsub.f32 %v7208_v46, %v7212_v13 }
0x485d   :  { %v7220_v23 = vmul.f32 1.442695, %v7217_v62 }
0x485e   :  { %v7218_v27 = vmul.f32 1.442695, %v7216_v5 }
0x485f   :  { %10472 = vpow2.f32 %v7220_v23 }
0x4860   :  { %10474 = vpow2.f32 %v7218_v27 }
0x4869   :  { %v10473_v26 = vpop.eup %10472 }
0x486a   :  { %v10475_v43 = vpop.eup %10474  ;;  %v7225_v53 = vsel %vm387_vm7, %v10473_v26, 0.0 }
0x486b   :  { %7226 = vadd.xlane.f32.xlu1 %v7225_v53  ;;  %v7222_v3 = vsel %vm387_vm7, %v10475_v43, 0.0 }
0x486c   :  { %7223 = vadd.xlane.f32.xlu0 %v7222_v3 }
0x487c   :  { %10204 = vrot.lane.b32.xlu1 %v11944_v1, %s12262_s19 }
0x4880   :  { %10209 = vrot.lane.b32.xlu1 %v11944_v1, %s12261_s26 }
0x4882   :  { %10199 = vrot.lane.b32.xlu0 %v11944_v1, %s12260_s18 }
0x4884   :  { %7319 = vrot.lane.b32.xlu1 %v11971_v30, %s12261_s26 }
0x4885   :  { %v7023_v28 = vpop.xlane.xlu1 %7022 }
0x4886   :  { %7321 = vrot.lane.b32.xlu0 %v11969_v24, %s12261_s26  ;;  %v7020_v20 = vpop.xlane.xlu0 %7019 }
0x4887   :  { %10476 = vrcp.f32 %v7020_v20 }
0x4888   :  { %10478 = vrcp.f32 %v7023_v28 }
0x4891   :  { %v10477_v15 = vpop.eup %10476 }
0x4892   :  { %v7026_v55 = vmul.f32 %v10477_v15, %v10471_v4  ;;  %v10479_v57 = vpop.eup %10478 }
0x4893   :  { %v7027_v56 = vmul.f32 %v10479_v57, %v10469_v19 }
0x4894   :  { %9440 = vmatprep.mubr.msk.f32.mxu0 %vm387_vm7, %v7026_v55 }
0x48f8   :  { %v7227_v63 = vpop.xlane.xlu1 %7226 }
0x48f9   :  { %v7224_v10 = vpop.xlane.xlu0 %7223 }
0x48fa   :  { %10480 = vrcp.f32 %v7224_v10 }
0x48fb   :  { %10482 = vrcp.f32 %v7227_v63 }
0x48fc   :  { %v10205_v29 = vpop.permute.xlu1 %10204 }
0x48fd   :  { %v10200_v44 = vpop.permute.xlu0 %10199  ;;  %v10207_v58 = vunpack.i.h.bf16 %v10205_v29  ;;  %v10206_v31 = vunpack.i.l.bf16 %v10205_v29 }
0x48fe   :  { %v10202_v59 = vunpack.i.h.bf16 %v10200_v44  ;;  %v10201_v34 = vunpack.i.l.bf16 %v10200_v44 }
0x48ff   :  { %v9950_v41 = vpack.c.bf16 %v10207_v58, %v10206_v31 }
0x4900   :  { %v9940_v25 = vpack.c.bf16 %v10202_v59, %v10201_v34  ;;  %v10210_v2 = vpop.permute.xlu1 %10209 }
0x4901   :  { %v10212_v60 = vunpack.i.h.bf16 %v10210_v2  ;;  %v10211_v22 = vunpack.i.l.bf16 %v10210_v2  ;;  %v7322_v0 = vpop.permute.xlu0 %7321 }
0x4902   :  { %9941 = vmatprep.subr.bf16.mxu0 %v9940_v25 }
0x4903   :  { %9943 = vmatpush3.bf16.msra.mxu0 %v9940_v25  ;;  %v9954_v47 = vpack.c.bf16 %v10212_v60, %v10211_v22 }
0x4904   :  { %v10481_v8 = vpop.eup %10480  ;;  %9951 = vmatprep.subr.bf16.mxu0 %v9950_v41  ;;  %v7320_v49 = vpop.permute.xlu1 %7319 }
0x4905   :  { %v10483_v42 = vpop.eup %10482  ;;  %v7230_v40 = vmul.f32 %v10481_v8, %v10475_v43 }
0x4906   :  { %9441 = vmatmul.mubr.msk.f32.vlgmr.msra.gmra.mrb[60].mxu0 %vm387_vm7, %v7027_v56  ;;  %v7231_v48 = vmul.f32 %v10483_v42, %v10473_v26 }
0x4907   :  { %9953 = vmatpush3.bf16.msra.mxu0 %v9950_v41  ;;  %9454 = vmatprep.mubr.msk.f32.mxu0 %vm387_vm7, %v7230_v40 }
0x4908   :  { %9956 = vmatprep.subr.msk.bf16.mxu0 %vm10712_vm6, %v9954_v47 }
0x490a   :  { %9455 = vmatmul.mubr.msk.f32.vlgmr.msra.gmra.mrb[62].mxu0 %vm387_vm7, %v7231_v48 }
0x490b   :  { %9461 = vmatprep.mubr.msk.f32.mxu0 %vm295_vm5, %v7320_v49 }
0x4910   :  { %9959 = vmatpush3.bf16.xpose.msk.msra.mxu0 %vm10712_vm6, %v9954_v47 }
0x4917   :  { %9462 = vmatmul.mubr.msk.f32.vlgmr.msra.gmra.mrb[64].mxu0 %vm295_vm5, %v7322_v0 }
0x49d9   :  { %v12027_v39 = vpop.f32.mrb[60].mxu0 }
0x49da   :  { %v12029_v35 = vpop.f32.mrb[61].mxu0 }
0x49dd   :  { %v12031_v32 = vpop.f32.mrb[62].mxu0 }
0x49de   :  { %v12033_v7 = vpop.f32.mrb[63].mxu0 }
0x49ea   :  { %v9463_v12 = vpop.f32.mrb[64].mxu0 }
0x49eb   :  { %v7411_v38 = vmul.f32 0.35355338, %v9463_v12  ;;  %v7401_v51 = vpop.f32.mrb[65].mxu0 }
0x49ec   :  { %v7410_v46 = vmul.f32 0.35355338, %v7401_v51 }
0x49ed   :  { %v7413_v36 = vadd.f32 %v11988_v50, %v7411_v38 }
0x49ee   :  { %v7412_v14 = vadd.f32 %v11994_v9, %v7410_v46 }
0x49ef   :  { %v7417_v52 = vsel %vm387_vm7, %v7413_v36, -inf }
0x49f0   :  { %7418 = vmax.xlane.f32.xlu0 %v7417_v52  ;;  %v7414_v16 = vsel %vm387_vm7, %v7412_v14, -inf  ;;  %v8481_v52 = vld [vmem:[%s12207_s9 + $0xb0] sm:$0xff] }
0x49f1   :  { %7415 = vmax.xlane.f32.xlu1 %v7414_v16 }
0x4a02   :  { %10214 = vrot.lane.b32.xlu1 %v11944_v1, %s12263_s21 }
0x4a06   :  { %7523 = vrot.lane.b32.xlu1 %v11971_v30, %s12254_s2 }
0x4a0a   :  { %7525 = vrot.lane.b32.xlu1 %v11969_v24, %s12254_s2 }
0x4a7d   :  { %v7419_v17 = vpop.xlane.xlu0 %7418 }
0x4a7e   :  { %v7421_v18 = vsub.f32 %v7413_v36, %v7419_v17  ;;  %v7416_v6 = vpop.xlane.xlu1 %7415  ;;  %v8482_v17 = vld [vmem:[%s12207_s9 + $0xb8] sm:$0xff] }
0x4a7f   :  { %v7420_v37 = vsub.f32 %v7412_v14, %v7416_v6  ;;  %v8479_v14 = vld [vmem:[%s12207_s9 + $0xa0] sm:$0xff] }
0x4a80   :  { %v7424_v19 = vmul.f32 1.442695, %v7421_v18  ;;  %v9978_v18 = vpack.c.bf16 %v8482_v17, %v8481_v52 }
0x4a81   :  { %v7422_v4 = vmul.f32 1.442695, %v7420_v37 }
0x4a82   :  { %10484 = vpow2.f32 %v7424_v19  ;;  %v10215_v21 = vpop.permute.xlu1 %10214 }
0x4a83   :  { %v10217_v11 = vunpack.i.h.bf16 %v10215_v21  ;;  %v10216_v45 = vunpack.i.l.bf16 %v10215_v21  ;;  %10486 = vpow2.f32 %v7422_v4 }
0x4a85   :  { %v9960_v62 = vpack.c.bf16 %v10217_v11, %v10216_v45 }
0x4a86   :  { %v7524_v63 = vpop.permute.xlu1 %7523 }
0x4a87   :  { %9961 = vmatprep.subr.bf16.mxu1 %v9960_v62 }
0x4a88   :  { %9963 = vmatpush3.bf16.msra.mxu1 %v9960_v62 }
0x4a8a   :  { %v7526_v10 = vpop.permute.xlu1 %7525 }
0x4a8c   :  { %v10485_v13 = vpop.eup %10484 }
0x4a8d   :  { %v7429_v30 = vsel %vm387_vm7, %v10485_v13, 0.0  ;;  %v10487_v5 = vpop.eup %10486 }
0x4a8e   :  { %7430 = vadd.xlane.f32.xlu0 %v7429_v30  ;;  %v7426_v24 = vsel %vm387_vm7, %v10487_v5, 0.0 }
0x4a92   :  { %7427 = vadd.xlane.f32.xlu0 %v7426_v24 }
0x4aa8   :  { %10219 = vrot.lane.b32.xlu0 %v11944_v1, %s12254_s2 }
0x4b1b   :  { %v7431_v23 = vpop.xlane.xlu0 %7430 }
0x4b1c   :  { %10488 = vrcp.f32 %v7431_v23 }
0x4b1f   :  { %v7428_v27 = vpop.xlane.xlu0 %7427 }
0x4b20   :  { %10490 = vrcp.f32 %v7428_v27 }
0x4b23   :  { %v10220_v26 = vpop.permute.xlu0 %10219 }
0x4b24   :  { %v10222_v43 = vunpack.i.h.bf16 %v10220_v26  ;;  %v10221_v53 = vunpack.i.l.bf16 %v10220_v26 }
0x4b26   :  { %v9964_v3 = vpack.c.bf16 %v10222_v43, %v10221_v53  ;;  %v10489_v20 = vpop.eup %10488 }
0x4b27   :  { %v7435_v28 = vmul.f32 %v10489_v20, %v10485_v13 }
0x4b28   :  { %9966 = vmatprep.subr.msk.bf16.mxu1 %vm10712_vm6, %v9964_v3 }
0x4b2a   :  { %v10491_v15 = vpop.eup %10490 }
0x4b2b   :  { %v7434_v55 = vmul.f32 %v10491_v15, %v10487_v5 }
0x4b2d   :  { %9468 = vmatprep.mubr.msk.f32.mxu1 %vm387_vm7, %v7434_v55 }
0x4b2e   :  { %9469 = vmatmul.mubr.msk.f32.vlgmr.msra.gmra.mrb[70].mxu1 %vm387_vm7, %v7435_v28 }
0x4b2f   :  { %9969 = vmatpush3.bf16.xpose.msk.msra.mxu1 %vm10712_vm6, %v9964_v3  ;;  %9475 = vmatprep.mubr.msk.f32.mxu1 %vm295_vm5, %v7524_v63 }
0x4b36   :  { %9476 = vmatmul.mubr.msk.f32.vlgmr.msra.gmra.mrb[72].mxu1 %vm295_vm5, %v7526_v10 }
0x4c01   :  { %v9470_v29 = vpop.f32.mrb[70].mxu1 }
0x4c02   :  { %v7514_v44 = vpop.f32.mrb[71].mxu1 }
0x4c09   :  { %v9477_v58 = vpop.f32.mrb[72].mxu1 }
0x4c0a   :  { %v7615_v31 = vmul.f32 0.35355338, %v9477_v58  ;;  %v7605_v59 = vpop.f32.mrb[73].mxu1 }
0x4c0b   :  { %v7614_v34 = vmul.f32 0.35355338, %v7605_v59 }
0x4c0c   :  { %v7617_v25 = vadd.f32 %v11988_v50, %v7615_v31 }
0x4c0d   :  { %v7616_v2 = vadd.f32 %v11994_v9, %v7614_v34  ;;  %v8488_v34 = vld [vmem:[%s12267_s5 + $0x60] sm:$0xff] }
0x4c0e   :  { %v7621_v57 = vsel %vm387_vm7, %v7617_v25, -inf }
0x4c0f   :  { %7622 = vmax.xlane.f32.xlu0 %v7621_v57  ;;  %v7618_v61 = vsel %vm387_vm7, %v7616_v2, -inf }
0x4c10   :  { %7619 = vmax.xlane.f32.xlu1 %v7618_v61  ;;  %v8491_v61 = vld [vmem:[%s12267_s5 + $0x78] sm:$0xff] }
0x4c21   :  { %10224 = vrot.lane.b32.xlu1 %v11944_v1, %s12255_s30 }
0x4c25   :  { %7731 = vrot.lane.b32.xlu1 %v12031_v32, %s12256_s20 }
0x4c29   :  { %7737 = vrot.lane.b32.xlu1 %v7514_v44, %s12257_s24 }
0x4c2d   :  { %7739 = vrot.lane.b32.xlu1 %v9470_v29, %s12257_s24 }
0x4c9c   :  { %v7623_v41 = vpop.xlane.xlu0 %7622 }
0x4c9d   :  { %v7625_v50 = vsub.f32 %v7617_v25, %v7623_v41  ;;  %v7620_v60 = vpop.xlane.xlu1 %7619  ;;  %v8489_v25 = vld [vmem:[%s12267_s5 + $0x68] sm:$0xff] }
0x4c9e   :  { %v7624_v9 = vsub.f32 %v7616_v2, %v7620_v60  ;;  %v8490_v2 = vld [vmem:[%s12267_s5 + $0x70] sm:$0xff]  ;;  %v9982_v57 = vpack.c.bf16 %v8489_v25, %v8488_v34  ;;  %v8496_v60 = vld [vmem:[%s12211_s13 + $0xc8] sm:$0xff] }
0x4c9f   :  { %v7628_v22 = vmul.f32 1.442695, %v7625_v50  ;;  %v9986_v41 = vpack.c.bf16 %v8491_v61, %v8490_v2  ;;  %v8495_v50 = vld [vmem:[%s12211_s13 + $0xc0] sm:$0xff] }
0x4ca0   :  { %v7626_v8 = vmul.f32 1.442695, %v7624_v9  ;;  %9983 = vmatprep.subr.bf16.mxu1 %v9982_v57  ;;  %v8497_v9 = vld [vmem:[%s12211_s13 + $0xd0] sm:$0xff] }
0x4ca1   :  { %v10225_v56 = vpop.permute.xlu1 %10224  ;;  %9985 = vmatpush3.bf16.msra.mxu1 %v9982_v57 }
0x4ca2   :  { %10492 = vpow2.f32 %v7626_v8  ;;  %v10227_v42 = vunpack.i.h.bf16 %v10225_v56  ;;  %v10226_v40 = vunpack.i.l.bf16 %v10225_v56  ;;  %9987 = vmatprep.subr.bf16.mxu1 %v9986_v41  ;;  %v8498_v8 = vld [vmem:[%s12211_s13 + $0xd8] sm:$0xff] }
0x4ca3   :  { %10494 = vpow2.f32 %v7628_v22  ;;  %v9990_v22 = vpack.c.bf16 %v8496_v60, %v8495_v50  ;;  %v9994_v56 = vpack.c.bf16 %v8498_v8, %v8497_v9 }
0x4ca4   :  { %v9970_v47 = vpack.c.bf16 %v10227_v42, %v10226_v40  ;;  %v8499_v42 = vld [vmem:[%s12211_s13 + $0xe0] sm:$0xff]  ;;  %v8500_v40 = vld [vmem:[%s12211_s13 + $0xe8] sm:$0xff] }
0x4ca5   :  { %v7732_v19 = vpop.permute.xlu1 %7731  ;;  %9989 = vmatpush3.bf16.msra.mxu1 %v9986_v41 }
0x4ca6   :  { %9971 = vmatprep.subr.bf16.mxu0 %v9970_v47  ;;  %v7752_v13 = vsel %vm295_vm5, %v12027_v39, %v7732_v19 }
0x4ca7   :  { %9973 = vmatpush3.bf16.msra.mxu0 %v9970_v47  ;;  %v9998_v47 = vpack.c.bf16 %v8500_v40, %v8499_v42 }
0x4ca9   :  { %v7738_v4 = vpop.permute.xlu1 %7737 }
0x4cac   :  { %v10493_v1 = vpop.eup %10492 }
0x4cad   :  { %v7630_v48 = vsel %vm387_vm7, %v10493_v1, 0.0  ;;  %v10495_v49 = vpop.eup %10494  ;;  %v7740_v11 = vpop.permute.xlu1 %7739 }
0x4cae   :  { %7631 = vadd.xlane.f32.xlu0 %v7630_v48  ;;  %v7633_v0 = vsel %vm387_vm7, %v10495_v49, 0.0  ;;  %v7754_v24 = vsel %vm387_vm7, %v7752_v13, %v7740_v11 }
0x4cb2   :  { %7634 = vadd.xlane.f32.xlu0 %v7633_v0 }
0x4cc8   :  { %7729 = vrot.lane.b32.xlu0 %v12033_v7, %s12256_s20  ;;  %v8480_v7 = vld [vmem:[%s12207_s9 + $0xa8] sm:$0xff] }
0x4cc9   :  { %v9974_v16 = vpack.c.bf16 %v8480_v7, %v8479_v14 }
0x4ccb   :  { %9975 = vmatprep.subr.bf16.mxu0 %v9974_v16 }
0x4d3b   :  { %v7632_v32 = vpop.xlane.xlu0 %7631 }
0x4d3c   :  { %10496 = vrcp.f32 %v7632_v32 }
0x4d3f   :  { %v7635_v12 = vpop.xlane.xlu0 %7634 }
0x4d40   :  { %10498 = vrcp.f32 %v7635_v12 }
0x4d43   :  { %v7730_v21 = vpop.permute.xlu0 %7729 }
0x4d44   :  { %v7751_v45 = vsel %vm295_vm5, %v12029_v35, %v7730_v21  ;;  %v8483_v35 = vld [vmem:[%s12265_s0 + $0x5] ss:$0 sm:$0xff] }
0x4d45   :  { %v7753_v30 = vsel %vm387_vm7, %v7751_v45, %v7738_v4  ;;  %v8487_v4 = vld [vmem:[%s12214_s16 + $0xa] ss:$0 sm:$0xff] }
0x4d46   :  { %v10497_v38 = vpop.eup %10496 }
0x4d47   :  { %v7638_v51 = vmul.f32 %v10497_v38, %v10493_v1 }
0x4d49   :  { %9482 = vmatprep.mubr.msk.f32.mxu0 %vm387_vm7, %v7638_v51 }
0x4d4a   :  { %v10499_v46 = vpop.eup %10498 }
0x4d4b   :  { %v7639_v36 = vmul.f32 %v10499_v46, %v10495_v49 }
0x4d4d   :  { %9483 = vmatmul.mubr.msk.f32.vlgmr.msra.gmra.mrb[66].mxu0 %vm387_vm7, %v7639_v36 }
0x4d4e   :  { %9977 = vmatpush3.bf16.msra.mxu0 %v9974_v16 }
0x4d4f   :  { %9979 = vmatprep.subr.bf16.mxu0 %v9978_v18 }
0x4d52   :  { %9981 = vmatpush3.bf16.msra.mxu0 %v9978_v18 }
0x4d53   :  { %9991 = vmatprep.subr.bf16.mxu0 %v9990_v22 }
0x4e20   :  { %v9484_v6 = vpop.f32.mrb[66].mxu0 }
0x4e21   :  { %7747 = vrot.lane.b32.xlu1 %v9484_v6, %s12258_s25  ;;  %v7718_v37 = vpop.f32.mrb[67].mxu0 }
0x4e22   :  { %7745 = vrot.lane.b32.xlu0 %v7718_v37, %s12258_s25  ;;  %v8486_v37 = vld [vmem:[%s12213_s15 + $0xa] ss:$0 sm:$0xff] }
0x4e93   :  { %v7748_v62 = vpop.permute.xlu1 %7747 }
0x4e94   :  { %v7746_v5 = vpop.permute.xlu0 %7745  ;;  %v7756_v27 = vsel %vm1137_vm8, %v7754_v24, %v7748_v62  ;;  %v8502_v24 = vld [vmem:[%s12211_s13 + $0xf8] sm:$0xff] }
0x4e95   :  { %v7755_v23 = vsel %vm1137_vm8, %v7753_v30, %v7746_v5  ;;  %v8501_v5 = vld [vmem:[%s12211_s13 + $0xf0] sm:$0xff] }
0x4e96   :  { %9493 = vmatprep.mubr.msk.f32.mxu0 %vm65_vm0, %v7755_v23  ;;  %v10002_v23 = vpack.c.bf16 %v8502_v24, %v8501_v5 }
0x4e97   :  { %9494 = vmatmul.mubr.msk.f32.vlgmr.msra.gmra.mrb[68].mxu0 %vm65_vm0, %v7756_v27  ;;  %v8492_v27 = vld [vmem:[%s12210_s12 + $0x3] ss:$0 sm:$0xff] }
0x4e98   :  { %9993 = vmatpush3.bf16.msra.mxu0 %v9990_v22 }
0x4e99   :  { %9995 = vmatprep.subr.bf16.mxu0 %v9994_v56 }
0x4e9c   :  { %9997 = vmatpush3.bf16.msra.mxu0 %v9994_v56 }
0x4e9d   :  { %9999 = vmatprep.subr.bf16.mxu0 %v9998_v47 }
0x4ea0   :  { %10001 = vmatpush3.bf16.msra.mxu0 %v9998_v47 }
0x4ea1   :  { %10003 = vmatprep.subr.bf16.mxu0 %v10002_v23 }
0x4ea4   :  { %10005 = vmatpush3.bf16.msra.mxu0 %v10002_v23 }
0x4f6a   :  { %v9495_v26 = vpop.f32.mrb[68].mxu0 }
0x4f6b   :  { %v7845_v43 = vadd.f32 %v9495_v26, %v8483_v35  ;;  %v7839_v39 = vpop.f32.mrb[69].mxu0 }
0x4f6c   :  { %v7840_v53 = vadd.f32 %v8483_v35, %v7839_v39 }
0x4f6d   :  { %v12101_v3 = vadd.f32 %v7845_v43, %v11932_v54 }
0x4f6e   :  { %v12104_v20 = vadd.f32 %v7840_v53, %v11935_v33 }
0x4f6f   :  { %v7853_v15 = vsel %vm65_vm0, %v12101_v3, 0.0 }
0x4f70   :  { %7854 = vadd.xlane.f32.xlu1 %v7853_v15  ;;  %v7850_v55 = vsel %vm65_vm0, %v12104_v20, 0.0 }
0x4f71   :  { %7851 = vadd.xlane.f32.xlu0 %v7850_v55  ;;  %v8503_v55 = vld [vmem:[%s12212_s14 + $0x3] ss:$0 sm:$0xff] }
0x4ffd   :  { %v7855_v28 = vpop.xlane.xlu1 %7854 }
0x4ffe   :  { %v7857_v63 = vmul.f32 0.03125, %v7855_v28  ;;  %v7852_v10 = vpop.xlane.xlu0 %7851 }
0x4fff   :  { %v7856_v29 = vmul.f32 0.03125, %v7852_v10 }
0x5000   :  { %v12111_v44 = vsub.f32 %v12101_v3, %v7857_v63 }
0x5001   :  { %v7858_v54 = vsub.f32 %v12104_v20, %v7856_v29 }
0x5002   :  { %v7861_v31 = vmul.f32 %v12111_v44, %v12111_v44 }
0x5003   :  { %v7860_v58 = vmul.f32 %v7858_v54, %v7858_v54 }
0x5004   :  { %v7865_v59 = vsel %vm65_vm0, %v7861_v31, 0.0 }
0x5005   :  { %v7862_v33 = vsel %vm65_vm0, %v7860_v58, 0.0 }
0x5006   :  { %7863 = vadd.xlane.f32.xlu0 %v7862_v33 }
0x500a   :  { %7866 = vadd.xlane.f32.xlu0 %v7865_v59 }
0x5093   :  { %v7864_v1 = vpop.xlane.xlu0 %7863 }
0x5094   :  { %v7868_v48 = vmul.f32 0.032258064, %v7864_v1 }
0x5096   :  { %10500 = vrsqrt.f32 %v7868_v48  ;;  %vm7872_vm5 = vcmp.eq.f32.partialorder %v7868_v48, inf  ;;  %v7875_v38 = vand.u32 2147483648, %v7868_v48  ;;  %vm7874_vm6 = vcmp.eq.f32.partialorder %v7868_v48, 0.0 }
0x5097   :  { %v7867_v49 = vpop.xlane.xlu0 %7866 }
0x5098   :  { %v7869_v0 = vmul.f32 0.032258064, %v7867_v49 }
0x509a   :  { %10502 = vrsqrt.f32 %v7869_v0  ;;  %vm7879_vm7 = vcmp.eq.f32.partialorder %v7869_v0, inf  ;;  %v7882_v52 = vand.u32 2147483648, %v7869_v0  ;;  %vm7881_vm8 = vcmp.eq.f32.partialorder %v7869_v0, 0.0 }
0x50a0   :  { %v10501_v32 = vpop.eup %10500 }
0x50a1   :  { %v7871_v12 = vmul.f32 %v10501_v32, %v7868_v48 }
0x50a3   :  { %v7873_v51 = vsel %vm7872_vm5, %v7868_v48, %v7871_v12 }
0x50a4   :  { %v10503_v46 = vpop.eup %10502  ;;  %v7876_v36 = vsel %vm7874_vm6, %v7875_v38, %v7873_v51 }
0x50a5   :  { %v7884_v14 = vadd.f32 1e-06, %v7876_v36  ;;  %v7878_v7 = vmul.f32 %v10503_v46, %v7869_v0  ;;  %v8506_v46 = vld [vmem:[%s12213_s15 + $0xb] ss:$0 sm:$0xff] }
0x50a7   :  { %10504 = vrcp.f32 %v7884_v14  ;;  %v7880_v16 = vsel %vm7879_vm7, %v7869_v0, %v7878_v7 }
0x50a8   :  { %v7883_v17 = vsel %vm7881_vm8, %v7882_v52, %v7880_v16  ;;  %v8507_v52 = vld [vmem:[%s12214_s16 + $0xb] ss:$0 sm:$0xff] }
0x50a9   :  { %v7885_v18 = vadd.f32 1e-06, %v7883_v17 }
0x50ab   :  { %10506 = vrcp.f32 %v7885_v18 }
0x50b1   :  { %v10505_v6 = vpop.eup %10504 }
0x50b2   :  { %v7888_v19 = vmul.f32 %v10505_v6, %v7858_v54 }
0x50b4   :  { %v7895_v21 = vmul.f32 %v8486_v37, %v7888_v19 }
0x50b5   :  { %v10507_v11 = vpop.eup %10506 }
0x50b6   :  { %v7889_v45 = vmul.f32 %v10507_v11, %v12111_v44  ;;  %v7902_v62 = vadd.f32 %v8487_v4, %v7895_v21 }
0x50b8   :  { %v7896_v13 = vmul.f32 %v8486_v37, %v7889_v45  ;;  %9504 = vmatprep.mubr.msk.f32.mxu1 %vm65_vm0, %v7902_v62 }
0x50ba   :  { %v7903_v30 = vadd.f32 %v8487_v4, %v7896_v13 }
0x50bc   :  { %9505 = vmatmul.mubr.msk.f32.vlgmr.msra.gmra.mrb[74].mxu1 %vm65_vm0, %v7903_v30 }
0x518f   :  { %v9506_v35 = vpop.f32.mrb[74].mxu1 }
0x5190   :  { %v7992_v26 = vadd.f32 %v9506_v35, %v8492_v27  ;;  %v7986_v43 = vpop.f32.mrb[75].mxu1 }
0x5191   :  { %v7987_v39 = vadd.f32 %v8492_v27, %v7986_v43 }
0x5192   :  { %v7996_v15 = vmax.f32 %v7992_v26, 0.0 }
0x5193   :  { %v7995_v53 = vmax.f32 %v7987_v39, 0.0 }
0x5195   :  { %9523 = vmatprep.mubr.msk.f32.mxu0 %vm1391_vm13, %v7995_v53 }
0x5196   :  { %9524 = vmatmul.mubr.msk.f32.vlgmr.msra.gmra.mrb[70].mxu0 %vm1391_vm13, %v7996_v15 }
0x5269   :  { %v9525_v28 = vpop.f32.mrb[70].mxu0 }
0x526a   :  { %v8089_v63 = vadd.f32 %v9525_v28, %v8503_v55  ;;  %v8083_v10 = vpop.f32.mrb[71].mxu0 }
0x526b   :  { %v8084_v29 = vadd.f32 %v8503_v55, %v8083_v10 }
0x526c   :  { %v8093_v44 = vadd.f32 %v8089_v63, %v12101_v3 }
0x526d   :  { %v8092_v54 = vadd.f32 %v8084_v29, %v12104_v20 }
0x526e   :  { %v8097_v58 = vsel %vm65_vm0, %v8093_v44, 0.0 }
0x526f   :  { %8098 = vadd.xlane.f32.xlu1 %v8097_v58  ;;  %v8094_v33 = vsel %vm65_vm0, %v8092_v54, 0.0 }
0x5270   :  { %8095 = vadd.xlane.f32.xlu0 %v8094_v33 }
0x52fc   :  { %v8099_v31 = vpop.xlane.xlu1 %8098 }
0x52fd   :  { %v8101_v59 = vmul.f32 0.03125, %v8099_v31  ;;  %v8096_v34 = vpop.xlane.xlu0 %8095 }
0x52fe   :  { %v8100_v25 = vmul.f32 0.03125, %v8096_v34 }
0x52ff   :  { %v8103_v2 = vsub.f32 %v8093_v44, %v8101_v59 }
0x5300   :  { %v8102_v57 = vsub.f32 %v8092_v54, %v8100_v25 }
0x5301   :  { %v8105_v61 = vmul.f32 %v8103_v2, %v8103_v2 }
0x5302   :  { %v8104_v41 = vmul.f32 %v8102_v57, %v8102_v57 }
0x5303   :  { %v8109_v50 = vsel %vm65_vm0, %v8105_v61, 0.0 }
0x5304   :  { %8110 = vadd.xlane.f32.xlu1 %v8109_v50  ;;  %v8106_v3 = vsel %vm65_vm0, %v8104_v41, 0.0 }
0x5305   :  { %8107 = vadd.xlane.f32.xlu0 %v8106_v3 }
0x5391   :  { %v8111_v20 = vpop.xlane.xlu1 %8110 }
0x5392   :  { %v8113_v60 = vmul.f32 0.032258064, %v8111_v20  ;;  %v8108_v9 = vpop.xlane.xlu0 %8107 }
0x5393   :  { %v8112_v22 = vmul.f32 0.032258064, %v8108_v9 }
0x5394   :  { %10508 = vrsqrt.f32 %v8113_v60  ;;  %vm8123_vm13 = vcmp.eq.f32.partialorder %v8113_v60, inf  ;;  %v8126_v40 = vand.u32 2147483648, %v8113_v60  ;;  %vm8125_vm1 = vcmp.eq.f32.partialorder %v8113_v60, 0.0 }
0x5395   :  { %10510 = vrsqrt.f32 %v8112_v22  ;;  %vm8116_vm2 = vcmp.eq.f32.partialorder %v8112_v22, inf  ;;  %v8119_v48 = vand.u32 2147483648, %v8112_v22  ;;  %vm8118_vm3 = vcmp.eq.f32.partialorder %v8112_v22, 0.0 }
0x539e   :  { %v10509_v8 = vpop.eup %10508 }
0x539f   :  { %v10511_v56 = vpop.eup %10510  ;;  %v8122_v42 = vmul.f32 %v10509_v8, %v8113_v60 }
0x53a0   :  { %v8115_v47 = vmul.f32 %v10511_v56, %v8112_v22 }
0x53a1   :  { %v8124_v1 = vsel %vm8123_vm13, %v8113_v60, %v8122_v42 }
0x53a2   :  { %v8127_v49 = vsel %vm8125_vm1, %v8126_v40, %v8124_v1  ;;  %v8117_v0 = vsel %vm8116_vm2, %v8112_v22, %v8115_v47 }
0x53a3   :  { %v8129_v32 = vadd.f32 1e-06, %v8127_v49  ;;  %v8120_v12 = vsel %vm8118_vm3, %v8119_v48, %v8117_v0 }
0x53a4   :  { %v8128_v38 = vadd.f32 1e-06, %v8120_v12 }
0x53a5   :  { %10512 = vrcp.f32 %v8129_v32 }
0x53a6   :  { %10514 = vrcp.f32 %v8128_v38 }
0x53af   :  { %v10513_v51 = vpop.eup %10512 }
0x53b0   :  { %v10515_v36 = vpop.eup %10514  ;;  %v8133_v14 = vmul.f32 %v10513_v51, %v8103_v2 }
0x53b1   :  { %v8132_v7 = vmul.f32 %v10515_v36, %v8102_v57 }
0x53b2   :  { %v8140_v16 = vmul.f32 %v8506_v46, %v8133_v14 }
0x53b3   :  { %v8139_v17 = vmul.f32 %v8506_v46, %v8132_v7 }
0x53b4   :  { %v8147_v18 = vadd.f32 %v8507_v52, %v8140_v16 }
0x53b5   :  { %v8146_v6 = vadd.f32 %v8507_v52, %v8139_v17 }
0x53b6   :  { %8149 = vst.msk [vmem:[#allocation2 + $0x8] sm:$0xff] %vm65_vm0, %v8147_v18 }
0x53b7   :  { %8148 = vst.msk [vmem:[#allocation2] sm:$0xff] %vm65_vm0, %v8146_v6 }
0x53b8   :  { %10533 = shalt.err (!%p10530_p4)
}
0x53b9   :  { %s12268_s23 = sld [smem:[#allocation10_spill]] }
0x53bf   :  { %s10534_s1 = scalar_lea.hbm %s12268_s23, 256 }
0x53c0   :  { %p10535_p5 = scmp.ne.s32.totalorder %s12268_s23, %s10534_s1  ;;  %p10538_p6 = scmp.lt.u32.totalorder %s10534_s1, %s12268_s23 }
0x53c2   :  { %p10540_p7 = pnand %p10538_p6, %p10535_p5 }
0x53c4   :  { %10543 = shalt.err (!%p10540_p7)
}
0x53c5   :  { %s10557_s18 = smov 128  }
0x53c6   :  { %8161 = dma.vmem_to_hbm [thread:$0]  %s8156_s6, 256, %s12268_s23, [#allocation3], %s10557_s18, %s10557_s18, %s12256_s20  }
0x53c7   :  { %10544 = dma.done.wait [#allocation3], 256  }
0x53c8   :  { %10545 = vsyncadd [#allocation3], 4294967040 }
0x53c9   :  { %8165 = vsyncpa [#allocation3], 1 }

</bundles_post_ra>
